<compile_context>
chip_gen: v7x
topology: tpu7x:2x2x1
jax: 0.10.0
libtpu: 0.0.40
codegen_flags: <defaults>
</compile_context>

<pallas_src>
import functools
import math

import jax
import jax.numpy as jnp
from jax.experimental import pallas as pl
from jax.experimental.pallas import tpu as pltpu


# ---------------------------------------------------------------------------
# Shapes fixed by the module (fc1.in_features = 59536 = 16 * 61 * 61).
# ---------------------------------------------------------------------------
IMG_HW = 256
FC1_IN = 16 * 61 * 61            # 59536
FC1_TK = 4992                    # K tile for fc1 (multiple of 128)
FC1_KGROUPS = 2                  # parallel K groups for fc1 (v7x 2 TCs)
FC1_IN_PAD = FC1_TK * FC1_KGROUPS * 6   # 59904 (>= FC1_IN)
CONV_TM = 3584                   # lane-dim tile for the conv matmuls


def _sigmoid(z):
    # 1 / (1 + exp(-z)) with the divide on the EUP (approx reciprocal).
    return pl.reciprocal(1.0 + jnp.exp(-z), approx=True)


# ---------------------------------------------------------------------------
# Generic K-tiled linear kernel:  out = relu?(x @ w + b)       (small M)
# ---------------------------------------------------------------------------
def linear_kernel(x_ref, w_ref, b_ref, o_ref, acc_ref, *, apply_relu):
    k = pl.program_id(0)

    @pl.when(k == 0)
    def _():
        acc_ref[...] = jnp.zeros_like(acc_ref)

    acc_ref[...] += jnp.dot(x_ref[...], w_ref[...],
                            preferred_element_type=jnp.float32)

    @pl.when(k == pl.num_programs(0) - 1)
    def _():
        r = acc_ref[...] + b_ref[...]
        if apply_relu:
            r = jnp.maximum(r, 0.0)
        o_ref[...] = r.astype(o_ref.dtype)


def pallas_linear(x, w, b, *, apply_relu=False, tk=None,
                  out_dtype=jnp.float32):
    """x: (M, K), w: (K_pad, N) [K_pad >= K, pre-padded], b: (N,)."""
    M, K = x.shape
    Kw, N = w.shape
    if Kw != K:                       # weight pre-padded along K at init
        x = jnp.pad(x, ((0, 0), (0, Kw - K)))
        K = Kw
    if tk is None or tk >= K:
        tk = K                        # single K block (no padded activation)
    assert K % tk == 0
    nk = K // tk
    b2 = b.reshape(1, N).astype(jnp.float32)

    return pl.pallas_call(
        functools.partial(linear_kernel, apply_relu=apply_relu),
        out_shape=jax.ShapeDtypeStruct((M, N), out_dtype),
        grid_spec=pltpu.PrefetchScalarGridSpec(
            num_scalar_prefetch=0,
            grid=(nk,),
            in_specs=[
                pl.BlockSpec((M, tk), lambda k: (0, k)),
                pl.BlockSpec((tk, N), lambda k: (k, 0)),
                pl.BlockSpec((1, N), lambda k: (0, 0)),
            ],
            out_specs=pl.BlockSpec((M, N), lambda k: (0, 0)),
            scratch_shapes=[pltpu.VMEM((M, N), jnp.float32)],
        ),
        compiler_params=pltpu.CompilerParams(
            dimension_semantics=("arbitrary",)),
    )(x, w, b2)


# ---------------------------------------------------------------------------
# Split-K linear (used for fc1): parallel K groups -> partial sums, then a
# tiny XLA epilogue (sum + bias + relu).  Gives v7x a parallel axis.
# ---------------------------------------------------------------------------
def linear_partial_kernel(x_ref, w_ref, o_ref, acc_ref):
    k = pl.program_id(1)

    @pl.when(k == 0)
    def _():
        acc_ref[...] = jnp.zeros_like(acc_ref)

    acc_ref[...] += jnp.dot(x_ref[...], w_ref[...],
                            preferred_element_type=jnp.float32)

    @pl.when(k == pl.num_programs(1) - 1)
    def _():
        o_ref[...] = acc_ref[...]


def pallas_linear_splitk(x, w, b, *, apply_relu=False, tk=FC1_TK,
                         k_groups=FC1_KGROUPS):
    M, K = x.shape
    Kw, N = w.shape
    if Kw != K:                       # weight pre-padded along K at init
        x = jnp.pad(x, ((0, 0), (0, Kw - K)))
        K = Kw
    assert K % (tk * k_groups) == 0
    nkg = K // (tk * k_groups)        # K steps per parallel group

    partial = pl.pallas_call(
        linear_partial_kernel,
        out_shape=jax.ShapeDtypeStruct((k_groups, M, N), jnp.float32),
        grid_spec=pltpu.PrefetchScalarGridSpec(
            num_scalar_prefetch=0,
            grid=(k_groups, nkg),
            in_specs=[
                pl.BlockSpec((M, tk), lambda g, k: (0, g * nkg + k)),
                pl.BlockSpec((tk, N), lambda g, k: (g * nkg + k, 0)),
            ],
            out_specs=pl.BlockSpec((None, M, N), lambda g, k: (g, 0, 0)),
            scratch_shapes=[pltpu.VMEM((M, N), jnp.float32)],
        ),
        compiler_params=pltpu.CompilerParams(
            dimension_semantics=("parallel", "arbitrary")),
    )(x, w)

    r = partial.sum(axis=0) + b.astype(jnp.float32)[None, :]
    if apply_relu:
        r = jnp.maximum(r, 0.0)
    return r


# ---------------------------------------------------------------------------
# Transposed conv matmul:  out(C, M) = relu(W(C, K) @ patches(K, M) + b).
# Single K block, lane-dense M tiling, parallel M grid.
# ---------------------------------------------------------------------------
def conv_kernel(w_ref, x_ref, b_ref, o_ref):
    r = jnp.dot(w_ref[...], x_ref[...], preferred_element_type=jnp.float32)
    r = jnp.maximum(r + b_ref[...], 0.0)
    o_ref[...] = r.astype(o_ref.dtype)


def conv_matmul_T(w_t, x_t, b_col, *, tm=CONV_TM, out_dtype=jnp.bfloat16):
    """w_t: (C, K) bf16, x_t: (K, M) bf16, b_col: (C, 1) f32 -> (C, M)."""
    C, K = w_t.shape
    Kx, M = x_t.shape
    assert K == Kx
    nm = pl.cdiv(M, tm)               # boundary block is masked by Pallas

    return pl.pallas_call(
        conv_kernel,
        out_shape=jax.ShapeDtypeStruct((C, M), out_dtype),
        grid_spec=pltpu.PrefetchScalarGridSpec(
            num_scalar_prefetch=0,
            grid=(nm,),
            in_specs=[
                pl.BlockSpec((C, K), lambda i: (0, 0)),
                pl.BlockSpec((K, tm), lambda i: (0, i)),
                pl.BlockSpec((C, 1), lambda i: (0, 0)),
            ],
            out_specs=pl.BlockSpec((C, tm), lambda i: (0, i)),
        ),
        compiler_params=pltpu.CompilerParams(
            dimension_semantics=("parallel",)),
    )(w_t, x_t, b_col)


# ---------------------------------------------------------------------------
# LSTM recurrence.  Input projection (x @ W_ih^T + b) is precomputed outside;
# the kernel does one lane-dense (B,H)@(H,4H) matmul per step.
# Gate order is PyTorch's [i, f, g, o]; h_0 = c_0 = 0.
# ---------------------------------------------------------------------------
def lstm_kernel(xp_ref, whh_ref, o_ref):
    T, B, _ = xp_ref.shape
    H = o_ref.shape[1]
    h = jnp.zeros((B, H), jnp.float32)
    c = jnp.zeros((B, H), jnp.float32)

    for t in range(T):                # T small & static -> fully unrolled
        g = xp_ref[t] + jnp.dot(h, whh_ref[...],
                                preferred_element_type=jnp.float32)
        i_g = _sigmoid(g[:, 0 * H:1 * H])
        f_g = _sigmoid(g[:, 1 * H:2 * H])
        g_g = jnp.tanh(g[:, 2 * H:3 * H])
        o_g = _sigmoid(g[:, 3 * H:4 * H])
        c = f_g * c + i_g * g_g
        h = o_g * jnp.tanh(c)

    o_ref[...] = h.astype(o_ref.dtype)


def lstm_last_hidden(xp, w_hh_t):
    """xp: (T, B, 4H) time-major pre-projected input, w_hh_t: (H, 4H)."""
    T, B, G = xp.shape
    H = w_hh_t.shape[0]
    return pl.pallas_call(
        lstm_kernel,
        out_shape=jax.ShapeDtypeStruct((B, H), jnp.float32),
        grid_spec=pltpu.PrefetchScalarGridSpec(
            num_scalar_prefetch=0,
            grid=(1,),
            in_specs=[
                pl.BlockSpec((T, B, G), lambda i: (0, 0, 0)),
                pl.BlockSpec((H, G), lambda i: (0, 0)),
            ],
            out_specs=pl.BlockSpec((B, H), lambda i: (0, 0)),
        ),
    )(xp, w_hh_t)


# ---------------------------------------------------------------------------
# XLA glue: channels-first im2col (transposed, K-major) and 2x2 max-pool.
# ---------------------------------------------------------------------------
def im2col_T(x, kh, kw):
    """x: (C, B, H, W) -> (kh*kw*C, B*Ho*Wo); K ordered (kh, kw, c)."""
    C, B, H, W = x.shape
    Ho, Wo = H - kh + 1, W - kw + 1
    cols = [x[:, :, i:i + Ho, j:j + Wo] for i in range(kh) for j in range(kw)]
    p = jnp.stack(cols, axis=0)                      # (kh*kw, C, B, Ho, Wo)
    return p.reshape(kh * kw * C, B * Ho * Wo)


def maxpool2_cf(x):
    """x: (C, B, H, W) -> (C, B, H//2, W//2)."""
    C, B, H, W = x.shape
    return x.reshape(C, B, H // 2, 2, W // 2, 2).max(axis=(3, 5))


# ---------------------------------------------------------------------------
# Parameters: sampled with torch-style shapes / uniform bounds, then
# pre-transposed / pre-padded / pre-cast once (no per-forward weight prep).
# ---------------------------------------------------------------------------
def _uniform(key, shape, bound):
    return jax.random.uniform(key, shape, jnp.float32, -bound, bound)


def init_params(key, text_input_size, hidden_size, num_classes):
    ks = jax.random.split(key, 18)
    H = hidden_size
    p = {}

    # LSTM (torch gate order [i, f, g, o]).
    b = 1.0 / math.sqrt(H)
    w_ih = _uniform(ks[0], (4 * H, text_input_size), b)
    w_hh = _uniform(ks[1], (4 * H, H), b)
    b_ih = _uniform(ks[2], (4 * H,), b)
    b_hh = _uniform(ks[3], (4 * H,), b)
    p['lstm_w_ih_t'] = w_ih.T                              # (D, 4H)
    p['lstm_w_hh_t'] = w_hh.T                              # (H, 4H)
    p['lstm_b'] = b_ih + b_hh                              # (4H,)
    p['text_fc_w_t'] = _uniform(ks[4], (num_classes, H), b).T
    p['text_fc_b'] = _uniform(ks[5], (num_classes,), b)

    # conv1: (6,1,5,5) -> (6, 25) bf16, K ordered (kh, kw, c_in).
    b = 1.0 / math.sqrt(1 * 5 * 5)
    conv1_w = _uniform(ks[6], (6, 1, 5, 5), b)
    p['conv1_w_t'] = conv1_w.reshape(6, 25).astype(jnp.bfloat16)
    p['conv1_b_c'] = _uniform(ks[7], (6,), b).reshape(6, 1)

    # conv2: (16,6,5,5) -> (16, 150) bf16, K ordered (kh, kw, c_in).
    b = 1.0 / math.sqrt(6 * 5 * 5)
    conv2_w = _uniform(ks[8], (16, 6, 5, 5), b)
    p['conv2_w_t'] = jnp.transpose(conv2_w, (0, 2, 3, 1)).reshape(
        16, 150).astype(jnp.bfloat16)
    p['conv2_b_c'] = _uniform(ks[9], (16,), b).reshape(16, 1)

    # fc1: (120, 59536) -> transposed, K-padded to 59904, bf16.
    b = 1.0 / math.sqrt(FC1_IN)
    fc1_w = _uniform(ks[10], (120, FC1_IN), b)
    p['fc1_w_t'] = jnp.pad(fc1_w.T, ((0, FC1_IN_PAD - FC1_IN), (0, 0))
                           ).astype(jnp.bfloat16)          # (59904, 120)
    p['fc1_b'] = _uniform(ks[11], (120,), b)

    b = 1.0 / math.sqrt(120)
    p['fc2_w_t'] = _uniform(ks[12], (84, 120), b).T         # (120, 84)
    p['fc2_b'] = _uniform(ks[13], (84,), b)
    b = 1.0 / math.sqrt(84)
    p['img_fc_w_t'] = _uniform(ks[14], (num_classes, 84), b).T
    p['img_fc_b'] = _uniform(ks[15], (num_classes,), b)
    b = 1.0 / math.sqrt(2 * num_classes)
    p['final_fc_w_t'] = _uniform(ks[16], (num_classes, 2 * num_classes), b).T
    p['final_fc_b'] = _uniform(ks[17], (num_classes,), b)
    return p


# ---------------------------------------------------------------------------
# Full forward pass.
# ---------------------------------------------------------------------------
def multimodal_forward(params, text_x, image_x):
    B, T, D = text_x.shape
    H = params['lstm_w_hh_t'].shape[0]

    # ---- Text branch: hoisted LSTM input projection -> recurrence -> fc ----
    xp = pallas_linear(text_x.reshape(B * T, D).astype(jnp.float32),
                       params['lstm_w_ih_t'], params['lstm_b'])
    xp = jnp.transpose(xp.reshape(B, T, 4 * H), (1, 0, 2))   # (T, B, 4H)
    h_last = lstm_last_hidden(xp, params['lstm_w_hh_t'])
    text_out = pallas_linear(h_last, params['text_fc_w_t'],
                             params['text_fc_b'])

    # ---- Image branch (channels-first, transposed conv matmuls, bf16) ----
    img_cf = jnp.transpose(image_x.astype(jnp.bfloat16),
                           (1, 0, 2, 3))                     # (1, B, 256, 256)

    p1 = im2col_T(img_cf, 5, 5)                              # (25, B*252*252)
    y1 = conv_matmul_T(params['conv1_w_t'], p1, params['conv1_b_c'])
    y1 = maxpool2_cf(y1.reshape(6, B, 252, 252))             # (6, B, 126, 126)

    p2 = im2col_T(y1, 5, 5)                                  # (150, B*122*122)
    y2 = conv_matmul_T(params['conv2_w_t'], p2, params['conv2_b_c'])
    y2 = maxpool2_cf(y2.reshape(16, B, 122, 122))            # (16, B, 61, 61)

    # PyTorch NCHW flatten: channels are already major -> tiny batch permute.
    flat = jnp.transpose(y2, (1, 0, 2, 3)).reshape(B, FC1_IN)   # (B, 59536)

    y = pallas_linear_splitk(flat, params['fc1_w_t'], params['fc1_b'],
                             apply_relu=True)
    y = pallas_linear(y, params['fc2_w_t'], params['fc2_b'], apply_relu=True)
    image_out = pallas_linear(y, params['img_fc_w_t'], params['img_fc_b'])

    # ---- Fusion ----
    fused = jnp.concatenate([text_out, image_out], axis=1)   # (B, 2*nc)
    return pallas_linear(fused, params['final_fc_w_t'], params['final_fc_b'])


if __name__ == "__main__":
    key = jax.random.PRNGKey(0)
    k_param, k_text, k_img = jax.random.split(key, 3)

    B, T = 2, 8
    text_input_size, hidden_size, num_classes = 32, 32, 4

    params = init_params(k_param, text_input_size, hidden_size, num_classes)
    text_x = jax.random.normal(k_text, (B, T, text_input_size), jnp.float32)
    # 256x256 spatial size is dictated by fc1.in_features == 59536 == 16*61*61.
    image_x = jax.random.normal(k_img, (B, 1, IMG_HW, IMG_HW), jnp.float32)

    fwd = jax.jit(multimodal_forward)
    out = fwd(params, text_x, image_x)
    out = jax.block_until_ready(out)
    assert out.shape == (B, num_classes)
    assert bool(jnp.all(jnp.isfinite(out)))
    print("KERNEL_OK")
</pallas_src>

<mosaic_0001>
module attributes {stable_mosaic.version = 11 : i64} {
  func.func @conv_kernel(%arg0: i32, %arg1: memref<6x25xbf16, #tpu.memory_space<vmem>>, %arg2: memref<25x3584xbf16, #tpu.memory_space<vmem>>, %arg3: memref<6x1xf32, #tpu.memory_space<vmem>>, %arg4: memref<6x3584xbf16, #tpu.memory_space<vmem>>) attributes {dimension_semantics = [#tpu.dimension_semantics<parallel>], iteration_bounds = array<i64: 36>, scalar_prefetch = 0 : i64, scratch_operands = 0 : i64, tpu.core_type = #tpu.core_type<tc>, window_params = [{pipeline_mode = #tpu.pipeline_mode<synchronous>, transform_indices = @transform_0, window_bounds = array<i64: 6, 25>}, {transform_indices = @transform_1, window_bounds = array<i64: 25, 3584>}, {pipeline_mode = #tpu.pipeline_mode<synchronous>, transform_indices = @transform_2, window_bounds = array<i64: 6, 1>}, {transform_indices = @transform_3, window_bounds = array<i64: 6, 3584>}]} {
    %c0 = arith.constant 0 : index
    %c0_0 = arith.constant 0 : index
    %0 = vector.load %arg1[%c0, %c0_0] : memref<6x25xbf16, #tpu.memory_space<vmem>>, vector<6x25xbf16>
    %c0_1 = arith.constant 0 : index
    %c0_2 = arith.constant 0 : index
    %1 = vector.load %arg2[%c0_1, %c0_2] : memref<25x3584xbf16, #tpu.memory_space<vmem>>, vector<25x3584xbf16>
    %cst = arith.constant dense<0.000000e+00> : vector<6x3584xf32>
    %2 = tpu.matmul %0, %1, %cst {dimension_numbers = #tpu.dot_dimension_numbers<[1], [0], [0], [1], [0, 0, 1, 1], [], []>} : vector<6x25xbf16>, vector<25x3584xbf16>, vector<6x3584xf32> -> vector<6x3584xf32>
    %c0_3 = arith.constant 0 : index
    %c0_4 = arith.constant 0 : index
    %3 = vector.load %arg3[%c0_3, %c0_4] : memref<6x1xf32, #tpu.memory_space<vmem>>, vector<6x1xf32>
    %4 = vector.broadcast %3 : vector<6x1xf32> to vector<6x3584xf32>
    %5 = arith.addf %2, %4 : vector<6x3584xf32>
    %cst_5 = arith.constant 0.000000e+00 : f32
    %6 = vector.broadcast %cst_5 : f32 to vector<6x3584xf32>
    %7 = arith.maximumf %5, %6 : vector<6x3584xf32>
    %8 = arith.truncf %7 : vector<6x3584xf32> to vector<6x3584xbf16>
    %c0_6 = arith.constant 0 : index
    %c0_7 = arith.constant 0 : index
    %9 = vector.load %arg4[%c0_6, %c0_7] : memref<6x3584xbf16, #tpu.memory_space<vmem>>, vector<6x3584xbf16>
    tpu.vector_store %arg4[%c0_6, %c0_7], %8 {strides = array<i32>} : memref<6x3584xbf16, #tpu.memory_space<vmem>>, vector<6x3584xbf16>,
    return
  }
  func.func @transform_0(%arg0: i32) -> (i32, i32) {
    %c0_i32 = arith.constant 0 : i32
    %c0_i32_0 = arith.constant 0 : i32
    %c0_i32_1 = arith.constant 0 : i32
    return %c0_i32, %c0_i32_0 : i32, i32
  }
  func.func @transform_1(%arg0: i32) -> (i32, i32) {
    %c0_i32 = arith.constant 0 : i32
    %c0_i32_0 = arith.constant 0 : i32
    return %c0_i32, %arg0 : i32, i32
  }
  func.func @transform_2(%arg0: i32) -> (i32, i32) {
    %c0_i32 = arith.constant 0 : i32
    %c0_i32_0 = arith.constant 0 : i32
    %c0_i32_1 = arith.constant 0 : i32
    return %c0_i32, %c0_i32_0 : i32, i32
  }
  func.func @transform_3(%arg0: i32) -> (i32, i32) {
    %c0_i32 = arith.constant 0 : i32
    %c0_i32_0 = arith.constant 0 : i32
    return %c0_i32, %arg0 : i32, i32
  }
}

module attributes {stable_mosaic.version = 11 : i64} {
  func.func @conv_kernel(%arg0: i32, %arg1: memref<16x150xbf16, #tpu.memory_space<vmem>>, %arg2: memref<150x3584xbf16, #tpu.memory_space<vmem>>, %arg3: memref<16x1xf32, #tpu.memory_space<vmem>>, %arg4: memref<16x3584xbf16, #tpu.memory_space<vmem>>) attributes {dimension_semantics = [#tpu.dimension_semantics<parallel>], iteration_bounds = array<i64: 9>, scalar_prefetch = 0 : i64, scratch_operands = 0 : i64, tpu.core_type = #tpu.core_type<tc>, window_params = [{pipeline_mode = #tpu.pipeline_mode<synchronous>, transform_indices = @transform_0, window_bounds = array<i64: 16, 150>}, {transform_indices = @transform_1, window_bounds = array<i64: 150, 3584>}, {pipeline_mode = #tpu.pipeline_mode<synchronous>, transform_indices = @transform_2, window_bounds = array<i64: 16, 1>}, {transform_indices = @transform_3, window_bounds = array<i64: 16, 3584>}]} {
    %c0 = arith.constant 0 : index
    %c0_0 = arith.constant 0 : index
    %0 = vector.load %arg1[%c0, %c0_0] : memref<16x150xbf16, #tpu.memory_space<vmem>>, vector<16x150xbf16>
    %c0_1 = arith.constant 0 : index
    %c0_2 = arith.constant 0 : index
    %1 = vector.load %arg2[%c0_1, %c0_2] : memref<150x3584xbf16, #tpu.memory_space<vmem>>, vector<150x3584xbf16>
    %cst = arith.constant dense<0.000000e+00> : vector<16x3584xf32>
    %2 = tpu.matmul %0, %1, %cst {dimension_numbers = #tpu.dot_dimension_numbers<[1], [0], [0], [1], [0, 0, 1, 1], [], []>} : vector<16x150xbf16>, vector<150x3584xbf16>, vector<16x3584xf32> -> vector<16x3584xf32>
    %c0_3 = arith.constant 0 : index
    %c0_4 = arith.constant 0 : index
    %3 = vector.load %arg3[%c0_3, %c0_4] : memref<16x1xf32, #tpu.memory_space<vmem>>, vector<16x1xf32>
    %4 = vector.broadcast %3 : vector<16x1xf32> to vector<16x3584xf32>
    %5 = arith.addf %2, %4 : vector<16x3584xf32>
    %cst_5 = arith.constant 0.000000e+00 : f32
    %6 = vector.broadcast %cst_5 : f32 to vector<16x3584xf32>
    %7 = arith.maximumf %5, %6 : vector<16x3584xf32>
    %8 = arith.truncf %7 : vector<16x3584xf32> to vector<16x3584xbf16>
    %c0_6 = arith.constant 0 : index
    %c0_7 = arith.constant 0 : index
    %9 = vector.load %arg4[%c0_6, %c0_7] : memref<16x3584xbf16, #tpu.memory_space<vmem>>, vector<16x3584xbf16>
    tpu.vector_store %arg4[%c0_6, %c0_7], %8 {strides = array<i32>} : memref<16x3584xbf16, #tpu.memory_space<vmem>>, vector<16x3584xbf16>,
    return
  }
  func.func @transform_0(%arg0: i32) -> (i32, i32) {
    %c0_i32 = arith.constant 0 : i32
    %c0_i32_0 = arith.constant 0 : i32
    %c0_i32_1 = arith.constant 0 : i32
    return %c0_i32, %c0_i32_0 : i32, i32
  }
  func.func @transform_1(%arg0: i32) -> (i32, i32) {
    %c0_i32 = arith.constant 0 : i32
    %c0_i32_0 = arith.constant 0 : i32
    return %c0_i32, %arg0 : i32, i32
  }
  func.func @transform_2(%arg0: i32) -> (i32, i32) {
    %c0_i32 = arith.constant 0 : i32
    %c0_i32_0 = arith.constant 0 : i32
    %c0_i32_1 = arith.constant 0 : i32
    return %c0_i32, %c0_i32_0 : i32, i32
  }
  func.func @transform_3(%arg0: i32) -> (i32, i32) {
    %c0_i32 = arith.constant 0 : i32
    %c0_i32_0 = arith.constant 0 : i32
    return %c0_i32, %arg0 : i32, i32
  }
}

module attributes {stable_mosaic.version = 11 : i64} {
  func.func @linear_partial_kernel(%arg0: i32, %arg1: i32, %arg2: memref<2x4992xbf16, #tpu.memory_space<vmem>>, %arg3: memref<4992x120xbf16, #tpu.memory_space<vmem>>, %arg4: memref<1x2x120xf32, #tpu.memory_space<vmem>>, %arg5: memref<2x120xf32, #tpu.memory_space<vmem>>) attributes {dimension_semantics = [#tpu.dimension_semantics<parallel>, #tpu.dimension_semantics<arbitrary>], iteration_bounds = array<i64: 2, 6>, scalar_prefetch = 0 : i64, scratch_operands = 1 : i64, tpu.core_type = #tpu.core_type<tc>, window_params = [{transform_indices = @transform_0, window_bounds = array<i64: 2, 4992>}, {transform_indices = @transform_1, window_bounds = array<i64: 4992, 120>}, {transform_indices = @transform_2, window_bounds = array<i64: 1, 2, 120>}]} {
    %c0_i32 = arith.constant 0 : i32
    %0 = arith.cmpi eq, %arg1, %c0_i32 : i32
    %1 = arith.extui %0 : i1 to i32
    %c0_i32_0 = arith.constant 0 : i32
    %2 = arith.cmpi ne, %1, %c0_i32_0 : i32
    scf.if %2 {
      %cst_9 = arith.constant 0.000000e+00 : f32
      %12 = vector.broadcast %cst_9 : f32 to vector<2x120xf32>
      %c0_10 = arith.constant 0 : index
      %c0_11 = arith.constant 0 : index
      %13 = vector.load %arg5[%c0_10, %c0_11] : memref<2x120xf32, #tpu.memory_space<vmem>>, vector<2x120xf32>
      tpu.vector_store %arg5[%c0_10, %c0_11], %12 {strides = array<i32>} : memref<2x120xf32, #tpu.memory_space<vmem>>, vector<2x120xf32>,
    } else {
    }
    %c0 = arith.constant 0 : index
    %c0_1 = arith.constant 0 : index
    %3 = vector.load %arg5[%c0, %c0_1] : memref<2x120xf32, #tpu.memory_space<vmem>>, vector<2x120xf32>
    %c0_2 = arith.constant 0 : index
    %c0_3 = arith.constant 0 : index
    %4 = vector.load %arg2[%c0_2, %c0_3] : memref<2x4992xbf16, #tpu.memory_space<vmem>>, vector<2x4992xbf16>
    %c0_4 = arith.constant 0 : index
    %c0_5 = arith.constant 0 : index
    %5 = vector.load %arg3[%c0_4, %c0_5] : memref<4992x120xbf16, #tpu.memory_space<vmem>>, vector<4992x120xbf16>
    %cst = arith.constant dense<0.000000e+00> : vector<2x120xf32>
    %6 = tpu.matmul %4, %5, %cst {dimension_numbers = #tpu.dot_dimension_numbers<[1], [0], [0], [1], [0, 0, 1, 1], [], []>} : vector<2x4992xbf16>, vector<4992x120xbf16>, vector<2x120xf32> -> vector<2x120xf32>
    %7 = arith.addf %3, %6 : vector<2x120xf32>
    %c0_6 = arith.constant 0 : index
    %c0_7 = arith.constant 0 : index
    %8 = vector.load %arg5[%c0_6, %c0_7] : memref<2x120xf32, #tpu.memory_space<vmem>>, vector<2x120xf32>
    tpu.vector_store %arg5[%c0_6, %c0_7], %7 {strides = array<i32>} : memref<2x120xf32, #tpu.memory_space<vmem>>, vector<2x120xf32>,
    %c5_i32 = arith.constant 5 : i32
    %9 = arith.cmpi eq, %arg1, %c5_i32 : i32
    %10 = arith.extui %9 : i1 to i32
    %c0_i32_8 = arith.constant 0 : i32
    %11 = arith.cmpi ne, %10, %c0_i32_8 : i32
    scf.if %11 {
      %c0_9 = arith.constant 0 : index
      %c0_10 = arith.constant 0 : index
      %12 = vector.load %arg5[%c0_9, %c0_10] : memref<2x120xf32, #tpu.memory_space<vmem>>, vector<2x120xf32>
      %c0_11 = arith.constant 0 : index
      %c0_12 = arith.constant 0 : index
      %c0_13 = arith.constant 0 : index
      %13 = vector.load %arg4[%c0_11, %c0_12, %c0_13] : memref<1x2x120xf32, #tpu.memory_space<vmem>>, vector<1x2x120xf32>
      %14 = vector.shape_cast %13 : vector<1x2x120xf32> to vector<2x120xf32>
      %15 = vector.shape_cast %12 : vector<2x120xf32> to vector<1x2x120xf32>
      tpu.vector_store %arg4[%c0_11, %c0_12, %c0_13], %15 {strides = array<i32>} : memref<1x2x120xf32, #tpu.memory_space<vmem>>, vector<1x2x120xf32>,
    } else {
    }
    return
  }
  func.func @transform_0(%arg0: i32, %arg1: i32) -> (i32, i32) {
    %c6_i32 = arith.constant 6 : i32
    %0 = arith.muli %arg0, %c6_i32 : i32
    %1 = arith.addi %0, %arg1 : i32
    %c0_i32 = arith.constant 0 : i32
    %c0_i32_0 = arith.constant 0 : i32
    return %c0_i32, %1 : i32, i32
  }
  func.func @transform_1(%arg0: i32, %arg1: i32) -> (i32, i32) {
    %c6_i32 = arith.constant 6 : i32
    %0 = arith.muli %arg0, %c6_i32 : i32
    %1 = arith.addi %0, %arg1 : i32
    %c0_i32 = arith.constant 0 : i32
    %c0_i32_0 = arith.constant 0 : i32
    return %1, %c0_i32 : i32, i32
  }
  func.func @transform_2(%arg0: i32, %arg1: i32) -> (i32, i32, i32) {
    %c0_i32 = arith.constant 0 : i32
    %c0_i32_0 = arith.constant 0 : i32
    %c0_i32_1 = arith.constant 0 : i32
    return %arg0, %c0_i32, %c0_i32_0 : i32, i32, i32
  }
}

module attributes {stable_mosaic.version = 11 : i64} {
  func.func @linear_kernel(%arg0: i32, %arg1: memref<2x120xf32, #tpu.memory_space<vmem>>, %arg2: memref<120x84xf32, #tpu.memory_space<vmem>>, %arg3: memref<1x84xf32, #tpu.memory_space<vmem>>, %arg4: memref<2x84xf32, #tpu.memory_space<vmem>>, %arg5: memref<2x84xf32, #tpu.memory_space<vmem>>) attributes {dimension_semantics = [#tpu.dimension_semantics<arbitrary>], iteration_bounds = array<i64: 1>, scalar_prefetch = 0 : i64, scratch_operands = 1 : i64, tpu.core_type = #tpu.core_type<tc>, window_params = [{transform_indices = @transform_0, window_bounds = array<i64: 2, 120>}, {transform_indices = @transform_1, window_bounds = array<i64: 120, 84>}, {pipeline_mode = #tpu.pipeline_mode<synchronous>, transform_indices = @transform_2, window_bounds = array<i64: 1, 84>}, {pipeline_mode = #tpu.pipeline_mode<synchronous>, transform_indices = @transform_3, window_bounds = array<i64: 2, 84>}]} {
    %c0_i32 = arith.constant 0 : i32
    %0 = arith.cmpi eq, %arg0, %c0_i32 : i32
    %1 = arith.extui %0 : i1 to i32
    %c0_i32_0 = arith.constant 0 : i32
    %2 = arith.cmpi ne, %1, %c0_i32_0 : i32
    scf.if %2 {
      %cst_10 = arith.constant 0.000000e+00 : f32
      %12 = vector.broadcast %cst_10 : f32 to vector<2x84xf32>
      %c0_11 = arith.constant 0 : index
      %c0_12 = arith.constant 0 : index
      %13 = vector.load %arg5[%c0_11, %c0_12] : memref<2x84xf32, #tpu.memory_space<vmem>>, vector<2x84xf32>
      tpu.vector_store %arg5[%c0_11, %c0_12], %12 {strides = array<i32>} : memref<2x84xf32, #tpu.memory_space<vmem>>, vector<2x84xf32>,
    } else {
    }
    %c0 = arith.constant 0 : index
    %c0_1 = arith.constant 0 : index
    %3 = vector.load %arg5[%c0, %c0_1] : memref<2x84xf32, #tpu.memory_space<vmem>>, vector<2x84xf32>
    %c0_2 = arith.constant 0 : index
    %c0_3 = arith.constant 0 : index
    %4 = vector.load %arg1[%c0_2, %c0_3] : memref<2x120xf32, #tpu.memory_space<vmem>>, vector<2x120xf32>
    %c0_4 = arith.constant 0 : index
    %c0_5 = arith.constant 0 : index
    %5 = vector.load %arg2[%c0_4, %c0_5] : memref<120x84xf32, #tpu.memory_space<vmem>>, vector<120x84xf32>
    %cst = arith.constant dense<0.000000e+00> : vector<2x84xf32>
    %6 = tpu.matmul %4, %5, %cst {dimension_numbers = #tpu.dot_dimension_numbers<[1], [0], [0], [1], [0, 0, 1, 1], [], []>} : vector<2x120xf32>, vector<120x84xf32>, vector<2x84xf32> -> vector<2x84xf32>
    %7 = arith.addf %3, %6 : vector<2x84xf32>
    %c0_6 = arith.constant 0 : index
    %c0_7 = arith.constant 0 : index
    %8 = vector.load %arg5[%c0_6, %c0_7] : memref<2x84xf32, #tpu.memory_space<vmem>>, vector<2x84xf32>
    tpu.vector_store %arg5[%c0_6, %c0_7], %7 {strides = array<i32>} : memref<2x84xf32, #tpu.memory_space<vmem>>, vector<2x84xf32>,
    %c0_i32_8 = arith.constant 0 : i32
    %9 = arith.cmpi eq, %arg0, %c0_i32_8 : i32
    %10 = arith.extui %9 : i1 to i32
    %c0_i32_9 = arith.constant 0 : i32
    %11 = arith.cmpi ne, %10, %c0_i32_9 : i32
    scf.if %11 {
      %c0_10 = arith.constant 0 : index
      %c0_11 = arith.constant 0 : index
      %12 = vector.load %arg5[%c0_10, %c0_11] : memref<2x84xf32, #tpu.memory_space<vmem>>, vector<2x84xf32>
      %c0_12 = arith.constant 0 : index
      %c0_13 = arith.constant 0 : index
      %13 = vector.load %arg3[%c0_12, %c0_13] : memref<1x84xf32, #tpu.memory_space<vmem>>, vector<1x84xf32>
      %14 = vector.broadcast %13 : vector<1x84xf32> to vector<2x84xf32>
      %15 = arith.addf %12, %14 : vector<2x84xf32>
      %cst_14 = arith.constant 0.000000e+00 : f32
      %16 = vector.broadcast %cst_14 : f32 to vector<2x84xf32>
      %17 = arith.maximumf %15, %16 : vector<2x84xf32>
      %c0_15 = arith.constant 0 : index
      %c0_16 = arith.constant 0 : index
      %18 = vector.load %arg4[%c0_15, %c0_16] : memref<2x84xf32, #tpu.memory_space<vmem>>, vector<2x84xf32>
      tpu.vector_store %arg4[%c0_15, %c0_16], %17 {strides = array<i32>} : memref<2x84xf32, #tpu.memory_space<vmem>>, vector<2x84xf32>,
    } else {
    }
    return
  }
  func.func @transform_0(%arg0: i32) -> (i32, i32) {
    %c0_i32 = arith.constant 0 : i32
    %c0_i32_0 = arith.constant 0 : i32
    return %c0_i32, %arg0 : i32, i32
  }
  func.func @transform_1(%arg0: i32) -> (i32, i32) {
    %c0_i32 = arith.constant 0 : i32
    %c0_i32_0 = arith.constant 0 : i32
    return %arg0, %c0_i32 : i32, i32
  }
  func.func @transform_2(%arg0: i32) -> (i32, i32) {
    %c0_i32 = arith.constant 0 : i32
    %c0_i32_0 = arith.constant 0 : i32
    %c0_i32_1 = arith.constant 0 : i32
    return %c0_i32, %c0_i32_0 : i32, i32
  }
  func.func @transform_3(%arg0: i32) -> (i32, i32) {
    %c0_i32 = arith.constant 0 : i32
    %c0_i32_0 = arith.constant 0 : i32
    %c0_i32_1 = arith.constant 0 : i32
    return %c0_i32, %c0_i32_0 : i32, i32
  }
}

module attributes {stable_mosaic.version = 11 : i64} {
  func.func @linear_kernel(%arg0: i32, %arg1: memref<2x84xf32, #tpu.memory_space<vmem>>, %arg2: memref<84x4xf32, #tpu.memory_space<vmem>>, %arg3: memref<1x4xf32, #tpu.memory_space<vmem>>, %arg4: memref<2x4xf32, #tpu.memory_space<vmem>>, %arg5: memref<2x4xf32, #tpu.memory_space<vmem>>) attributes {dimension_semantics = [#tpu.dimension_semantics<arbitrary>], iteration_bounds = array<i64: 1>, scalar_prefetch = 0 : i64, scratch_operands = 1 : i64, tpu.core_type = #tpu.core_type<tc>, window_params = [{transform_indices = @transform_0, window_bounds = array<i64: 2, 84>}, {transform_indices = @transform_1, window_bounds = array<i64: 84, 4>}, {pipeline_mode = #tpu.pipeline_mode<synchronous>, transform_indices = @transform_2, window_bounds = array<i64: 1, 4>}, {pipeline_mode = #tpu.pipeline_mode<synchronous>, transform_indices = @transform_3, window_bounds = array<i64: 2, 4>}]} {
    %c0_i32 = arith.constant 0 : i32
    %0 = arith.cmpi eq, %arg0, %c0_i32 : i32
    %1 = arith.extui %0 : i1 to i32
    %c0_i32_0 = arith.constant 0 : i32
    %2 = arith.cmpi ne, %1, %c0_i32_0 : i32
    scf.if %2 {
      %cst_10 = arith.constant 0.000000e+00 : f32
      %12 = vector.broadcast %cst_10 : f32 to vector<2x4xf32>
      %c0_11 = arith.constant 0 : index
      %c0_12 = arith.constant 0 : index
      %13 = vector.load %arg5[%c0_11, %c0_12] : memref<2x4xf32, #tpu.memory_space<vmem>>, vector<2x4xf32>
      tpu.vector_store %arg5[%c0_11, %c0_12], %12 {strides = array<i32>} : memref<2x4xf32, #tpu.memory_space<vmem>>, vector<2x4xf32>,
    } else {
    }
    %c0 = arith.constant 0 : index
    %c0_1 = arith.constant 0 : index
    %3 = vector.load %arg5[%c0, %c0_1] : memref<2x4xf32, #tpu.memory_space<vmem>>, vector<2x4xf32>
    %c0_2 = arith.constant 0 : index
    %c0_3 = arith.constant 0 : index
    %4 = vector.load %arg1[%c0_2, %c0_3] : memref<2x84xf32, #tpu.memory_space<vmem>>, vector<2x84xf32>
    %c0_4 = arith.constant 0 : index
    %c0_5 = arith.constant 0 : index
    %5 = vector.load %arg2[%c0_4, %c0_5] : memref<84x4xf32, #tpu.memory_space<vmem>>, vector<84x4xf32>
    %cst = arith.constant dense<0.000000e+00> : vector<2x4xf32>
    %6 = tpu.matmul %4, %5, %cst {dimension_numbers = #tpu.dot_dimension_numbers<[1], [0], [0], [1], [0, 0, 1, 1], [], []>} : vector<2x84xf32>, vector<84x4xf32>, vector<2x4xf32> -> vector<2x4xf32>
    %7 = arith.addf %3, %6 : vector<2x4xf32>
    %c0_6 = arith.constant 0 : index
    %c0_7 = arith.constant 0 : index
    %8 = vector.load %arg5[%c0_6, %c0_7] : memref<2x4xf32, #tpu.memory_space<vmem>>, vector<2x4xf32>
    tpu.vector_store %arg5[%c0_6, %c0_7], %7 {strides = array<i32>} : memref<2x4xf32, #tpu.memory_space<vmem>>, vector<2x4xf32>,
    %c0_i32_8 = arith.constant 0 : i32
    %9 = arith.cmpi eq, %arg0, %c0_i32_8 : i32
    %10 = arith.extui %9 : i1 to i32
    %c0_i32_9 = arith.constant 0 : i32
    %11 = arith.cmpi ne, %10, %c0_i32_9 : i32
    scf.if %11 {
      %c0_10 = arith.constant 0 : index
      %c0_11 = arith.constant 0 : index
      %12 = vector.load %arg5[%c0_10, %c0_11] : memref<2x4xf32, #tpu.memory_space<vmem>>, vector<2x4xf32>
      %c0_12 = arith.constant 0 : index
      %c0_13 = arith.constant 0 : index
      %13 = vector.load %arg3[%c0_12, %c0_13] : memref<1x4xf32, #tpu.memory_space<vmem>>, vector<1x4xf32>
      %14 = vector.broadcast %13 : vector<1x4xf32> to vector<2x4xf32>
      %15 = arith.addf %12, %14 : vector<2x4xf32>
      %c0_14 = arith.constant 0 : index
      %c0_15 = arith.constant 0 : index
      %16 = vector.load %arg4[%c0_14, %c0_15] : memref<2x4xf32, #tpu.memory_space<vmem>>, vector<2x4xf32>
      tpu.vector_store %arg4[%c0_14, %c0_15], %15 {strides = array<i32>} : memref<2x4xf32, #tpu.memory_space<vmem>>, vector<2x4xf32>,
    } else {
    }
    return
  }
  func.func @transform_0(%arg0: i32) -> (i32, i32) {
    %c0_i32 = arith.constant 0 : i32
    %c0_i32_0 = arith.constant 0 : i32
    return %c0_i32, %arg0 : i32, i32
  }
  func.func @transform_1(%arg0: i32) -> (i32, i32) {
    %c0_i32 = arith.constant 0 : i32
    %c0_i32_0 = arith.constant 0 : i32
    return %arg0, %c0_i32 : i32, i32
  }
  func.func @transform_2(%arg0: i32) -> (i32, i32) {
    %c0_i32 = arith.constant 0 : i32
    %c0_i32_0 = arith.constant 0 : i32
    %c0_i32_1 = arith.constant 0 : i32
    return %c0_i32, %c0_i32_0 : i32, i32
  }
  func.func @transform_3(%arg0: i32) -> (i32, i32) {
    %c0_i32 = arith.constant 0 : i32
    %c0_i32_0 = arith.constant 0 : i32
    %c0_i32_1 = arith.constant 0 : i32
    return %c0_i32, %c0_i32_0 : i32, i32
  }
}

module attributes {stable_mosaic.version = 11 : i64} {
  func.func @linear_kernel(%arg0: i32, %arg1: memref<16x32xf32, #tpu.memory_space<vmem>>, %arg2: memref<32x128xf32, #tpu.memory_space<vmem>>, %arg3: memref<1x128xf32, #tpu.memory_space<vmem>>, %arg4: memref<16x128xf32, #tpu.memory_space<vmem>>, %arg5: memref<16x128xf32, #tpu.memory_space<vmem>>) attributes {dimension_semantics = [#tpu.dimension_semantics<arbitrary>], iteration_bounds = array<i64: 1>, scalar_prefetch = 0 : i64, scratch_operands = 1 : i64, tpu.core_type = #tpu.core_type<tc>, window_params = [{transform_indices = @transform_0, window_bounds = array<i64: 16, 32>}, {transform_indices = @transform_1, window_bounds = array<i64: 32, 128>}, {pipeline_mode = #tpu.pipeline_mode<synchronous>, transform_indices = @transform_2, window_bounds = array<i64: 1, 128>}, {pipeline_mode = #tpu.pipeline_mode<synchronous>, transform_indices = @transform_3, window_bounds = array<i64: 16, 128>}]} {
    %c0_i32 = arith.constant 0 : i32
    %0 = arith.cmpi eq, %arg0, %c0_i32 : i32
    %1 = arith.extui %0 : i1 to i32
    %c0_i32_0 = arith.constant 0 : i32
    %2 = arith.cmpi ne, %1, %c0_i32_0 : i32
    scf.if %2 {
      %cst_10 = arith.constant 0.000000e+00 : f32
      %12 = vector.broadcast %cst_10 : f32 to vector<16x128xf32>
      %c0_11 = arith.constant 0 : index
      %c0_12 = arith.constant 0 : index
      %13 = vector.load %arg5[%c0_11, %c0_12] : memref<16x128xf32, #tpu.memory_space<vmem>>, vector<16x128xf32>
      tpu.vector_store %arg5[%c0_11, %c0_12], %12 {strides = array<i32>} : memref<16x128xf32, #tpu.memory_space<vmem>>, vector<16x128xf32>,
    } else {
    }
    %c0 = arith.constant 0 : index
    %c0_1 = arith.constant 0 : index
    %3 = vector.load %arg5[%c0, %c0_1] : memref<16x128xf32, #tpu.memory_space<vmem>>, vector<16x128xf32>
    %c0_2 = arith.constant 0 : index
    %c0_3 = arith.constant 0 : index
    %4 = vector.load %arg1[%c0_2, %c0_3] : memref<16x32xf32, #tpu.memory_space<vmem>>, vector<16x32xf32>
    %c0_4 = arith.constant 0 : index
    %c0_5 = arith.constant 0 : index
    %5 = vector.load %arg2[%c0_4, %c0_5] : memref<32x128xf32, #tpu.memory_space<vmem>>, vector<32x128xf32>
    %cst = arith.constant dense<0.000000e+00> : vector<16x128xf32>
    %6 = tpu.matmul %4, %5, %cst {dimension_numbers = #tpu.dot_dimension_numbers<[1], [0], [0], [1], [0, 0, 1, 1], [], []>} : vector<16x32xf32>, vector<32x128xf32>, vector<16x128xf32> -> vector<16x128xf32>
    %7 = arith.addf %3, %6 : vector<16x128xf32>
    %c0_6 = arith.constant 0 : index
    %c0_7 = arith.constant 0 : index
    %8 = vector.load %arg5[%c0_6, %c0_7] : memref<16x128xf32, #tpu.memory_space<vmem>>, vector<16x128xf32>
    tpu.vector_store %arg5[%c0_6, %c0_7], %7 {strides = array<i32>} : memref<16x128xf32, #tpu.memory_space<vmem>>, vector<16x128xf32>,
    %c0_i32_8 = arith.constant 0 : i32
    %9 = arith.cmpi eq, %arg0, %c0_i32_8 : i32
    %10 = arith.extui %9 : i1 to i32
    %c0_i32_9 = arith.constant 0 : i32
    %11 = arith.cmpi ne, %10, %c0_i32_9 : i32
    scf.if %11 {
      %c0_10 = arith.constant 0 : index
      %c0_11 = arith.constant 0 : index
      %12 = vector.load %arg5[%c0_10, %c0_11] : memref<16x128xf32, #tpu.memory_space<vmem>>, vector<16x128xf32>
      %c0_12 = arith.constant 0 : index
      %c0_13 = arith.constant 0 : index
      %13 = vector.load %arg3[%c0_12, %c0_13] : memref<1x128xf32, #tpu.memory_space<vmem>>, vector<1x128xf32>
      %14 = vector.broadcast %13 : vector<1x128xf32> to vector<16x128xf32>
      %15 = arith.addf %12, %14 : vector<16x128xf32>
      %c0_14 = arith.constant 0 : index
      %c0_15 = arith.constant 0 : index
      %16 = vector.load %arg4[%c0_14, %c0_15] : memref<16x128xf32, #tpu.memory_space<vmem>>, vector<16x128xf32>
      tpu.vector_store %arg4[%c0_14, %c0_15], %15 {strides = array<i32>} : memref<16x128xf32, #tpu.memory_space<vmem>>, vector<16x128xf32>,
    } else {
    }
    return
  }
  func.func @transform_0(%arg0: i32) -> (i32, i32) {
    %c0_i32 = arith.constant 0 : i32
    %c0_i32_0 = arith.constant 0 : i32
    return %c0_i32, %arg0 : i32, i32
  }
  func.func @transform_1(%arg0: i32) -> (i32, i32) {
    %c0_i32 = arith.constant 0 : i32
    %c0_i32_0 = arith.constant 0 : i32
    return %arg0, %c0_i32 : i32, i32
  }
  func.func @transform_2(%arg0: i32) -> (i32, i32) {
    %c0_i32 = arith.constant 0 : i32
    %c0_i32_0 = arith.constant 0 : i32
    %c0_i32_1 = arith.constant 0 : i32
    return %c0_i32, %c0_i32_0 : i32, i32
  }
  func.func @transform_3(%arg0: i32) -> (i32, i32) {
    %c0_i32 = arith.constant 0 : i32
    %c0_i32_0 = arith.constant 0 : i32
    %c0_i32_1 = arith.constant 0 : i32
    return %c0_i32, %c0_i32_0 : i32, i32
  }
}

module attributes {stable_mosaic.version = 11 : i64} {
  func.func @lstm_kernel(%arg0: i32, %arg1: memref<8x2x128xf32, #tpu.memory_space<vmem>>, %arg2: memref<32x128xf32, #tpu.memory_space<vmem>>, %arg3: memref<2x32xf32, #tpu.memory_space<vmem>>) attributes {dimension_semantics = [#tpu.dimension_semantics<arbitrary>], iteration_bounds = array<i64: 1>, scalar_prefetch = 0 : i64, scratch_operands = 0 : i64, tpu.core_type = #tpu.core_type<tc>, window_params = [{pipeline_mode = #tpu.pipeline_mode<synchronous>, transform_indices = @transform_0, window_bounds = array<i64: 8, 2, 128>}, {pipeline_mode = #tpu.pipeline_mode<synchronous>, transform_indices = @transform_1, window_bounds = array<i64: 32, 128>}, {pipeline_mode = #tpu.pipeline_mode<synchronous>, transform_indices = @transform_2, window_bounds = array<i64: 2, 32>}]} {
    %cst = arith.constant 0.000000e+00 : f32
    %0 = vector.broadcast %cst : f32 to vector<2x32xf32>
    %cst_0 = arith.constant 0.000000e+00 : f32
    %1 = vector.broadcast %cst_0 : f32 to vector<2x32xf32>
    %c0 = arith.constant 0 : index
    %c0_1 = arith.constant 0 : index
    %c0_2 = arith.constant 0 : index
    %2 = vector.load %arg1[%c0, %c0_1, %c0_2] : memref<8x2x128xf32, #tpu.memory_space<vmem>>, vector<1x2x128xf32>
    %3 = vector.shape_cast %2 : vector<1x2x128xf32> to vector<2x128xf32>
    %c0_3 = arith.constant 0 : index
    %c0_4 = arith.constant 0 : index
    %4 = vector.load %arg2[%c0_3, %c0_4] : memref<32x128xf32, #tpu.memory_space<vmem>>, vector<32x128xf32>
    %cst_5 = arith.constant dense<0.000000e+00> : vector<2x128xf32>
    %5 = tpu.matmul %0, %4, %cst_5 {dimension_numbers = #tpu.dot_dimension_numbers<[1], [0], [0], [1], [0, 0, 1, 1], [], []>} : vector<2x32xf32>, vector<32x128xf32>, vector<2x128xf32> -> vector<2x128xf32>
    %6 = arith.addf %3, %5 : vector<2x128xf32>
    %7 = vector.extract_strided_slice %6 {offsets = [0, 0], sizes = [2, 32], strides = [1, 1]} : vector<2x128xf32> to vector<2x32xf32>
    %cst_6 = arith.constant 0.000000e+00 : f32
    %8 = vector.broadcast %cst_6 : f32 to vector<2x32xf32>
    %9 = arith.subf %8, %7 : vector<2x32xf32>
    %10 = math.exp %9 : vector<2x32xf32>
    %cst_7 = arith.constant 1.000000e+00 : f32
    %11 = vector.broadcast %cst_7 : f32 to vector<2x32xf32>
    %12 = arith.addf %11, %10 : vector<2x32xf32>
    %13 = tpu.reciprocal %12 {approx = true} : vector<2x32xf32> -> vector<2x32xf32>
    %14 = vector.extract_strided_slice %6 {offsets = [0, 32], sizes = [2, 32], strides = [1, 1]} : vector<2x128xf32> to vector<2x32xf32>
    %cst_8 = arith.constant 0.000000e+00 : f32
    %15 = vector.broadcast %cst_8 : f32 to vector<2x32xf32>
    %16 = arith.subf %15, %14 : vector<2x32xf32>
    %17 = math.exp %16 : vector<2x32xf32>
    %cst_9 = arith.constant 1.000000e+00 : f32
    %18 = vector.broadcast %cst_9 : f32 to vector<2x32xf32>
    %19 = arith.addf %18, %17 : vector<2x32xf32>
    %20 = tpu.reciprocal %19 {approx = true} : vector<2x32xf32> -> vector<2x32xf32>
    %21 = vector.extract_strided_slice %6 {offsets = [0, 64], sizes = [2, 32], strides = [1, 1]} : vector<2x128xf32> to vector<2x32xf32>
    %22 = math.tanh %21 : vector<2x32xf32>
    %23 = vector.extract_strided_slice %6 {offsets = [0, 96], sizes = [2, 32], strides = [1, 1]} : vector<2x128xf32> to vector<2x32xf32>
    %cst_10 = arith.constant 0.000000e+00 : f32
    %24 = vector.broadcast %cst_10 : f32 to vector<2x32xf32>
    %25 = arith.subf %24, %23 : vector<2x32xf32>
    %26 = math.exp %25 : vector<2x32xf32>
    %cst_11 = arith.constant 1.000000e+00 : f32
    %27 = vector.broadcast %cst_11 : f32 to vector<2x32xf32>
    %28 = arith.addf %27, %26 : vector<2x32xf32>
    %29 = tpu.reciprocal %28 {approx = true} : vector<2x32xf32> -> vector<2x32xf32>
    %30 = arith.mulf %20, %1 : vector<2x32xf32>
    %31 = arith.mulf %13, %22 : vector<2x32xf32>
    %32 = arith.addf %30, %31 : vector<2x32xf32>
    %33 = math.tanh %32 : vector<2x32xf32>
    %34 = arith.mulf %29, %33 : vector<2x32xf32>
    %c1 = arith.constant 1 : index
    %c0_12 = arith.constant 0 : index
    %c0_13 = arith.constant 0 : index
    %35 = vector.load %arg1[%c1, %c0_12, %c0_13] : memref<8x2x128xf32, #tpu.memory_space<vmem>>, vector<1x2x128xf32>
    %36 = vector.shape_cast %35 : vector<1x2x128xf32> to vector<2x128xf32>
    %c0_14 = arith.constant 0 : index
    %c0_15 = arith.constant 0 : index
    %37 = vector.load %arg2[%c0_14, %c0_15] : memref<32x128xf32, #tpu.memory_space<vmem>>, vector<32x128xf32>
    %cst_16 = arith.constant dense<0.000000e+00> : vector<2x128xf32>
    %38 = tpu.matmul %34, %37, %cst_16 {dimension_numbers = #tpu.dot_dimension_numbers<[1], [0], [0], [1], [0, 0, 1, 1], [], []>} : vector<2x32xf32>, vector<32x128xf32>, vector<2x128xf32> -> vector<2x128xf32>
    %39 = arith.addf %36, %38 : vector<2x128xf32>
    %40 = vector.extract_strided_slice %39 {offsets = [0, 0], sizes = [2, 32], strides = [1, 1]} : vector<2x128xf32> to vector<2x32xf32>
    %cst_17 = arith.constant 0.000000e+00 : f32
    %41 = vector.broadcast %cst_17 : f32 to vector<2x32xf32>
    %42 = arith.subf %41, %40 : vector<2x32xf32>
    %43 = math.exp %42 : vector<2x32xf32>
    %cst_18 = arith.constant 1.000000e+00 : f32
    %44 = vector.broadcast %cst_18 : f32 to vector<2x32xf32>
    %45 = arith.addf %44, %43 : vector<2x32xf32>
    %46 = tpu.reciprocal %45 {approx = true} : vector<2x32xf32> -> vector<2x32xf32>
    %47 = vector.extract_strided_slice %39 {offsets = [0, 32], sizes = [2, 32], strides = [1, 1]} : vector<2x128xf32> to vector<2x32xf32>
    %cst_19 = arith.constant 0.000000e+00 : f32
    %48 = vector.broadcast %cst_19 : f32 to vector<2x32xf32>
    %49 = arith.subf %48, %47 : vector<2x32xf32>
    %50 = math.exp %49 : vector<2x32xf32>
    %cst_20 = arith.constant 1.000000e+00 : f32
    %51 = vector.broadcast %cst_20 : f32 to vector<2x32xf32>
    %52 = arith.addf %51, %50 : vector<2x32xf32>
    %53 = tpu.reciprocal %52 {approx = true} : vector<2x32xf32> -> vector<2x32xf32>
    %54 = vector.extract_strided_slice %39 {offsets = [0, 64], sizes = [2, 32], strides = [1, 1]} : vector<2x128xf32> to vector<2x32xf32>
    %55 = math.tanh %54 : vector<2x32xf32>
    %56 = vector.extract_strided_slice %39 {offsets = [0, 96], sizes = [2, 32], strides = [1, 1]} : vector<2x128xf32> to vector<2x32xf32>
    %cst_21 = arith.constant 0.000000e+00 : f32
    %57 = vector.broadcast %cst_21 : f32 to vector<2x32xf32>
    %58 = arith.subf %57, %56 : vector<2x32xf32>
    %59 = math.exp %58 : vector<2x32xf32>
    %cst_22 = arith.constant 1.000000e+00 : f32
    %60 = vector.broadcast %cst_22 : f32 to vector<2x32xf32>
    %61 = arith.addf %60, %59 : vector<2x32xf32>
    %62 = tpu.reciprocal %61 {approx = true} : vector<2x32xf32> -> vector<2x32xf32>
    %63 = arith.mulf %53, %32 : vector<2x32xf32>
    %64 = arith.mulf %46, %55 : vector<2x32xf32>
    %65 = arith.addf %63, %64 : vector<2x32xf32>
    %66 = math.tanh %65 : vector<2x32xf32>
    %67 = arith.mulf %62, %66 : vector<2x32xf32>
    %c2 = arith.constant 2 : index
    %c0_23 = arith.constant 0 : index
    %c0_24 = arith.constant 0 : index
    %68 = vector.load %arg1[%c2, %c0_23, %c0_24] : memref<8x2x128xf32, #tpu.memory_space<vmem>>, vector<1x2x128xf32>
    %69 = vector.shape_cast %68 : vector<1x2x128xf32> to vector<2x128xf32>
    %c0_25 = arith.constant 0 : index
    %c0_26 = arith.constant 0 : index
    %70 = vector.load %arg2[%c0_25, %c0_26] : memref<32x128xf32, #tpu.memory_space<vmem>>, vector<32x128xf32>
    %cst_27 = arith.constant dense<0.000000e+00> : vector<2x128xf32>
    %71 = tpu.matmul %67, %70, %cst_27 {dimension_numbers = #tpu.dot_dimension_numbers<[1], [0], [0], [1], [0, 0, 1, 1], [], []>} : vector<2x32xf32>, vector<32x128xf32>, vector<2x128xf32> -> vector<2x128xf32>
    %72 = arith.addf %69, %71 : vector<2x128xf32>
    %73 = vector.extract_strided_slice %72 {offsets = [0, 0], sizes = [2, 32], strides = [1, 1]} : vector<2x128xf32> to vector<2x32xf32>
    %cst_28 = arith.constant 0.000000e+00 : f32
    %74 = vector.broadcast %cst_28 : f32 to vector<2x32xf32>
    %75 = arith.subf %74, %73 : vector<2x32xf32>
    %76 = math.exp %75 : vector<2x32xf32>
    %cst_29 = arith.constant 1.000000e+00 : f32
    %77 = vector.broadcast %cst_29 : f32 to vector<2x32xf32>
    %78 = arith.addf %77, %76 : vector<2x32xf32>
    %79 = tpu.reciprocal %78 {approx = true} : vector<2x32xf32> -> vector<2x32xf32>
    %80 = vector.extract_strided_slice %72 {offsets = [0, 32], sizes = [2, 32], strides = [1, 1]} : vector<2x128xf32> to vector<2x32xf32>
    %cst_30 = arith.constant 0.000000e+00 : f32
    %81 = vector.broadcast %cst_30 : f32 to vector<2x32xf32>
    %82 = arith.subf %81, %80 : vector<2x32xf32>
    %83 = math.exp %82 : vector<2x32xf32>
    %cst_31 = arith.constant 1.000000e+00 : f32
    %84 = vector.broadcast %cst_31 : f32 to vector<2x32xf32>
    %85 = arith.addf %84, %83 : vector<2x32xf32>
    %86 = tpu.reciprocal %85 {approx = true} : vector<2x32xf32> -> vector<2x32xf32>
    %87 = vector.extract_strided_slice %72 {offsets = [0, 64], sizes = [2, 32], strides = [1, 1]} : vector<2x128xf32> to vector<2x32xf32>
    %88 = math.tanh %87 : vector<2x32xf32>
    %89 = vector.extract_strided_slice %72 {offsets = [0, 96], sizes = [2, 32], strides = [1, 1]} : vector<2x128xf32> to vector<2x32xf32>
    %cst_32 = arith.constant 0.000000e+00 : f32
    %90 = vector.broadcast %cst_32 : f32 to vector<2x32xf32>
    %91 = arith.subf %90, %89 : vector<2x32xf32>
    %92 = math.exp %91 : vector<2x32xf32>
    %cst_33 = arith.constant 1.000000e+00 : f32
    %93 = vector.broadcast %cst_33 : f32 to vector<2x32xf32>
    %94 = arith.addf %93, %92 : vector<2x32xf32>
    %95 = tpu.reciprocal %94 {approx = true} : vector<2x32xf32> -> vector<2x32xf32>
    %96 = arith.mulf %86, %65 : vector<2x32xf32>
    %97 = arith.mulf %79, %88 : vector<2x32xf32>
    %98 = arith.addf %96, %97 : vector<2x32xf32>
    %99 = math.tanh %98 : vector<2x32xf32>
    %100 = arith.mulf %95, %99 : vector<2x32xf32>
    %c3 = arith.constant 3 : index
    %c0_34 = arith.constant 0 : index
    %c0_35 = arith.constant 0 : index
    %101 = vector.load %arg1[%c3, %c0_34, %c0_35] : memref<8x2x128xf32, #tpu.memory_space<vmem>>, vector<1x2x128xf32>
    %102 = vector.shape_cast %101 : vector<1x2x128xf32> to vector<2x128xf32>
    %c0_36 = arith.constant 0 : index
    %c0_37 = arith.constant 0 : index
    %103 = vector.load %arg2[%c0_36, %c0_37] : memref<32x128xf32, #tpu.memory_space<vmem>>, vector<32x128xf32>
    %cst_38 = arith.constant dense<0.000000e+00> : vector<2x128xf32>
    %104 = tpu.matmul %100, %103, %cst_38 {dimension_numbers = #tpu.dot_dimension_numbers<[1], [0], [0], [1], [0, 0, 1, 1], [], []>} : vector<2x32xf32>, vector<32x128xf32>, vector<2x128xf32> -> vector<2x128xf32>
    %105 = arith.addf %102, %104 : vector<2x128xf32>
    %106 = vector.extract_strided_slice %105 {offsets = [0, 0], sizes = [2, 32], strides = [1, 1]} : vector<2x128xf32> to vector<2x32xf32>
    %cst_39 = arith.constant 0.000000e+00 : f32
    %107 = vector.broadcast %cst_39 : f32 to vector<2x32xf32>
    %108 = arith.subf %107, %106 : vector<2x32xf32>
    %109 = math.exp %108 : vector<2x32xf32>
    %cst_40 = arith.constant 1.000000e+00 : f32
    %110 = vector.broadcast %cst_40 : f32 to vector<2x32xf32>
    %111 = arith.addf %110, %109 : vector<2x32xf32>
    %112 = tpu.reciprocal %111 {approx = true} : vector<2x32xf32> -> vector<2x32xf32>
    %113 = vector.extract_strided_slice %105 {offsets = [0, 32], sizes = [2, 32], strides = [1, 1]} : vector<2x128xf32> to vector<2x32xf32>
    %cst_41 = arith.constant 0.000000e+00 : f32
    %114 = vector.broadcast %cst_41 : f32 to vector<2x32xf32>
    %115 = arith.subf %114, %113 : vector<2x32xf32>
    %116 = math.exp %115 : vector<2x32xf32>
    %cst_42 = arith.constant 1.000000e+00 : f32
    %117 = vector.broadcast %cst_42 : f32 to vector<2x32xf32>
    %118 = arith.addf %117, %116 : vector<2x32xf32>
    %119 = tpu.reciprocal %118 {approx = true} : vector<2x32xf32> -> vector<2x32xf32>
    %120 = vector.extract_strided_slice %105 {offsets = [0, 64], sizes = [2, 32], strides = [1, 1]} : vector<2x128xf32> to vector<2x32xf32>
    %121 = math.tanh %120 : vector<2x32xf32>
    %122 = vector.extract_strided_slice %105 {offsets = [0, 96], sizes = [2, 32], strides = [1, 1]} : vector<2x128xf32> to vector<2x32xf32>
    %cst_43 = arith.constant 0.000000e+00 : f32
    %123 = vector.broadcast %cst_43 : f32 to vector<2x32xf32>
    %124 = arith.subf %123, %122 : vector<2x32xf32>
    %125 = math.exp %124 : vector<2x32xf32>
    %cst_44 = arith.constant 1.000000e+00 : f32
    %126 = vector.broadcast %cst_44 : f32 to vector<2x32xf32>
    %127 = arith.addf %126, %125 : vector<2x32xf32>
    %128 = tpu.reciprocal %127 {approx = true} : vector<2x32xf32> -> vector<2x32xf32>
    %129 = arith.mulf %119, %98 : vector<2x32xf32>
    %130 = arith.mulf %112, %121 : vector<2x32xf32>
    %131 = arith.addf %129, %130 : vector<2x32xf32>
    %132 = math.tanh %131 : vector<2x32xf32>
    %133 = arith.mulf %128, %132 : vector<2x32xf32>
    %c4 = arith.constant 4 : index
    %c0_45 = arith.constant 0 : index
    %c0_46 = arith.constant 0 : index
    %134 = vector.load %arg1[%c4, %c0_45, %c0_46] : memref<8x2x128xf32, #tpu.memory_space<vmem>>, vector<1x2x128xf32>
    %135 = vector.shape_cast %134 : vector<1x2x128xf32> to vector<2x128xf32>
    %c0_47 = arith.constant 0 : index
    %c0_48 = arith.constant 0 : index
    %136 = vector.load %arg2[%c0_47, %c0_48] : memref<32x128xf32, #tpu.memory_space<vmem>>, vector<32x128xf32>
    %cst_49 = arith.constant dense<0.000000e+00> : vector<2x128xf32>
    %137 = tpu.matmul %133, %136, %cst_49 {dimension_numbers = #tpu.dot_dimension_numbers<[1], [0], [0], [1], [0, 0, 1, 1], [], []>} : vector<2x32xf32>, vector<32x128xf32>, vector<2x128xf32> -> vector<2x128xf32>
    %138 = arith.addf %135, %137 : vector<2x128xf32>
    %139 = vector.extract_strided_slice %138 {offsets = [0, 0], sizes = [2, 32], strides = [1, 1]} : vector<2x128xf32> to vector<2x32xf32>
    %cst_50 = arith.constant 0.000000e+00 : f32
    %140 = vector.broadcast %cst_50 : f32 to vector<2x32xf32>
    %141 = arith.subf %140, %139 : vector<2x32xf32>
    %142 = math.exp %141 : vector<2x32xf32>
    %cst_51 = arith.constant 1.000000e+00 : f32
    %143 = vector.broadcast %cst_51 : f32 to vector<2x32xf32>
    %144 = arith.addf %143, %142 : vector<2x32xf32>
    %145 = tpu.reciprocal %144 {approx = true} : vector<2x32xf32> -> vector<2x32xf32>
    %146 = vector.extract_strided_slice %138 {offsets = [0, 32], sizes = [2, 32], strides = [1, 1]} : vector<2x128xf32> to vector<2x32xf32>
    %cst_52 = arith.constant 0.000000e+00 : f32
    %147 = vector.broadcast %cst_52 : f32 to vector<2x32xf32>
    %148 = arith.subf %147, %146 : vector<2x32xf32>
    %149 = math.exp %148 : vector<2x32xf32>
    %cst_53 = arith.constant 1.000000e+00 : f32
    %150 = vector.broadcast %cst_53 : f32 to vector<2x32xf32>
    %151 = arith.addf %150, %149 : vector<2x32xf32>
    %152 = tpu.reciprocal %151 {approx = true} : vector<2x32xf32> -> vector<2x32xf32>
    %153 = vector.extract_strided_slice %138 {offsets = [0, 64], sizes = [2, 32], strides = [1, 1]} : vector<2x128xf32> to vector<2x32xf32>
    %154 = math.tanh %153 : vector<2x32xf32>
    %155 = vector.extract_strided_slice %138 {offsets = [0, 96], sizes = [2, 32], strides = [1, 1]} : vector<2x128xf32> to vector<2x32xf32>
    %cst_54 = arith.constant 0.000000e+00 : f32
    %156 = vector.broadcast %cst_54 : f32 to vector<2x32xf32>
    %157 = arith.subf %156, %155 : vector<2x32xf32>
    %158 = math.exp %157 : vector<2x32xf32>
    %cst_55 = arith.constant 1.000000e+00 : f32
    %159 = vector.broadcast %cst_55 : f32 to vector<2x32xf32>
    %160 = arith.addf %159, %158 : vector<2x32xf32>
    %161 = tpu.reciprocal %160 {approx = true} : vector<2x32xf32> -> vector<2x32xf32>
    %162 = arith.mulf %152, %131 : vector<2x32xf32>
    %163 = arith.mulf %145, %154 : vector<2x32xf32>
    %164 = arith.addf %162, %163 : vector<2x32xf32>
    %165 = math.tanh %164 : vector<2x32xf32>
    %166 = arith.mulf %161, %165 : vector<2x32xf32>
    %c5 = arith.constant 5 : index
    %c0_56 = arith.constant 0 : index
    %c0_57 = arith.constant 0 : index
    %167 = vector.load %arg1[%c5, %c0_56, %c0_57] : memref<8x2x128xf32, #tpu.memory_space<vmem>>, vector<1x2x128xf32>
    %168 = vector.shape_cast %167 : vector<1x2x128xf32> to vector<2x128xf32>
    %c0_58 = arith.constant 0 : index
    %c0_59 = arith.constant 0 : index
    %169 = vector.load %arg2[%c0_58, %c0_59] : memref<32x128xf32, #tpu.memory_space<vmem>>, vector<32x128xf32>
    %cst_60 = arith.constant dense<0.000000e+00> : vector<2x128xf32>
    %170 = tpu.matmul %166, %169, %cst_60 {dimension_numbers = #tpu.dot_dimension_numbers<[1], [0], [0], [1], [0, 0, 1, 1], [], []>} : vector<2x32xf32>, vector<32x128xf32>, vector<2x128xf32> -> vector<2x128xf32>
    %171 = arith.addf %168, %170 : vector<2x128xf32>
    %172 = vector.extract_strided_slice %171 {offsets = [0, 0], sizes = [2, 32], strides = [1, 1]} : vector<2x128xf32> to vector<2x32xf32>
    %cst_61 = arith.constant 0.000000e+00 : f32
    %173 = vector.broadcast %cst_61 : f32 to vector<2x32xf32>
    %174 = arith.subf %173, %172 : vector<2x32xf32>
    %175 = math.exp %174 : vector<2x32xf32>
    %cst_62 = arith.constant 1.000000e+00 : f32
    %176 = vector.broadcast %cst_62 : f32 to vector<2x32xf32>
    %177 = arith.addf %176, %175 : vector<2x32xf32>
    %178 = tpu.reciprocal %177 {approx = true} : vector<2x32xf32> -> vector<2x32xf32>
    %179 = vector.extract_strided_slice %171 {offsets = [0, 32], sizes = [2, 32], strides = [1, 1]} : vector<2x128xf32> to vector<2x32xf32>
    %cst_63 = arith.constant 0.000000e+00 : f32
    %180 = vector.broadcast %cst_63 : f32 to vector<2x32xf32>
    %181 = arith.subf %180, %179 : vector<2x32xf32>
    %182 = math.exp %181 : vector<2x32xf32>
    %cst_64 = arith.constant 1.000000e+00 : f32
    %183 = vector.broadcast %cst_64 : f32 to vector<2x32xf32>
    %184 = arith.addf %183, %182 : vector<2x32xf32>
    %185 = tpu.reciprocal %184 {approx = true} : vector<2x32xf32> -> vector<2x32xf32>
    %186 = vector.extract_strided_slice %171 {offsets = [0, 64], sizes = [2, 32], strides = [1, 1]} : vector<2x128xf32> to vector<2x32xf32>
    %187 = math.tanh %186 : vector<2x32xf32>
    %188 = vector.extract_strided_slice %171 {offsets = [0, 96], sizes = [2, 32], strides = [1, 1]} : vector<2x128xf32> to vector<2x32xf32>
    %cst_65 = arith.constant 0.000000e+00 : f32
    %189 = vector.broadcast %cst_65 : f32 to vector<2x32xf32>
    %190 = arith.subf %189, %188 : vector<2x32xf32>
    %191 = math.exp %190 : vector<2x32xf32>
    %cst_66 = arith.constant 1.000000e+00 : f32
    %192 = vector.broadcast %cst_66 : f32 to vector<2x32xf32>
    %193 = arith.addf %192, %191 : vector<2x32xf32>
    %194 = tpu.reciprocal %193 {approx = true} : vector<2x32xf32> -> vector<2x32xf32>
    %195 = arith.mulf %185, %164 : vector<2x32xf32>
    %196 = arith.mulf %178, %187 : vector<2x32xf32>
    %197 = arith.addf %195, %196 : vector<2x32xf32>
    %198 = math.tanh %197 : vector<2x32xf32>
    %199 = arith.mulf %194, %198 : vector<2x32xf32>
    %c6 = arith.constant 6 : index
    %c0_67 = arith.constant 0 : index
    %c0_68 = arith.constant 0 : index
    %200 = vector.load %arg1[%c6, %c0_67, %c0_68] : memref<8x2x128xf32, #tpu.memory_space<vmem>>, vector<1x2x128xf32>
    %201 = vector.shape_cast %200 : vector<1x2x128xf32> to vector<2x128xf32>
    %c0_69 = arith.constant 0 : index
    %c0_70 = arith.constant 0 : index
    %202 = vector.load %arg2[%c0_69, %c0_70] : memref<32x128xf32, #tpu.memory_space<vmem>>, vector<32x128xf32>
    %cst_71 = arith.constant dense<0.000000e+00> : vector<2x128xf32>
    %203 = tpu.matmul %199, %202, %cst_71 {dimension_numbers = #tpu.dot_dimension_numbers<[1], [0], [0], [1], [0, 0, 1, 1], [], []>} : vector<2x32xf32>, vector<32x128xf32>, vector<2x128xf32> -> vector<2x128xf32>
    %204 = arith.addf %201, %203 : vector<2x128xf32>
    %205 = vector.extract_strided_slice %204 {offsets = [0, 0], sizes = [2, 32], strides = [1, 1]} : vector<2x128xf32> to vector<2x32xf32>
    %cst_72 = arith.constant 0.000000e+00 : f32
    %206 = vector.broadcast %cst_72 : f32 to vector<2x32xf32>
    %207 = arith.subf %206, %205 : vector<2x32xf32>
    %208 = math.exp %207 : vector<2x32xf32>
    %cst_73 = arith.constant 1.000000e+00 : f32
    %209 = vector.broadcast %cst_73 : f32 to vector<2x32xf32>
    %210 = arith.addf %209, %208 : vector<2x32xf32>
    %211 = tpu.reciprocal %210 {approx = true} : vector<2x32xf32> -> vector<2x32xf32>
    %212 = vector.extract_strided_slice %204 {offsets = [0, 32], sizes = [2, 32], strides = [1, 1]} : vector<2x128xf32> to vector<2x32xf32>
    %cst_74 = arith.constant 0.000000e+00 : f32
    %213 = vector.broadcast %cst_74 : f32 to vector<2x32xf32>
    %214 = arith.subf %213, %212 : vector<2x32xf32>
    %215 = math.exp %214 : vector<2x32xf32>
    %cst_75 = arith.constant 1.000000e+00 : f32
    %216 = vector.broadcast %cst_75 : f32 to vector<2x32xf32>
    %217 = arith.addf %216, %215 : vector<2x32xf32>
    %218 = tpu.reciprocal %217 {approx = true} : vector<2x32xf32> -> vector<2x32xf32>
    %219 = vector.extract_strided_slice %204 {offsets = [0, 64], sizes = [2, 32], strides = [1, 1]} : vector<2x128xf32> to vector<2x32xf32>
    %220 = math.tanh %219 : vector<2x32xf32>
    %221 = vector.extract_strided_slice %204 {offsets = [0, 96], sizes = [2, 32], strides = [1, 1]} : vector<2x128xf32> to vector<2x32xf32>
    %cst_76 = arith.constant 0.000000e+00 : f32
    %222 = vector.broadcast %cst_76 : f32 to vector<2x32xf32>
    %223 = arith.subf %222, %221 : vector<2x32xf32>
    %224 = math.exp %223 : vector<2x32xf32>
    %cst_77 = arith.constant 1.000000e+00 : f32
    %225 = vector.broadcast %cst_77 : f32 to vector<2x32xf32>
    %226 = arith.addf %225, %224 : vector<2x32xf32>
    %227 = tpu.reciprocal %226 {approx = true} : vector<2x32xf32> -> vector<2x32xf32>
    %228 = arith.mulf %218, %197 : vector<2x32xf32>
    %229 = arith.mulf %211, %220 : vector<2x32xf32>
    %230 = arith.addf %228, %229 : vector<2x32xf32>
    %231 = math.tanh %230 : vector<2x32xf32>
    %232 = arith.mulf %227, %231 : vector<2x32xf32>
    %c7 = arith.constant 7 : index
    %c0_78 = arith.constant 0 : index
    %c0_79 = arith.constant 0 : index
    %233 = vector.load %arg1[%c7, %c0_78, %c0_79] : memref<8x2x128xf32, #tpu.memory_space<vmem>>, vector<1x2x128xf32>
    %234 = vector.shape_cast %233 : vector<1x2x128xf32> to vector<2x128xf32>
    %c0_80 = arith.constant 0 : index
    %c0_81 = arith.constant 0 : index
    %235 = vector.load %arg2[%c0_80, %c0_81] : memref<32x128xf32, #tpu.memory_space<vmem>>, vector<32x128xf32>
    %cst_82 = arith.constant dense<0.000000e+00> : vector<2x128xf32>
    %236 = tpu.matmul %232, %235, %cst_82 {dimension_numbers = #tpu.dot_dimension_numbers<[1], [0], [0], [1], [0, 0, 1, 1], [], []>} : vector<2x32xf32>, vector<32x128xf32>, vector<2x128xf32> -> vector<2x128xf32>
    %237 = arith.addf %234, %236 : vector<2x128xf32>
    %238 = vector.extract_strided_slice %237 {offsets = [0, 0], sizes = [2, 32], strides = [1, 1]} : vector<2x128xf32> to vector<2x32xf32>
    %cst_83 = arith.constant 0.000000e+00 : f32
    %239 = vector.broadcast %cst_83 : f32 to vector<2x32xf32>
    %240 = arith.subf %239, %238 : vector<2x32xf32>
    %241 = math.exp %240 : vector<2x32xf32>
    %cst_84 = arith.constant 1.000000e+00 : f32
    %242 = vector.broadcast %cst_84 : f32 to vector<2x32xf32>
    %243 = arith.addf %242, %241 : vector<2x32xf32>
    %244 = tpu.reciprocal %243 {approx = true} : vector<2x32xf32> -> vector<2x32xf32>
    %245 = vector.extract_strided_slice %237 {offsets = [0, 32], sizes = [2, 32], strides = [1, 1]} : vector<2x128xf32> to vector<2x32xf32>
    %cst_85 = arith.constant 0.000000e+00 : f32
    %246 = vector.broadcast %cst_85 : f32 to vector<2x32xf32>
    %247 = arith.subf %246, %245 : vector<2x32xf32>
    %248 = math.exp %247 : vector<2x32xf32>
    %cst_86 = arith.constant 1.000000e+00 : f32
    %249 = vector.broadcast %cst_86 : f32 to vector<2x32xf32>
    %250 = arith.addf %249, %248 : vector<2x32xf32>
    %251 = tpu.reciprocal %250 {approx = true} : vector<2x32xf32> -> vector<2x32xf32>
    %252 = vector.extract_strided_slice %237 {offsets = [0, 64], sizes = [2, 32], strides = [1, 1]} : vector<2x128xf32> to vector<2x32xf32>
    %253 = math.tanh %252 : vector<2x32xf32>
    %254 = vector.extract_strided_slice %237 {offsets = [0, 96], sizes = [2, 32], strides = [1, 1]} : vector<2x128xf32> to vector<2x32xf32>
    %cst_87 = arith.constant 0.000000e+00 : f32
    %255 = vector.broadcast %cst_87 : f32 to vector<2x32xf32>
    %256 = arith.subf %255, %254 : vector<2x32xf32>
    %257 = math.exp %256 : vector<2x32xf32>
    %cst_88 = arith.constant 1.000000e+00 : f32
    %258 = vector.broadcast %cst_88 : f32 to vector<2x32xf32>
    %259 = arith.addf %258, %257 : vector<2x32xf32>
    %260 = tpu.reciprocal %259 {approx = true} : vector<2x32xf32> -> vector<2x32xf32>
    %261 = arith.mulf %251, %230 : vector<2x32xf32>
    %262 = arith.mulf %244, %253 : vector<2x32xf32>
    %263 = arith.addf %261, %262 : vector<2x32xf32>
    %264 = math.tanh %263 : vector<2x32xf32>
    %265 = arith.mulf %260, %264 : vector<2x32xf32>
    %c0_89 = arith.constant 0 : index
    %c0_90 = arith.constant 0 : index
    %266 = vector.load %arg3[%c0_89, %c0_90] : memref<2x32xf32, #tpu.memory_space<vmem>>, vector<2x32xf32>
    tpu.vector_store %arg3[%c0_89, %c0_90], %265 {strides = array<i32>} : memref<2x32xf32, #tpu.memory_space<vmem>>, vector<2x32xf32>,
    return
  }
  func.func @transform_0(%arg0: i32) -> (i32, i32, i32) {
    %c0_i32 = arith.constant 0 : i32
    %c0_i32_0 = arith.constant 0 : i32
    %c0_i32_1 = arith.constant 0 : i32
    %c0_i32_2 = arith.constant 0 : i32
    return %c0_i32, %c0_i32_0, %c0_i32_1 : i32, i32, i32
  }
  func.func @transform_1(%arg0: i32) -> (i32, i32) {
    %c0_i32 = arith.constant 0 : i32
    %c0_i32_0 = arith.constant 0 : i32
    %c0_i32_1 = arith.constant 0 : i32
    return %c0_i32, %c0_i32_0 : i32, i32
  }
  func.func @transform_2(%arg0: i32) -> (i32, i32) {
    %c0_i32 = arith.constant 0 : i32
    %c0_i32_0 = arith.constant 0 : i32
    %c0_i32_1 = arith.constant 0 : i32
    return %c0_i32, %c0_i32_0 : i32, i32
  }
}

module attributes {stable_mosaic.version = 11 : i64} {
  func.func @linear_kernel(%arg0: i32, %arg1: memref<2x32xf32, #tpu.memory_space<vmem>>, %arg2: memref<32x4xf32, #tpu.memory_space<vmem>>, %arg3: memref<1x4xf32, #tpu.memory_space<vmem>>, %arg4: memref<2x4xf32, #tpu.memory_space<vmem>>, %arg5: memref<2x4xf32, #tpu.memory_space<vmem>>) attributes {dimension_semantics = [#tpu.dimension_semantics<arbitrary>], iteration_bounds = array<i64: 1>, scalar_prefetch = 0 : i64, scratch_operands = 1 : i64, tpu.core_type = #tpu.core_type<tc>, window_params = [{transform_indices = @transform_0, window_bounds = array<i64: 2, 32>}, {transform_indices = @transform_1, window_bounds = array<i64: 32, 4>}, {pipeline_mode = #tpu.pipeline_mode<synchronous>, transform_indices = @transform_2, window_bounds = array<i64: 1, 4>}, {pipeline_mode = #tpu.pipeline_mode<synchronous>, transform_indices = @transform_3, window_bounds = array<i64: 2, 4>}]} {
    %c0_i32 = arith.constant 0 : i32
    %0 = arith.cmpi eq, %arg0, %c0_i32 : i32
    %1 = arith.extui %0 : i1 to i32
    %c0_i32_0 = arith.constant 0 : i32
    %2 = arith.cmpi ne, %1, %c0_i32_0 : i32
    scf.if %2 {
      %cst_10 = arith.constant 0.000000e+00 : f32
      %12 = vector.broadcast %cst_10 : f32 to vector<2x4xf32>
      %c0_11 = arith.constant 0 : index
      %c0_12 = arith.constant 0 : index
      %13 = vector.load %arg5[%c0_11, %c0_12] : memref<2x4xf32, #tpu.memory_space<vmem>>, vector<2x4xf32>
      tpu.vector_store %arg5[%c0_11, %c0_12], %12 {strides = array<i32>} : memref<2x4xf32, #tpu.memory_space<vmem>>, vector<2x4xf32>,
    } else {
    }
    %c0 = arith.constant 0 : index
    %c0_1 = arith.constant 0 : index
    %3 = vector.load %arg5[%c0, %c0_1] : memref<2x4xf32, #tpu.memory_space<vmem>>, vector<2x4xf32>
    %c0_2 = arith.constant 0 : index
    %c0_3 = arith.constant 0 : index
    %4 = vector.load %arg1[%c0_2, %c0_3] : memref<2x32xf32, #tpu.memory_space<vmem>>, vector<2x32xf32>
    %c0_4 = arith.constant 0 : index
    %c0_5 = arith.constant 0 : index
    %5 = vector.load %arg2[%c0_4, %c0_5] : memref<32x4xf32, #tpu.memory_space<vmem>>, vector<32x4xf32>
    %cst = arith.constant dense<0.000000e+00> : vector<2x4xf32>
    %6 = tpu.matmul %4, %5, %cst {dimension_numbers = #tpu.dot_dimension_numbers<[1], [0], [0], [1], [0, 0, 1, 1], [], []>} : vector<2x32xf32>, vector<32x4xf32>, vector<2x4xf32> -> vector<2x4xf32>
    %7 = arith.addf %3, %6 : vector<2x4xf32>
    %c0_6 = arith.constant 0 : index
    %c0_7 = arith.constant 0 : index
    %8 = vector.load %arg5[%c0_6, %c0_7] : memref<2x4xf32, #tpu.memory_space<vmem>>, vector<2x4xf32>
    tpu.vector_store %arg5[%c0_6, %c0_7], %7 {strides = array<i32>} : memref<2x4xf32, #tpu.memory_space<vmem>>, vector<2x4xf32>,
    %c0_i32_8 = arith.constant 0 : i32
    %9 = arith.cmpi eq, %arg0, %c0_i32_8 : i32
    %10 = arith.extui %9 : i1 to i32
    %c0_i32_9 = arith.constant 0 : i32
    %11 = arith.cmpi ne, %10, %c0_i32_9 : i32
    scf.if %11 {
      %c0_10 = arith.constant 0 : index
      %c0_11 = arith.constant 0 : index
      %12 = vector.load %arg5[%c0_10, %c0_11] : memref<2x4xf32, #tpu.memory_space<vmem>>, vector<2x4xf32>
      %c0_12 = arith.constant 0 : index
      %c0_13 = arith.constant 0 : index
      %13 = vector.load %arg3[%c0_12, %c0_13] : memref<1x4xf32, #tpu.memory_space<vmem>>, vector<1x4xf32>
      %14 = vector.broadcast %13 : vector<1x4xf32> to vector<2x4xf32>
      %15 = arith.addf %12, %14 : vector<2x4xf32>
      %c0_14 = arith.constant 0 : index
      %c0_15 = arith.constant 0 : index
      %16 = vector.load %arg4[%c0_14, %c0_15] : memref<2x4xf32, #tpu.memory_space<vmem>>, vector<2x4xf32>
      tpu.vector_store %arg4[%c0_14, %c0_15], %15 {strides = array<i32>} : memref<2x4xf32, #tpu.memory_space<vmem>>, vector<2x4xf32>,
    } else {
    }
    return
  }
  func.func @transform_0(%arg0: i32) -> (i32, i32) {
    %c0_i32 = arith.constant 0 : i32
    %c0_i32_0 = arith.constant 0 : i32
    return %c0_i32, %arg0 : i32, i32
  }
  func.func @transform_1(%arg0: i32) -> (i32, i32) {
    %c0_i32 = arith.constant 0 : i32
    %c0_i32_0 = arith.constant 0 : i32
    return %arg0, %c0_i32 : i32, i32
  }
  func.func @transform_2(%arg0: i32) -> (i32, i32) {
    %c0_i32 = arith.constant 0 : i32
    %c0_i32_0 = arith.constant 0 : i32
    %c0_i32_1 = arith.constant 0 : i32
    return %c0_i32, %c0_i32_0 : i32, i32
  }
  func.func @transform_3(%arg0: i32) -> (i32, i32) {
    %c0_i32 = arith.constant 0 : i32
    %c0_i32_0 = arith.constant 0 : i32
    %c0_i32_1 = arith.constant 0 : i32
    return %c0_i32, %c0_i32_0 : i32, i32
  }
}

module attributes {stable_mosaic.version = 11 : i64} {
  func.func @linear_kernel(%arg0: i32, %arg1: memref<2x8xf32, #tpu.memory_space<vmem>>, %arg2: memref<8x4xf32, #tpu.memory_space<vmem>>, %arg3: memref<1x4xf32, #tpu.memory_space<vmem>>, %arg4: memref<2x4xf32, #tpu.memory_space<vmem>>, %arg5: memref<2x4xf32, #tpu.memory_space<vmem>>) attributes {dimension_semantics = [#tpu.dimension_semantics<arbitrary>], iteration_bounds = array<i64: 1>, scalar_prefetch = 0 : i64, scratch_operands = 1 : i64, tpu.core_type = #tpu.core_type<tc>, window_params = [{transform_indices = @transform_0, window_bounds = array<i64: 2, 8>}, {transform_indices = @transform_1, window_bounds = array<i64: 8, 4>}, {pipeline_mode = #tpu.pipeline_mode<synchronous>, transform_indices = @transform_2, window_bounds = array<i64: 1, 4>}, {pipeline_mode = #tpu.pipeline_mode<synchronous>, transform_indices = @transform_3, window_bounds = array<i64: 2, 4>}]} {
    %c0_i32 = arith.constant 0 : i32
    %0 = arith.cmpi eq, %arg0, %c0_i32 : i32
    %1 = arith.extui %0 : i1 to i32
    %c0_i32_0 = arith.constant 0 : i32
    %2 = arith.cmpi ne, %1, %c0_i32_0 : i32
    scf.if %2 {
      %cst_10 = arith.constant 0.000000e+00 : f32
      %12 = vector.broadcast %cst_10 : f32 to vector<2x4xf32>
      %c0_11 = arith.constant 0 : index
      %c0_12 = arith.constant 0 : index
      %13 = vector.load %arg5[%c0_11, %c0_12] : memref<2x4xf32, #tpu.memory_space<vmem>>, vector<2x4xf32>
      tpu.vector_store %arg5[%c0_11, %c0_12], %12 {strides = array<i32>} : memref<2x4xf32, #tpu.memory_space<vmem>>, vector<2x4xf32>,
    } else {
    }
    %c0 = arith.constant 0 : index
    %c0_1 = arith.constant 0 : index
    %3 = vector.load %arg5[%c0, %c0_1] : memref<2x4xf32, #tpu.memory_space<vmem>>, vector<2x4xf32>
    %c0_2 = arith.constant 0 : index
    %c0_3 = arith.constant 0 : index
    %4 = vector.load %arg1[%c0_2, %c0_3] : memref<2x8xf32, #tpu.memory_space<vmem>>, vector<2x8xf32>
    %c0_4 = arith.constant 0 : index
    %c0_5 = arith.constant 0 : index
    %5 = vector.load %arg2[%c0_4, %c0_5] : memref<8x4xf32, #tpu.memory_space<vmem>>, vector<8x4xf32>
    %cst = arith.constant dense<0.000000e+00> : vector<2x4xf32>
    %6 = tpu.matmul %4, %5, %cst {dimension_numbers = #tpu.dot_dimension_numbers<[1], [0], [0], [1], [0, 0, 1, 1], [], []>} : vector<2x8xf32>, vector<8x4xf32>, vector<2x4xf32> -> vector<2x4xf32>
    %7 = arith.addf %3, %6 : vector<2x4xf32>
    %c0_6 = arith.constant 0 : index
    %c0_7 = arith.constant 0 : index
    %8 = vector.load %arg5[%c0_6, %c0_7] : memref<2x4xf32, #tpu.memory_space<vmem>>, vector<2x4xf32>
    tpu.vector_store %arg5[%c0_6, %c0_7], %7 {strides = array<i32>} : memref<2x4xf32, #tpu.memory_space<vmem>>, vector<2x4xf32>,
    %c0_i32_8 = arith.constant 0 : i32
    %9 = arith.cmpi eq, %arg0, %c0_i32_8 : i32
    %10 = arith.extui %9 : i1 to i32
    %c0_i32_9 = arith.constant 0 : i32
    %11 = arith.cmpi ne, %10, %c0_i32_9 : i32
    scf.if %11 {
      %c0_10 = arith.constant 0 : index
      %c0_11 = arith.constant 0 : index
      %12 = vector.load %arg5[%c0_10, %c0_11] : memref<2x4xf32, #tpu.memory_space<vmem>>, vector<2x4xf32>
      %c0_12 = arith.constant 0 : index
      %c0_13 = arith.constant 0 : index
      %13 = vector.load %arg3[%c0_12, %c0_13] : memref<1x4xf32, #tpu.memory_space<vmem>>, vector<1x4xf32>
      %14 = vector.broadcast %13 : vector<1x4xf32> to vector<2x4xf32>
      %15 = arith.addf %12, %14 : vector<2x4xf32>
      %c0_14 = arith.constant 0 : index
      %c0_15 = arith.constant 0 : index
      %16 = vector.load %arg4[%c0_14, %c0_15] : memref<2x4xf32, #tpu.memory_space<vmem>>, vector<2x4xf32>
      tpu.vector_store %arg4[%c0_14, %c0_15], %15 {strides = array<i32>} : memref<2x4xf32, #tpu.memory_space<vmem>>, vector<2x4xf32>,
    } else {
    }
    return
  }
  func.func @transform_0(%arg0: i32) -> (i32, i32) {
    %c0_i32 = arith.constant 0 : i32
    %c0_i32_0 = arith.constant 0 : i32
    return %c0_i32, %arg0 : i32, i32
  }
  func.func @transform_1(%arg0: i32) -> (i32, i32) {
    %c0_i32 = arith.constant 0 : i32
    %c0_i32_0 = arith.constant 0 : i32
    return %arg0, %c0_i32 : i32, i32
  }
  func.func @transform_2(%arg0: i32) -> (i32, i32) {
    %c0_i32 = arith.constant 0 : i32
    %c0_i32_0 = arith.constant 0 : i32
    %c0_i32_1 = arith.constant 0 : i32
    return %c0_i32, %c0_i32_0 : i32, i32
  }
  func.func @transform_3(%arg0: i32) -> (i32, i32) {
    %c0_i32 = arith.constant 0 : i32
    %c0_i32_0 = arith.constant 0 : i32
    %c0_i32_1 = arith.constant 0 : i32
    return %c0_i32, %c0_i32_0 : i32, i32
  }
}

</mosaic_0001>

<bundles_post_ra>
// kernel: multimodal_forward.12
= control target key start
LH: loop header
LB: loop body
LE: loop exit
PB: predicated region body
PF: predicated region fallthrough
CT: control target
= control target key end

     0   :  { %8 = vsyncpa [#allocation3], 0  ;;  %s3296_s12 = smov 0   ;;  %s3298_s13 = smov 0   ;;  %s4433_s0 = inlined_call_operand.hbm [shape: bf16[6,25], index: 0, kind: input, shape index: {}]   ;;  %s4434_s1 = inlined_call_operand.vmem [shape: bf16[25,127008], index: 1, kind: input, shape index: {}]   ;;  %s4435_s2 = inlined_call_operand.vmem [shape: f32[6,1], index: 2, kind: input, shape index: {}]   ;;  %s4436_s3 = inlined_call_operand.vmem [shape: bf16[6,127008], index: 3, kind: output, shape index: {}]  }
   0x1   :  { %s3300_s14 = smov 0  }
   0x2 LB: > { %s3312_s15 = sadd.s32 4294967295, %s3139_s14   ;;  %s3315_s16 = sadd.s32 1, %s3139_s14   ;;  %s3139_s14 = sphi %s3300_s14, %s4476_s14   ;;  %s3135_s13 = sphi %s3298_s13, %s4475_s13   ;;  %s3131_s12 = sphi %s3296_s12, %s4474_s12  }
   0x3   : > { %s39_s17 = ssub.s32 %s3139_s14, %s3315_s16  ;;  %s42_s18 = sadd.s32 1, %s3135_s13 }
   0x4   : > { %p40_p0 = scmp.eq.s32.totalorder %s39_s17, 0  ;;  %p49_p1 = scmp.ne.s32.totalorder %s3135_s13, %s3131_s12 }
   0x5   : > { %p50_p2 = scmp.eq.s32.totalorder %s3139_s14, 0  ;;  %p100_p3 = scmp.eq.s32.totalorder %s3312_s15, 35 }
   0x6   : > { %s3325_s19 = scalar_select %p40_p0, %s3135_s13, %s42_s18  }
   0x7   : > { %p3327_p4 = por %p50_p2, %p49_p1  ;;  %p3331_p5 = por %p100_p3, %p49_p1 }
   0x8   : > { %p2407_p6 = scmp.ge.s32.totalorder %s3139_s14, 1  ;;  %p113_p7 = scmp.lt.s32.totalorder %s3139_s14, 37 }
   0x9   : > { %s4439_s20 = scalar_select %p3327_p4, 1, 0 }
   0xa   : > { %s4440_s21 = scalar_select %p3331_p5, 1, 0 }
   0xb   : > { %p4437_p8 = scmp.eq.s32.totalorder %s3312_s15, 0  ;;  %p3338_p9 = pnand %p2407_p6, %p113_p7 }
   0xc   : > { %s3269_s23 = smov [#allocation2]   ;;  %s2957_s28 = scalar_lea.hbm %s4433_s0, 64 }
   0xd   : > { %s4441_s22 = scalar_select %p3338_p9, 1, 0 }
   0xe   : > { %s126_s24 = sshll.u32 %s3269_s23, 4  ;;  %p2579_p10 = pneg %p3338_p9  ;;  %s127_s24 = int_to_ptr.vmem [resolvable:$true] %s126_s24 }
   0xf   : > { %p2958_p12 = scmp.ne.s32.totalorder %s4433_s0, %s2957_s28  ;;  %p2964_p2 = scmp.lt.u32.totalorder %s2957_s28, %s4433_s0 }
  0x10   : > { %p3346_p11 = pnand %p4437_p8, %p2579_p10 }
  0x12   : > { %p2959_p13 = pneg %p3346_p11 }
  0x14   : > { %p2960_p0 = pnand %p2959_p13, %p2958_p12 }
  0x16   : > { %p2961_p1 = pneg %p2960_p0 }
  0x18   : > { %p2966_p3 = pnand %p2964_p2, %p2961_p1 }
  0x1a   : > { %2969 = shalt.err (!%p2966_p3)
}
  0x1b   : > { %s2970_s6 = scalar_lea.vmem %s127_s24, 64  ;;  %p2978_p8 = scmp.lt.s32.totalorder %s127_s24, %s127_s24 }
  0x1c   : > { %p2971_p6 = scmp.ne.s32.totalorder %s127_s24, %s2970_s6  ;;  %p2979_p5 = scmp.lt.s32.totalorder %s2970_s6, %s2970_s6 }
  0x1e   : > { %p2973_p7 = pnand %p2971_p6, %p2959_p13  ;;  %p2980_p9 = por %p2979_p5, %p2978_p8 }
  0x20   : > { %p2974_p10 = pneg %p2973_p7 }
  0x22   : > { %p2981_p4 = pnand %p2980_p9, %p2974_p10 }
  0x24   : > { %2984 = shalt.err (!%p2981_p4)
}
  0x25   : > { %2582 = dma.hbm_to_vmem [thread:$0]  (!%p3346_p11), %s4433_s0, 64, %s127_s24, [#allocation3]  }
  0x26   : > { %p2409_p12 = scmp.ge.s32.totalorder %s3139_s14, 36 }
  0x27   : > { %p4443_p0 = scmp.ne.s32.totalorder (!%p2409_p12), %s4439_s20, 0 }
  0x28   : > { %136 = sbr.rel (%p2409_p12) target bundleno = 215 (0xd7), region = 24 }
  0x2f   : > { %139 = sbr.rel (!%p4443_p0) target bundleno = 215 (0xd7), region = 28  ;;  %s141_s9 = sand.u32 (%p4443_p0), 1, %s3135_s13  }
  0x30   : > { %s144_s10 = smul.u32 (%p4443_p0), 28, %s3139_s14 }
  0x31   : > { %s2572_s11 = smul.u32 (%p4443_p0), 448, %s141_s9 }
  0x32   : > { %s145_s17 = ssub.s32 (%p4443_p0), 993, %s144_s10  ;;  %s2548_s18 = smul.u32 (%p4443_p0), 112, %s3139_s14 }
  0x33   : > { %p146_p4 = scmp.lt.s32.totalorder (%p4443_p0), %s145_s17, 28  ;;  %s3379_s20 = scalar_lea.vmem (%p4443_p0), [#allocation4], %s2572_s11  }
  0x34   : > { %s3375_s26 = scalar_lea.vmem (%p4443_p0), %s4434_s1, %s2548_s18  }
  0x36   : > { %s4478_s17 = smov (!%p146_p4, %s145_s17), 28 }
  0x37   : > { %s2410_s24 = sshll.u32 %s4478_s17, 8  ;;  %s3377_s27 = sshll.u32 %s4478_s17, 2 }
  0x38   : > { %p2414_p5 = scmp.eq.s32.totalorder %s2410_s24, 0 }
  0x39   : > { %p156_p8 = scmp.lt.u32.totalorder (!%p2414_p5), %s3377_s27, 8 }
  0x3a   : > { %155 = sbr.rel (%p2414_p5) target bundleno = 215 (0xd7), region = 32 }
  0x41   : > { %159 = sbr.rel (%p156_p8) target bundleno = 206 (0xce), region = 36  ;;  %s3383_s28 = sand.u32 (!%p156_p8), 7, %s3377_s27  }
  0x42   : > { %p181_p9 = scmp.eq.s32.totalorder (!%p156_p8), %s3383_s28, 0  ;;  %p2415_p11 = scmp.ne.s32.totalorder (!%p156_p8), %s3383_s28, 0 }
  0x48   : > { %184 = sbr.rel (%p2415_p11) target bundleno = 136 (0x88), region = 51  ;;  %s185_s14 = sshrl.u32 (!%p2415_p11), %s3377_s27, 3 }
  0x49   : > { %s3390_s29 = sshrl.u32 (!%p2415_p11), %s185_s14, 4 }
  0x4a   : > { %p2416_p13 = scmp.le.s32.totalorder (!%p2415_p11), %s3390_s29, 0 }
  0x4f   : > { %2269 = sbr.rel (%p2416_p13) target bundleno = 116 (0x74), region = 234  ;;  %s4444_s30 = smov (!%p2416_p13), %s3379_s20 }
  0x50   : > { %s4445_s4 = smov (!%p2416_p13), %s3375_s26  ;;  %s3399_s5 = smov (!%p2416_p13), 0  }
  0x51   : > { %s3401_s6 = smov (!%p2416_p13), 0  }
  0x56 LB: >> { %v198_v0 = vld [vmem:[%s3147_s4] sm:$0xff]  ;;  %v200_v1 = vld [vmem:[%s3147_s4 + $0x8] sm:$0xff]  ;;  %v202_v2 = vld [vmem:[%s3147_s4 + $0x10] sm:$0xff]  ;;  %s326_s7 = sadd.s32 1, %s3151_s5  ;;  %s192_s6 = sadd.s32 1, %s3155_s6   ;;  %s3155_s6 = sphi %s3401_s6, %s192_s6   ;;  %s3151_s5 = sphi %s3399_s5, %s4448_s5   ;;  %s3147_s4 = sphi %s4445_s4, %s4447_s4   ;;  %s3143_s30 = sphi %s4444_s30, %s4446_s30  }
  0x57   : >> { %199 = vst [vmem:[%s3143_s30] sm:$0xff] %v198_v0  ;;  %201 = vst [vmem:[%s3143_s30 + $0x8] sm:$0xff] %v200_v1  ;;  %v204_v3 = vld [vmem:[%s3147_s4 + $0x18] sm:$0xff]  ;;  %v206_v4 = vld [vmem:[%s3147_s4 + $0x20] sm:$0xff]  ;;  %p327_p1 = scmp.ge.s32.totalorder %s326_s7, %s3390_s29  ;;  %p191_p2 = scmp.ge.s32.totalorder %s192_s6, %s3390_s29 }
  0x58   : >> { %203 = vst [vmem:[%s3143_s30 + $0x10] sm:$0xff] %v202_v2  ;;  %v208_v5 = vld [vmem:[%s3147_s4 + $0x28] sm:$0xff]  ;;  %205 = vst [vmem:[%s3143_s30 + $0x18] sm:$0xff] %v204_v3  ;;  %v210_v6 = vld [vmem:[%s3147_s4 + $0x30] sm:$0xff] }
  0x59   : >> { %207 = vst [vmem:[%s3143_s30 + $0x20] sm:$0xff] %v206_v4  ;;  %209 = vst [vmem:[%s3143_s30 + $0x28] sm:$0xff] %v208_v5  ;;  %v212_v7 = vld [vmem:[%s3147_s4 + $0x38] sm:$0xff]  ;;  %v214_v8 = vld [vmem:[%s3147_s4 + $0x40] sm:$0xff]  ;;  %s4480_s7 = smov (%p327_p1, %s326_s7), 0 }
  0x5a   : >> { %211 = vst [vmem:[%s3143_s30 + $0x30] sm:$0xff] %v210_v6  ;;  %213 = vst [vmem:[%s3143_s30 + $0x38] sm:$0xff] %v212_v7  ;;  %v216_v9 = vld [vmem:[%s3147_s4 + $0x48] sm:$0xff]  ;;  %v218_v10 = vld [vmem:[%s3147_s4 + $0x50] sm:$0xff]  ;;  %s2417_s8 = sshll.u32 %s4480_s7, 7  ;;  %s4448_s5 = smov %s4480_s7 }
  0x5b   : >> { %215 = vst [vmem:[%s3143_s30 + $0x40] sm:$0xff] %v214_v8  ;;  %v220_v11 = vld [vmem:[%s3147_s4 + $0x58] sm:$0xff]  ;;  %217 = vst [vmem:[%s3143_s30 + $0x48] sm:$0xff] %v216_v9  ;;  %v222_v12 = vld [vmem:[%s3147_s4 + $0x60] sm:$0xff]  ;;  %s3472_s9 = scalar_lea.vmem %s3375_s26, %s2417_s8   ;;  %s3475_s10 = scalar_lea.vmem %s3379_s20, %s2417_s8 [#allocation4]  }
  0x5c   : >> { %219 = vst [vmem:[%s3143_s30 + $0x50] sm:$0xff] %v218_v10  ;;  %221 = vst [vmem:[%s3143_s30 + $0x58] sm:$0xff] %v220_v11  ;;  %v224_v13 = vld [vmem:[%s3147_s4 + $0x68] sm:$0xff]  ;;  %v234_v16 = vld [vmem:[%s3147_s4 + $0xf94] sm:$0xff] }
  0x5d   : >> { %v230_v14 = vld [vmem:[%s3147_s4 + $0xf84] sm:$0xff]  ;;  %223 = vst [vmem:[%s3143_s30 + $0x60] sm:$0xff] %v222_v12  ;;  %225 = vst [vmem:[%s3143_s30 + $0x68] sm:$0xff] %v224_v13  ;;  %v232_v15 = vld [vmem:[%s3147_s4 + $0xf8c] sm:$0xff] }
  0x5e   : >> { %231 = vst [vmem:[%s3143_s30 + $0x70] sm:$0xff] %v230_v14  ;;  %v236_v17 = vld [vmem:[%s3147_s4 + $0xf9c] sm:$0xff]  ;;  %233 = vst [vmem:[%s3143_s30 + $0x78] sm:$0xff] %v232_v15  ;;  %v238_v18 = vld [vmem:[%s3147_s4 + $0xfa4] sm:$0xff] }
  0x5f   : >> { %235 = vst [vmem:[%s3143_s30 + $0x80] sm:$0xff] %v234_v16  ;;  %237 = vst [vmem:[%s3143_s30 + $0x88] sm:$0xff] %v236_v17  ;;  %v240_v19 = vld [vmem:[%s3147_s4 + $0xfac] sm:$0xff]  ;;  %v242_v20 = vld [vmem:[%s3147_s4 + $0xfb4] sm:$0xff] }
  0x60   : >> { %239 = vst [vmem:[%s3143_s30 + $0x90] sm:$0xff] %v238_v18  ;;  %241 = vst [vmem:[%s3143_s30 + $0x98] sm:$0xff] %v240_v19  ;;  %v244_v21 = vld [vmem:[%s3147_s4 + $0xfbc] sm:$0xff]  ;;  %v246_v22 = vld [vmem:[%s3147_s4 + $0xfc4] sm:$0xff] }
  0x61   : >> { %243 = vst [vmem:[%s3143_s30 + $0xa0] sm:$0xff] %v242_v20  ;;  %v248_v23 = vld [vmem:[%s3147_s4 + $0xfcc] sm:$0xff]  ;;  %245 = vst [vmem:[%s3143_s30 + $0xa8] sm:$0xff] %v244_v21  ;;  %v250_v24 = vld [vmem:[%s3147_s4 + $0xfd4] sm:$0xff] }
  0x62   : >> { %247 = vst [vmem:[%s3143_s30 + $0xb0] sm:$0xff] %v246_v22  ;;  %249 = vst [vmem:[%s3143_s30 + $0xb8] sm:$0xff] %v248_v23  ;;  %v252_v25 = vld [vmem:[%s3147_s4 + $0xfdc] sm:$0xff]  ;;  %v254_v26 = vld [vmem:[%s3147_s4 + $0xfe4] sm:$0xff] }
  0x63   : >> { %251 = vst [vmem:[%s3143_s30 + $0xc0] sm:$0xff] %v250_v24  ;;  %253 = vst [vmem:[%s3143_s30 + $0xc8] sm:$0xff] %v252_v25  ;;  %v256_v27 = vld [vmem:[%s3147_s4 + $0xfec] sm:$0xff]  ;;  %v266_v30 = vld [vmem:[%s3147_s4 + $0x1f18] sm:$0xff] }
  0x64   : >> { %255 = vst [vmem:[%s3143_s30 + $0xd0] sm:$0xff] %v254_v26  ;;  %v262_v28 = vld [vmem:[%s3147_s4 + $0x1f08] sm:$0xff]  ;;  %v264_v29 = vld [vmem:[%s3147_s4 + $0x1f10] sm:$0xff]  ;;  %257 = vst [vmem:[%s3143_s30 + $0xd8] sm:$0xff] %v256_v27 }
  0x65   : >> { %263 = vst [vmem:[%s3143_s30 + $0xe0] sm:$0xff] %v262_v28  ;;  %265 = vst [vmem:[%s3143_s30 + $0xe8] sm:$0xff] %v264_v29  ;;  %v268_v31 = vld [vmem:[%s3147_s4 + $0x1f20] sm:$0xff]  ;;  %v270_v32 = vld [vmem:[%s3147_s4 + $0x1f28] sm:$0xff] }
  0x66   : >> { %267 = vst [vmem:[%s3143_s30 + $0xf0] sm:$0xff] %v266_v30  ;;  %269 = vst [vmem:[%s3143_s30 + $0xf8] sm:$0xff] %v268_v31  ;;  %v272_v33 = vld [vmem:[%s3147_s4 + $0x1f30] sm:$0xff]  ;;  %v274_v34 = vld [vmem:[%s3147_s4 + $0x1f38] sm:$0xff] }
  0x67   : >> { %271 = vst [vmem:[%s3143_s30 + $0x100] sm:$0xff] %v270_v32  ;;  %v276_v35 = vld [vmem:[%s3147_s4 + $0x1f40] sm:$0xff]  ;;  %273 = vst [vmem:[%s3143_s30 + $0x108] sm:$0xff] %v272_v33  ;;  %v278_v36 = vld [vmem:[%s3147_s4 + $0x1f48] sm:$0xff] }
  0x68   : >> { %275 = vst [vmem:[%s3143_s30 + $0x110] sm:$0xff] %v274_v34  ;;  %277 = vst [vmem:[%s3143_s30 + $0x118] sm:$0xff] %v276_v35  ;;  %v280_v37 = vld [vmem:[%s3147_s4 + $0x1f50] sm:$0xff]  ;;  %v282_v38 = vld [vmem:[%s3147_s4 + $0x1f58] sm:$0xff] }
  0x69   : >> { %279 = vst [vmem:[%s3143_s30 + $0x120] sm:$0xff] %v278_v36  ;;  %281 = vst [vmem:[%s3143_s30 + $0x128] sm:$0xff] %v280_v37  ;;  %v284_v39 = vld [vmem:[%s3147_s4 + $0x1f60] sm:$0xff]  ;;  %v286_v40 = vld [vmem:[%s3147_s4 + $0x1f68] sm:$0xff] }
  0x6a   : >> { %283 = vst [vmem:[%s3143_s30 + $0x130] sm:$0xff] %v282_v38  ;;  %v288_v41 = vld [vmem:[%s3147_s4 + $0x1f70] sm:$0xff]  ;;  %285 = vst [vmem:[%s3143_s30 + $0x138] sm:$0xff] %v284_v39  ;;  %v298_v44 = vld [vmem:[%s3147_s4 + $0x2e9c] sm:$0xff] }
  0x6b   : >> { %287 = vst [vmem:[%s3143_s30 + $0x140] sm:$0xff] %v286_v40  ;;  %289 = vst [vmem:[%s3143_s30 + $0x148] sm:$0xff] %v288_v41  ;;  %v294_v42 = vld [vmem:[%s3147_s4 + $0x2e8c] sm:$0xff]  ;;  %v296_v43 = vld [vmem:[%s3147_s4 + $0x2e94] sm:$0xff] }
  0x6c   : >> { %295 = vst [vmem:[%s3143_s30 + $0x150] sm:$0xff] %v294_v42  ;;  %297 = vst [vmem:[%s3143_s30 + $0x158] sm:$0xff] %v296_v43  ;;  %v300_v45 = vld [vmem:[%s3147_s4 + $0x2ea4] sm:$0xff]  ;;  %v302_v46 = vld [vmem:[%s3147_s4 + $0x2eac] sm:$0xff] }
  0x6d   : >> { %299 = vst [vmem:[%s3143_s30 + $0x160] sm:$0xff] %v298_v44  ;;  %v304_v47 = vld [vmem:[%s3147_s4 + $0x2eb4] sm:$0xff]  ;;  %301 = vst [vmem:[%s3143_s30 + $0x168] sm:$0xff] %v300_v45  ;;  %v306_v48 = vld [vmem:[%s3147_s4 + $0x2ebc] sm:$0xff]  ;;  %194 = sbr.rel (!%p191_p2) target bundleno = 86 (0x56), region = 240 }
  0x6e   : >> { %303 = vst [vmem:[%s3143_s30 + $0x170] sm:$0xff] %v302_v46  ;;  %305 = vst [vmem:[%s3143_s30 + $0x178] sm:$0xff] %v304_v47  ;;  %v308_v49 = vld [vmem:[%s3147_s4 + $0x2ec4] sm:$0xff]  ;;  %v310_v50 = vld [vmem:[%s3147_s4 + $0x2ecc] sm:$0xff] }
  0x6f   : >> { %307 = vst [vmem:[%s3143_s30 + $0x180] sm:$0xff] %v306_v48  ;;  %309 = vst [vmem:[%s3143_s30 + $0x188] sm:$0xff] %v308_v49  ;;  %v312_v51 = vld [vmem:[%s3147_s4 + $0x2ed4] sm:$0xff]  ;;  %v314_v52 = vld [vmem:[%s3147_s4 + $0x2edc] sm:$0xff] }
  0x70   : >> { %311 = vst [vmem:[%s3143_s30 + $0x190] sm:$0xff] %v310_v50  ;;  %v316_v53 = vld [vmem:[%s3147_s4 + $0x2ee4] sm:$0xff]  ;;  %313 = vst [vmem:[%s3143_s30 + $0x198] sm:$0xff] %v312_v51  ;;  %v318_v54 = vld [vmem:[%s3147_s4 + $0x2eec] sm:$0xff] }
  0x71   : >> { %315 = vst [vmem:[%s3143_s30 + $0x1a0] sm:$0xff] %v314_v52  ;;  %317 = vst [vmem:[%s3143_s30 + $0x1a8] sm:$0xff] %v316_v53  ;;  %v320_v55 = vld [vmem:[%s3147_s4 + $0x2ef4] sm:$0xff]  ;;  %v322_v56 = vld [vmem:[%s3147_s4 + $0x2efc] sm:$0xff] }
  0x72   : >> { %319 = vst [vmem:[%s3143_s30 + $0x1b0] sm:$0xff] %v318_v54  ;;  %321 = vst [vmem:[%s3143_s30 + $0x1b8] sm:$0xff] %v320_v55  ;;  %v324_v57 = vld [vmem:[%s3147_s4 + $0x2f04] sm:$0xff]  ;;  %s4447_s4 = smov %s3472_s9 }
  0x73   : >> { %323 = vst [vmem:[%s3143_s30 + $0x1c0] sm:$0xff] %v322_v56  ;;  %325 = vst [vmem:[%s3143_s30 + $0x1c8] sm:$0xff] %v324_v57  ;;  %s4446_s30 = smov %s3475_s10 }
  0x74 PF: > { %s3557_s11 = sand.u32 15, %s185_s14   ;;  %s2549_s17 = sshll.u32 %s3390_s29, 11 }
  0x75   : > { %s337_s18 = sshra.s32 %s2549_s17, 4  ;;  %p2422_p3 = scmp.le.s32.totalorder %s3557_s11, 0 }
  0x76   : > { %s3561_s23 = scalar_lea.vmem %s3375_s26, %s337_s18   ;;  %s3564_s25 = scalar_lea.vmem %s3379_s20, %s337_s18 [#allocation4]  }
  0x77   : > { %2283 = sbr.rel (%p2422_p3) target bundleno = 136 (0x88), region = 245  ;;  %s4449_s24 = smov (!%p2422_p3), %s3564_s25 }
  0x78   : > { %s4450_s30 = smov (!%p2422_p3), %s3561_s23  ;;  %s3573_s4 = smov (!%p2422_p3), 0  }
  0x79   : > { %s3169_s5 = smov (!%p2422_p3), 0  }
  0x7e LB: >> { %v353_v58 = vld [vmem:[%s3163_s30] sm:$0xff]  ;;  %v357_v60 = vld [vmem:[%s3163_s30 + $0x1f08] sm:$0xff]  ;;  %s361_s14 = sadd.s32 1, %s3167_s4  ;;  %s347_s5 = sadd.s32 1, %s3171_s5   ;;  %s3171_s5 = sphi %s3169_s5, %s347_s5   ;;  %s3167_s4 = sphi %s3573_s4, %s4451_s4   ;;  %s3163_s30 = sphi %s4450_s30, %s366_s30   ;;  %s3159_s24 = sphi %s4449_s24, %s367_s24  }
  0x7f   : >> { %v355_v59 = vld [vmem:[%s3163_s30 + $0xf84] sm:$0xff]  ;;  %354 = vst [vmem:[%s3159_s24] sm:$0xff] %v353_v58  ;;  %358 = vst [vmem:[%s3159_s24 + $0xe0] sm:$0xff] %v357_v60  ;;  %v359_v61 = vld [vmem:[%s3163_s30 + $0x2e8c] sm:$0xff]  ;;  %p362_p6 = scmp.ge.s32.totalorder %s361_s14, %s3557_s11  ;;  %p346_p7 = scmp.ge.s32.totalorder %s347_s5, %s3557_s11 }
  0x80   : >> { %356 = vst [vmem:[%s3159_s24 + $0x70] sm:$0xff] %v355_v59  ;;  %360 = vst [vmem:[%s3159_s24 + $0x150] sm:$0xff] %v359_v61 }
  0x81   : >> { %s4482_s14 = smov (%p362_p6, %s361_s14), 0  ;;  %349 = sbr.rel (!%p346_p7) target bundleno = 126 (0x7e), region = 251 }
  0x82   : >> { %s2423_s29 = sshll.u32 %s4482_s14, 3  ;;  %s4451_s4 = smov %s4482_s14 }
  0x83   : >> { %s366_s30 = scalar_lea.vmem %s3561_s23, %s2423_s29   ;;  %s367_s24 = scalar_lea.vmem %s3564_s25, %s2423_s29 [#allocation4]  }
  0x88 PF: > { %370 = sbr.rel (%p181_p9) target bundleno = 206 (0xce), region = 69  ;;  %s372_s6 = ssub.s32 (!%p181_p9), %s3377_s27, %s3383_s28 }
  0x89   : > { %s376_s7 = sshrl.u32 (!%p181_p9), %s3377_s27, 3  ;;  %s3594_s8 = scalar_lea.vmem (!%p181_p9), %s3375_s26, %s372_s6 }
  0x8a   : > { %s3597_s9 = scalar_lea.vmem (!%p181_p9), %s3379_s20, %s372_s6 [#allocation4]  ;;  %s3601_s10 = sshrl.u32 (!%p181_p9), %s376_s7, 4 }
  0x8b   : > { %p2425_p10 = scmp.le.s32.totalorder (!%p181_p9), %s3601_s10, 0 }
  0x8f   : > { %2297 = sbr.rel (%p2425_p10) target bundleno = 180 (0xb4), region = 256  ;;  %s4452_s11 = smov (!%p2425_p10), %s3379_s20 }
  0x90   : > { %s4453_s17 = smov (!%p2425_p10), %s3375_s26  ;;  %s3610_s18 = smov (!%p2425_p10), 0  }
  0x91   : > { %s3612_s23 = smov (!%p2425_p10), 0  }
  0x96 LB: >> { %v389_v62 = vld [vmem:[%s3179_s17] sm:$0xff]  ;;  %v391_v63 = vld [vmem:[%s3179_s17 + $0x8] sm:$0xff]  ;;  %v393_v0 = vld [vmem:[%s3179_s17 + $0x10] sm:$0xff]  ;;  %s517_s25 = sadd.s32 1, %s3183_s18  ;;  %s383_s23 = sadd.s32 1, %s3187_s23   ;;  %s3187_s23 = sphi %s3612_s23, %s383_s23   ;;  %s3183_s18 = sphi %s3610_s18, %s4456_s18   ;;  %s3179_s17 = sphi %s4453_s17, %s4455_s17   ;;  %s3175_s11 = sphi %s4452_s11, %s4454_s11  }
  0x97   : >> { %390 = vst [vmem:[%s3175_s11] sm:$0xff] %v389_v62  ;;  %392 = vst [vmem:[%s3175_s11 + $0x8] sm:$0xff] %v391_v63  ;;  %v395_v1 = vld [vmem:[%s3179_s17 + $0x18] sm:$0xff]  ;;  %v397_v2 = vld [vmem:[%s3179_s17 + $0x20] sm:$0xff]  ;;  %p518_p12 = scmp.ge.s32.totalorder %s517_s25, %s3601_s10  ;;  %p382_p0 = scmp.ge.s32.totalorder %s383_s23, %s3601_s10 }
  0x98   : >> { %394 = vst [vmem:[%s3175_s11 + $0x10] sm:$0xff] %v393_v0  ;;  %v399_v3 = vld [vmem:[%s3179_s17 + $0x28] sm:$0xff]  ;;  %396 = vst [vmem:[%s3175_s11 + $0x18] sm:$0xff] %v395_v1  ;;  %v401_v4 = vld [vmem:[%s3179_s17 + $0x30] sm:$0xff] }
  0x99   : >> { %398 = vst [vmem:[%s3175_s11 + $0x20] sm:$0xff] %v397_v2  ;;  %400 = vst [vmem:[%s3175_s11 + $0x28] sm:$0xff] %v399_v3  ;;  %v403_v5 = vld [vmem:[%s3179_s17 + $0x38] sm:$0xff]  ;;  %v405_v6 = vld [vmem:[%s3179_s17 + $0x40] sm:$0xff]  ;;  %s4484_s25 = smov (%p518_p12, %s517_s25), 0 }
  0x9a   : >> { %402 = vst [vmem:[%s3175_s11 + $0x30] sm:$0xff] %v401_v4  ;;  %404 = vst [vmem:[%s3175_s11 + $0x38] sm:$0xff] %v403_v5  ;;  %v407_v7 = vld [vmem:[%s3179_s17 + $0x48] sm:$0xff]  ;;  %v409_v8 = vld [vmem:[%s3179_s17 + $0x50] sm:$0xff]  ;;  %s2426_s24 = sshll.u32 %s4484_s25, 7  ;;  %s4456_s18 = smov %s4484_s25 }
  0x9b   : >> { %406 = vst [vmem:[%s3175_s11 + $0x40] sm:$0xff] %v405_v6  ;;  %v411_v9 = vld [vmem:[%s3179_s17 + $0x58] sm:$0xff]  ;;  %408 = vst [vmem:[%s3175_s11 + $0x48] sm:$0xff] %v407_v7  ;;  %v413_v10 = vld [vmem:[%s3179_s17 + $0x60] sm:$0xff]  ;;  %s3683_s30 = scalar_lea.vmem %s3375_s26, %s2426_s24   ;;  %s3686_s4 = scalar_lea.vmem %s3379_s20, %s2426_s24 [#allocation4]  }
  0x9c   : >> { %410 = vst [vmem:[%s3175_s11 + $0x50] sm:$0xff] %v409_v8  ;;  %412 = vst [vmem:[%s3175_s11 + $0x58] sm:$0xff] %v411_v9  ;;  %v415_v11 = vld [vmem:[%s3179_s17 + $0x68] sm:$0xff]  ;;  %v425_v14 = vld [vmem:[%s3179_s17 + $0xf94] sm:$0xff] }
  0x9d   : >> { %v421_v12 = vld [vmem:[%s3179_s17 + $0xf84] sm:$0xff]  ;;  %414 = vst [vmem:[%s3175_s11 + $0x60] sm:$0xff] %v413_v10  ;;  %416 = vst [vmem:[%s3175_s11 + $0x68] sm:$0xff] %v415_v11  ;;  %v423_v13 = vld [vmem:[%s3179_s17 + $0xf8c] sm:$0xff] }
  0x9e   : >> { %422 = vst [vmem:[%s3175_s11 + $0x70] sm:$0xff] %v421_v12  ;;  %v427_v15 = vld [vmem:[%s3179_s17 + $0xf9c] sm:$0xff]  ;;  %424 = vst [vmem:[%s3175_s11 + $0x78] sm:$0xff] %v423_v13  ;;  %v429_v16 = vld [vmem:[%s3179_s17 + $0xfa4] sm:$0xff] }
  0x9f   : >> { %426 = vst [vmem:[%s3175_s11 + $0x80] sm:$0xff] %v425_v14  ;;  %428 = vst [vmem:[%s3175_s11 + $0x88] sm:$0xff] %v427_v15  ;;  %v431_v17 = vld [vmem:[%s3179_s17 + $0xfac] sm:$0xff]  ;;  %v433_v18 = vld [vmem:[%s3179_s17 + $0xfb4] sm:$0xff] }
  0xa0   : >> { %430 = vst [vmem:[%s3175_s11 + $0x90] sm:$0xff] %v429_v16  ;;  %432 = vst [vmem:[%s3175_s11 + $0x98] sm:$0xff] %v431_v17  ;;  %v435_v19 = vld [vmem:[%s3179_s17 + $0xfbc] sm:$0xff]  ;;  %v437_v20 = vld [vmem:[%s3179_s17 + $0xfc4] sm:$0xff] }
  0xa1   : >> { %434 = vst [vmem:[%s3175_s11 + $0xa0] sm:$0xff] %v433_v18  ;;  %v439_v21 = vld [vmem:[%s3179_s17 + $0xfcc] sm:$0xff]  ;;  %436 = vst [vmem:[%s3175_s11 + $0xa8] sm:$0xff] %v435_v19  ;;  %v441_v22 = vld [vmem:[%s3179_s17 + $0xfd4] sm:$0xff] }
  0xa2   : >> { %438 = vst [vmem:[%s3175_s11 + $0xb0] sm:$0xff] %v437_v20  ;;  %440 = vst [vmem:[%s3175_s11 + $0xb8] sm:$0xff] %v439_v21  ;;  %v443_v23 = vld [vmem:[%s3179_s17 + $0xfdc] sm:$0xff]  ;;  %v445_v24 = vld [vmem:[%s3179_s17 + $0xfe4] sm:$0xff] }
  0xa3   : >> { %442 = vst [vmem:[%s3175_s11 + $0xc0] sm:$0xff] %v441_v22  ;;  %444 = vst [vmem:[%s3175_s11 + $0xc8] sm:$0xff] %v443_v23  ;;  %v447_v25 = vld [vmem:[%s3179_s17 + $0xfec] sm:$0xff]  ;;  %v457_v28 = vld [vmem:[%s3179_s17 + $0x1f18] sm:$0xff] }
  0xa4   : >> { %446 = vst [vmem:[%s3175_s11 + $0xd0] sm:$0xff] %v445_v24  ;;  %v453_v26 = vld [vmem:[%s3179_s17 + $0x1f08] sm:$0xff]  ;;  %v455_v27 = vld [vmem:[%s3179_s17 + $0x1f10] sm:$0xff]  ;;  %448 = vst [vmem:[%s3175_s11 + $0xd8] sm:$0xff] %v447_v25 }
  0xa5   : >> { %454 = vst [vmem:[%s3175_s11 + $0xe0] sm:$0xff] %v453_v26  ;;  %456 = vst [vmem:[%s3175_s11 + $0xe8] sm:$0xff] %v455_v27  ;;  %v459_v29 = vld [vmem:[%s3179_s17 + $0x1f20] sm:$0xff]  ;;  %v461_v30 = vld [vmem:[%s3179_s17 + $0x1f28] sm:$0xff] }
  0xa6   : >> { %458 = vst [vmem:[%s3175_s11 + $0xf0] sm:$0xff] %v457_v28  ;;  %460 = vst [vmem:[%s3175_s11 + $0xf8] sm:$0xff] %v459_v29  ;;  %v463_v31 = vld [vmem:[%s3179_s17 + $0x1f30] sm:$0xff]  ;;  %v465_v32 = vld [vmem:[%s3179_s17 + $0x1f38] sm:$0xff] }
  0xa7   : >> { %462 = vst [vmem:[%s3175_s11 + $0x100] sm:$0xff] %v461_v30  ;;  %v467_v33 = vld [vmem:[%s3179_s17 + $0x1f40] sm:$0xff]  ;;  %464 = vst [vmem:[%s3175_s11 + $0x108] sm:$0xff] %v463_v31  ;;  %v469_v34 = vld [vmem:[%s3179_s17 + $0x1f48] sm:$0xff] }
  0xa8   : >> { %466 = vst [vmem:[%s3175_s11 + $0x110] sm:$0xff] %v465_v32  ;;  %468 = vst [vmem:[%s3175_s11 + $0x118] sm:$0xff] %v467_v33  ;;  %v471_v35 = vld [vmem:[%s3179_s17 + $0x1f50] sm:$0xff]  ;;  %v473_v36 = vld [vmem:[%s3179_s17 + $0x1f58] sm:$0xff] }
  0xa9   : >> { %470 = vst [vmem:[%s3175_s11 + $0x120] sm:$0xff] %v469_v34  ;;  %472 = vst [vmem:[%s3175_s11 + $0x128] sm:$0xff] %v471_v35  ;;  %v475_v37 = vld [vmem:[%s3179_s17 + $0x1f60] sm:$0xff]  ;;  %v477_v38 = vld [vmem:[%s3179_s17 + $0x1f68] sm:$0xff] }
  0xaa   : >> { %474 = vst [vmem:[%s3175_s11 + $0x130] sm:$0xff] %v473_v36  ;;  %v479_v39 = vld [vmem:[%s3179_s17 + $0x1f70] sm:$0xff]  ;;  %476 = vst [vmem:[%s3175_s11 + $0x138] sm:$0xff] %v475_v37  ;;  %v489_v42 = vld [vmem:[%s3179_s17 + $0x2e9c] sm:$0xff] }
  0xab   : >> { %478 = vst [vmem:[%s3175_s11 + $0x140] sm:$0xff] %v477_v38  ;;  %480 = vst [vmem:[%s3175_s11 + $0x148] sm:$0xff] %v479_v39  ;;  %v485_v40 = vld [vmem:[%s3179_s17 + $0x2e8c] sm:$0xff]  ;;  %v487_v41 = vld [vmem:[%s3179_s17 + $0x2e94] sm:$0xff] }
  0xac   : >> { %486 = vst [vmem:[%s3175_s11 + $0x150] sm:$0xff] %v485_v40  ;;  %488 = vst [vmem:[%s3175_s11 + $0x158] sm:$0xff] %v487_v41  ;;  %v491_v43 = vld [vmem:[%s3179_s17 + $0x2ea4] sm:$0xff]  ;;  %v493_v44 = vld [vmem:[%s3179_s17 + $0x2eac] sm:$0xff] }
  0xad   : >> { %490 = vst [vmem:[%s3175_s11 + $0x160] sm:$0xff] %v489_v42  ;;  %v495_v45 = vld [vmem:[%s3179_s17 + $0x2eb4] sm:$0xff]  ;;  %492 = vst [vmem:[%s3175_s11 + $0x168] sm:$0xff] %v491_v43  ;;  %v497_v46 = vld [vmem:[%s3179_s17 + $0x2ebc] sm:$0xff]  ;;  %385 = sbr.rel (!%p382_p0) target bundleno = 150 (0x96), region = 262 }
  0xae   : >> { %494 = vst [vmem:[%s3175_s11 + $0x170] sm:$0xff] %v493_v44  ;;  %496 = vst [vmem:[%s3175_s11 + $0x178] sm:$0xff] %v495_v45  ;;  %v499_v47 = vld [vmem:[%s3179_s17 + $0x2ec4] sm:$0xff]  ;;  %v501_v48 = vld [vmem:[%s3179_s17 + $0x2ecc] sm:$0xff] }
  0xaf   : >> { %498 = vst [vmem:[%s3175_s11 + $0x180] sm:$0xff] %v497_v46  ;;  %500 = vst [vmem:[%s3175_s11 + $0x188] sm:$0xff] %v499_v47  ;;  %v503_v49 = vld [vmem:[%s3179_s17 + $0x2ed4] sm:$0xff]  ;;  %v505_v50 = vld [vmem:[%s3179_s17 + $0x2edc] sm:$0xff] }
  0xb0   : >> { %502 = vst [vmem:[%s3175_s11 + $0x190] sm:$0xff] %v501_v48  ;;  %v507_v51 = vld [vmem:[%s3179_s17 + $0x2ee4] sm:$0xff]  ;;  %504 = vst [vmem:[%s3175_s11 + $0x198] sm:$0xff] %v503_v49  ;;  %v509_v52 = vld [vmem:[%s3179_s17 + $0x2eec] sm:$0xff] }
  0xb1   : >> { %506 = vst [vmem:[%s3175_s11 + $0x1a0] sm:$0xff] %v505_v50  ;;  %508 = vst [vmem:[%s3175_s11 + $0x1a8] sm:$0xff] %v507_v51  ;;  %v511_v53 = vld [vmem:[%s3179_s17 + $0x2ef4] sm:$0xff]  ;;  %v513_v54 = vld [vmem:[%s3179_s17 + $0x2efc] sm:$0xff] }
  0xb2   : >> { %510 = vst [vmem:[%s3175_s11 + $0x1b0] sm:$0xff] %v509_v52  ;;  %512 = vst [vmem:[%s3175_s11 + $0x1b8] sm:$0xff] %v511_v53  ;;  %v515_v55 = vld [vmem:[%s3179_s17 + $0x2f04] sm:$0xff]  ;;  %s4455_s17 = smov %s3683_s30 }
  0xb3   : >> { %514 = vst [vmem:[%s3175_s11 + $0x1c0] sm:$0xff] %v513_v54  ;;  %516 = vst [vmem:[%s3175_s11 + $0x1c8] sm:$0xff] %v515_v55  ;;  %s4454_s11 = smov %s3686_s4 }
  0xb4 PF: > { %s3768_s5 = sand.u32 15, %s376_s7   ;;  %s2551_s14 = sshll.u32 %s3601_s10, 11 }
  0xb5   : > { %s528_s29 = sshra.s32 %s2551_s14, 4  ;;  %p2431_p4 = scmp.le.s32.totalorder %s3768_s5, 0 }
  0xb6   : > { %s3772_s6 = scalar_lea.vmem %s3375_s26, %s528_s29   ;;  %s3775_s24 = scalar_lea.vmem %s3379_s20, %s528_s29 [#allocation4]  }
  0xb7   : > { %2311 = sbr.rel (%p2431_p4) target bundleno = 200 (0xc8), region = 267  ;;  %s4457_s11 = smov (!%p2431_p4), %s3775_s24 }
  0xb8   : > { %s4458_s17 = smov (!%p2431_p4), %s3772_s6  ;;  %s3784_s18 = smov (!%p2431_p4), 0  }
  0xb9   : > { %s3201_s23 = smov (!%p2431_p4), 0  }
  0xbe LB: >> { %v544_v56 = vld [vmem:[%s3195_s17] sm:$0xff]  ;;  %v548_v58 = vld [vmem:[%s3195_s17 + $0x1f08] sm:$0xff]  ;;  %s552_s7 = sadd.s32 1, %s3199_s18  ;;  %s538_s23 = sadd.s32 1, %s3203_s23   ;;  %s3203_s23 = sphi %s3201_s23, %s538_s23   ;;  %s3199_s18 = sphi %s3784_s18, %s4459_s18   ;;  %s3195_s17 = sphi %s4458_s17, %s557_s17   ;;  %s3191_s11 = sphi %s4457_s11, %s558_s11  }
  0xbf   : >> { %v546_v57 = vld [vmem:[%s3195_s17 + $0xf84] sm:$0xff]  ;;  %545 = vst [vmem:[%s3191_s11] sm:$0xff] %v544_v56  ;;  %549 = vst [vmem:[%s3191_s11 + $0xe0] sm:$0xff] %v548_v58  ;;  %v550_v59 = vld [vmem:[%s3195_s17 + $0x2e8c] sm:$0xff]  ;;  %p553_p5 = scmp.ge.s32.totalorder %s552_s7, %s3768_s5  ;;  %p537_p8 = scmp.ge.s32.totalorder %s538_s23, %s3768_s5 }
  0xc0   : >> { %547 = vst [vmem:[%s3191_s11 + $0x70] sm:$0xff] %v546_v57  ;;  %551 = vst [vmem:[%s3191_s11 + $0x150] sm:$0xff] %v550_v59 }
  0xc1   : >> { %s4486_s7 = smov (%p553_p5, %s552_s7), 0  ;;  %540 = sbr.rel (!%p537_p8) target bundleno = 190 (0xbe), region = 273 }
  0xc2   : >> { %s2432_s10 = sshll.u32 %s4486_s7, 3  ;;  %s4459_s18 = smov %s4486_s7 }
  0xc3   : >> { %s557_s17 = scalar_lea.vmem %s3772_s6, %s2432_s10   ;;  %s558_s11 = scalar_lea.vmem %s3775_s24, %s2432_s10 [#allocation4]  }
  0xc8 PF: > { %s3270_s25 = smov 0  }
  0xc9   : > { %s559_s30 = sshllo.u32 %s3270_s25, %s3383_s28 }
  0xca   : > { %v568_v60 = vld [vmem:[%s3594_s8] sm:%s559_s30]  ;;  %v572_v62 = vld [vmem:[%s3594_s8 + $0x1f08] sm:%s559_s30] }
  0xcb   : > { %v570_v61 = vld [vmem:[%s3594_s8 + $0xf84] sm:%s559_s30]  ;;  %569 = vst [vmem:[%s3597_s9] sm:%s559_s30] %v568_v60 }
  0xcc   : > { %571 = vst [vmem:[%s3597_s9 + $0x70] sm:%s559_s30] %v570_v61  ;;  %v574_v63 = vld [vmem:[%s3594_s8 + $0x2e8c] sm:%s559_s30] }
  0xcd   : > { %573 = vst [vmem:[%s3597_s9 + $0xe0] sm:%s559_s30] %v572_v62  ;;  %575 = vst [vmem:[%s3597_s9 + $0x150] sm:%s559_s30] %v574_v63 }
  0xce PF: > { %p2434_p9 = scmp.ge.u32.totalorder %s3377_s27, 8 }
  0xcf   : > { %s3271_s4 = smov (!%p2434_p9), 0  }
  0xd0   : > { %162 = sbr.rel (%p2434_p9) target bundleno = 215 (0xd7), region = 40  ;;  %s163_s28 = sshllo.u32 (!%p2434_p9), %s3271_s4, %s3377_s27 }
  0xd1   : > { %v172_v0 = vld [vmem:[%s3375_s26] sm:%s163_s28] (!%p2434_p9)  ;;  %v176_v2 = vld [vmem:[%s3375_s26 + $0x1f08] sm:%s163_s28] (!%p2434_p9) }
  0xd2   : > { %v174_v1 = vld [vmem:[%s3375_s26 + $0xf84] sm:%s163_s28] (!%p2434_p9)  ;;  %173 = vst [vmem:[%s3379_s20] sm:%s163_s28] (!%p2434_p9), %v172_v0 }
  0xd3   : > { %175 = vst [vmem:[%s3379_s20 + $0x70] sm:%s163_s28] (!%p2434_p9), %v174_v1  ;;  %v178_v3 = vld [vmem:[%s3375_s26 + $0x2e8c] sm:%s163_s28] (!%p2434_p9) }
  0xd4   : > { %177 = vst [vmem:[%s3379_s20 + $0xe0] sm:%s163_s28] (!%p2434_p9), %v176_v2  ;;  %179 = vst [vmem:[%s3379_s20 + $0x150] sm:%s163_s28] (!%p2434_p9), %v178_v3 }
  0xd7 PF: > { %p4460_p11 = scmp.ne.s32.totalorder %s4441_s22, 0 }
  0xd8   : > { %p4461_p13 = scmp.eq.s32.totalorder (!%p4460_p11), %s3312_s15, 0 }
  0xd9   : > { %582 = sbr.rel (%p4460_p11) target bundleno = 671 (0x29f), region = 94 }
  0xe0   : > { %3126 = dma.done.wait (%p4461_p13), [#allocation3], 64   ;;  %p4462_p1 = pmov %p4461_p13 }
  0xe1   : > { %s589_s27 = sand.u32 1, %s3131_s12   ;;  %v3272_v4 = vmov 0   ;;  %vm941_vm0 = vcmask 1043456   ;;  %vm942_vm1 = vcmask 1044480   ;;  %v3273_v5 = vmov 65535   ;;  %p4463_p2 = scmp.ne.s32.totalorder %s4440_s21, 0 }
  0xe2   : > { %3128 = vsyncadd (%p4462_p1), [#allocation3], 4294967232  ;;  %s2573_s26 = smul.u32 448, %s589_s27  ;;  %1061 = vmatprep.mubr.bf16.mxu0 %v3272_v4  ;;  %1102 = vmatprep.mubr.bf16.mxu1 %v3272_v4  ;;  %v943_v6 = vsel %vm941_vm0, 4294967295, %v3273_v5  ;;  %v3846_v20 = vld [vmem:[#allocation2] sm:$0x7] }
  0xe3   : > { %2872 = vset.pattern.permute.xlu0 %v3272_v4  ;;  %v3836_v11 = vsel %vm942_vm1, %v943_v6, 0  ;;  %vm937_vm2 = vcmask 203776   ;;  %s2574_s9 = smul.u32 112, %s589_s27 }
  0xe4   : > { %s3830_s22 = scalar_lea.vmem [#allocation4], %s2573_s26  ;;  %s1764_s5 = smul.u32 (%p4463_p2), 28, %s3312_s15 }
  0xe5   : > { %v2873_v7 = vld [vmem:[%s3830_s22 + $0x4] ss:$112 sps:$4 sm:$0xff]   ;;  %v2875_v8 = vld [vmem:[%s3830_s22 + $0xc] ss:$112 sps:$4 sm:$0xff]   ;;  %v2877_v9 = vld [vmem:[%s3830_s22] ss:$112 sps:$4 sm:$0xff]  }
  0xe6   : > { %1029 = vmatprep.subr.bf16.mxu0 %v2873_v7  ;;  %v2878_v10 = vld [vmem:[%s3830_s22 + $0x8] ss:$112 sps:$4 sm:$0xff]   ;;  %1070 = vmatprep.subr.bf16.mxu1 %v2875_v8  ;;  %v2879_v12 = vld [vmem:[%s3830_s22 + $0xe4] ss:$112 sps:$4 sm:$0x1f]   ;;  %s3971_s12 = scalar_lea.vmem [#allocation5], %s2574_s9  }
  0xe7   : > { %1030 = vmatpush1.bf16.msra.mxu0 %v2877_v9  ;;  %1071 = vmatpush1.bf16.msra.mxu1 %v2878_v10  ;;  %v2881_v13 = vld [vmem:[%s3830_s22 + $0xec] ss:$112 sps:$4 sm:$0x1f]   ;;  %v949_v14 = vand.u32 %v2879_v12, %v3836_v11  ;;  %v2883_v15 = vld [vmem:[%s3830_s22 + $0xe0] ss:$112 sps:$4 sm:$0x1f]  }
  0xe8   : > { %v2884_v16 = vld [vmem:[%s3830_s22 + $0xe8] ss:$112 sps:$4 sm:$0x1f]   ;;  %v955_v17 = vand.u32 %v2881_v13, %v3836_v11  ;;  %v946_v18 = vand.u32 %v2883_v15, %v3836_v11  ;;  %v2885_v21 = vld [vmem:[%s3830_s22 + $0x10] ss:$112 sps:$4 sm:$0xff]   ;;  %s2567_s14 = smul.u32 (%p4463_p2), 112, %s3312_s15 }
  0xe9   : > { %1031 = vmatprep.subr.bf16.mxu0 %v949_v14  ;;  %v952_v19 = vand.u32 %v2884_v16, %v3836_v11  ;;  %v2887_v22 = vld [vmem:[%s3830_s22 + $0x14] ss:$112 sps:$4 sm:$0xff]   ;;  %v2888_v23 = vld [vmem:[%s3830_s22 + $0x18] ss:$112 sps:$4 sm:$0xff]   ;;  %v2890_v24 = vld [vmem:[%s3830_s22 + $0x1c] ss:$112 sps:$4 sm:$0xff]  }
  0xea   : > { %1072 = vmatprep.subr.bf16.mxu1 %v955_v17  ;;  %v2891_v25 = vld [vmem:[%s3830_s22 + $0xf0] ss:$112 sps:$4 sm:$0x1f]   ;;  %v2893_v26 = vld [vmem:[%s3830_s22 + $0xf4] ss:$112 sps:$4 sm:$0x1f]   ;;  %s4018_s11 = scalar_lea.vmem (%p4463_p2), %s4436_s3, %s2567_s14  }
  0xeb   : > { %1032 = vmatpush1.bf16.msra.mxu0 %v946_v18  ;;  %1073 = vmatpush1.bf16.msra.mxu1 %v952_v19  ;;  %v2894_v27 = vld [vmem:[%s3830_s22 + $0xf8] ss:$112 sps:$4 sm:$0x1f]   ;;  %v2896_v28 = vld [vmem:[%s3830_s22 + $0xfc] ss:$112 sps:$4 sm:$0x1f]   ;;  %v961_v29 = vand.u32 %v2893_v26, %v3836_v11  ;;  %v958_v31 = vand.u32 %v2891_v25, %v3836_v11 }
  0xec   : > { %1111 = vmatprep.subr.bf16.mxu0 %v2887_v22  ;;  %1152 = vmatprep.subr.bf16.mxu1 %v2890_v24  ;;  %v967_v30 = vand.u32 %v2896_v28, %v3836_v11  ;;  %v964_v32 = vand.u32 %v2894_v27, %v3836_v11  ;;  %v2899_v33 = vld [vmem:[%s3830_s22 + $0x24] ss:$112 sps:$4 sm:$0xff]   ;;  %v2902_v34 = vld [vmem:[%s3830_s22 + $0x2c] ss:$112 sps:$4 sm:$0xff]   ;;  %v2897_v35 = vld [vmem:[%s3830_s22 + $0x20] ss:$112 sps:$4 sm:$0xff]  }
  0xed   : > { %v2900_v36 = vld [vmem:[%s3830_s22 + $0x28] ss:$112 sps:$4 sm:$0xff]   ;;  %v2903_v37 = vld [vmem:[%s3830_s22 + $0x100] ss:$112 sps:$4 sm:$0x1f]   ;;  %s1765_s29 = ssub.s32 (%p4463_p2), 993, %s1764_s5 }
  0xee   : > { %2493 = vmatmul.mubr.msk.bf16.vlgmr.msra.gmra.mrb[0].mxu0 %vm937_vm2, %v3846_v20  ;;  %2494 = vmatmul.mubr.msk.bf16.vlgmr.msra.gmra.mrb[0].mxu1 %vm937_vm2, %v3846_v20  ;;  %v2905_v38 = vld [vmem:[%s3830_s22 + $0x104] ss:$112 sps:$4 sm:$0x1f]   ;;  %v2906_v39 = vld [vmem:[%s3830_s22 + $0x108] ss:$112 sps:$4 sm:$0x1f]   ;;  %v970_v44 = vand.u32 %v2903_v37, %v3836_v11 }
  0xef   : > { %1112 = vmatpush1.bf16.msra.mxu0 %v2885_v21  ;;  %1153 = vmatpush1.bf16.msra.mxu1 %v2888_v23  ;;  %v2908_v40 = vld [vmem:[%s3830_s22 + $0x10c] ss:$112 sps:$4 sm:$0x1f]   ;;  %v973_v41 = vand.u32 %v2905_v38, %v3836_v11  ;;  %v2911_v43 = vld [vmem:[%s3830_s22 + $0x34] ss:$112 sps:$4 sm:$0xff]   ;;  %v976_v45 = vand.u32 %v2906_v39, %v3836_v11  ;;  %p1766_p3 = scmp.lt.s32.totalorder (%p4463_p2), %s1765_s29, 28 }
  0xf0   : > { %1113 = vmatprep.subr.bf16.mxu0 %v961_v29  ;;  %1143 = vmatprep.mubr.bf16.mxu0 %v3272_v4  ;;  %v979_v42 = vand.u32 %v2908_v40, %v3836_v11  ;;  %v2914_v46 = vld [vmem:[%s3830_s22 + $0x3c] ss:$112 sps:$4 sm:$0xff]   ;;  %v2917_v47 = vld [vmem:[%s3830_s22 + $0x114] ss:$112 sps:$4 sm:$0x1f]  }
  0xf1   : > { %1154 = vmatprep.subr.bf16.mxu1 %v967_v30  ;;  %1184 = vmatprep.mubr.bf16.mxu1 %v3272_v4  ;;  %v2920_v48 = vld [vmem:[%s3830_s22 + $0x11c] ss:$112 sps:$4 sm:$0x1f]   ;;  %v2909_v49 = vld [vmem:[%s3830_s22 + $0x30] ss:$112 sps:$4 sm:$0xff]   ;;  %v985_v53 = vand.u32 %v2917_v47, %v3836_v11 }
  0xf2   : > { %v2915_v50 = vld [vmem:[%s3830_s22 + $0x110] ss:$112 sps:$4 sm:$0x1f]   ;;  %v2912_v51 = vld [vmem:[%s3830_s22 + $0x38] ss:$112 sps:$4 sm:$0xff]   ;;  %v991_v54 = vand.u32 %v2920_v48, %v3836_v11 }
  0xf3   : > { %1114 = vmatpush1.bf16.msra.mxu0 %v958_v31  ;;  %1155 = vmatpush1.bf16.msra.mxu1 %v964_v32  ;;  %v2918_v52 = vld [vmem:[%s3830_s22 + $0x118] ss:$112 sps:$4 sm:$0x1f]   ;;  %v2923_v55 = vld [vmem:[%s3830_s22 + $0x44] ss:$112 sps:$4 sm:$0xff]   ;;  %v982_v56 = vand.u32 %v2915_v50, %v3836_v11 }
  0xf4   : > { %1193 = vmatprep.subr.bf16.mxu0 %v2899_v33  ;;  %1234 = vmatprep.subr.bf16.mxu1 %v2902_v34  ;;  %v988_v57 = vand.u32 %v2918_v52, %v3836_v11  ;;  %v2926_v58 = vld [vmem:[%s3830_s22 + $0x4c] ss:$112 sps:$4 sm:$0xff]   ;;  %v2929_v59 = vld [vmem:[%s3830_s22 + $0x124] ss:$112 sps:$4 sm:$0x1f]  }
  0xf5   : > { %v2932_v60 = vld [vmem:[%s3830_s22 + $0x12c] ss:$112 sps:$4 sm:$0x1f]   ;;  %v2921_v61 = vld [vmem:[%s3830_s22 + $0x40] ss:$112 sps:$4 sm:$0xff]   ;;  %v997_v1 = vand.u32 %v2929_v59, %v3836_v11 }
  0xf6   : > { %2495 = vmatmul.mubr.msk.bf16.vlgmr.msra.gmra.mrb[4].mxu0 %vm937_vm2, %v3846_v20  ;;  %2496 = vmatmul.mubr.msk.bf16.vlgmr.msra.gmra.mrb[4].mxu1 %vm937_vm2, %v3846_v20  ;;  %v2924_v62 = vld [vmem:[%s3830_s22 + $0x48] ss:$112 sps:$4 sm:$0xff]   ;;  %v2927_v63 = vld [vmem:[%s3830_s22 + $0x120] ss:$112 sps:$4 sm:$0x1f]   ;;  %v1003_v2 = vand.u32 %v2932_v60, %v3836_v11 }
  0xf7   : > { %1194 = vmatpush1.bf16.msra.mxu0 %v2897_v35  ;;  %1235 = vmatpush1.bf16.msra.mxu1 %v2900_v36  ;;  %v2930_v0 = vld [vmem:[%s3830_s22 + $0x128] ss:$112 sps:$4 sm:$0x1f]   ;;  %v2935_v3 = vld [vmem:[%s3830_s22 + $0x54] ss:$112 sps:$4 sm:$0xff]   ;;  %v994_v6 = vand.u32 %v2927_v63, %v3836_v11 }
  0xf8   : > { %1195 = vmatprep.subr.bf16.mxu0 %v973_v41  ;;  %1236 = vmatprep.subr.bf16.mxu1 %v979_v42  ;;  %v2938_v5 = vld [vmem:[%s3830_s22 + $0x5c] ss:$112 sps:$4 sm:$0xff]   ;;  %v1000_v7 = vand.u32 %v2930_v0, %v3836_v11  ;;  %v2941_v8 = vld [vmem:[%s3830_s22 + $0x134] ss:$112 sps:$4 sm:$0x1f]  }
  0xf9   : > { %1225 = vmatprep.mubr.bf16.mxu0 %v3272_v4  ;;  %1266 = vmatprep.mubr.bf16.mxu1 %v3272_v4  ;;  %v2944_v9 = vld [vmem:[%s3830_s22 + $0x13c] ss:$112 sps:$4 sm:$0x1f]   ;;  %v2933_v10 = vld [vmem:[%s3830_s22 + $0x50] ss:$112 sps:$4 sm:$0xff]   ;;  %v1009_v16 = vand.u32 %v2941_v8, %v3836_v11 }
  0xfa   : > { %v2936_v12 = vld [vmem:[%s3830_s22 + $0x58] ss:$112 sps:$4 sm:$0xff]   ;;  %v679_v13 = vld [vmem:[%s4435_s2] sm:$0x3f]  ;;  %v1015_v17 = vand.u32 %v2944_v9, %v3836_v11  ;;  %v2947_v21 = vld [vmem:[%s3830_s22 + $0x64] ss:$112 sps:$4 sm:$0xff]  }
  0xfb   : > { %1196 = vmatpush1.bf16.msra.mxu0 %v970_v44  ;;  %1237 = vmatpush1.bf16.msra.mxu1 %v976_v45  ;;  %v2939_v14 = vld [vmem:[%s3830_s22 + $0x130] ss:$112 sps:$4 sm:$0x1f]   ;;  %v2942_v15 = vld [vmem:[%s3830_s22 + $0x138] ss:$112 sps:$4 sm:$0x1f]  }
  0xfc   : > { %1275 = vmatprep.subr.bf16.mxu0 %v2911_v43  ;;  %1316 = vmatprep.subr.bf16.mxu1 %v2914_v46  ;;  %v1006_v18 = vand.u32 %v2939_v14, %v3836_v11  ;;  %v1012_v19 = vand.u32 %v2942_v15, %v3836_v11  ;;  %v2950_v22 = vld [vmem:[%s3830_s22 + $0x6c] ss:$112 sps:$4 sm:$0xff]   ;;  %v2953_v23 = vld [vmem:[%s3830_s22 + $0x144] ss:$112 sps:$4 sm:$0x1f]  }
  0xfd   : > { %682 = vperm.xlu0 %2872, %v679_v13   ;;  %v2956_v24 = vld [vmem:[%s3830_s22 + $0x14c] ss:$112 sps:$4 sm:$0x1f]   ;;  %v2945_v25 = vld [vmem:[%s3830_s22 + $0x60] ss:$112 sps:$4 sm:$0xff]   ;;  %v1021_v29 = vand.u32 %v2953_v23, %v3836_v11 }
  0xfe   : > { %2497 = vmatmul.mubr.msk.bf16.vlgmr.msra.gmra.mrb[8].mxu0 %vm937_vm2, %v3846_v20  ;;  %2498 = vmatmul.mubr.msk.bf16.vlgmr.msra.gmra.mrb[8].mxu1 %vm937_vm2, %v3846_v20  ;;  %v2948_v26 = vld [vmem:[%s3830_s22 + $0x68] ss:$112 sps:$4 sm:$0xff]   ;;  %v2951_v27 = vld [vmem:[%s3830_s22 + $0x140] ss:$112 sps:$4 sm:$0x1f]   ;;  %v1027_v30 = vand.u32 %v2956_v24, %v3836_v11 }
  0xff   : > { %1276 = vmatpush1.bf16.msra.mxu0 %v2909_v49  ;;  %1317 = vmatpush1.bf16.msra.mxu1 %v2912_v51  ;;  %v2954_v28 = vld [vmem:[%s3830_s22 + $0x148] ss:$112 sps:$4 sm:$0x1f]   ;;  %v1018_v31 = vand.u32 %v2951_v27, %v3836_v11 }
 0x100   : > { %1277 = vmatprep.subr.bf16.mxu0 %v985_v53  ;;  %1318 = vmatprep.subr.bf16.mxu1 %v991_v54  ;;  %v1024_v32 = vand.u32 %v2954_v28, %v3836_v11 }
 0x101   : > { %1307 = vmatprep.mubr.bf16.mxu0 %v3272_v4  ;;  %1348 = vmatprep.mubr.bf16.mxu1 %v3272_v4 }
 0x103   : > { %1278 = vmatpush1.bf16.msra.mxu0 %v982_v56  ;;  %1319 = vmatpush1.bf16.msra.mxu1 %v988_v57 }
 0x104   : > { %1357 = vmatprep.subr.bf16.mxu0 %v2923_v55  ;;  %1398 = vmatprep.subr.bf16.mxu1 %v2926_v58 }
 0x106   : > { %2499 = vmatmul.mubr.msk.bf16.vlgmr.msra.gmra.mrb[12].mxu0 %vm937_vm2, %v3846_v20  ;;  %2500 = vmatmul.mubr.msk.bf16.vlgmr.msra.gmra.mrb[12].mxu1 %vm937_vm2, %v3846_v20 }
 0x107   : > { %1358 = vmatpush1.bf16.msra.mxu0 %v2921_v61  ;;  %1399 = vmatpush1.bf16.msra.mxu1 %v2924_v62 }
 0x108   : > { %1359 = vmatprep.subr.bf16.mxu0 %v997_v1  ;;  %1400 = vmatprep.subr.bf16.mxu1 %v1003_v2 }
 0x109   : > { %1389 = vmatprep.mubr.bf16.mxu0 %v3272_v4  ;;  %1430 = vmatprep.mubr.bf16.mxu1 %v3272_v4 }
 0x10b   : > { %1360 = vmatpush1.bf16.msra.mxu0 %v994_v6  ;;  %1401 = vmatpush1.bf16.msra.mxu1 %v1000_v7 }
 0x10c   : > { %1439 = vmatprep.subr.bf16.mxu0 %v2935_v3  ;;  %1480 = vmatprep.subr.bf16.mxu1 %v2938_v5 }
 0x10e   : > { %2501 = vmatmul.mubr.msk.bf16.vlgmr.msra.gmra.mrb[16].mxu0 %vm937_vm2, %v3846_v20  ;;  %2502 = vmatmul.mubr.msk.bf16.vlgmr.msra.gmra.mrb[16].mxu1 %vm937_vm2, %v3846_v20 }
 0x10f   : > { %1440 = vmatpush1.bf16.msra.mxu0 %v2933_v10  ;;  %1481 = vmatpush1.bf16.msra.mxu1 %v2936_v12 }
 0x110   : > { %1441 = vmatprep.subr.bf16.mxu0 %v1009_v16  ;;  %1482 = vmatprep.subr.bf16.mxu1 %v1015_v17 }
 0x111   : > { %1471 = vmatprep.mubr.bf16.mxu0 %v3272_v4  ;;  %1512 = vmatprep.mubr.bf16.mxu1 %v3272_v4 }
 0x113   : > { %1442 = vmatpush1.bf16.msra.mxu0 %v1006_v18  ;;  %1483 = vmatpush1.bf16.msra.mxu1 %v1012_v19 }
 0x114   : > { %1521 = vmatprep.subr.bf16.mxu0 %v2947_v21  ;;  %1562 = vmatprep.subr.bf16.mxu1 %v2950_v22 }
 0x116   : > { %2503 = vmatmul.mubr.msk.bf16.vlgmr.msra.gmra.mrb[20].mxu0 %vm937_vm2, %v3846_v20  ;;  %2504 = vmatmul.mubr.msk.bf16.vlgmr.msra.gmra.mrb[20].mxu1 %vm937_vm2, %v3846_v20 }
 0x117   : > { %1522 = vmatpush1.bf16.msra.mxu0 %v2945_v25  ;;  %1563 = vmatpush1.bf16.msra.mxu1 %v2948_v26 }
 0x118   : > { %1523 = vmatprep.subr.bf16.mxu0 %v1021_v29  ;;  %1564 = vmatprep.subr.bf16.mxu1 %v1027_v30 }
 0x119   : > { %1553 = vmatprep.mubr.bf16.mxu0 %v3272_v4  ;;  %1594 = vmatprep.mubr.bf16.mxu1 %v3272_v4 }
 0x11b   : > { %1524 = vmatpush1.bf16.msra.mxu0 %v1018_v31  ;;  %1565 = vmatpush1.bf16.msra.mxu1 %v1024_v32 }
 0x11e   : > { %2505 = vmatmul.mubr.msk.bf16.vlgmr.msra.gmra.mrb[24].mxu0 %vm937_vm2, %v3846_v20  ;;  %2506 = vmatmul.mubr.msk.bf16.vlgmr.msra.gmra.mrb[24].mxu1 %vm937_vm2, %v3846_v20 }
 0x17c   : > { %v3963_v33 = vpop.permute.xlu0 %682 }
 0x1c1   : > { %v1063_v34 = vpop.f32.mrb[0].mxu0  ;;  %v1104_v35 = vpop.f32.mrb[0].mxu1 }
 0x1c2   : > { %v1064_v11 = vadd.f32 %v1063_v34, %v3963_v33  ;;  %v1065_v36 = vpop.f32.mrb[1].mxu0  ;;  %v1105_v37 = vadd.f32 %v1104_v35, %v3963_v33  ;;  %v1106_v4 = vpop.f32.mrb[1].mxu1 }
 0x1c3   : > { %v1066_v38 = vadd.f32 %v1065_v36, %v3963_v33  ;;  %v1107_v39 = vadd.f32 %v1106_v4, %v3963_v33  ;;  %v1067_v40 = vpop.f32.mrb[2].mxu0  ;;  %v1108_v41 = vpop.f32.mrb[2].mxu1 }
 0x1c4   : > { %v1603_v42 = vmax.f32 %v1064_v11, 0.0  ;;  %v1605_v20 = vmax.f32 %v1105_v37, 0.0  ;;  %v1068_v43 = vpop.f32.mrb[3].mxu0  ;;  %v1109_v44 = vpop.f32.mrb[3].mxu1 }
 0x1c5   : > { %v1604_v45 = vmax.f32 %v1066_v38, 0.0  ;;  %v1606_v46 = vmax.f32 %v1107_v39, 0.0 }
 0x1c7   : > { %v2553_v47 = vpack.c.bf16 %v1604_v45, %v1603_v42  ;;  %v2554_v48 = vpack.c.bf16 %v1606_v46, %v1605_v20 }
 0x1c9   : > { %1743 = vst [vmem:[%s3971_s12] sm:$0x77] %v2553_v47  ;;  %1744 = vst [vmem:[%s3971_s12 + $0x8] sm:$0x77] %v2554_v48  ;;  %v1145_v49 = vpop.f32.mrb[4].mxu0  ;;  %v1186_v50 = vpop.f32.mrb[4].mxu1 }
 0x1ca   : > { %v1146_v51 = vadd.f32 %v1145_v49, %v3963_v33  ;;  %v1187_v52 = vadd.f32 %v1186_v50, %v3963_v33  ;;  %v1147_v53 = vpop.f32.mrb[5].mxu0  ;;  %v1188_v54 = vpop.f32.mrb[5].mxu1 }
 0x1cb   : > { %v1148_v55 = vadd.f32 %v1147_v53, %v3963_v33  ;;  %v1189_v56 = vadd.f32 %v1188_v54, %v3963_v33  ;;  %v1149_v57 = vpop.f32.mrb[6].mxu0  ;;  %v1190_v58 = vpop.f32.mrb[6].mxu1 }
 0x1cc   : > { %v1607_v59 = vmax.f32 %v1146_v51, 0.0  ;;  %v1609_v60 = vmax.f32 %v1187_v52, 0.0  ;;  %v1150_v61 = vpop.f32.mrb[7].mxu0  ;;  %v1191_v62 = vpop.f32.mrb[7].mxu1 }
 0x1cd   : > { %v1608_v63 = vmax.f32 %v1148_v55, 0.0  ;;  %v1610_v0 = vmax.f32 %v1189_v56, 0.0 }
 0x1cf   : > { %v2555_v1 = vpack.c.bf16 %v1608_v63, %v1607_v59  ;;  %v2556_v2 = vpack.c.bf16 %v1610_v0, %v1609_v60 }
 0x1d1   : > { %1745 = vst [vmem:[%s3971_s12 + $0x10] sm:$0x77] %v2555_v1  ;;  %1746 = vst [vmem:[%s3971_s12 + $0x18] sm:$0x77] %v2556_v2  ;;  %v1227_v3 = vpop.f32.mrb[8].mxu0  ;;  %v1268_v5 = vpop.f32.mrb[8].mxu1 }
 0x1d2   : > { %v1228_v6 = vadd.f32 %v1227_v3, %v3963_v33  ;;  %v1269_v7 = vadd.f32 %v1268_v5, %v3963_v33  ;;  %v1229_v8 = vpop.f32.mrb[9].mxu0  ;;  %v1270_v9 = vpop.f32.mrb[9].mxu1 }
 0x1d3   : > { %v1230_v10 = vadd.f32 %v1229_v8, %v3963_v33  ;;  %v1271_v12 = vadd.f32 %v1270_v9, %v3963_v33  ;;  %v1231_v13 = vpop.f32.mrb[10].mxu0  ;;  %v1272_v14 = vpop.f32.mrb[10].mxu1 }
 0x1d4   : > { %v1611_v15 = vmax.f32 %v1228_v6, 0.0  ;;  %v1613_v16 = vmax.f32 %v1269_v7, 0.0  ;;  %v1232_v17 = vpop.f32.mrb[11].mxu0  ;;  %v1273_v18 = vpop.f32.mrb[11].mxu1 }
 0x1d5   : > { %v1612_v19 = vmax.f32 %v1230_v10, 0.0  ;;  %v1614_v21 = vmax.f32 %v1271_v12, 0.0 }
 0x1d7   : > { %v2557_v22 = vpack.c.bf16 %v1612_v19, %v1611_v15  ;;  %v2558_v23 = vpack.c.bf16 %v1614_v21, %v1613_v16 }
 0x1d9   : > { %1747 = vst [vmem:[%s3971_s12 + $0x20] sm:$0x77] %v2557_v22  ;;  %1748 = vst [vmem:[%s3971_s12 + $0x28] sm:$0x77] %v2558_v23  ;;  %v1309_v24 = vpop.f32.mrb[12].mxu0  ;;  %v1350_v25 = vpop.f32.mrb[12].mxu1 }
 0x1da   : > { %v1310_v26 = vadd.f32 %v1309_v24, %v3963_v33  ;;  %v1351_v27 = vadd.f32 %v1350_v25, %v3963_v33  ;;  %v1311_v28 = vpop.f32.mrb[13].mxu0  ;;  %v1352_v29 = vpop.f32.mrb[13].mxu1 }
 0x1db   : > { %v1312_v30 = vadd.f32 %v1311_v28, %v3963_v33  ;;  %v1353_v31 = vadd.f32 %v1352_v29, %v3963_v33  ;;  %v1313_v32 = vpop.f32.mrb[14].mxu0  ;;  %v1354_v34 = vpop.f32.mrb[14].mxu1 }
 0x1dc   : > { %v1615_v35 = vmax.f32 %v1310_v26, 0.0  ;;  %v1617_v11 = vmax.f32 %v1351_v27, 0.0  ;;  %v1314_v36 = vpop.f32.mrb[15].mxu0  ;;  %v1355_v37 = vpop.f32.mrb[15].mxu1 }
 0x1dd   : > { %v1616_v4 = vmax.f32 %v1312_v30, 0.0  ;;  %v1618_v38 = vmax.f32 %v1353_v31, 0.0 }
 0x1df   : > { %v2559_v39 = vpack.c.bf16 %v1616_v4, %v1615_v35  ;;  %v2560_v40 = vpack.c.bf16 %v1618_v38, %v1617_v11 }
 0x1e1   : > { %1749 = vst [vmem:[%s3971_s12 + $0x30] sm:$0x77] %v2559_v39  ;;  %1750 = vst [vmem:[%s3971_s12 + $0x38] sm:$0x77] %v2560_v40  ;;  %v1391_v41 = vpop.f32.mrb[16].mxu0  ;;  %v1432_v42 = vpop.f32.mrb[16].mxu1 }
 0x1e2   : > { %v1392_v20 = vadd.f32 %v1391_v41, %v3963_v33  ;;  %v1433_v43 = vadd.f32 %v1432_v42, %v3963_v33  ;;  %v1393_v44 = vpop.f32.mrb[17].mxu0  ;;  %v1434_v45 = vpop.f32.mrb[17].mxu1 }
 0x1e3   : > { %v1394_v46 = vadd.f32 %v1393_v44, %v3963_v33  ;;  %v1435_v47 = vadd.f32 %v1434_v45, %v3963_v33  ;;  %v1395_v48 = vpop.f32.mrb[18].mxu0  ;;  %v1436_v49 = vpop.f32.mrb[18].mxu1 }
 0x1e4   : > { %v1619_v50 = vmax.f32 %v1392_v20, 0.0  ;;  %v1621_v51 = vmax.f32 %v1433_v43, 0.0  ;;  %v1396_v52 = vpop.f32.mrb[19].mxu0  ;;  %v1437_v53 = vpop.f32.mrb[19].mxu1 }
 0x1e5   : > { %v1620_v54 = vmax.f32 %v1394_v46, 0.0  ;;  %v1622_v55 = vmax.f32 %v1435_v47, 0.0 }
 0x1e7   : > { %v2561_v56 = vpack.c.bf16 %v1620_v54, %v1619_v50  ;;  %v2562_v57 = vpack.c.bf16 %v1622_v55, %v1621_v51 }
 0x1e9   : > { %1751 = vst [vmem:[%s3971_s12 + $0x40] sm:$0x77] %v2561_v56  ;;  %1752 = vst [vmem:[%s3971_s12 + $0x48] sm:$0x77] %v2562_v57  ;;  %v1473_v58 = vpop.f32.mrb[20].mxu0  ;;  %v1514_v59 = vpop.f32.mrb[20].mxu1 }
 0x1ea   : > { %v1474_v60 = vadd.f32 %v1473_v58, %v3963_v33  ;;  %v1515_v61 = vadd.f32 %v1514_v59, %v3963_v33  ;;  %v1475_v62 = vpop.f32.mrb[21].mxu0  ;;  %v1516_v63 = vpop.f32.mrb[21].mxu1 }
 0x1eb   : > { %v1476_v0 = vadd.f32 %v1475_v62, %v3963_v33  ;;  %v1517_v1 = vadd.f32 %v1516_v63, %v3963_v33  ;;  %v1477_v2 = vpop.f32.mrb[22].mxu0  ;;  %v1518_v3 = vpop.f32.mrb[22].mxu1 }
 0x1ec   : > { %v1623_v5 = vmax.f32 %v1474_v60, 0.0  ;;  %v1625_v6 = vmax.f32 %v1515_v61, 0.0  ;;  %v1478_v7 = vpop.f32.mrb[23].mxu0  ;;  %v1519_v8 = vpop.f32.mrb[23].mxu1 }
 0x1ed   : > { %v1624_v9 = vmax.f32 %v1476_v0, 0.0  ;;  %v1626_v10 = vmax.f32 %v1517_v1, 0.0 }
 0x1ef   : > { %v2563_v12 = vpack.c.bf16 %v1624_v9, %v1623_v5  ;;  %v2564_v13 = vpack.c.bf16 %v1626_v10, %v1625_v6 }
 0x1f1   : > { %1753 = vst [vmem:[%s3971_s12 + $0x50] sm:$0x77] %v2563_v12  ;;  %1754 = vst [vmem:[%s3971_s12 + $0x58] sm:$0x77] %v2564_v13  ;;  %v1555_v14 = vpop.f32.mrb[24].mxu0  ;;  %v1596_v15 = vpop.f32.mrb[24].mxu1 }
 0x1f2   : > { %v1556_v16 = vadd.f32 %v1555_v14, %v3963_v33  ;;  %v1597_v17 = vadd.f32 %v1596_v15, %v3963_v33  ;;  %v1557_v18 = vpop.f32.mrb[25].mxu0  ;;  %v1598_v19 = vpop.f32.mrb[25].mxu1 }
 0x1f3   : > { %v1558_v21 = vadd.f32 %v1557_v18, %v3963_v33  ;;  %v1599_v22 = vadd.f32 %v1598_v19, %v3963_v33  ;;  %v1559_v23 = vpop.f32.mrb[26].mxu0  ;;  %v1600_v24 = vpop.f32.mrb[26].mxu1  ;;  %1763 = sbr.rel (!%p4463_p2) target bundleno = 671 (0x29f), region = 106 }
 0x1f4   : > { %v1627_v25 = vmax.f32 %v1556_v16, 0.0  ;;  %v1629_v26 = vmax.f32 %v1597_v17, 0.0  ;;  %v1560_v27 = vpop.f32.mrb[27].mxu0  ;;  %v1601_v28 = vpop.f32.mrb[27].mxu1 }
 0x1f5   : > { %v1628_v29 = vmax.f32 %v1558_v21, 0.0  ;;  %v1630_v30 = vmax.f32 %v1599_v22, 0.0 }
 0x1f7   : > { %v2565_v31 = vpack.c.bf16 %v1628_v29, %v1627_v25  ;;  %v2566_v32 = vpack.c.bf16 %v1630_v30, %v1629_v26 }
 0x1f9   : > { %1755 = vst [vmem:[%s3971_s12 + $0x60] sm:$0x77] %v2565_v31  ;;  %1756 = vst [vmem:[%s3971_s12 + $0x68] sm:$0x77] %v2566_v32 }
 0x1fa   : > { %s4488_s29 = smov (!%p1766_p3, %s1765_s29), 28 }
 0x1fb   : > { %s2521_s17 = sshll.u32 %s4488_s29, 6  ;;  %s4020_s18 = sshll.u32 %s4488_s29, 2 }
 0x1fc   : > { %p2525_p6 = scmp.eq.s32.totalorder %s2521_s17, 0 }
 0x1fd   : > { %p1776_p7 = scmp.lt.u32.totalorder (!%p2525_p6), %s4020_s18, 8 }
 0x1fe   : > { %1775 = sbr.rel (%p2525_p6) target bundleno = 671 (0x29f), region = 110 }
 0x205   : > { %1779 = sbr.rel (%p1776_p7) target bundleno = 662 (0x296), region = 114  ;;  %s4024_s21 = sand.u32 (!%p1776_p7), 7, %s4020_s18  }
 0x206   : > { %p1795_p10 = scmp.eq.s32.totalorder (!%p1776_p7), %s4024_s21, 0  ;;  %p2526_p12 = scmp.ne.s32.totalorder (!%p1776_p7), %s4024_s21, 0 }
 0x20c   : > { %1798 = sbr.rel (%p2526_p12) target bundleno = 591 (0x24f), region = 129  ;;  %s1799_s15 = sshrl.u32 (!%p2526_p12), %s4020_s18, 3 }
 0x20d   : > { %s4031_s23 = sshrl.u32 (!%p2526_p12), %s1799_s15, 6 }
 0x20e   : > { %p2527_p0 = scmp.le.s32.totalorder (!%p2526_p12), %s4031_s23, 0 }
 0x213   : > { %2325 = sbr.rel (%p2527_p0) target bundleno = 571 (0x23b), region = 278  ;;  %s4464_s7 = smov (!%p2527_p0), %s4018_s11 }
 0x214   : > { %s4465_s10 = smov (!%p2527_p0), %s3971_s12  ;;  %s4040_s25 = smov (!%p2527_p0), 0  }
 0x215   : > { %s4042_s30 = smov (!%p2527_p0), 0  }
 0x21a LB: >> { %v1812_v33 = vld [vmem:[%s3211_s10] sm:$0xff]  ;;  %v1814_v34 = vld [vmem:[%s3211_s10 + $0x8] sm:$0xff]  ;;  %v1816_v35 = vld [vmem:[%s3211_s10 + $0x10] sm:$0xff]  ;;  %s1940_s4 = sadd.s32 1, %s3215_s25  ;;  %s1806_s30 = sadd.s32 1, %s3219_s30   ;;  %s3219_s30 = sphi %s4042_s30, %s1806_s30   ;;  %s3215_s25 = sphi %s4040_s25, %s4468_s25   ;;  %s3211_s10 = sphi %s4465_s10, %s4467_s10   ;;  %s3207_s7 = sphi %s4464_s7, %s4466_s7  }
 0x21b   : >> { %1813 = vst [vmem:[%s3207_s7] sm:$0xff] %v1812_v33  ;;  %1815 = vst [vmem:[%s3207_s7 + $0x8] sm:$0xff] %v1814_v34  ;;  %v1818_v11 = vld [vmem:[%s3211_s10 + $0x18] sm:$0xff]  ;;  %v1820_v36 = vld [vmem:[%s3211_s10 + $0x20] sm:$0xff]  ;;  %p1941_p4 = scmp.ge.s32.totalorder %s1940_s4, %s4031_s23  ;;  %p1805_p5 = scmp.ge.s32.totalorder %s1806_s30, %s4031_s23 }
 0x21c   : >> { %1817 = vst [vmem:[%s3207_s7 + $0x10] sm:$0xff] %v1816_v35  ;;  %v1822_v37 = vld [vmem:[%s3211_s10 + $0x28] sm:$0xff]  ;;  %1819 = vst [vmem:[%s3207_s7 + $0x18] sm:$0xff] %v1818_v11  ;;  %v1824_v4 = vld [vmem:[%s3211_s10 + $0x30] sm:$0xff] }
 0x21d   : >> { %1821 = vst [vmem:[%s3207_s7 + $0x20] sm:$0xff] %v1820_v36  ;;  %1823 = vst [vmem:[%s3207_s7 + $0x28] sm:$0xff] %v1822_v37  ;;  %v1826_v38 = vld [vmem:[%s3211_s10 + $0x38] sm:$0xff]  ;;  %v1828_v39 = vld [vmem:[%s3211_s10 + $0x40] sm:$0xff]  ;;  %s4490_s4 = smov (%p1941_p4, %s1940_s4), 0 }
 0x21e   : >> { %1825 = vst [vmem:[%s3207_s7 + $0x30] sm:$0xff] %v1824_v4  ;;  %1827 = vst [vmem:[%s3207_s7 + $0x38] sm:$0xff] %v1826_v38  ;;  %v1830_v40 = vld [vmem:[%s3211_s10 + $0x48] sm:$0xff]  ;;  %v1832_v41 = vld [vmem:[%s3211_s10 + $0x50] sm:$0xff]  ;;  %s2528_s28 = sshll.u32 %s4490_s4, 9  ;;  %s4468_s25 = smov %s4490_s4 }
 0x21f   : >> { %1829 = vst [vmem:[%s3207_s7 + $0x40] sm:$0xff] %v1828_v39  ;;  %v1834_v42 = vld [vmem:[%s3211_s10 + $0x58] sm:$0xff]  ;;  %1831 = vst [vmem:[%s3207_s7 + $0x48] sm:$0xff] %v1830_v40  ;;  %v1836_v20 = vld [vmem:[%s3211_s10 + $0x60] sm:$0xff]  ;;  %s4098_s27 = scalar_lea.vmem %s3971_s12, %s2528_s28 [#allocation5]   ;;  %s4101_s26 = scalar_lea.vmem %s4018_s11, %s2528_s28  }
 0x220   : >> { %1833 = vst [vmem:[%s3207_s7 + $0x50] sm:$0xff] %v1832_v41  ;;  %1835 = vst [vmem:[%s3207_s7 + $0x58] sm:$0xff] %v1834_v42  ;;  %v1838_v43 = vld [vmem:[%s3211_s10 + $0x68] sm:$0xff]  ;;  %v1840_v44 = vld [vmem:[%s3211_s10 + $0x70] sm:$0xff] }
 0x221   : >> { %1837 = vst [vmem:[%s3207_s7 + $0x60] sm:$0xff] %v1836_v20  ;;  %1839 = vst [vmem:[%s3207_s7 + $0x68] sm:$0xff] %v1838_v43  ;;  %v1842_v45 = vld [vmem:[%s3211_s10 + $0x78] sm:$0xff]  ;;  %v1844_v46 = vld [vmem:[%s3211_s10 + $0x80] sm:$0xff] }
 0x222   : >> { %1841 = vst [vmem:[%s3207_s7 + $0x70] sm:$0xff] %v1840_v44  ;;  %v1846_v47 = vld [vmem:[%s3211_s10 + $0x88] sm:$0xff]  ;;  %1843 = vst [vmem:[%s3207_s7 + $0x78] sm:$0xff] %v1842_v45  ;;  %v1848_v48 = vld [vmem:[%s3211_s10 + $0x90] sm:$0xff] }
 0x223   : >> { %1845 = vst [vmem:[%s3207_s7 + $0x80] sm:$0xff] %v1844_v46  ;;  %1847 = vst [vmem:[%s3207_s7 + $0x88] sm:$0xff] %v1846_v47  ;;  %v1850_v49 = vld [vmem:[%s3211_s10 + $0x98] sm:$0xff]  ;;  %v1852_v50 = vld [vmem:[%s3211_s10 + $0xa0] sm:$0xff] }
 0x224   : >> { %1849 = vst [vmem:[%s3207_s7 + $0x90] sm:$0xff] %v1848_v48  ;;  %1851 = vst [vmem:[%s3207_s7 + $0x98] sm:$0xff] %v1850_v49  ;;  %v1854_v51 = vld [vmem:[%s3211_s10 + $0xa8] sm:$0xff]  ;;  %v1856_v52 = vld [vmem:[%s3211_s10 + $0xb0] sm:$0xff] }
 0x225   : >> { %1853 = vst [vmem:[%s3207_s7 + $0xa0] sm:$0xff] %v1852_v50  ;;  %v1858_v53 = vld [vmem:[%s3211_s10 + $0xb8] sm:$0xff]  ;;  %1855 = vst [vmem:[%s3207_s7 + $0xa8] sm:$0xff] %v1854_v51  ;;  %v1860_v54 = vld [vmem:[%s3211_s10 + $0xc0] sm:$0xff] }
 0x226   : >> { %1857 = vst [vmem:[%s3207_s7 + $0xb0] sm:$0xff] %v1856_v52  ;;  %1859 = vst [vmem:[%s3207_s7 + $0xb8] sm:$0xff] %v1858_v53  ;;  %v1862_v55 = vld [vmem:[%s3211_s10 + $0xc8] sm:$0xff]  ;;  %v1864_v56 = vld [vmem:[%s3211_s10 + $0xd0] sm:$0xff] }
 0x227   : >> { %1861 = vst [vmem:[%s3207_s7 + $0xc0] sm:$0xff] %v1860_v54  ;;  %1863 = vst [vmem:[%s3207_s7 + $0xc8] sm:$0xff] %v1862_v55  ;;  %v1866_v57 = vld [vmem:[%s3211_s10 + $0xd8] sm:$0xff]  ;;  %v1868_v58 = vld [vmem:[%s3211_s10 + $0xe0] sm:$0xff] }
 0x228   : >> { %1865 = vst [vmem:[%s3207_s7 + $0xd0] sm:$0xff] %v1864_v56  ;;  %v1870_v59 = vld [vmem:[%s3211_s10 + $0xe8] sm:$0xff]  ;;  %1867 = vst [vmem:[%s3207_s7 + $0xd8] sm:$0xff] %v1866_v57  ;;  %v1872_v60 = vld [vmem:[%s3211_s10 + $0xf0] sm:$0xff] }
 0x229   : >> { %1869 = vst [vmem:[%s3207_s7 + $0xe0] sm:$0xff] %v1868_v58  ;;  %1871 = vst [vmem:[%s3207_s7 + $0xe8] sm:$0xff] %v1870_v59  ;;  %v1874_v61 = vld [vmem:[%s3211_s10 + $0xf8] sm:$0xff]  ;;  %v1876_v62 = vld [vmem:[%s3211_s10 + $0x100] sm:$0xff] }
 0x22a   : >> { %1873 = vst [vmem:[%s3207_s7 + $0xf0] sm:$0xff] %v1872_v60  ;;  %1875 = vst [vmem:[%s3207_s7 + $0xf8] sm:$0xff] %v1874_v61  ;;  %v1878_v63 = vld [vmem:[%s3211_s10 + $0x108] sm:$0xff]  ;;  %v1880_v0 = vld [vmem:[%s3211_s10 + $0x110] sm:$0xff] }
 0x22b   : >> { %1877 = vst [vmem:[%s3207_s7 + $0x100] sm:$0xff] %v1876_v62  ;;  %v1882_v1 = vld [vmem:[%s3211_s10 + $0x118] sm:$0xff]  ;;  %1879 = vst [vmem:[%s3207_s7 + $0x108] sm:$0xff] %v1878_v63  ;;  %v1884_v2 = vld [vmem:[%s3211_s10 + $0x120] sm:$0xff] }
 0x22c   : >> { %1881 = vst [vmem:[%s3207_s7 + $0x110] sm:$0xff] %v1880_v0  ;;  %1883 = vst [vmem:[%s3207_s7 + $0x118] sm:$0xff] %v1882_v1  ;;  %v1886_v3 = vld [vmem:[%s3211_s10 + $0x128] sm:$0xff]  ;;  %v1888_v5 = vld [vmem:[%s3211_s10 + $0x130] sm:$0xff] }
 0x22d   : >> { %1885 = vst [vmem:[%s3207_s7 + $0x120] sm:$0xff] %v1884_v2  ;;  %1887 = vst [vmem:[%s3207_s7 + $0x128] sm:$0xff] %v1886_v3  ;;  %v1890_v6 = vld [vmem:[%s3211_s10 + $0x138] sm:$0xff]  ;;  %v1892_v7 = vld [vmem:[%s3211_s10 + $0x140] sm:$0xff] }
 0x22e   : >> { %1889 = vst [vmem:[%s3207_s7 + $0x130] sm:$0xff] %v1888_v5  ;;  %v1894_v8 = vld [vmem:[%s3211_s10 + $0x148] sm:$0xff]  ;;  %1891 = vst [vmem:[%s3207_s7 + $0x138] sm:$0xff] %v1890_v6  ;;  %v1896_v9 = vld [vmem:[%s3211_s10 + $0x150] sm:$0xff] }
 0x22f   : >> { %1893 = vst [vmem:[%s3207_s7 + $0x140] sm:$0xff] %v1892_v7  ;;  %1895 = vst [vmem:[%s3207_s7 + $0x148] sm:$0xff] %v1894_v8  ;;  %v1898_v10 = vld [vmem:[%s3211_s10 + $0x158] sm:$0xff]  ;;  %v1900_v12 = vld [vmem:[%s3211_s10 + $0x160] sm:$0xff] }
 0x230   : >> { %1897 = vst [vmem:[%s3207_s7 + $0x150] sm:$0xff] %v1896_v9  ;;  %1899 = vst [vmem:[%s3207_s7 + $0x158] sm:$0xff] %v1898_v10  ;;  %v1902_v13 = vld [vmem:[%s3211_s10 + $0x168] sm:$0xff]  ;;  %v1904_v14 = vld [vmem:[%s3211_s10 + $0x170] sm:$0xff] }
 0x231   : >> { %1901 = vst [vmem:[%s3207_s7 + $0x160] sm:$0xff] %v1900_v12  ;;  %v1906_v15 = vld [vmem:[%s3211_s10 + $0x178] sm:$0xff]  ;;  %1903 = vst [vmem:[%s3207_s7 + $0x168] sm:$0xff] %v1902_v13  ;;  %v1908_v16 = vld [vmem:[%s3211_s10 + $0x180] sm:$0xff] }
 0x232   : >> { %1905 = vst [vmem:[%s3207_s7 + $0x170] sm:$0xff] %v1904_v14  ;;  %1907 = vst [vmem:[%s3207_s7 + $0x178] sm:$0xff] %v1906_v15  ;;  %v1910_v17 = vld [vmem:[%s3211_s10 + $0x188] sm:$0xff]  ;;  %v1912_v18 = vld [vmem:[%s3211_s10 + $0x190] sm:$0xff] }
 0x233   : >> { %1909 = vst [vmem:[%s3207_s7 + $0x180] sm:$0xff] %v1908_v16  ;;  %1911 = vst [vmem:[%s3207_s7 + $0x188] sm:$0xff] %v1910_v17  ;;  %v1914_v19 = vld [vmem:[%s3211_s10 + $0x198] sm:$0xff]  ;;  %v1916_v21 = vld [vmem:[%s3211_s10 + $0x1a0] sm:$0xff] }
 0x234   : >> { %1913 = vst [vmem:[%s3207_s7 + $0x190] sm:$0xff] %v1912_v18  ;;  %v1918_v22 = vld [vmem:[%s3211_s10 + $0x1a8] sm:$0xff]  ;;  %1915 = vst [vmem:[%s3207_s7 + $0x198] sm:$0xff] %v1914_v19  ;;  %v1920_v23 = vld [vmem:[%s3211_s10 + $0x1b0] sm:$0xff]  ;;  %1808 = sbr.rel (!%p1805_p5) target bundleno = 538 (0x21a), region = 284 }
 0x235   : >> { %1917 = vst [vmem:[%s3207_s7 + $0x1a0] sm:$0xff] %v1916_v21  ;;  %1919 = vst [vmem:[%s3207_s7 + $0x1a8] sm:$0xff] %v1918_v22  ;;  %v1922_v24 = vld [vmem:[%s3211_s10 + $0x1b8] sm:$0xff]  ;;  %v1924_v25 = vld [vmem:[%s3211_s10 + $0x1c0] sm:$0xff] }
 0x236   : >> { %1921 = vst [vmem:[%s3207_s7 + $0x1b0] sm:$0xff] %v1920_v23  ;;  %1923 = vst [vmem:[%s3207_s7 + $0x1b8] sm:$0xff] %v1922_v24  ;;  %v1926_v26 = vld [vmem:[%s3211_s10 + $0x1c8] sm:$0xff]  ;;  %v1928_v27 = vld [vmem:[%s3211_s10 + $0x1d0] sm:$0xff] }
 0x237   : >> { %1925 = vst [vmem:[%s3207_s7 + $0x1c0] sm:$0xff] %v1924_v25  ;;  %v1930_v28 = vld [vmem:[%s3211_s10 + $0x1d8] sm:$0xff]  ;;  %1927 = vst [vmem:[%s3207_s7 + $0x1c8] sm:$0xff] %v1926_v26  ;;  %v1932_v29 = vld [vmem:[%s3211_s10 + $0x1e0] sm:$0xff] }
 0x238   : >> { %1929 = vst [vmem:[%s3207_s7 + $0x1d0] sm:$0xff] %v1928_v27  ;;  %1931 = vst [vmem:[%s3207_s7 + $0x1d8] sm:$0xff] %v1930_v28  ;;  %v1934_v30 = vld [vmem:[%s3211_s10 + $0x1e8] sm:$0xff]  ;;  %v1936_v31 = vld [vmem:[%s3211_s10 + $0x1f0] sm:$0xff] }
 0x239   : >> { %1933 = vst [vmem:[%s3207_s7 + $0x1e0] sm:$0xff] %v1932_v29  ;;  %1935 = vst [vmem:[%s3207_s7 + $0x1e8] sm:$0xff] %v1934_v30  ;;  %v1938_v32 = vld [vmem:[%s3211_s10 + $0x1f8] sm:$0xff]  ;;  %s4467_s10 = smov %s4098_s27 }
 0x23a   : >> { %1937 = vst [vmem:[%s3207_s7 + $0x1f0] sm:$0xff] %v1936_v31  ;;  %1939 = vst [vmem:[%s3207_s7 + $0x1f8] sm:$0xff] %v1938_v32  ;;  %s4466_s7 = smov %s4101_s26 }
 0x23b PF: > { %s4207_s22 = sand.u32 63, %s1799_s15   ;;  %s2568_s20 = sshll.u32 %s4031_s23, 13 }
 0x23c   : > { %s1951_s8 = sshra.s32 %s2568_s20, 4  ;;  %p2533_p8 = scmp.le.s32.totalorder %s4207_s22, 0 }
 0x23d   : > { %s1952_s9 = scalar_lea.vmem %s3971_s12, %s1951_s8 [#allocation5]   ;;  %s1955_s5 = scalar_lea.vmem %s4018_s11, %s1951_s8  }
 0x23e   : > { %2339 = sbr.rel (%p2533_p8) target bundleno = 591 (0x24f), region = 289  ;;  %s3221_s14 = smov (!%p2533_p8), %s1955_s5  }
 0x23f   : > { %s3225_s29 = smov (!%p2533_p8), %s1952_s9   ;;  %s3229_s6 = smov (!%p2533_p8), 0  }
 0x240   : > { %s3233_s24 = smov (!%p2533_p8), 0  }
 0x245 LB: >> { %v1967_v33 = vld [vmem:[%s3227_s29] sm:$0xff]  ;;  %s1969_s17 = sadd.s32 1, %s3231_s6  ;;  %s1961_s24 = sadd.s32 1, %s3235_s24   ;;  %s3235_s24 = sphi %s3233_s24, %s1961_s24   ;;  %s3231_s6 = sphi %s3229_s6, %s3230_s6   ;;  %s3227_s29 = sphi %s3225_s29, %s1974_s29   ;;  %s3223_s14 = sphi %s3221_s14, %s1975_s14  }
 0x246   : >> { %1968 = vst [vmem:[%s3223_s14] sm:$0xff] %v1967_v33  ;;  %p1970_p9 = scmp.ge.s32.totalorder %s1969_s17, %s4207_s22  ;;  %p1960_p11 = scmp.ge.s32.totalorder %s1961_s24, %s4207_s22 }
 0x248   : >> { %s4492_s17 = smov (%p1970_p9, %s1969_s17), 0  ;;  %1963 = sbr.rel (!%p1960_p11) target bundleno = 581 (0x245), region = 295 }
 0x249   : >> { %s2534_s15 = sshll.u32 %s4492_s17, 3  ;;  %s3230_s6 = smov %s4492_s17  }
 0x24a   : >> { %s1974_s29 = scalar_lea.vmem %s1952_s9, %s2534_s15 [#allocation5]   ;;  %s1975_s14 = scalar_lea.vmem %s1955_s5, %s2534_s15  }
 0x24f PF: > { %1978 = sbr.rel (%p1795_p10) target bundleno = 662 (0x296), region = 147  ;;  %s4219_s23 = ssub.s32 (!%p1795_p10), %s4020_s18, %s4024_s21 }
 0x250   : > { %s1984_s7 = sshrl.u32 (!%p1795_p10), %s4020_s18, 3  ;;  %s1981_s10 = scalar_lea.vmem (!%p1795_p10), %s3971_s12, %s4219_s23 [#allocation5] }
 0x251   : > { %s1983_s25 = scalar_lea.vmem (!%p1795_p10), %s4018_s11, %s4219_s23  ;;  %s4228_s30 = sshrl.u32 (!%p1795_p10), %s1984_s7, 6 }
 0x252   : > { %p2536_p13 = scmp.le.s32.totalorder (!%p1795_p10), %s4228_s30, 0 }
 0x256   : > { %2353 = sbr.rel (%p2536_p13) target bundleno = 638 (0x27e), region = 300  ;;  %s4469_s4 = smov (!%p2536_p13), %s4018_s11 }
 0x257   : > { %s4470_s28 = smov (!%p2536_p13), %s3971_s12  ;;  %s4237_s27 = smov (!%p2536_p13), 0  }
 0x258   : > { %s4239_s26 = smov (!%p2536_p13), 0  }
 0x25d LB: >> { %v1997_v34 = vld [vmem:[%s3243_s28] sm:$0xff]  ;;  %v1999_v35 = vld [vmem:[%s3243_s28 + $0x8] sm:$0xff]  ;;  %v2001_v11 = vld [vmem:[%s3243_s28 + $0x10] sm:$0xff]  ;;  %s2125_s22 = sadd.s32 1, %s3247_s27  ;;  %s1991_s26 = sadd.s32 1, %s3251_s26   ;;  %s3251_s26 = sphi %s4239_s26, %s1991_s26   ;;  %s3247_s27 = sphi %s4237_s27, %s4473_s27   ;;  %s3243_s28 = sphi %s4470_s28, %s4472_s28   ;;  %s3239_s4 = sphi %s4469_s4, %s4471_s4  }
 0x25e   : >> { %1998 = vst [vmem:[%s3239_s4] sm:$0xff] %v1997_v34  ;;  %2000 = vst [vmem:[%s3239_s4 + $0x8] sm:$0xff] %v1999_v35  ;;  %v2003_v36 = vld [vmem:[%s3243_s28 + $0x18] sm:$0xff]  ;;  %v2005_v37 = vld [vmem:[%s3243_s28 + $0x20] sm:$0xff]  ;;  %p2126_p1 = scmp.ge.s32.totalorder %s2125_s22, %s4228_s30  ;;  %p1990_p2 = scmp.ge.s32.totalorder %s1991_s26, %s4228_s30 }
 0x25f   : >> { %2002 = vst [vmem:[%s3239_s4 + $0x10] sm:$0xff] %v2001_v11  ;;  %v2007_v4 = vld [vmem:[%s3243_s28 + $0x28] sm:$0xff]  ;;  %2004 = vst [vmem:[%s3239_s4 + $0x18] sm:$0xff] %v2003_v36  ;;  %v2009_v38 = vld [vmem:[%s3243_s28 + $0x30] sm:$0xff] }
 0x260   : >> { %2006 = vst [vmem:[%s3239_s4 + $0x20] sm:$0xff] %v2005_v37  ;;  %2008 = vst [vmem:[%s3239_s4 + $0x28] sm:$0xff] %v2007_v4  ;;  %v2011_v39 = vld [vmem:[%s3243_s28 + $0x38] sm:$0xff]  ;;  %v2013_v40 = vld [vmem:[%s3243_s28 + $0x40] sm:$0xff]  ;;  %s4494_s22 = smov (%p2126_p1, %s2125_s22), 0 }
 0x261   : >> { %2010 = vst [vmem:[%s3239_s4 + $0x30] sm:$0xff] %v2009_v38  ;;  %2012 = vst [vmem:[%s3239_s4 + $0x38] sm:$0xff] %v2011_v39  ;;  %v2015_v41 = vld [vmem:[%s3243_s28 + $0x48] sm:$0xff]  ;;  %v2017_v42 = vld [vmem:[%s3243_s28 + $0x50] sm:$0xff]  ;;  %s2537_s20 = sshll.u32 %s4494_s22, 9  ;;  %s4473_s27 = smov %s4494_s22 }
 0x262   : >> { %2014 = vst [vmem:[%s3239_s4 + $0x40] sm:$0xff] %v2013_v40  ;;  %v2019_v20 = vld [vmem:[%s3243_s28 + $0x58] sm:$0xff]  ;;  %2016 = vst [vmem:[%s3239_s4 + $0x48] sm:$0xff] %v2015_v41  ;;  %v2021_v43 = vld [vmem:[%s3243_s28 + $0x60] sm:$0xff]  ;;  %s4295_s8 = scalar_lea.vmem %s3971_s12, %s2537_s20 [#allocation5]   ;;  %s4298_s9 = scalar_lea.vmem %s4018_s11, %s2537_s20  }
 0x263   : >> { %2018 = vst [vmem:[%s3239_s4 + $0x50] sm:$0xff] %v2017_v42  ;;  %2020 = vst [vmem:[%s3239_s4 + $0x58] sm:$0xff] %v2019_v20  ;;  %v2023_v44 = vld [vmem:[%s3243_s28 + $0x68] sm:$0xff]  ;;  %v2025_v45 = vld [vmem:[%s3243_s28 + $0x70] sm:$0xff] }
 0x264   : >> { %2022 = vst [vmem:[%s3239_s4 + $0x60] sm:$0xff] %v2021_v43  ;;  %2024 = vst [vmem:[%s3239_s4 + $0x68] sm:$0xff] %v2023_v44  ;;  %v2027_v46 = vld [vmem:[%s3243_s28 + $0x78] sm:$0xff]  ;;  %v2029_v47 = vld [vmem:[%s3243_s28 + $0x80] sm:$0xff] }
 0x265   : >> { %2026 = vst [vmem:[%s3239_s4 + $0x70] sm:$0xff] %v2025_v45  ;;  %v2031_v48 = vld [vmem:[%s3243_s28 + $0x88] sm:$0xff]  ;;  %2028 = vst [vmem:[%s3239_s4 + $0x78] sm:$0xff] %v2027_v46  ;;  %v2033_v49 = vld [vmem:[%s3243_s28 + $0x90] sm:$0xff] }
 0x266   : >> { %2030 = vst [vmem:[%s3239_s4 + $0x80] sm:$0xff] %v2029_v47  ;;  %2032 = vst [vmem:[%s3239_s4 + $0x88] sm:$0xff] %v2031_v48  ;;  %v2035_v50 = vld [vmem:[%s3243_s28 + $0x98] sm:$0xff]  ;;  %v2037_v51 = vld [vmem:[%s3243_s28 + $0xa0] sm:$0xff] }
 0x267   : >> { %2034 = vst [vmem:[%s3239_s4 + $0x90] sm:$0xff] %v2033_v49  ;;  %2036 = vst [vmem:[%s3239_s4 + $0x98] sm:$0xff] %v2035_v50  ;;  %v2039_v52 = vld [vmem:[%s3243_s28 + $0xa8] sm:$0xff]  ;;  %v2041_v53 = vld [vmem:[%s3243_s28 + $0xb0] sm:$0xff] }
 0x268   : >> { %2038 = vst [vmem:[%s3239_s4 + $0xa0] sm:$0xff] %v2037_v51  ;;  %v2043_v54 = vld [vmem:[%s3243_s28 + $0xb8] sm:$0xff]  ;;  %2040 = vst [vmem:[%s3239_s4 + $0xa8] sm:$0xff] %v2039_v52  ;;  %v2045_v55 = vld [vmem:[%s3243_s28 + $0xc0] sm:$0xff] }
 0x269   : >> { %2042 = vst [vmem:[%s3239_s4 + $0xb0] sm:$0xff] %v2041_v53  ;;  %2044 = vst [vmem:[%s3239_s4 + $0xb8] sm:$0xff] %v2043_v54  ;;  %v2047_v56 = vld [vmem:[%s3243_s28 + $0xc8] sm:$0xff]  ;;  %v2049_v57 = vld [vmem:[%s3243_s28 + $0xd0] sm:$0xff] }
 0x26a   : >> { %2046 = vst [vmem:[%s3239_s4 + $0xc0] sm:$0xff] %v2045_v55  ;;  %2048 = vst [vmem:[%s3239_s4 + $0xc8] sm:$0xff] %v2047_v56  ;;  %v2051_v58 = vld [vmem:[%s3243_s28 + $0xd8] sm:$0xff]  ;;  %v2053_v59 = vld [vmem:[%s3243_s28 + $0xe0] sm:$0xff] }
 0x26b   : >> { %2050 = vst [vmem:[%s3239_s4 + $0xd0] sm:$0xff] %v2049_v57  ;;  %v2055_v60 = vld [vmem:[%s3243_s28 + $0xe8] sm:$0xff]  ;;  %2052 = vst [vmem:[%s3239_s4 + $0xd8] sm:$0xff] %v2051_v58  ;;  %v2057_v61 = vld [vmem:[%s3243_s28 + $0xf0] sm:$0xff] }
 0x26c   : >> { %2054 = vst [vmem:[%s3239_s4 + $0xe0] sm:$0xff] %v2053_v59  ;;  %2056 = vst [vmem:[%s3239_s4 + $0xe8] sm:$0xff] %v2055_v60  ;;  %v2059_v62 = vld [vmem:[%s3243_s28 + $0xf8] sm:$0xff]  ;;  %v2061_v63 = vld [vmem:[%s3243_s28 + $0x100] sm:$0xff] }
 0x26d   : >> { %2058 = vst [vmem:[%s3239_s4 + $0xf0] sm:$0xff] %v2057_v61  ;;  %2060 = vst [vmem:[%s3239_s4 + $0xf8] sm:$0xff] %v2059_v62  ;;  %v2063_v0 = vld [vmem:[%s3243_s28 + $0x108] sm:$0xff]  ;;  %v2065_v1 = vld [vmem:[%s3243_s28 + $0x110] sm:$0xff] }
 0x26e   : >> { %2062 = vst [vmem:[%s3239_s4 + $0x100] sm:$0xff] %v2061_v63  ;;  %v2067_v2 = vld [vmem:[%s3243_s28 + $0x118] sm:$0xff]  ;;  %2064 = vst [vmem:[%s3239_s4 + $0x108] sm:$0xff] %v2063_v0  ;;  %v2069_v3 = vld [vmem:[%s3243_s28 + $0x120] sm:$0xff] }
 0x26f   : >> { %2066 = vst [vmem:[%s3239_s4 + $0x110] sm:$0xff] %v2065_v1  ;;  %2068 = vst [vmem:[%s3239_s4 + $0x118] sm:$0xff] %v2067_v2  ;;  %v2071_v5 = vld [vmem:[%s3243_s28 + $0x128] sm:$0xff]  ;;  %v2073_v6 = vld [vmem:[%s3243_s28 + $0x130] sm:$0xff] }
 0x270   : >> { %2070 = vst [vmem:[%s3239_s4 + $0x120] sm:$0xff] %v2069_v3  ;;  %2072 = vst [vmem:[%s3239_s4 + $0x128] sm:$0xff] %v2071_v5  ;;  %v2075_v7 = vld [vmem:[%s3243_s28 + $0x138] sm:$0xff]  ;;  %v2077_v8 = vld [vmem:[%s3243_s28 + $0x140] sm:$0xff] }
 0x271   : >> { %2074 = vst [vmem:[%s3239_s4 + $0x130] sm:$0xff] %v2073_v6  ;;  %v2079_v9 = vld [vmem:[%s3243_s28 + $0x148] sm:$0xff]  ;;  %2076 = vst [vmem:[%s3239_s4 + $0x138] sm:$0xff] %v2075_v7  ;;  %v2081_v10 = vld [vmem:[%s3243_s28 + $0x150] sm:$0xff] }
 0x272   : >> { %2078 = vst [vmem:[%s3239_s4 + $0x140] sm:$0xff] %v2077_v8  ;;  %2080 = vst [vmem:[%s3239_s4 + $0x148] sm:$0xff] %v2079_v9  ;;  %v2083_v12 = vld [vmem:[%s3243_s28 + $0x158] sm:$0xff]  ;;  %v2085_v13 = vld [vmem:[%s3243_s28 + $0x160] sm:$0xff] }
 0x273   : >> { %2082 = vst [vmem:[%s3239_s4 + $0x150] sm:$0xff] %v2081_v10  ;;  %2084 = vst [vmem:[%s3239_s4 + $0x158] sm:$0xff] %v2083_v12  ;;  %v2087_v14 = vld [vmem:[%s3243_s28 + $0x168] sm:$0xff]  ;;  %v2089_v15 = vld [vmem:[%s3243_s28 + $0x170] sm:$0xff] }
 0x274   : >> { %2086 = vst [vmem:[%s3239_s4 + $0x160] sm:$0xff] %v2085_v13  ;;  %v2091_v16 = vld [vmem:[%s3243_s28 + $0x178] sm:$0xff]  ;;  %2088 = vst [vmem:[%s3239_s4 + $0x168] sm:$0xff] %v2087_v14  ;;  %v2093_v17 = vld [vmem:[%s3243_s28 + $0x180] sm:$0xff] }
 0x275   : >> { %2090 = vst [vmem:[%s3239_s4 + $0x170] sm:$0xff] %v2089_v15  ;;  %2092 = vst [vmem:[%s3239_s4 + $0x178] sm:$0xff] %v2091_v16  ;;  %v2095_v18 = vld [vmem:[%s3243_s28 + $0x188] sm:$0xff]  ;;  %v2097_v19 = vld [vmem:[%s3243_s28 + $0x190] sm:$0xff] }
 0x276   : >> { %2094 = vst [vmem:[%s3239_s4 + $0x180] sm:$0xff] %v2093_v17  ;;  %2096 = vst [vmem:[%s3239_s4 + $0x188] sm:$0xff] %v2095_v18  ;;  %v2099_v21 = vld [vmem:[%s3243_s28 + $0x198] sm:$0xff]  ;;  %v2101_v22 = vld [vmem:[%s3243_s28 + $0x1a0] sm:$0xff] }
 0x277   : >> { %2098 = vst [vmem:[%s3239_s4 + $0x190] sm:$0xff] %v2097_v19  ;;  %v2103_v23 = vld [vmem:[%s3243_s28 + $0x1a8] sm:$0xff]  ;;  %2100 = vst [vmem:[%s3239_s4 + $0x198] sm:$0xff] %v2099_v21  ;;  %v2105_v24 = vld [vmem:[%s3243_s28 + $0x1b0] sm:$0xff]  ;;  %1993 = sbr.rel (!%p1990_p2) target bundleno = 605 (0x25d), region = 306 }
 0x278   : >> { %2102 = vst [vmem:[%s3239_s4 + $0x1a0] sm:$0xff] %v2101_v22  ;;  %2104 = vst [vmem:[%s3239_s4 + $0x1a8] sm:$0xff] %v2103_v23  ;;  %v2107_v25 = vld [vmem:[%s3243_s28 + $0x1b8] sm:$0xff]  ;;  %v2109_v26 = vld [vmem:[%s3243_s28 + $0x1c0] sm:$0xff] }
 0x279   : >> { %2106 = vst [vmem:[%s3239_s4 + $0x1b0] sm:$0xff] %v2105_v24  ;;  %2108 = vst [vmem:[%s3239_s4 + $0x1b8] sm:$0xff] %v2107_v25  ;;  %v2111_v27 = vld [vmem:[%s3243_s28 + $0x1c8] sm:$0xff]  ;;  %v2113_v28 = vld [vmem:[%s3243_s28 + $0x1d0] sm:$0xff] }
 0x27a   : >> { %2110 = vst [vmem:[%s3239_s4 + $0x1c0] sm:$0xff] %v2109_v26  ;;  %v2115_v29 = vld [vmem:[%s3243_s28 + $0x1d8] sm:$0xff]  ;;  %2112 = vst [vmem:[%s3239_s4 + $0x1c8] sm:$0xff] %v2111_v27  ;;  %v2117_v30 = vld [vmem:[%s3243_s28 + $0x1e0] sm:$0xff] }
 0x27b   : >> { %2114 = vst [vmem:[%s3239_s4 + $0x1d0] sm:$0xff] %v2113_v28  ;;  %2116 = vst [vmem:[%s3239_s4 + $0x1d8] sm:$0xff] %v2115_v29  ;;  %v2119_v31 = vld [vmem:[%s3243_s28 + $0x1e8] sm:$0xff]  ;;  %v2121_v32 = vld [vmem:[%s3243_s28 + $0x1f0] sm:$0xff] }
 0x27c   : >> { %2118 = vst [vmem:[%s3239_s4 + $0x1e0] sm:$0xff] %v2117_v30  ;;  %2120 = vst [vmem:[%s3239_s4 + $0x1e8] sm:$0xff] %v2119_v31  ;;  %v2123_v33 = vld [vmem:[%s3243_s28 + $0x1f8] sm:$0xff]  ;;  %s4472_s28 = smov %s4295_s8 }
 0x27d   : >> { %2122 = vst [vmem:[%s3239_s4 + $0x1f0] sm:$0xff] %v2121_v32  ;;  %2124 = vst [vmem:[%s3239_s4 + $0x1f8] sm:$0xff] %v2123_v33  ;;  %s4471_s4 = smov %s4298_s9 }
 0x27e PF: > { %s4404_s5 = sand.u32 63, %s1984_s7   ;;  %s2570_s14 = sshll.u32 %s4228_s30, 13 }
 0x27f   : > { %s2136_s29 = sshra.s32 %s2570_s14, 4  ;;  %p2542_p3 = scmp.le.s32.totalorder %s4404_s5, 0 }
 0x280   : > { %s2137_s6 = scalar_lea.vmem %s3971_s12, %s2136_s29 [#allocation5]   ;;  %s2140_s24 = scalar_lea.vmem %s4018_s11, %s2136_s29  }
 0x281   : > { %2367 = sbr.rel (%p2542_p3) target bundleno = 658 (0x292), region = 311  ;;  %s3253_s17 = smov (!%p2542_p3), %s2140_s24  }
 0x282   : > { %s3257_s15 = smov (!%p2542_p3), %s2137_s6   ;;  %s3261_s22 = smov (!%p2542_p3), 0  }
 0x283   : > { %s3265_s26 = smov (!%p2542_p3), 0  }
 0x288 LB: >> { %v2152_v34 = vld [vmem:[%s3259_s15] sm:$0xff]  ;;  %s2154_s7 = sadd.s32 1, %s3263_s22  ;;  %s2146_s26 = sadd.s32 1, %s3267_s26   ;;  %s3267_s26 = sphi %s3265_s26, %s2146_s26   ;;  %s3263_s22 = sphi %s3261_s22, %s3262_s22   ;;  %s3259_s15 = sphi %s3257_s15, %s2159_s15   ;;  %s3255_s17 = sphi %s3253_s17, %s2160_s17  }
 0x289   : >> { %2153 = vst [vmem:[%s3255_s17] sm:$0xff] %v2152_v34  ;;  %p2155_p6 = scmp.ge.s32.totalorder %s2154_s7, %s4404_s5  ;;  %p2145_p7 = scmp.ge.s32.totalorder %s2146_s26, %s4404_s5 }
 0x28b   : >> { %s4496_s7 = smov (%p2155_p6, %s2154_s7), 0  ;;  %2148 = sbr.rel (!%p2145_p7) target bundleno = 648 (0x288), region = 317 }
 0x28c   : >> { %s2543_s30 = sshll.u32 %s4496_s7, 3  ;;  %s3262_s22 = smov %s4496_s7  }
 0x28d   : >> { %s2159_s15 = scalar_lea.vmem %s2137_s6, %s2543_s30 [#allocation5]   ;;  %s2160_s17 = scalar_lea.vmem %s2140_s24, %s2543_s30  }
 0x292 PF: > { %s3274_s4 = smov 0  }
 0x293   : > { %s2161_s28 = sshllo.u32 %s3274_s4, %s4024_s21 }
 0x294   : > { %v2170_v35 = vld [vmem:[%s1981_s10] sm:%s2161_s28] }
 0x295   : > { %2171 = vst [vmem:[%s1983_s25] sm:%s2161_s28] %v2170_v35 }
 0x296 PF: > { %p2545_p10 = scmp.ge.u32.totalorder %s4020_s18, 8 }
 0x297   : > { %s3275_s27 = smov (!%p2545_p10), 0  }
 0x298   : > { %1782 = sbr.rel (%p2545_p10) target bundleno = 671 (0x29f), region = 118  ;;  %s1783_s20 = sshllo.u32 (!%p2545_p10), %s3275_s27, %s4020_s18 }
 0x299   : > { %v1792_v11 = vld [vmem:[%s3971_s12] sm:%s1783_s20] (!%p2545_p10) }
 0x29a   : > { %1793 = vst [vmem:[%s4018_s11] sm:%s1783_s20] (!%p2545_p10), %v1792_v11 }
 0x29f PF: > { %p11_p12 = scmp.ge.s32.totalorder %s3315_s16, 38   ;;  %s4474_s12 = smov %s3135_s13 }
 0x2a0   : > { %s4475_s13 = smov %s3325_s19  ;;  %s4476_s14 = smov %s3315_s16 }
 0x2a1   :  { %13 = sbr.rel (!%p11_p12) target bundleno = 2 (0x2), region = 328 }
 0x2a8   :  { %2185 = vsyncpa [#allocation3], 1 }
 0x2a9   :  { %2187 = vsyncpa [#allocation3 + $0x1], 1 }

// kernel: multimodal_forward.13
= control target key start
LH: loop header
LB: loop body
LE: loop exit
PB: predicated region body
PF: predicated region fallthrough
CT: control target
= control target key end

     0   :  { %s5420_s12 = smov 0   ;;  %s5422_s13 = smov 0   ;;  %s7069_s0 = inlined_call_operand.vmem [shape: bf16[16,150], index: 0, kind: input, shape index: {}]   ;;  %s7070_s1 = inlined_call_operand.vmem [shape: bf16[150,29768], index: 1, kind: input, shape index: {}]   ;;  %s7071_s2 = inlined_call_operand.vmem [shape: f32[16,1], index: 2, kind: input, shape index: {}]   ;;  %s7072_s3 = inlined_call_operand.vmem [shape: bf16[16,29768], index: 3, kind: output, shape index: {}]  }
   0x1   :  { %s5424_s14 = smov 0  }
   0x2 LB: > { %s5436_s15 = sadd.s32 4294967295, %s5265_s14   ;;  %s5439_s16 = sadd.s32 1, %s5265_s14   ;;  %s5265_s14 = sphi %s5424_s14, %s7104_s14   ;;  %s5261_s13 = sphi %s5422_s13, %s7103_s13   ;;  %s5257_s12 = sphi %s5420_s12, %s7102_s12  }
   0x3   : > { %s38_s17 = ssub.s32 %s5265_s14, %s5439_s16  ;;  %s41_s18 = sadd.s32 1, %s5261_s13 }
   0x4   : > { %p39_p0 = scmp.eq.s32.totalorder %s38_s17, 0  ;;  %p48_p1 = scmp.ne.s32.totalorder %s5261_s13, %s5257_s12 }
   0x5   : > { %p49_p2 = scmp.eq.s32.totalorder %s5265_s14, 0  ;;  %p99_p3 = scmp.eq.s32.totalorder %s5436_s15, 8 }
   0x6   : > { %s5449_s19 = scalar_select %p39_p0, %s5261_s13, %s41_s18  }
   0x7   : > { %p50_p4 = por %p49_p2, %p48_p1  ;;  %p5451_p5 = por %p99_p3, %p48_p1 }
   0x8   : > { %p3986_p6 = scmp.ge.s32.totalorder %s5265_s14, 9 }
   0xa   : > { %127 = sbr.rel (%p3986_p6) target bundleno = 236 (0xec), region = 24 }
  0x11   : > { %130 = sbr.rel (!%p50_p4) target bundleno = 236 (0xec), region = 28  ;;  %s132_s21 = sand.u32 (%p50_p4), 1, %s5261_s13  }
  0x12   : > { %s135_s22 = smul.u32 (%p50_p4), 28, %s5265_s14 }
  0x13   : > { %s4415_s23 = smul.u32 (%p50_p4), 2128, %s132_s21 }
  0x14   : > { %s136_s24 = ssub.s32 (%p50_p4), 233, %s135_s22  ;;  %s4377_s25 = smul.u32 (%p50_p4), 112, %s5265_s14 }
  0x15   : > { %p137_p7 = scmp.lt.s32.totalorder (%p50_p4), %s136_s24, 28  ;;  %s5466_s4 = scalar_lea.vmem (%p50_p4), [#allocation2], %s4415_s23  }
  0x16   : > { %s5462_s28 = scalar_lea.vmem (%p50_p4), %s7070_s1, %s4377_s25  }
  0x18   : > { %s7106_s24 = smov (!%p137_p7, %s136_s24), 28 }
  0x19   : > { %s139_s29 = smul.u32 1216, %s7106_s24  ;;  %s5464_s30 = sshll.u32 %s7106_s24, 2 }
  0x1b   : > { %p3990_p8 = scmp.eq.s32.totalorder %s139_s29, 0 }
  0x1c   : > { %p147_p9 = scmp.lt.u32.totalorder (!%p3990_p8), %s5464_s30, 8 }
  0x1d   : > { %146 = sbr.rel (%p3990_p8) target bundleno = 236 (0xec), region = 32 }
  0x24   : > { %150 = sbr.rel (%p147_p9) target bundleno = 214 (0xd6), region = 36  ;;  %s5470_s5 = sand.u32 (!%p147_p9), 7, %s5464_s30  }
  0x25   : > { %p202_p10 = scmp.eq.s32.totalorder (!%p147_p9), %s5470_s5, 0  ;;  %p3991_p11 = scmp.ne.s32.totalorder (!%p147_p9), %s5470_s5, 0 }
  0x2b   : > { %205 = sbr.rel (%p3991_p11) target bundleno = 118 (0x76), region = 51  ;;  %s206_s6 = sshrl.u32 (!%p3991_p11), %s5464_s30, 3 }
  0x2c   : > { %s5477_s7 = sshrl.u32 (!%p3991_p11), %s206_s6, 2 }
  0x2d   : > { %p3992_p12 = scmp.le.s32.totalorder (!%p3991_p11), %s5477_s7, 0 }
  0x32   : > { %3856 = sbr.rel (%p3992_p12) target bundleno = 96 (0x60), region = 229  ;;  %s7074_s8 = smov (!%p3992_p12), %s5466_s4 }
  0x33   : > { %s7075_s9 = smov (!%p3992_p12), %s5462_s28  ;;  %s5486_s10 = smov (!%p3992_p12), 0  }
  0x34   : > { %s5488_s11 = smov (!%p3992_p12), 0  }
  0x39 LB: >> { %v219_v0 = vld [vmem:[%s5273_s9] sm:$0xff]  ;;  %v221_v1 = vld [vmem:[%s5273_s9 + $0x8] sm:$0xff]  ;;  %v223_v2 = vld [vmem:[%s5273_s9 + $0x10] sm:$0xff]  ;;  %s371_s17 = sadd.s32 1, %s5277_s10  ;;  %s213_s11 = sadd.s32 1, %s5281_s11   ;;  %s5281_s11 = sphi %s5488_s11, %s213_s11   ;;  %s5277_s10 = sphi %s5486_s10, %s7078_s10   ;;  %s5273_s9 = sphi %s7075_s9, %s7077_s9   ;;  %s5269_s8 = sphi %s7074_s8, %s7076_s8  }
  0x3a   : >> { %220 = vst [vmem:[%s5269_s8] sm:$0xff] %v219_v0  ;;  %222 = vst [vmem:[%s5269_s8 + $0x8] sm:$0xff] %v221_v1  ;;  %v225_v3 = vld [vmem:[%s5273_s9 + $0x18] sm:$0xff]  ;;  %v227_v4 = vld [vmem:[%s5273_s9 + $0x3a4] sm:$0xff]  ;;  %p372_p13 = scmp.ge.s32.totalorder %s371_s17, %s5477_s7  ;;  %p212_p0 = scmp.ge.s32.totalorder %s213_s11, %s5477_s7 }
  0x3b   : >> { %224 = vst [vmem:[%s5269_s8 + $0x10] sm:$0xff] %v223_v2  ;;  %v229_v5 = vld [vmem:[%s5273_s9 + $0x3ac] sm:$0xff]  ;;  %226 = vst [vmem:[%s5269_s8 + $0x18] sm:$0xff] %v225_v3  ;;  %v231_v6 = vld [vmem:[%s5273_s9 + $0x3b4] sm:$0xff] }
  0x3c   : >> { %228 = vst [vmem:[%s5269_s8 + $0x70] sm:$0xff] %v227_v4  ;;  %230 = vst [vmem:[%s5269_s8 + $0x78] sm:$0xff] %v229_v5  ;;  %v233_v7 = vld [vmem:[%s5273_s9 + $0x3bc] sm:$0xff]  ;;  %v235_v8 = vld [vmem:[%s5273_s9 + $0x748] sm:$0xff]  ;;  %s7108_s17 = smov (%p372_p13, %s371_s17), 0 }
  0x3d   : >> { %232 = vst [vmem:[%s5269_s8 + $0x80] sm:$0xff] %v231_v6  ;;  %234 = vst [vmem:[%s5269_s8 + $0x88] sm:$0xff] %v233_v7  ;;  %v237_v9 = vld [vmem:[%s5273_s9 + $0x750] sm:$0xff]  ;;  %v239_v10 = vld [vmem:[%s5273_s9 + $0x758] sm:$0xff]  ;;  %s3993_s18 = sshll.u32 %s7108_s17, 5  ;;  %s7078_s10 = smov %s7108_s17 }
  0x3e   : >> { %236 = vst [vmem:[%s5269_s8 + $0xe0] sm:$0xff] %v235_v8  ;;  %v241_v11 = vld [vmem:[%s5273_s9 + $0x760] sm:$0xff]  ;;  %238 = vst [vmem:[%s5269_s8 + $0xe8] sm:$0xff] %v237_v9  ;;  %v243_v12 = vld [vmem:[%s5273_s9 + $0xaec] sm:$0xff]  ;;  %s5544_s21 = scalar_lea.vmem %s5462_s28, %s3993_s18   ;;  %s5547_s22 = scalar_lea.vmem %s5466_s4, %s3993_s18 [#allocation2]  }
  0x3f   : >> { %240 = vst [vmem:[%s5269_s8 + $0xf0] sm:$0xff] %v239_v10  ;;  %242 = vst [vmem:[%s5269_s8 + $0xf8] sm:$0xff] %v241_v11  ;;  %v245_v13 = vld [vmem:[%s5273_s9 + $0xaf4] sm:$0xff]  ;;  %v247_v14 = vld [vmem:[%s5273_s9 + $0xafc] sm:$0xff] }
  0x40   : >> { %244 = vst [vmem:[%s5269_s8 + $0x150] sm:$0xff] %v243_v12  ;;  %246 = vst [vmem:[%s5269_s8 + $0x158] sm:$0xff] %v245_v13  ;;  %v249_v15 = vld [vmem:[%s5273_s9 + $0xb04] sm:$0xff]  ;;  %v251_v16 = vld [vmem:[%s5273_s9 + $0xe90] sm:$0xff] }
  0x41   : >> { %248 = vst [vmem:[%s5269_s8 + $0x160] sm:$0xff] %v247_v14  ;;  %v253_v17 = vld [vmem:[%s5273_s9 + $0xe98] sm:$0xff]  ;;  %250 = vst [vmem:[%s5269_s8 + $0x168] sm:$0xff] %v249_v15  ;;  %v255_v18 = vld [vmem:[%s5273_s9 + $0xea0] sm:$0xff] }
  0x42   : >> { %252 = vst [vmem:[%s5269_s8 + $0x1c0] sm:$0xff] %v251_v16  ;;  %254 = vst [vmem:[%s5269_s8 + $0x1c8] sm:$0xff] %v253_v17  ;;  %v257_v19 = vld [vmem:[%s5273_s9 + $0xea8] sm:$0xff]  ;;  %v259_v20 = vld [vmem:[%s5273_s9 + $0x1234] sm:$0xff] }
  0x43   : >> { %256 = vst [vmem:[%s5269_s8 + $0x1d0] sm:$0xff] %v255_v18  ;;  %258 = vst [vmem:[%s5269_s8 + $0x1d8] sm:$0xff] %v257_v19  ;;  %v261_v21 = vld [vmem:[%s5273_s9 + $0x123c] sm:$0xff]  ;;  %v263_v22 = vld [vmem:[%s5273_s9 + $0x1244] sm:$0xff] }
  0x44   : >> { %260 = vst [vmem:[%s5269_s8 + $0x230] sm:$0xff] %v259_v20  ;;  %v265_v23 = vld [vmem:[%s5273_s9 + $0x124c] sm:$0xff]  ;;  %262 = vst [vmem:[%s5269_s8 + $0x238] sm:$0xff] %v261_v21  ;;  %v267_v24 = vld [vmem:[%s5273_s9 + $0x15d8] sm:$0xff] }
  0x45   : >> { %264 = vst [vmem:[%s5269_s8 + $0x240] sm:$0xff] %v263_v22  ;;  %266 = vst [vmem:[%s5269_s8 + $0x248] sm:$0xff] %v265_v23  ;;  %v269_v25 = vld [vmem:[%s5273_s9 + $0x15e0] sm:$0xff]  ;;  %v271_v26 = vld [vmem:[%s5273_s9 + $0x15e8] sm:$0xff] }
  0x46   : >> { %268 = vst [vmem:[%s5269_s8 + $0x2a0] sm:$0xff] %v267_v24  ;;  %270 = vst [vmem:[%s5269_s8 + $0x2a8] sm:$0xff] %v269_v25  ;;  %v273_v27 = vld [vmem:[%s5273_s9 + $0x15f0] sm:$0xff]  ;;  %v275_v28 = vld [vmem:[%s5273_s9 + $0x197c] sm:$0xff] }
  0x47   : >> { %272 = vst [vmem:[%s5269_s8 + $0x2b0] sm:$0xff] %v271_v26  ;;  %v277_v29 = vld [vmem:[%s5273_s9 + $0x1984] sm:$0xff]  ;;  %274 = vst [vmem:[%s5269_s8 + $0x2b8] sm:$0xff] %v273_v27  ;;  %v279_v30 = vld [vmem:[%s5273_s9 + $0x198c] sm:$0xff] }
  0x48   : >> { %276 = vst [vmem:[%s5269_s8 + $0x310] sm:$0xff] %v275_v28  ;;  %278 = vst [vmem:[%s5269_s8 + $0x318] sm:$0xff] %v277_v29  ;;  %v281_v31 = vld [vmem:[%s5273_s9 + $0x1994] sm:$0xff]  ;;  %v283_v32 = vld [vmem:[%s5273_s9 + $0x1d20] sm:$0xff] }
  0x49   : >> { %280 = vst [vmem:[%s5269_s8 + $0x320] sm:$0xff] %v279_v30  ;;  %282 = vst [vmem:[%s5269_s8 + $0x328] sm:$0xff] %v281_v31  ;;  %v285_v33 = vld [vmem:[%s5273_s9 + $0x1d28] sm:$0xff]  ;;  %v287_v34 = vld [vmem:[%s5273_s9 + $0x1d30] sm:$0xff] }
  0x4a   : >> { %284 = vst [vmem:[%s5269_s8 + $0x380] sm:$0xff] %v283_v32  ;;  %v289_v35 = vld [vmem:[%s5273_s9 + $0x1d38] sm:$0xff]  ;;  %286 = vst [vmem:[%s5269_s8 + $0x388] sm:$0xff] %v285_v33  ;;  %v291_v36 = vld [vmem:[%s5273_s9 + $0x20c4] sm:$0xff] }
  0x4b   : >> { %288 = vst [vmem:[%s5269_s8 + $0x390] sm:$0xff] %v287_v34  ;;  %290 = vst [vmem:[%s5269_s8 + $0x398] sm:$0xff] %v289_v35  ;;  %v293_v37 = vld [vmem:[%s5273_s9 + $0x20cc] sm:$0xff]  ;;  %v295_v38 = vld [vmem:[%s5273_s9 + $0x20d4] sm:$0xff] }
  0x4c   : >> { %292 = vst [vmem:[%s5269_s8 + $0x3f0] sm:$0xff] %v291_v36  ;;  %294 = vst [vmem:[%s5269_s8 + $0x3f8] sm:$0xff] %v293_v37  ;;  %v297_v39 = vld [vmem:[%s5273_s9 + $0x20dc] sm:$0xff]  ;;  %v299_v40 = vld [vmem:[%s5273_s9 + $0x2468] sm:$0xff] }
  0x4d   : >> { %296 = vst [vmem:[%s5269_s8 + $0x400] sm:$0xff] %v295_v38  ;;  %v301_v41 = vld [vmem:[%s5273_s9 + $0x2470] sm:$0xff]  ;;  %298 = vst [vmem:[%s5269_s8 + $0x408] sm:$0xff] %v297_v39  ;;  %v303_v42 = vld [vmem:[%s5273_s9 + $0x2478] sm:$0xff] }
  0x4e   : >> { %300 = vst [vmem:[%s5269_s8 + $0x460] sm:$0xff] %v299_v40  ;;  %302 = vst [vmem:[%s5269_s8 + $0x468] sm:$0xff] %v301_v41  ;;  %v305_v43 = vld [vmem:[%s5273_s9 + $0x2480] sm:$0xff]  ;;  %v307_v44 = vld [vmem:[%s5273_s9 + $0x280c] sm:$0xff] }
  0x4f   : >> { %304 = vst [vmem:[%s5269_s8 + $0x470] sm:$0xff] %v303_v42  ;;  %306 = vst [vmem:[%s5269_s8 + $0x478] sm:$0xff] %v305_v43  ;;  %v309_v45 = vld [vmem:[%s5273_s9 + $0x2814] sm:$0xff]  ;;  %v311_v46 = vld [vmem:[%s5273_s9 + $0x281c] sm:$0xff] }
  0x50   : >> { %308 = vst [vmem:[%s5269_s8 + $0x4d0] sm:$0xff] %v307_v44  ;;  %v313_v47 = vld [vmem:[%s5273_s9 + $0x2824] sm:$0xff]  ;;  %310 = vst [vmem:[%s5269_s8 + $0x4d8] sm:$0xff] %v309_v45  ;;  %v315_v48 = vld [vmem:[%s5273_s9 + $0x2bb0] sm:$0xff] }
  0x51   : >> { %312 = vst [vmem:[%s5269_s8 + $0x4e0] sm:$0xff] %v311_v46  ;;  %314 = vst [vmem:[%s5269_s8 + $0x4e8] sm:$0xff] %v313_v47  ;;  %v317_v49 = vld [vmem:[%s5273_s9 + $0x2bb8] sm:$0xff]  ;;  %v319_v50 = vld [vmem:[%s5273_s9 + $0x2bc0] sm:$0xff] }
  0x52   : >> { %316 = vst [vmem:[%s5269_s8 + $0x540] sm:$0xff] %v315_v48  ;;  %318 = vst [vmem:[%s5269_s8 + $0x548] sm:$0xff] %v317_v49  ;;  %v321_v51 = vld [vmem:[%s5273_s9 + $0x2bc8] sm:$0xff]  ;;  %v323_v52 = vld [vmem:[%s5273_s9 + $0x2f54] sm:$0xff] }
  0x53   : >> { %320 = vst [vmem:[%s5269_s8 + $0x550] sm:$0xff] %v319_v50  ;;  %v325_v53 = vld [vmem:[%s5273_s9 + $0x2f5c] sm:$0xff]  ;;  %322 = vst [vmem:[%s5269_s8 + $0x558] sm:$0xff] %v321_v51  ;;  %v327_v54 = vld [vmem:[%s5273_s9 + $0x2f64] sm:$0xff] }
  0x54   : >> { %324 = vst [vmem:[%s5269_s8 + $0x5b0] sm:$0xff] %v323_v52  ;;  %326 = vst [vmem:[%s5269_s8 + $0x5b8] sm:$0xff] %v325_v53  ;;  %v329_v55 = vld [vmem:[%s5273_s9 + $0x2f6c] sm:$0xff]  ;;  %v331_v56 = vld [vmem:[%s5273_s9 + $0x32f8] sm:$0xff] }
  0x55   : >> { %328 = vst [vmem:[%s5269_s8 + $0x5c0] sm:$0xff] %v327_v54  ;;  %330 = vst [vmem:[%s5269_s8 + $0x5c8] sm:$0xff] %v329_v55  ;;  %v333_v57 = vld [vmem:[%s5273_s9 + $0x3300] sm:$0xff]  ;;  %v335_v58 = vld [vmem:[%s5273_s9 + $0x3308] sm:$0xff] }
  0x56   : >> { %332 = vst [vmem:[%s5269_s8 + $0x620] sm:$0xff] %v331_v56  ;;  %v337_v59 = vld [vmem:[%s5273_s9 + $0x3310] sm:$0xff]  ;;  %334 = vst [vmem:[%s5269_s8 + $0x628] sm:$0xff] %v333_v57  ;;  %v339_v60 = vld [vmem:[%s5273_s9 + $0x369c] sm:$0xff] }
  0x57   : >> { %336 = vst [vmem:[%s5269_s8 + $0x630] sm:$0xff] %v335_v58  ;;  %338 = vst [vmem:[%s5269_s8 + $0x638] sm:$0xff] %v337_v59  ;;  %v341_v61 = vld [vmem:[%s5273_s9 + $0x36a4] sm:$0xff]  ;;  %v343_v62 = vld [vmem:[%s5273_s9 + $0x36ac] sm:$0xff] }
  0x58   : >> { %340 = vst [vmem:[%s5269_s8 + $0x690] sm:$0xff] %v339_v60  ;;  %342 = vst [vmem:[%s5269_s8 + $0x698] sm:$0xff] %v341_v61  ;;  %v345_v63 = vld [vmem:[%s5273_s9 + $0x36b4] sm:$0xff]  ;;  %v347_v0 = vld [vmem:[%s5273_s9 + $0x3a40] sm:$0xff] }
  0x59   : >> { %344 = vst [vmem:[%s5269_s8 + $0x6a0] sm:$0xff] %v343_v62  ;;  %v349_v1 = vld [vmem:[%s5273_s9 + $0x3a48] sm:$0xff]  ;;  %346 = vst [vmem:[%s5269_s8 + $0x6a8] sm:$0xff] %v345_v63  ;;  %v351_v2 = vld [vmem:[%s5273_s9 + $0x3a50] sm:$0xff]  ;;  %215 = sbr.rel (!%p212_p0) target bundleno = 57 (0x39), region = 235 }
  0x5a   : >> { %348 = vst [vmem:[%s5269_s8 + $0x700] sm:$0xff] %v347_v0  ;;  %350 = vst [vmem:[%s5269_s8 + $0x708] sm:$0xff] %v349_v1  ;;  %v353_v3 = vld [vmem:[%s5273_s9 + $0x3a58] sm:$0xff]  ;;  %v355_v4 = vld [vmem:[%s5273_s9 + $0x3de4] sm:$0xff] }
  0x5b   : >> { %352 = vst [vmem:[%s5269_s8 + $0x710] sm:$0xff] %v351_v2  ;;  %354 = vst [vmem:[%s5269_s8 + $0x718] sm:$0xff] %v353_v3  ;;  %v357_v5 = vld [vmem:[%s5273_s9 + $0x3dec] sm:$0xff]  ;;  %v359_v6 = vld [vmem:[%s5273_s9 + $0x3df4] sm:$0xff] }
  0x5c   : >> { %356 = vst [vmem:[%s5269_s8 + $0x770] sm:$0xff] %v355_v4  ;;  %v361_v7 = vld [vmem:[%s5273_s9 + $0x3dfc] sm:$0xff]  ;;  %358 = vst [vmem:[%s5269_s8 + $0x778] sm:$0xff] %v357_v5  ;;  %v363_v8 = vld [vmem:[%s5273_s9 + $0x4188] sm:$0xff] }
  0x5d   : >> { %360 = vst [vmem:[%s5269_s8 + $0x780] sm:$0xff] %v359_v6  ;;  %362 = vst [vmem:[%s5269_s8 + $0x788] sm:$0xff] %v361_v7  ;;  %v365_v9 = vld [vmem:[%s5273_s9 + $0x4190] sm:$0xff]  ;;  %v367_v10 = vld [vmem:[%s5273_s9 + $0x4198] sm:$0xff] }
  0x5e   : >> { %364 = vst [vmem:[%s5269_s8 + $0x7e0] sm:$0xff] %v363_v8  ;;  %366 = vst [vmem:[%s5269_s8 + $0x7e8] sm:$0xff] %v365_v9  ;;  %v369_v11 = vld [vmem:[%s5273_s9 + $0x41a0] sm:$0xff]  ;;  %s7077_s9 = smov %s5544_s21 }
  0x5f   : >> { %368 = vst [vmem:[%s5269_s8 + $0x7f0] sm:$0xff] %v367_v10  ;;  %370 = vst [vmem:[%s5269_s8 + $0x7f8] sm:$0xff] %v369_v11  ;;  %s7076_s8 = smov %s5547_s22 }
  0x60 PF: > { %s5677_s23 = sand.u32 3, %s206_s6   ;;  %s4378_s24 = sshll.u32 %s5477_s7, 9 }
  0x61   : > { %s382_s25 = sshra.s32 %s4378_s24, 4  ;;  %p3998_p1 = scmp.le.s32.totalorder %s5677_s23, 0 }
  0x62   : > { %s5681_s26 = scalar_lea.vmem %s5462_s28, %s382_s25   ;;  %s5684_s27 = scalar_lea.vmem %s5466_s4, %s382_s25 [#allocation2]  }
  0x63   : > { %3870 = sbr.rel (%p3998_p1) target bundleno = 118 (0x76), region = 240  ;;  %s7079_s29 = smov (!%p3998_p1), %s5684_s27 }
  0x64   : > { %s7080_s8 = smov (!%p3998_p1), %s5681_s26  ;;  %s5693_s9 = smov (!%p3998_p1), 0  }
  0x65   : > { %s5695_s10 = smov (!%p3998_p1), 0  }
  0x6a LB: >> { %v398_v12 = vld [vmem:[%s5289_s8] sm:$0xff]  ;;  %v402_v14 = vld [vmem:[%s5289_s8 + $0x748] sm:$0xff]  ;;  %s436_s6 = sadd.s32 1, %s5293_s9  ;;  %v406_v16 = vld [vmem:[%s5289_s8 + $0xe90] sm:$0xff]  ;;  %s392_s10 = sadd.s32 1, %s5297_s10   ;;  %s5297_s10 = sphi %s5695_s10, %s392_s10   ;;  %s5293_s9 = sphi %s5693_s9, %s7082_s9   ;;  %s5289_s8 = sphi %s7080_s8, %s441_s8   ;;  %s5285_s29 = sphi %s7079_s29, %s7081_s29  }
  0x6b   : >> { %v400_v13 = vld [vmem:[%s5289_s8 + $0x3a4] sm:$0xff]  ;;  %399 = vst [vmem:[%s5285_s29] sm:$0xff] %v398_v12  ;;  %403 = vst [vmem:[%s5285_s29 + $0xe0] sm:$0xff] %v402_v14  ;;  %v404_v15 = vld [vmem:[%s5289_s8 + $0xaec] sm:$0xff]  ;;  %p437_p2 = scmp.ge.s32.totalorder %s436_s6, %s5677_s23  ;;  %p391_p3 = scmp.ge.s32.totalorder %s392_s10, %s5677_s23 }
  0x6c   : >> { %401 = vst [vmem:[%s5285_s29 + $0x70] sm:$0xff] %v400_v13  ;;  %v408_v17 = vld [vmem:[%s5289_s8 + $0x1234] sm:$0xff]  ;;  %405 = vst [vmem:[%s5285_s29 + $0x150] sm:$0xff] %v404_v15  ;;  %v412_v19 = vld [vmem:[%s5289_s8 + $0x197c] sm:$0xff] }
  0x6d   : >> { %407 = vst [vmem:[%s5285_s29 + $0x1c0] sm:$0xff] %v406_v16  ;;  %409 = vst [vmem:[%s5285_s29 + $0x230] sm:$0xff] %v408_v17  ;;  %v410_v18 = vld [vmem:[%s5289_s8 + $0x15d8] sm:$0xff]  ;;  %v414_v20 = vld [vmem:[%s5289_s8 + $0x1d20] sm:$0xff]  ;;  %s7110_s6 = smov (%p437_p2, %s436_s6), 0 }
  0x6e   : >> { %411 = vst [vmem:[%s5285_s29 + $0x2a0] sm:$0xff] %v410_v18  ;;  %413 = vst [vmem:[%s5285_s29 + $0x310] sm:$0xff] %v412_v19  ;;  %v416_v21 = vld [vmem:[%s5289_s8 + $0x20c4] sm:$0xff]  ;;  %v420_v23 = vld [vmem:[%s5289_s8 + $0x280c] sm:$0xff]  ;;  %s3999_s7 = sshll.u32 %s7110_s6, 3  ;;  %s7082_s9 = smov %s7110_s6 }
  0x6f   : >> { %415 = vst [vmem:[%s5285_s29 + $0x380] sm:$0xff] %v414_v20  ;;  %v418_v22 = vld [vmem:[%s5289_s8 + $0x2468] sm:$0xff]  ;;  %417 = vst [vmem:[%s5285_s29 + $0x3f0] sm:$0xff] %v416_v21  ;;  %v422_v24 = vld [vmem:[%s5289_s8 + $0x2bb0] sm:$0xff]  ;;  %s442_s11 = scalar_lea.vmem %s5684_s27, %s3999_s7 [#allocation2]   ;;  %394 = sbr.rel (!%p391_p3) target bundleno = 106 (0x6a), region = 246 }
  0x70   : >> { %419 = vst [vmem:[%s5285_s29 + $0x460] sm:$0xff] %v418_v22  ;;  %421 = vst [vmem:[%s5285_s29 + $0x4d0] sm:$0xff] %v420_v23  ;;  %v424_v25 = vld [vmem:[%s5289_s8 + $0x2f54] sm:$0xff]  ;;  %v428_v27 = vld [vmem:[%s5289_s8 + $0x369c] sm:$0xff] }
  0x71   : >> { %v426_v26 = vld [vmem:[%s5289_s8 + $0x32f8] sm:$0xff]  ;;  %423 = vst [vmem:[%s5285_s29 + $0x540] sm:$0xff] %v422_v24  ;;  %425 = vst [vmem:[%s5285_s29 + $0x5b0] sm:$0xff] %v424_v25  ;;  %v430_v28 = vld [vmem:[%s5289_s8 + $0x3a40] sm:$0xff] }
  0x72   : >> { %427 = vst [vmem:[%s5285_s29 + $0x620] sm:$0xff] %v426_v26  ;;  %v432_v29 = vld [vmem:[%s5289_s8 + $0x3de4] sm:$0xff]  ;;  %429 = vst [vmem:[%s5285_s29 + $0x690] sm:$0xff] %v428_v27 }
  0x73   : >> { %431 = vst [vmem:[%s5285_s29 + $0x700] sm:$0xff] %v430_v28  ;;  %433 = vst [vmem:[%s5285_s29 + $0x770] sm:$0xff] %v432_v29  ;;  %v434_v30 = vld [vmem:[%s5289_s8 + $0x4188] sm:$0xff]  ;;  %s441_s8 = scalar_lea.vmem %s5681_s26, %s3999_s7  }
  0x74   : >> { %435 = vst [vmem:[%s5285_s29 + $0x7e0] sm:$0xff] %v434_v30  ;;  %s7081_s29 = smov %s442_s11 }
  0x76 PF: > { %445 = sbr.rel (%p202_p10) target bundleno = 214 (0xd6), region = 69  ;;  %s447_s17 = ssub.s32 (!%p202_p10), %s5464_s30, %s5470_s5 }
  0x77   : > { %s451_s18 = sshrl.u32 (!%p202_p10), %s5464_s30, 3  ;;  %s5764_s21 = scalar_lea.vmem (!%p202_p10), %s5462_s28, %s447_s17 }
  0x78   : > { %s5767_s22 = scalar_lea.vmem (!%p202_p10), %s5466_s4, %s447_s17 [#allocation2]  ;;  %s5771_s24 = sshrl.u32 (!%p202_p10), %s451_s18, 2 }
  0x79   : > { %p4001_p4 = scmp.le.s32.totalorder (!%p202_p10), %s5771_s24, 0 }
  0x7d   : > { %3884 = sbr.rel (%p4001_p4) target bundleno = 171 (0xab), region = 251  ;;  %s7083_s23 = smov (!%p4001_p4), %s5466_s4 }
  0x7e   : > { %s7084_s25 = smov (!%p4001_p4), %s5462_s28  ;;  %s5780_s26 = smov (!%p4001_p4), 0  }
  0x7f   : > { %s5782_s27 = smov (!%p4001_p4), 0  }
  0x84 LB: >> { %v464_v31 = vld [vmem:[%s5305_s25] sm:$0xff]  ;;  %v466_v32 = vld [vmem:[%s5305_s25 + $0x8] sm:$0xff]  ;;  %v468_v33 = vld [vmem:[%s5305_s25 + $0x10] sm:$0xff]  ;;  %s616_s29 = sadd.s32 1, %s5309_s26  ;;  %s458_s27 = sadd.s32 1, %s5313_s27   ;;  %s5313_s27 = sphi %s5782_s27, %s458_s27   ;;  %s5309_s26 = sphi %s5780_s26, %s7087_s26   ;;  %s5305_s25 = sphi %s7084_s25, %s7086_s25   ;;  %s5301_s23 = sphi %s7083_s23, %s7085_s23  }
  0x85   : >> { %465 = vst [vmem:[%s5301_s23] sm:$0xff] %v464_v31  ;;  %467 = vst [vmem:[%s5301_s23 + $0x8] sm:$0xff] %v466_v32  ;;  %v470_v34 = vld [vmem:[%s5305_s25 + $0x18] sm:$0xff]  ;;  %v472_v35 = vld [vmem:[%s5305_s25 + $0x3a4] sm:$0xff]  ;;  %p617_p6 = scmp.ge.s32.totalorder %s616_s29, %s5771_s24  ;;  %p457_p7 = scmp.ge.s32.totalorder %s458_s27, %s5771_s24 }
  0x86   : >> { %469 = vst [vmem:[%s5301_s23 + $0x10] sm:$0xff] %v468_v33  ;;  %v474_v36 = vld [vmem:[%s5305_s25 + $0x3ac] sm:$0xff]  ;;  %471 = vst [vmem:[%s5301_s23 + $0x18] sm:$0xff] %v470_v34  ;;  %v476_v37 = vld [vmem:[%s5305_s25 + $0x3b4] sm:$0xff] }
  0x87   : >> { %473 = vst [vmem:[%s5301_s23 + $0x70] sm:$0xff] %v472_v35  ;;  %475 = vst [vmem:[%s5301_s23 + $0x78] sm:$0xff] %v474_v36  ;;  %v478_v38 = vld [vmem:[%s5305_s25 + $0x3bc] sm:$0xff]  ;;  %v480_v39 = vld [vmem:[%s5305_s25 + $0x748] sm:$0xff]  ;;  %s7112_s29 = smov (%p617_p6, %s616_s29), 0 }
  0x88   : >> { %477 = vst [vmem:[%s5301_s23 + $0x80] sm:$0xff] %v476_v37  ;;  %479 = vst [vmem:[%s5301_s23 + $0x88] sm:$0xff] %v478_v38  ;;  %v482_v40 = vld [vmem:[%s5305_s25 + $0x750] sm:$0xff]  ;;  %v484_v41 = vld [vmem:[%s5305_s25 + $0x758] sm:$0xff]  ;;  %s4002_s8 = sshll.u32 %s7112_s29, 5  ;;  %s7087_s26 = smov %s7112_s29 }
  0x89   : >> { %481 = vst [vmem:[%s5301_s23 + $0xe0] sm:$0xff] %v480_v39  ;;  %v486_v42 = vld [vmem:[%s5305_s25 + $0x760] sm:$0xff]  ;;  %483 = vst [vmem:[%s5301_s23 + $0xe8] sm:$0xff] %v482_v40  ;;  %v488_v43 = vld [vmem:[%s5305_s25 + $0xaec] sm:$0xff]  ;;  %s5838_s9 = scalar_lea.vmem %s5462_s28, %s4002_s8   ;;  %s5841_s10 = scalar_lea.vmem %s5466_s4, %s4002_s8 [#allocation2]  }
  0x8a   : >> { %485 = vst [vmem:[%s5301_s23 + $0xf0] sm:$0xff] %v484_v41  ;;  %487 = vst [vmem:[%s5301_s23 + $0xf8] sm:$0xff] %v486_v42  ;;  %v490_v44 = vld [vmem:[%s5305_s25 + $0xaf4] sm:$0xff]  ;;  %v492_v45 = vld [vmem:[%s5305_s25 + $0xafc] sm:$0xff] }
  0x8b   : >> { %489 = vst [vmem:[%s5301_s23 + $0x150] sm:$0xff] %v488_v43  ;;  %491 = vst [vmem:[%s5301_s23 + $0x158] sm:$0xff] %v490_v44  ;;  %v494_v46 = vld [vmem:[%s5305_s25 + $0xb04] sm:$0xff]  ;;  %v496_v47 = vld [vmem:[%s5305_s25 + $0xe90] sm:$0xff] }
  0x8c   : >> { %493 = vst [vmem:[%s5301_s23 + $0x160] sm:$0xff] %v492_v45  ;;  %v498_v48 = vld [vmem:[%s5305_s25 + $0xe98] sm:$0xff]  ;;  %495 = vst [vmem:[%s5301_s23 + $0x168] sm:$0xff] %v494_v46  ;;  %v500_v49 = vld [vmem:[%s5305_s25 + $0xea0] sm:$0xff] }
  0x8d   : >> { %497 = vst [vmem:[%s5301_s23 + $0x1c0] sm:$0xff] %v496_v47  ;;  %499 = vst [vmem:[%s5301_s23 + $0x1c8] sm:$0xff] %v498_v48  ;;  %v502_v50 = vld [vmem:[%s5305_s25 + $0xea8] sm:$0xff]  ;;  %v504_v51 = vld [vmem:[%s5305_s25 + $0x1234] sm:$0xff] }
  0x8e   : >> { %501 = vst [vmem:[%s5301_s23 + $0x1d0] sm:$0xff] %v500_v49  ;;  %503 = vst [vmem:[%s5301_s23 + $0x1d8] sm:$0xff] %v502_v50  ;;  %v506_v52 = vld [vmem:[%s5305_s25 + $0x123c] sm:$0xff]  ;;  %v508_v53 = vld [vmem:[%s5305_s25 + $0x1244] sm:$0xff] }
  0x8f   : >> { %505 = vst [vmem:[%s5301_s23 + $0x230] sm:$0xff] %v504_v51  ;;  %v510_v54 = vld [vmem:[%s5305_s25 + $0x124c] sm:$0xff]  ;;  %507 = vst [vmem:[%s5301_s23 + $0x238] sm:$0xff] %v506_v52  ;;  %v512_v55 = vld [vmem:[%s5305_s25 + $0x15d8] sm:$0xff] }
  0x90   : >> { %509 = vst [vmem:[%s5301_s23 + $0x240] sm:$0xff] %v508_v53  ;;  %511 = vst [vmem:[%s5301_s23 + $0x248] sm:$0xff] %v510_v54  ;;  %v514_v56 = vld [vmem:[%s5305_s25 + $0x15e0] sm:$0xff]  ;;  %v516_v57 = vld [vmem:[%s5305_s25 + $0x15e8] sm:$0xff] }
  0x91   : >> { %513 = vst [vmem:[%s5301_s23 + $0x2a0] sm:$0xff] %v512_v55  ;;  %515 = vst [vmem:[%s5301_s23 + $0x2a8] sm:$0xff] %v514_v56  ;;  %v518_v58 = vld [vmem:[%s5305_s25 + $0x15f0] sm:$0xff]  ;;  %v520_v59 = vld [vmem:[%s5305_s25 + $0x197c] sm:$0xff] }
  0x92   : >> { %517 = vst [vmem:[%s5301_s23 + $0x2b0] sm:$0xff] %v516_v57  ;;  %v522_v60 = vld [vmem:[%s5305_s25 + $0x1984] sm:$0xff]  ;;  %519 = vst [vmem:[%s5301_s23 + $0x2b8] sm:$0xff] %v518_v58  ;;  %v524_v61 = vld [vmem:[%s5305_s25 + $0x198c] sm:$0xff] }
  0x93   : >> { %521 = vst [vmem:[%s5301_s23 + $0x310] sm:$0xff] %v520_v59  ;;  %523 = vst [vmem:[%s5301_s23 + $0x318] sm:$0xff] %v522_v60  ;;  %v526_v62 = vld [vmem:[%s5305_s25 + $0x1994] sm:$0xff]  ;;  %v528_v63 = vld [vmem:[%s5305_s25 + $0x1d20] sm:$0xff] }
  0x94   : >> { %525 = vst [vmem:[%s5301_s23 + $0x320] sm:$0xff] %v524_v61  ;;  %527 = vst [vmem:[%s5301_s23 + $0x328] sm:$0xff] %v526_v62  ;;  %v530_v0 = vld [vmem:[%s5305_s25 + $0x1d28] sm:$0xff]  ;;  %v532_v1 = vld [vmem:[%s5305_s25 + $0x1d30] sm:$0xff] }
  0x95   : >> { %529 = vst [vmem:[%s5301_s23 + $0x380] sm:$0xff] %v528_v63  ;;  %v534_v2 = vld [vmem:[%s5305_s25 + $0x1d38] sm:$0xff]  ;;  %531 = vst [vmem:[%s5301_s23 + $0x388] sm:$0xff] %v530_v0  ;;  %v536_v3 = vld [vmem:[%s5305_s25 + $0x20c4] sm:$0xff] }
  0x96   : >> { %533 = vst [vmem:[%s5301_s23 + $0x390] sm:$0xff] %v532_v1  ;;  %535 = vst [vmem:[%s5301_s23 + $0x398] sm:$0xff] %v534_v2  ;;  %v538_v4 = vld [vmem:[%s5305_s25 + $0x20cc] sm:$0xff]  ;;  %v540_v5 = vld [vmem:[%s5305_s25 + $0x20d4] sm:$0xff] }
  0x97   : >> { %537 = vst [vmem:[%s5301_s23 + $0x3f0] sm:$0xff] %v536_v3  ;;  %539 = vst [vmem:[%s5301_s23 + $0x3f8] sm:$0xff] %v538_v4  ;;  %v542_v6 = vld [vmem:[%s5305_s25 + $0x20dc] sm:$0xff]  ;;  %v544_v7 = vld [vmem:[%s5305_s25 + $0x2468] sm:$0xff] }
  0x98   : >> { %541 = vst [vmem:[%s5301_s23 + $0x400] sm:$0xff] %v540_v5  ;;  %v546_v8 = vld [vmem:[%s5305_s25 + $0x2470] sm:$0xff]  ;;  %543 = vst [vmem:[%s5301_s23 + $0x408] sm:$0xff] %v542_v6  ;;  %v548_v9 = vld [vmem:[%s5305_s25 + $0x2478] sm:$0xff] }
  0x99   : >> { %545 = vst [vmem:[%s5301_s23 + $0x460] sm:$0xff] %v544_v7  ;;  %547 = vst [vmem:[%s5301_s23 + $0x468] sm:$0xff] %v546_v8  ;;  %v550_v10 = vld [vmem:[%s5305_s25 + $0x2480] sm:$0xff]  ;;  %v552_v11 = vld [vmem:[%s5305_s25 + $0x280c] sm:$0xff] }
  0x9a   : >> { %549 = vst [vmem:[%s5301_s23 + $0x470] sm:$0xff] %v548_v9  ;;  %551 = vst [vmem:[%s5301_s23 + $0x478] sm:$0xff] %v550_v10  ;;  %v554_v12 = vld [vmem:[%s5305_s25 + $0x2814] sm:$0xff]  ;;  %v556_v13 = vld [vmem:[%s5305_s25 + $0x281c] sm:$0xff] }
  0x9b   : >> { %553 = vst [vmem:[%s5301_s23 + $0x4d0] sm:$0xff] %v552_v11  ;;  %v558_v14 = vld [vmem:[%s5305_s25 + $0x2824] sm:$0xff]  ;;  %555 = vst [vmem:[%s5301_s23 + $0x4d8] sm:$0xff] %v554_v12  ;;  %v560_v15 = vld [vmem:[%s5305_s25 + $0x2bb0] sm:$0xff] }
  0x9c   : >> { %557 = vst [vmem:[%s5301_s23 + $0x4e0] sm:$0xff] %v556_v13  ;;  %559 = vst [vmem:[%s5301_s23 + $0x4e8] sm:$0xff] %v558_v14  ;;  %v562_v16 = vld [vmem:[%s5305_s25 + $0x2bb8] sm:$0xff]  ;;  %v564_v17 = vld [vmem:[%s5305_s25 + $0x2bc0] sm:$0xff] }
  0x9d   : >> { %561 = vst [vmem:[%s5301_s23 + $0x540] sm:$0xff] %v560_v15  ;;  %563 = vst [vmem:[%s5301_s23 + $0x548] sm:$0xff] %v562_v16  ;;  %v566_v18 = vld [vmem:[%s5305_s25 + $0x2bc8] sm:$0xff]  ;;  %v568_v19 = vld [vmem:[%s5305_s25 + $0x2f54] sm:$0xff] }
  0x9e   : >> { %565 = vst [vmem:[%s5301_s23 + $0x550] sm:$0xff] %v564_v17  ;;  %v570_v20 = vld [vmem:[%s5305_s25 + $0x2f5c] sm:$0xff]  ;;  %567 = vst [vmem:[%s5301_s23 + $0x558] sm:$0xff] %v566_v18  ;;  %v572_v21 = vld [vmem:[%s5305_s25 + $0x2f64] sm:$0xff] }
  0x9f   : >> { %569 = vst [vmem:[%s5301_s23 + $0x5b0] sm:$0xff] %v568_v19  ;;  %571 = vst [vmem:[%s5301_s23 + $0x5b8] sm:$0xff] %v570_v20  ;;  %v574_v22 = vld [vmem:[%s5305_s25 + $0x2f6c] sm:$0xff]  ;;  %v576_v23 = vld [vmem:[%s5305_s25 + $0x32f8] sm:$0xff] }
  0xa0   : >> { %573 = vst [vmem:[%s5301_s23 + $0x5c0] sm:$0xff] %v572_v21  ;;  %575 = vst [vmem:[%s5301_s23 + $0x5c8] sm:$0xff] %v574_v22  ;;  %v578_v24 = vld [vmem:[%s5305_s25 + $0x3300] sm:$0xff]  ;;  %v580_v25 = vld [vmem:[%s5305_s25 + $0x3308] sm:$0xff] }
  0xa1   : >> { %577 = vst [vmem:[%s5301_s23 + $0x620] sm:$0xff] %v576_v23  ;;  %v582_v26 = vld [vmem:[%s5305_s25 + $0x3310] sm:$0xff]  ;;  %579 = vst [vmem:[%s5301_s23 + $0x628] sm:$0xff] %v578_v24  ;;  %v584_v27 = vld [vmem:[%s5305_s25 + $0x369c] sm:$0xff] }
  0xa2   : >> { %581 = vst [vmem:[%s5301_s23 + $0x630] sm:$0xff] %v580_v25  ;;  %583 = vst [vmem:[%s5301_s23 + $0x638] sm:$0xff] %v582_v26  ;;  %v586_v28 = vld [vmem:[%s5305_s25 + $0x36a4] sm:$0xff]  ;;  %v588_v29 = vld [vmem:[%s5305_s25 + $0x36ac] sm:$0xff] }
  0xa3   : >> { %585 = vst [vmem:[%s5301_s23 + $0x690] sm:$0xff] %v584_v27  ;;  %587 = vst [vmem:[%s5301_s23 + $0x698] sm:$0xff] %v586_v28  ;;  %v590_v30 = vld [vmem:[%s5305_s25 + $0x36b4] sm:$0xff]  ;;  %v592_v31 = vld [vmem:[%s5305_s25 + $0x3a40] sm:$0xff] }
  0xa4   : >> { %589 = vst [vmem:[%s5301_s23 + $0x6a0] sm:$0xff] %v588_v29  ;;  %v594_v32 = vld [vmem:[%s5305_s25 + $0x3a48] sm:$0xff]  ;;  %591 = vst [vmem:[%s5301_s23 + $0x6a8] sm:$0xff] %v590_v30  ;;  %v596_v33 = vld [vmem:[%s5305_s25 + $0x3a50] sm:$0xff]  ;;  %460 = sbr.rel (!%p457_p7) target bundleno = 132 (0x84), region = 257 }
  0xa5   : >> { %593 = vst [vmem:[%s5301_s23 + $0x700] sm:$0xff] %v592_v31  ;;  %595 = vst [vmem:[%s5301_s23 + $0x708] sm:$0xff] %v594_v32  ;;  %v598_v34 = vld [vmem:[%s5305_s25 + $0x3a58] sm:$0xff]  ;;  %v600_v35 = vld [vmem:[%s5305_s25 + $0x3de4] sm:$0xff] }
  0xa6   : >> { %597 = vst [vmem:[%s5301_s23 + $0x710] sm:$0xff] %v596_v33  ;;  %599 = vst [vmem:[%s5301_s23 + $0x718] sm:$0xff] %v598_v34  ;;  %v602_v36 = vld [vmem:[%s5305_s25 + $0x3dec] sm:$0xff]  ;;  %v604_v37 = vld [vmem:[%s5305_s25 + $0x3df4] sm:$0xff] }
  0xa7   : >> { %601 = vst [vmem:[%s5301_s23 + $0x770] sm:$0xff] %v600_v35  ;;  %v606_v38 = vld [vmem:[%s5305_s25 + $0x3dfc] sm:$0xff]  ;;  %603 = vst [vmem:[%s5301_s23 + $0x778] sm:$0xff] %v602_v36  ;;  %v608_v39 = vld [vmem:[%s5305_s25 + $0x4188] sm:$0xff] }
  0xa8   : >> { %605 = vst [vmem:[%s5301_s23 + $0x780] sm:$0xff] %v604_v37  ;;  %607 = vst [vmem:[%s5301_s23 + $0x788] sm:$0xff] %v606_v38  ;;  %v610_v40 = vld [vmem:[%s5305_s25 + $0x4190] sm:$0xff]  ;;  %v612_v41 = vld [vmem:[%s5305_s25 + $0x4198] sm:$0xff] }
  0xa9   : >> { %609 = vst [vmem:[%s5301_s23 + $0x7e0] sm:$0xff] %v608_v39  ;;  %611 = vst [vmem:[%s5301_s23 + $0x7e8] sm:$0xff] %v610_v40  ;;  %v614_v42 = vld [vmem:[%s5305_s25 + $0x41a0] sm:$0xff]  ;;  %s7086_s25 = smov %s5838_s9 }
  0xaa   : >> { %613 = vst [vmem:[%s5301_s23 + $0x7f0] sm:$0xff] %v612_v41  ;;  %615 = vst [vmem:[%s5301_s23 + $0x7f8] sm:$0xff] %v614_v42  ;;  %s7085_s23 = smov %s5841_s10 }
  0xab PF: > { %s5971_s6 = sand.u32 3, %s451_s18   ;;  %s4380_s7 = sshll.u32 %s5771_s24, 9 }
  0xac   : > { %s627_s11 = sshra.s32 %s4380_s7, 4  ;;  %p4007_p8 = scmp.le.s32.totalorder %s5971_s6, 0 }
  0xad   : > { %s5975_s17 = scalar_lea.vmem %s5462_s28, %s627_s11   ;;  %s5978_s8 = scalar_lea.vmem %s5466_s4, %s627_s11 [#allocation2]  }
  0xae   : > { %3898 = sbr.rel (%p4007_p8) target bundleno = 193 (0xc1), region = 262  ;;  %s7088_s23 = smov (!%p4007_p8), %s5978_s8 }
  0xaf   : > { %s7089_s25 = smov (!%p4007_p8), %s5975_s17  ;;  %s5987_s26 = smov (!%p4007_p8), 0  }
  0xb0   : > { %s5989_s27 = smov (!%p4007_p8), 0  }
  0xb5 LB: >> { %v643_v43 = vld [vmem:[%s5321_s25] sm:$0xff]  ;;  %v647_v45 = vld [vmem:[%s5321_s25 + $0x748] sm:$0xff]  ;;  %s681_s18 = sadd.s32 1, %s5325_s26  ;;  %v651_v47 = vld [vmem:[%s5321_s25 + $0xe90] sm:$0xff]  ;;  %s637_s27 = sadd.s32 1, %s5329_s27   ;;  %s5329_s27 = sphi %s5989_s27, %s637_s27   ;;  %s5325_s26 = sphi %s5987_s26, %s7091_s26   ;;  %s5321_s25 = sphi %s7089_s25, %s686_s25   ;;  %s5317_s23 = sphi %s7088_s23, %s7090_s23  }
  0xb6   : >> { %v645_v44 = vld [vmem:[%s5321_s25 + $0x3a4] sm:$0xff]  ;;  %644 = vst [vmem:[%s5317_s23] sm:$0xff] %v643_v43  ;;  %648 = vst [vmem:[%s5317_s23 + $0xe0] sm:$0xff] %v647_v45  ;;  %v649_v46 = vld [vmem:[%s5321_s25 + $0xaec] sm:$0xff]  ;;  %p682_p9 = scmp.ge.s32.totalorder %s681_s18, %s5971_s6  ;;  %p636_p10 = scmp.ge.s32.totalorder %s637_s27, %s5971_s6 }
  0xb7   : >> { %646 = vst [vmem:[%s5317_s23 + $0x70] sm:$0xff] %v645_v44  ;;  %v653_v48 = vld [vmem:[%s5321_s25 + $0x1234] sm:$0xff]  ;;  %650 = vst [vmem:[%s5317_s23 + $0x150] sm:$0xff] %v649_v46  ;;  %v657_v50 = vld [vmem:[%s5321_s25 + $0x197c] sm:$0xff] }
  0xb8   : >> { %652 = vst [vmem:[%s5317_s23 + $0x1c0] sm:$0xff] %v651_v47  ;;  %654 = vst [vmem:[%s5317_s23 + $0x230] sm:$0xff] %v653_v48  ;;  %v655_v49 = vld [vmem:[%s5321_s25 + $0x15d8] sm:$0xff]  ;;  %v659_v51 = vld [vmem:[%s5321_s25 + $0x1d20] sm:$0xff]  ;;  %s7114_s18 = smov (%p682_p9, %s681_s18), 0 }
  0xb9   : >> { %656 = vst [vmem:[%s5317_s23 + $0x2a0] sm:$0xff] %v655_v49  ;;  %658 = vst [vmem:[%s5317_s23 + $0x310] sm:$0xff] %v657_v50  ;;  %v661_v52 = vld [vmem:[%s5321_s25 + $0x20c4] sm:$0xff]  ;;  %v665_v54 = vld [vmem:[%s5321_s25 + $0x280c] sm:$0xff]  ;;  %s4008_s24 = sshll.u32 %s7114_s18, 3  ;;  %s7091_s26 = smov %s7114_s18 }
  0xba   : >> { %660 = vst [vmem:[%s5317_s23 + $0x380] sm:$0xff] %v659_v51  ;;  %v663_v53 = vld [vmem:[%s5321_s25 + $0x2468] sm:$0xff]  ;;  %662 = vst [vmem:[%s5317_s23 + $0x3f0] sm:$0xff] %v661_v52  ;;  %v667_v55 = vld [vmem:[%s5321_s25 + $0x2bb0] sm:$0xff]  ;;  %s687_s29 = scalar_lea.vmem %s5978_s8, %s4008_s24 [#allocation2]   ;;  %639 = sbr.rel (!%p636_p10) target bundleno = 181 (0xb5), region = 268 }
  0xbb   : >> { %664 = vst [vmem:[%s5317_s23 + $0x460] sm:$0xff] %v663_v53  ;;  %666 = vst [vmem:[%s5317_s23 + $0x4d0] sm:$0xff] %v665_v54  ;;  %v669_v56 = vld [vmem:[%s5321_s25 + $0x2f54] sm:$0xff]  ;;  %v673_v58 = vld [vmem:[%s5321_s25 + $0x369c] sm:$0xff] }
  0xbc   : >> { %v671_v57 = vld [vmem:[%s5321_s25 + $0x32f8] sm:$0xff]  ;;  %668 = vst [vmem:[%s5317_s23 + $0x540] sm:$0xff] %v667_v55  ;;  %670 = vst [vmem:[%s5317_s23 + $0x5b0] sm:$0xff] %v669_v56  ;;  %v675_v59 = vld [vmem:[%s5321_s25 + $0x3a40] sm:$0xff] }
  0xbd   : >> { %672 = vst [vmem:[%s5317_s23 + $0x620] sm:$0xff] %v671_v57  ;;  %v677_v60 = vld [vmem:[%s5321_s25 + $0x3de4] sm:$0xff]  ;;  %674 = vst [vmem:[%s5317_s23 + $0x690] sm:$0xff] %v673_v58 }
  0xbe   : >> { %676 = vst [vmem:[%s5317_s23 + $0x700] sm:$0xff] %v675_v59  ;;  %678 = vst [vmem:[%s5317_s23 + $0x770] sm:$0xff] %v677_v60  ;;  %v679_v61 = vld [vmem:[%s5321_s25 + $0x4188] sm:$0xff]  ;;  %s686_s25 = scalar_lea.vmem %s5975_s17, %s4008_s24  }
  0xbf   : >> { %680 = vst [vmem:[%s5317_s23 + $0x7e0] sm:$0xff] %v679_v61  ;;  %s7090_s23 = smov %s687_s29 }
  0xc1 PF: > { %s5395_s9 = smov 0  }
  0xc2   : > { %s6053_s10 = sshllo.u32 %s5395_s9, %s5470_s5 }
  0xc3   : > { %v697_v62 = vld [vmem:[%s5764_s21] sm:%s6053_s10]  ;;  %v701_v0 = vld [vmem:[%s5764_s21 + $0x748] sm:%s6053_s10] }
  0xc4   : > { %v699_v63 = vld [vmem:[%s5764_s21 + $0x3a4] sm:%s6053_s10]  ;;  %698 = vst [vmem:[%s5767_s22] sm:%s6053_s10] %v697_v62 }
  0xc5   : > { %700 = vst [vmem:[%s5767_s22 + $0x70] sm:%s6053_s10] %v699_v63  ;;  %v703_v1 = vld [vmem:[%s5764_s21 + $0xaec] sm:%s6053_s10] }
  0xc6   : > { %702 = vst [vmem:[%s5767_s22 + $0xe0] sm:%s6053_s10] %v701_v0  ;;  %704 = vst [vmem:[%s5767_s22 + $0x150] sm:%s6053_s10] %v703_v1 }
  0xc7   : > { %v705_v2 = vld [vmem:[%s5764_s21 + $0xe90] sm:%s6053_s10]  ;;  %v709_v4 = vld [vmem:[%s5764_s21 + $0x15d8] sm:%s6053_s10] }
  0xc8   : > { %v707_v3 = vld [vmem:[%s5764_s21 + $0x1234] sm:%s6053_s10]  ;;  %706 = vst [vmem:[%s5767_s22 + $0x1c0] sm:%s6053_s10] %v705_v2 }
  0xc9   : > { %708 = vst [vmem:[%s5767_s22 + $0x230] sm:%s6053_s10] %v707_v3  ;;  %v711_v5 = vld [vmem:[%s5764_s21 + $0x197c] sm:%s6053_s10] }
  0xca   : > { %710 = vst [vmem:[%s5767_s22 + $0x2a0] sm:%s6053_s10] %v709_v4  ;;  %712 = vst [vmem:[%s5767_s22 + $0x310] sm:%s6053_s10] %v711_v5 }
  0xcb   : > { %v713_v6 = vld [vmem:[%s5764_s21 + $0x1d20] sm:%s6053_s10]  ;;  %v717_v8 = vld [vmem:[%s5764_s21 + $0x2468] sm:%s6053_s10] }
  0xcc   : > { %v715_v7 = vld [vmem:[%s5764_s21 + $0x20c4] sm:%s6053_s10]  ;;  %714 = vst [vmem:[%s5767_s22 + $0x380] sm:%s6053_s10] %v713_v6 }
  0xcd   : > { %716 = vst [vmem:[%s5767_s22 + $0x3f0] sm:%s6053_s10] %v715_v7  ;;  %v719_v9 = vld [vmem:[%s5764_s21 + $0x280c] sm:%s6053_s10] }
  0xce   : > { %718 = vst [vmem:[%s5767_s22 + $0x460] sm:%s6053_s10] %v717_v8  ;;  %720 = vst [vmem:[%s5767_s22 + $0x4d0] sm:%s6053_s10] %v719_v9 }
  0xcf   : > { %v721_v10 = vld [vmem:[%s5764_s21 + $0x2bb0] sm:%s6053_s10]  ;;  %v725_v12 = vld [vmem:[%s5764_s21 + $0x32f8] sm:%s6053_s10] }
  0xd0   : > { %v723_v11 = vld [vmem:[%s5764_s21 + $0x2f54] sm:%s6053_s10]  ;;  %722 = vst [vmem:[%s5767_s22 + $0x540] sm:%s6053_s10] %v721_v10 }
  0xd1   : > { %724 = vst [vmem:[%s5767_s22 + $0x5b0] sm:%s6053_s10] %v723_v11  ;;  %v727_v13 = vld [vmem:[%s5764_s21 + $0x369c] sm:%s6053_s10] }
  0xd2   : > { %726 = vst [vmem:[%s5767_s22 + $0x620] sm:%s6053_s10] %v725_v12  ;;  %728 = vst [vmem:[%s5767_s22 + $0x690] sm:%s6053_s10] %v727_v13 }
  0xd3   : > { %v729_v14 = vld [vmem:[%s5764_s21 + $0x3a40] sm:%s6053_s10]  ;;  %v733_v16 = vld [vmem:[%s5764_s21 + $0x4188] sm:%s6053_s10] }
  0xd4   : > { %v731_v15 = vld [vmem:[%s5764_s21 + $0x3de4] sm:%s6053_s10]  ;;  %730 = vst [vmem:[%s5767_s22 + $0x700] sm:%s6053_s10] %v729_v14 }
  0xd5   : > { %732 = vst [vmem:[%s5767_s22 + $0x770] sm:%s6053_s10] %v731_v15  ;;  %734 = vst [vmem:[%s5767_s22 + $0x7e0] sm:%s6053_s10] %v733_v16 }
  0xd6 PF: > { %p4010_p11 = scmp.ge.u32.totalorder %s5464_s30, 8 }
  0xd7   : > { %s5396_s5 = smov (!%p4010_p11), 0  }
  0xd8   : > { %153 = sbr.rel (%p4010_p11) target bundleno = 236 (0xec), region = 40  ;;  %s6133_s21 = sshllo.u32 (!%p4010_p11), %s5396_s5, %s5464_s30 }
  0xd9   : > { %v163_v17 = vld [vmem:[%s5462_s28] sm:%s6133_s21] (!%p4010_p11)  ;;  %v167_v19 = vld [vmem:[%s5462_s28 + $0x748] sm:%s6133_s21] (!%p4010_p11) }
  0xda   : > { %v165_v18 = vld [vmem:[%s5462_s28 + $0x3a4] sm:%s6133_s21] (!%p4010_p11)  ;;  %164 = vst [vmem:[%s5466_s4] sm:%s6133_s21] (!%p4010_p11), %v163_v17 }
  0xdb   : > { %166 = vst [vmem:[%s5466_s4 + $0x70] sm:%s6133_s21] (!%p4010_p11), %v165_v18  ;;  %v169_v20 = vld [vmem:[%s5462_s28 + $0xaec] sm:%s6133_s21] (!%p4010_p11) }
  0xdc   : > { %168 = vst [vmem:[%s5466_s4 + $0xe0] sm:%s6133_s21] (!%p4010_p11), %v167_v19  ;;  %170 = vst [vmem:[%s5466_s4 + $0x150] sm:%s6133_s21] (!%p4010_p11), %v169_v20 }
  0xdd   : > { %v171_v21 = vld [vmem:[%s5462_s28 + $0xe90] sm:%s6133_s21] (!%p4010_p11)  ;;  %v175_v23 = vld [vmem:[%s5462_s28 + $0x15d8] sm:%s6133_s21] (!%p4010_p11) }
  0xde   : > { %v173_v22 = vld [vmem:[%s5462_s28 + $0x1234] sm:%s6133_s21] (!%p4010_p11)  ;;  %172 = vst [vmem:[%s5466_s4 + $0x1c0] sm:%s6133_s21] (!%p4010_p11), %v171_v21 }
  0xdf   : > { %174 = vst [vmem:[%s5466_s4 + $0x230] sm:%s6133_s21] %v173_v22  ;;  %v177_v24 = vld [vmem:[%s5462_s28 + $0x197c] sm:%s6133_s21] }
  0xe0   : > { %176 = vst [vmem:[%s5466_s4 + $0x2a0] sm:%s6133_s21] %v175_v23  ;;  %178 = vst [vmem:[%s5466_s4 + $0x310] sm:%s6133_s21] %v177_v24 }
  0xe1   : > { %v179_v25 = vld [vmem:[%s5462_s28 + $0x1d20] sm:%s6133_s21]  ;;  %v183_v27 = vld [vmem:[%s5462_s28 + $0x2468] sm:%s6133_s21] }
  0xe2   : > { %v181_v26 = vld [vmem:[%s5462_s28 + $0x20c4] sm:%s6133_s21]  ;;  %180 = vst [vmem:[%s5466_s4 + $0x380] sm:%s6133_s21] %v179_v25 }
  0xe3   : > { %182 = vst [vmem:[%s5466_s4 + $0x3f0] sm:%s6133_s21] %v181_v26  ;;  %v185_v28 = vld [vmem:[%s5462_s28 + $0x280c] sm:%s6133_s21] }
  0xe4   : > { %184 = vst [vmem:[%s5466_s4 + $0x460] sm:%s6133_s21] %v183_v27  ;;  %186 = vst [vmem:[%s5466_s4 + $0x4d0] sm:%s6133_s21] %v185_v28 }
  0xe5   : > { %v187_v29 = vld [vmem:[%s5462_s28 + $0x2bb0] sm:%s6133_s21]  ;;  %v191_v31 = vld [vmem:[%s5462_s28 + $0x32f8] sm:%s6133_s21] }
  0xe6   : > { %v189_v30 = vld [vmem:[%s5462_s28 + $0x2f54] sm:%s6133_s21]  ;;  %188 = vst [vmem:[%s5466_s4 + $0x540] sm:%s6133_s21] %v187_v29 }
  0xe7   : > { %190 = vst [vmem:[%s5466_s4 + $0x5b0] sm:%s6133_s21] %v189_v30  ;;  %v193_v32 = vld [vmem:[%s5462_s28 + $0x369c] sm:%s6133_s21] }
  0xe8   : > { %192 = vst [vmem:[%s5466_s4 + $0x620] sm:%s6133_s21] %v191_v31  ;;  %194 = vst [vmem:[%s5466_s4 + $0x690] sm:%s6133_s21] %v193_v32 }
  0xe9   : > { %v195_v33 = vld [vmem:[%s5462_s28 + $0x3a40] sm:%s6133_s21]  ;;  %v199_v35 = vld [vmem:[%s5462_s28 + $0x4188] sm:%s6133_s21] }
  0xea   : > { %v197_v34 = vld [vmem:[%s5462_s28 + $0x3de4] sm:%s6133_s21]  ;;  %196 = vst [vmem:[%s5466_s4 + $0x700] sm:%s6133_s21] %v195_v33 }
  0xeb   : > { %198 = vst [vmem:[%s5466_s4 + $0x770] sm:%s6133_s21] %v197_v34  ;;  %200 = vst [vmem:[%s5466_s4 + $0x7e0] sm:%s6133_s21] %v199_v35 }
  0xec PF: > { %p4011_p12 = scmp.ge.s32.totalorder %s5265_s14, 1  ;;  %p737_p13 = scmp.lt.s32.totalorder %s5265_s14, 10 }
  0xee   : > { %p738_p0 = pnand %p4011_p12, %p737_p13 }
  0xef   : > { %s744_s30 = sand.u32 (!%p738_p0), 1, %s5257_s12   ;;  %v6217_v36 = vld [vmem:[%s7069_s0 + $0x4] ss:$8 sps:$4 sm:$0xff] (!%p738_p0)   ;;  %vm2396_vm0 = vcmask (!%p738_p0), 179200   ;;  %v5397_v38 = vmov (!%p738_p0), 0   ;;  %vm2400_vm1 = vcmask (!%p738_p0), 1042432  }
  0xf0   : > { %741 = sbr.rel (%p738_p0) target bundleno = 912 (0x390), region = 94  ;;  %v1045_v37 = vld [vmem:[%s7071_s2] sm:$0xff] (!%p738_p0)  ;;  %4295 = vmatprep.mubr.msk.bf16.mxu0 (!%p738_p0), %vm2396_vm0, %v6217_v36  ;;  %4297 = vmatprep.mubr.msk.bf16.mxu1 (!%p738_p0), %vm2396_vm0, %v6217_v36 }
  0xf1   : > { %s4416_s28 = smul.u32 (!%p738_p0), 2128, %s744_s30  ;;  %4703 = vset.pattern.permute.xlu0 (!%p738_p0), %v5397_v38  ;;  %v6277_v21 = vld [vmem:[%s7069_s0] ss:$8 sps:$4 sm:$0xff] (!%p738_p0)  }
  0xf2   : > { %1049 = vperm.xlu0 (!%p738_p0), %4703, %v1045_v37   ;;  %s6562_s24 = smul.u32 (!%p738_p0), 224, %s744_s30 }
  0xf3   : > { %s6228_s14 = scalar_lea.vmem (!%p738_p0), [#allocation2], %s4416_s28 }
  0xf4   : > { %v4704_v39 = vld [vmem:[%s6228_s14 + $0x4] ss:$112 sps:$4 sm:$0xff] (!%p738_p0)   ;;  %v4706_v40 = vld [vmem:[%s6228_s14 + $0xc] ss:$112 sps:$4 sm:$0xff] (!%p738_p0)   ;;  %v4708_v41 = vld [vmem:[%s6228_s14] ss:$112 sps:$4 sm:$0xff] (!%p738_p0)  }
  0xf5   : > { %2485 = vmatprep.subr.bf16.mxu0 (!%p738_p0), %v4704_v39  ;;  %v4709_v42 = vld [vmem:[%s6228_s14 + $0x8] ss:$112 sps:$4 sm:$0xff] (!%p738_p0)   ;;  %2528 = vmatprep.subr.bf16.mxu1 (!%p738_p0), %v4706_v40  ;;  %v4710_v43 = vld [vmem:[%s6228_s14 + $0xe4] ss:$112 sps:$4 sm:$0xff] (!%p738_p0)   ;;  %v4712_v44 = vld [vmem:[%s6228_s14 + $0xec] ss:$112 sps:$4 sm:$0xff] (!%p738_p0)  }
  0xf6   : > { %2486 = vmatpush1.bf16.msra.mxu0 (!%p738_p0), %v4708_v41  ;;  %2529 = vmatpush1.bf16.msra.mxu1 (!%p738_p0), %v4709_v42  ;;  %v4714_v45 = vld [vmem:[%s6228_s14 + $0xe0] ss:$112 sps:$4 sm:$0xff] (!%p738_p0)   ;;  %v4715_v46 = vld [vmem:[%s6228_s14 + $0xe8] ss:$112 sps:$4 sm:$0xff] (!%p738_p0)   ;;  %v4716_v47 = vld [vmem:[%s6228_s14 + $0x1c4] ss:$112 sps:$4 sm:$0xff] (!%p738_p0)  }
  0xf7   : > { %2487 = vmatprep.subr.bf16.mxu0 %v4710_v43  ;;  %2530 = vmatprep.subr.bf16.mxu1 %v4712_v44  ;;  %v4718_v48 = vld [vmem:[%s6228_s14 + $0x1cc] ss:$112 sps:$4 sm:$0xff]   ;;  %v4720_v49 = vld [vmem:[%s6228_s14 + $0x1c0] ss:$112 sps:$4 sm:$0xff]   ;;  %v4721_v50 = vld [vmem:[%s6228_s14 + $0x1c8] ss:$112 sps:$4 sm:$0xff]  }
  0xf8   : > { %v4722_v51 = vld [vmem:[%s6228_s14 + $0x2a4] ss:$112 sps:$4 sm:$0xff]   ;;  %v4724_v52 = vld [vmem:[%s6228_s14 + $0x2ac] ss:$112 sps:$4 sm:$0xff]   ;;  %v4726_v53 = vld [vmem:[%s6228_s14 + $0x2a0] ss:$112 sps:$4 sm:$0xff]  }
  0xf9   : > { %v4727_v54 = vld [vmem:[%s6228_s14 + $0x2a8] ss:$112 sps:$4 sm:$0xff]   ;;  %v4728_v55 = vld [vmem:[%s6228_s14 + $0x384] ss:$112 sps:$4 sm:$0xff]   ;;  %v4730_v56 = vld [vmem:[%s6228_s14 + $0x38c] ss:$112 sps:$4 sm:$0xff]  }
  0xfa   : > { %2488 = vmatpush1.bf16.msra.mxu0 %v4714_v45  ;;  %2531 = vmatpush1.bf16.msra.mxu1 %v4715_v46  ;;  %v4732_v57 = vld [vmem:[%s6228_s14 + $0x380] ss:$112 sps:$4 sm:$0xff]   ;;  %v4733_v58 = vld [vmem:[%s6228_s14 + $0x388] ss:$112 sps:$4 sm:$0xff]   ;;  %v4734_v59 = vld [vmem:[%s6228_s14 + $0x464] ss:$112 sps:$4 sm:$0xff]  }
  0xfb   : > { %2489 = vmatprep.subr.bf16.mxu0 %v4716_v47  ;;  %2532 = vmatprep.subr.bf16.mxu1 %v4718_v48  ;;  %v4736_v60 = vld [vmem:[%s6228_s14 + $0x46c] ss:$112 sps:$4 sm:$0xff]   ;;  %v4738_v61 = vld [vmem:[%s6228_s14 + $0x460] ss:$112 sps:$4 sm:$0xff]   ;;  %v4739_v62 = vld [vmem:[%s6228_s14 + $0x468] ss:$112 sps:$4 sm:$0xff]  }
  0xfc   : > { %v4740_v63 = vld [vmem:[%s6228_s14 + $0x544] ss:$112 sps:$4 sm:$0xff]   ;;  %v4742_v0 = vld [vmem:[%s6228_s14 + $0x54c] ss:$112 sps:$4 sm:$0xff]   ;;  %v4744_v1 = vld [vmem:[%s6228_s14 + $0x540] ss:$112 sps:$4 sm:$0xff]  }
  0xfd   : > { %v4745_v2 = vld [vmem:[%s6228_s14 + $0x548] ss:$112 sps:$4 sm:$0xff]   ;;  %v4746_v3 = vld [vmem:[%s6228_s14 + $0x624] ss:$112 sps:$4 sm:$0xff]   ;;  %v4748_v4 = vld [vmem:[%s6228_s14 + $0x62c] ss:$112 sps:$4 sm:$0xff]  }
  0xfe   : > { %2490 = vmatpush1.bf16.msra.mxu0 %v4720_v49  ;;  %2533 = vmatpush1.bf16.msra.mxu1 %v4721_v50  ;;  %v4750_v5 = vld [vmem:[%s6228_s14 + $0x620] ss:$112 sps:$4 sm:$0xff]   ;;  %v4751_v6 = vld [vmem:[%s6228_s14 + $0x628] ss:$112 sps:$4 sm:$0xff]   ;;  %v4752_v7 = vld [vmem:[%s6228_s14 + $0x704] ss:$112 sps:$4 sm:$0xff]  }
  0xff   : > { %2491 = vmatprep.subr.bf16.mxu0 %v4722_v51  ;;  %2534 = vmatprep.subr.bf16.mxu1 %v4724_v52  ;;  %v4754_v8 = vld [vmem:[%s6228_s14 + $0x70c] ss:$112 sps:$4 sm:$0xff]   ;;  %v1031_v9 = vld [vmem:[%s6228_s14 + $0x7e0] sm:$0x77]  ;;  %v4757_v12 = vld [vmem:[%s6228_s14 + $0x708] ss:$112 sps:$4 sm:$0xff]  }
 0x100   : > { %v1032_v10 = vld [vmem:[%s6228_s14 + $0x7e8] sm:$0x77]  ;;  %v4756_v11 = vld [vmem:[%s6228_s14 + $0x700] ss:$112 sps:$4 sm:$0xff]   ;;  %v4267_v13 = vcombine.high %v1031_v9, %v1031_v9  ;;  %v4266_v15 = vcombine.low %v1031_v9, %v1031_v9  ;;  %v4767_v17 = vld [vmem:[%s6228_s14 + $0x14] ss:$112 sps:$4 sm:$0xff]  }
 0x101   : > { %v4269_v14 = vcombine.high %v1032_v10, %v1032_v10  ;;  %v4268_v16 = vcombine.low %v1032_v10, %v1032_v10  ;;  %v4770_v20 = vld [vmem:[%s6228_s14 + $0x1c] ss:$112 sps:$4 sm:$0xff]   ;;  %v4765_v22 = vld [vmem:[%s6228_s14 + $0x10] ss:$112 sps:$4 sm:$0xff]   ;;  %v4768_v23 = vld [vmem:[%s6228_s14 + $0x18] ss:$112 sps:$4 sm:$0xff]  }
 0x102   : > { %2492 = vmatpush1.bf16.msra.mxu0 %v4726_v53  ;;  %2535 = vmatpush1.bf16.msra.mxu1 %v4727_v54  ;;  %v2402_v18 = vsel %vm2400_vm1, %v4266_v15, 0  ;;  %v4773_v24 = vld [vmem:[%s6228_s14 + $0xf4] ss:$112 sps:$4 sm:$0xff]   ;;  %v4776_v25 = vld [vmem:[%s6228_s14 + $0xfc] ss:$112 sps:$4 sm:$0xff]   ;;  %s6579_s12 = scalar_lea.vmem [#allocation3], %s6562_s24  }
 0x103   : > { %2493 = vmatprep.subr.bf16.mxu0 %v4728_v55  ;;  %2536 = vmatprep.subr.bf16.mxu1 %v4730_v56  ;;  %v2408_v19 = vsel %vm2400_vm1, %v4268_v16, 0  ;;  %v4771_v26 = vld [vmem:[%s6228_s14 + $0xf0] ss:$112 sps:$4 sm:$0xff]   ;;  %v4774_v27 = vld [vmem:[%s6228_s14 + $0xf8] ss:$112 sps:$4 sm:$0xff]   ;;  %s3346_s29 = smul.u32 (%p5451_p5), 28, %s5436_s15 }
 0x104   : > { %v4779_v28 = vld [vmem:[%s6228_s14 + $0x1d4] ss:$112 sps:$4 sm:$0xff]   ;;  %v4782_v29 = vld [vmem:[%s6228_s14 + $0x1dc] ss:$112 sps:$4 sm:$0xff]   ;;  %v4777_v30 = vld [vmem:[%s6228_s14 + $0x1d0] ss:$112 sps:$4 sm:$0xff]  }
 0x105   : > { %v4780_v31 = vld [vmem:[%s6228_s14 + $0x1d8] ss:$112 sps:$4 sm:$0xff]   ;;  %v4785_v32 = vld [vmem:[%s6228_s14 + $0x2b4] ss:$112 sps:$4 sm:$0xff]   ;;  %v4788_v33 = vld [vmem:[%s6228_s14 + $0x2bc] ss:$112 sps:$4 sm:$0xff]  }
 0x106   : > { %2494 = vmatpush1.bf16.msra.mxu0 %v4732_v57  ;;  %2537 = vmatpush1.bf16.msra.mxu1 %v4733_v58  ;;  %v4783_v34 = vld [vmem:[%s6228_s14 + $0x2b0] ss:$112 sps:$4 sm:$0xff]   ;;  %v4786_v35 = vld [vmem:[%s6228_s14 + $0x2b8] ss:$112 sps:$4 sm:$0xff]   ;;  %v4791_v37 = vld [vmem:[%s6228_s14 + $0x394] ss:$112 sps:$4 sm:$0xff]  }
 0x107   : > { %2495 = vmatprep.subr.bf16.mxu0 %v4734_v59  ;;  %2538 = vmatprep.subr.bf16.mxu1 %v4736_v60  ;;  %v4794_v38 = vld [vmem:[%s6228_s14 + $0x39c] ss:$112 sps:$4 sm:$0xff]   ;;  %v4789_v39 = vld [vmem:[%s6228_s14 + $0x390] ss:$112 sps:$4 sm:$0xff]   ;;  %v4792_v40 = vld [vmem:[%s6228_s14 + $0x398] ss:$112 sps:$4 sm:$0xff]  }
 0x108   : > { %v4797_v41 = vld [vmem:[%s6228_s14 + $0x474] ss:$112 sps:$4 sm:$0xff]   ;;  %v4800_v42 = vld [vmem:[%s6228_s14 + $0x47c] ss:$112 sps:$4 sm:$0xff]   ;;  %v4795_v43 = vld [vmem:[%s6228_s14 + $0x470] ss:$112 sps:$4 sm:$0xff]  }
 0x109   : > { %v4798_v44 = vld [vmem:[%s6228_s14 + $0x478] ss:$112 sps:$4 sm:$0xff]   ;;  %v4803_v45 = vld [vmem:[%s6228_s14 + $0x554] ss:$112 sps:$4 sm:$0xff]   ;;  %v4806_v46 = vld [vmem:[%s6228_s14 + $0x55c] ss:$112 sps:$4 sm:$0xff]  }
 0x10a   : > { %2496 = vmatpush1.bf16.msra.mxu0 %v4738_v61  ;;  %2539 = vmatpush1.bf16.msra.mxu1 %v4739_v62  ;;  %v4801_v47 = vld [vmem:[%s6228_s14 + $0x550] ss:$112 sps:$4 sm:$0xff]   ;;  %v4804_v48 = vld [vmem:[%s6228_s14 + $0x558] ss:$112 sps:$4 sm:$0xff]   ;;  %v4809_v49 = vld [vmem:[%s6228_s14 + $0x634] ss:$112 sps:$4 sm:$0xff]  }
 0x10b   : > { %2497 = vmatprep.subr.bf16.mxu0 %v4740_v63  ;;  %2540 = vmatprep.subr.bf16.mxu1 %v4742_v0  ;;  %v4812_v50 = vld [vmem:[%s6228_s14 + $0x63c] ss:$112 sps:$4 sm:$0xff]   ;;  %v4807_v51 = vld [vmem:[%s6228_s14 + $0x630] ss:$112 sps:$4 sm:$0xff]   ;;  %v4810_v52 = vld [vmem:[%s6228_s14 + $0x638] ss:$112 sps:$4 sm:$0xff]  }
 0x10c   : > { %v4815_v53 = vld [vmem:[%s6228_s14 + $0x714] ss:$112 sps:$4 sm:$0xff]   ;;  %v4818_v54 = vld [vmem:[%s6228_s14 + $0x71c] ss:$112 sps:$4 sm:$0xff]   ;;  %v4813_v57 = vld [vmem:[%s6228_s14 + $0x710] ss:$112 sps:$4 sm:$0xff]  }
 0x10d   : > { %v1033_v55 = vld [vmem:[%s6228_s14 + $0x7f0] sm:$0x77]  ;;  %v1034_v56 = vld [vmem:[%s6228_s14 + $0x7f8] sm:$0x77]  ;;  %s4410_s9 = smul.u32 (%p5451_p5), 112, %s5436_s15  ;;  %s3347_s10 = ssub.s32 (%p5451_p5), 233, %s3346_s29 }
 0x10e   : > { %2498 = vmatpush1.bf16.msra.mxu0 %v4744_v1  ;;  %2541 = vmatpush1.bf16.msra.mxu1 %v4745_v2  ;;  %v4816_v58 = vld [vmem:[%s6228_s14 + $0x718] ss:$112 sps:$4 sm:$0xff]   ;;  %v4271_v59 = vcombine.high %v1033_v55, %v1033_v55  ;;  %v4273_v60 = vcombine.high %v1034_v56, %v1034_v56  ;;  %v4270_v61 = vcombine.low %v1033_v55, %v1033_v55  ;;  %v4825_v63 = vld [vmem:[%s6228_s14 + $0x24] ss:$112 sps:$4 sm:$0xff]   ;;  %v4828_v2 = vld [vmem:[%s6228_s14 + $0x2c] ss:$112 sps:$4 sm:$0xff]  }
 0x10f   : > { %2499 = vmatprep.subr.bf16.mxu0 %v4746_v3  ;;  %2542 = vmatprep.subr.bf16.mxu1 %v4748_v4  ;;  %v4272_v62 = vcombine.low %v1034_v56, %v1034_v56  ;;  %v4823_v3 = vld [vmem:[%s6228_s14 + $0x20] ss:$112 sps:$4 sm:$0xff]   ;;  %v4826_v4 = vld [vmem:[%s6228_s14 + $0x28] ss:$112 sps:$4 sm:$0xff]   ;;  %v4837_v10 = vld [vmem:[%s6228_s14 + $0x1e4] ss:$112 sps:$4 sm:$0xff]   ;;  %s6682_s30 = scalar_lea.vmem (%p5451_p5), %s7072_s3, %s4410_s9  }
 0x110   : > { %v2414_v0 = vsel %vm2400_vm1, %v4270_v61, 0  ;;  %v4832_v9 = vld [vmem:[%s6228_s14 + $0x108] ss:$112 sps:$4 sm:$0xff]   ;;  %v4846_v15 = vld [vmem:[%s6228_s14 + $0x2cc] ss:$112 sps:$4 sm:$0xff]   ;;  %p3348_p1 = scmp.lt.s32.totalorder (%p5451_p5), %s3347_s10, 28 }
 0x111   : > { %v2420_v1 = vsel %vm2400_vm1, %v4272_v62, 0  ;;  %v4841_v16 = vld [vmem:[%s6228_s14 + $0x2c0] ss:$112 sps:$4 sm:$0xff]   ;;  %v4890_v55 = vld [vmem:[%s6228_s14 + $0x118] ss:$112 sps:$4 sm:$0xff]  }
 0x112   : > { %2500 = vmatpush1.bf16.msra.mxu0 %v4750_v5  ;;  %2543 = vmatpush1.bf16.msra.mxu1 %v4751_v6  ;;  %v1046_v5 = vld [vmem:[%s7071_s2 + $0x8] sm:$0xff]  ;;  %v4831_v6 = vld [vmem:[%s6228_s14 + $0x104] ss:$112 sps:$4 sm:$0xff]   ;;  %v4899_v62 = vld [vmem:[%s6228_s14 + $0x2d0] ss:$112 sps:$4 sm:$0xff]  }
 0x113   : > { %2501 = vmatprep.subr.bf16.mxu0 %v4752_v7  ;;  %2544 = vmatprep.subr.bf16.mxu1 %v4754_v8  ;;  %v4834_v7 = vld [vmem:[%s6228_s14 + $0x10c] ss:$112 sps:$4 sm:$0xff]   ;;  %v4829_v8 = vld [vmem:[%s6228_s14 + $0x100] ss:$112 sps:$4 sm:$0xff]   ;;  %v4895_v56 = vld [vmem:[%s6228_s14 + $0x1f4] ss:$112 sps:$4 sm:$0xff]  }
 0x114   : > { %1054 = vperm.xlu0 %4703, %v1046_v5   ;;  %v4904_v61 = vld [vmem:[%s6228_s14 + $0x2dc] ss:$112 sps:$4 sm:$0xff]   ;;  %v4911_v5 = vld [vmem:[%s6228_s14 + $0x490] ss:$112 sps:$4 sm:$0xff]  }
 0x116   : > { %2502 = vmatpush1.bf16.msra.mxu0 %v4756_v11  ;;  %2545 = vmatpush1.bf16.msra.mxu1 %v4757_v12  ;;  %v4840_v11 = vld [vmem:[%s6228_s14 + $0x1ec] ss:$112 sps:$4 sm:$0xff]   ;;  %v4835_v12 = vld [vmem:[%s6228_s14 + $0x1e0] ss:$112 sps:$4 sm:$0xff]  }
 0x117   : > { %4294 = vmatprep.subr.msk.bf16.mxu0 %vm2400_vm1, %v4267_v13  ;;  %4296 = vmatprep.subr.msk.bf16.mxu1 %vm2400_vm1, %v4269_v14  ;;  %v4838_v13 = vld [vmem:[%s6228_s14 + $0x1e8] ss:$112 sps:$4 sm:$0xff]   ;;  %v4843_v14 = vld [vmem:[%s6228_s14 + $0x2c4] ss:$112 sps:$4 sm:$0xff]  }
 0x11a   : > { %2504 = vmatpush1.bf16.msra.mxu0 %v2402_v18  ;;  %2547 = vmatpush1.bf16.msra.mxu1 %v2408_v19  ;;  %v4849_v18 = vld [vmem:[%s6228_s14 + $0x3a4] ss:$112 sps:$4 sm:$0xff]   ;;  %v4852_v19 = vld [vmem:[%s6228_s14 + $0x3ac] ss:$112 sps:$4 sm:$0xff]  }
 0x11b   : > { %2571 = vmatprep.subr.bf16.mxu0 %v4767_v17  ;;  %2614 = vmatprep.subr.bf16.mxu1 %v4770_v20  ;;  %v4844_v17 = vld [vmem:[%s6228_s14 + $0x2c8] ss:$112 sps:$4 sm:$0xff]   ;;  %v4847_v20 = vld [vmem:[%s6228_s14 + $0x3a0] ss:$112 sps:$4 sm:$0xff]  }
 0x11d   : > { %2518 = vmatmul.mubr.bf16.vlgmr.msra.gmra.mrb[0].mxu0 %v6277_v21  ;;  %2561 = vmatmul.mubr.bf16.vlgmr.msra.gmra.mrb[0].mxu1 %v6277_v21 }
 0x11e   : > { %2572 = vmatpush1.bf16.msra.mxu0 %v4765_v22  ;;  %2615 = vmatpush1.bf16.msra.mxu1 %v4768_v23  ;;  %v4850_v22 = vld [vmem:[%s6228_s14 + $0x3a8] ss:$112 sps:$4 sm:$0xff]   ;;  %v4855_v23 = vld [vmem:[%s6228_s14 + $0x484] ss:$112 sps:$4 sm:$0xff]  }
 0x11f   : > { %2573 = vmatprep.subr.bf16.mxu0 %v4773_v24  ;;  %2616 = vmatprep.subr.bf16.mxu1 %v4776_v25  ;;  %v4858_v24 = vld [vmem:[%s6228_s14 + $0x48c] ss:$112 sps:$4 sm:$0xff]   ;;  %v4853_v25 = vld [vmem:[%s6228_s14 + $0x480] ss:$112 sps:$4 sm:$0xff]  }
 0x120   : > { %4299 = vmatprep.mubr.msk.bf16.mxu0 %vm2396_vm0, %v6217_v36  ;;  %4301 = vmatprep.mubr.msk.bf16.mxu1 %vm2396_vm0, %v6217_v36 }
 0x122   : > { %2574 = vmatpush1.bf16.msra.mxu0 %v4771_v26  ;;  %2617 = vmatpush1.bf16.msra.mxu1 %v4774_v27  ;;  %v4856_v26 = vld [vmem:[%s6228_s14 + $0x488] ss:$112 sps:$4 sm:$0xff]   ;;  %v4861_v27 = vld [vmem:[%s6228_s14 + $0x564] ss:$112 sps:$4 sm:$0xff]  }
 0x123   : > { %2575 = vmatprep.subr.bf16.mxu0 %v4779_v28  ;;  %2618 = vmatprep.subr.bf16.mxu1 %v4782_v29  ;;  %v4864_v28 = vld [vmem:[%s6228_s14 + $0x56c] ss:$112 sps:$4 sm:$0xff]   ;;  %v4859_v29 = vld [vmem:[%s6228_s14 + $0x560] ss:$112 sps:$4 sm:$0xff]  }
 0x126   : > { %2576 = vmatpush1.bf16.msra.mxu0 %v4777_v30  ;;  %2619 = vmatpush1.bf16.msra.mxu1 %v4780_v31  ;;  %v4862_v30 = vld [vmem:[%s6228_s14 + $0x568] ss:$112 sps:$4 sm:$0xff]   ;;  %v4867_v31 = vld [vmem:[%s6228_s14 + $0x644] ss:$112 sps:$4 sm:$0xff]  }
 0x127   : > { %2577 = vmatprep.subr.bf16.mxu0 %v4785_v32  ;;  %2620 = vmatprep.subr.bf16.mxu1 %v4788_v33  ;;  %v4870_v32 = vld [vmem:[%s6228_s14 + $0x64c] ss:$112 sps:$4 sm:$0xff]   ;;  %v4865_v33 = vld [vmem:[%s6228_s14 + $0x640] ss:$112 sps:$4 sm:$0xff]  }
 0x12a   : > { %2578 = vmatpush1.bf16.msra.mxu0 %v4783_v34  ;;  %2621 = vmatpush1.bf16.msra.mxu1 %v4786_v35  ;;  %v4868_v34 = vld [vmem:[%s6228_s14 + $0x648] ss:$112 sps:$4 sm:$0xff]   ;;  %v4873_v35 = vld [vmem:[%s6228_s14 + $0x724] ss:$112 sps:$4 sm:$0xff]  }
 0x12b   : > { %2579 = vmatprep.subr.bf16.mxu0 %v4791_v37  ;;  %2622 = vmatprep.subr.bf16.mxu1 %v4794_v38  ;;  %v4876_v37 = vld [vmem:[%s6228_s14 + $0x72c] ss:$112 sps:$4 sm:$0xff]   ;;  %v1035_v38 = vld [vmem:[%s6228_s14 + $0x800] sm:$0x77] }
 0x12e   : > { %2580 = vmatpush1.bf16.msra.mxu0 %v4789_v39  ;;  %2623 = vmatpush1.bf16.msra.mxu1 %v4792_v40  ;;  %v1036_v39 = vld [vmem:[%s6228_s14 + $0x808] sm:$0x77]  ;;  %v4871_v40 = vld [vmem:[%s6228_s14 + $0x720] ss:$112 sps:$4 sm:$0xff]  }
 0x12f   : > { %2581 = vmatprep.subr.bf16.mxu0 %v4797_v41  ;;  %2624 = vmatprep.subr.bf16.mxu1 %v4800_v42  ;;  %v4874_v41 = vld [vmem:[%s6228_s14 + $0x728] ss:$112 sps:$4 sm:$0xff]   ;;  %v4275_v42 = vcombine.high %v1035_v38, %v1035_v38 }
 0x132   : > { %2582 = vmatpush1.bf16.msra.mxu0 %v4795_v43  ;;  %2625 = vmatpush1.bf16.msra.mxu1 %v4798_v44  ;;  %v4277_v43 = vcombine.high %v1036_v39, %v1036_v39  ;;  %v4274_v44 = vcombine.low %v1035_v38, %v1035_v38  ;;  %v4956_v38 = vld [vmem:[%s6228_s14 + $0x20c] ss:$112 sps:$4 sm:$0xff]  }
 0x133   : > { %2583 = vmatprep.subr.bf16.mxu0 %v4803_v45  ;;  %2626 = vmatprep.subr.bf16.mxu1 %v4806_v46  ;;  %v4276_v45 = vcombine.low %v1036_v39, %v1036_v39  ;;  %v4883_v46 = vld [vmem:[%s6228_s14 + $0x34] ss:$112 sps:$4 sm:$0xff]  }
 0x134   : > { %v6439_v39 = vld [vmem:[%s7069_s0 + $0x4] ss:$8 sps:$4 sm:$0xff]  }
 0x136   : > { %2584 = vmatpush1.bf16.msra.mxu0 %v4801_v47  ;;  %2627 = vmatpush1.bf16.msra.mxu1 %v4804_v48  ;;  %v2426_v47 = vsel %vm2400_vm1, %v4274_v44, 0  ;;  %v2432_v48 = vsel %vm2400_vm1, %v4276_v45, 0  ;;  %v4960_v44 = vld [vmem:[%s6228_s14 + $0x2e8] ss:$112 sps:$4 sm:$0xff]   ;;  %v4965_v45 = vld [vmem:[%s6228_s14 + $0x3c4] ss:$112 sps:$4 sm:$0xff]  }
 0x137   : > { %2585 = vmatprep.subr.bf16.mxu0 %v4809_v49  ;;  %2628 = vmatprep.subr.bf16.mxu1 %v4812_v50  ;;  %v4886_v49 = vld [vmem:[%s6228_s14 + $0x3c] ss:$112 sps:$4 sm:$0xff]   ;;  %v4881_v50 = vld [vmem:[%s6228_s14 + $0x30] ss:$112 sps:$4 sm:$0xff]  }
 0x13a   : > { %2586 = vmatpush1.bf16.msra.mxu0 %v4807_v51  ;;  %2629 = vmatpush1.bf16.msra.mxu1 %v4810_v52  ;;  %v4884_v51 = vld [vmem:[%s6228_s14 + $0x38] ss:$112 sps:$4 sm:$0xff]   ;;  %v4889_v52 = vld [vmem:[%s6228_s14 + $0x114] ss:$112 sps:$4 sm:$0xff]  }
 0x13b   : > { %2587 = vmatprep.subr.bf16.mxu0 %v4815_v53  ;;  %2630 = vmatprep.subr.bf16.mxu1 %v4818_v54  ;;  %v4892_v53 = vld [vmem:[%s6228_s14 + $0x11c] ss:$112 sps:$4 sm:$0xff]   ;;  %v4887_v54 = vld [vmem:[%s6228_s14 + $0x110] ss:$112 sps:$4 sm:$0xff]  }
 0x13e   : > { %2588 = vmatpush1.bf16.msra.mxu0 %v4813_v57  ;;  %2631 = vmatpush1.bf16.msra.mxu1 %v4816_v58  ;;  %v4898_v57 = vld [vmem:[%s6228_s14 + $0x1fc] ss:$112 sps:$4 sm:$0xff]   ;;  %v4893_v58 = vld [vmem:[%s6228_s14 + $0x1f0] ss:$112 sps:$4 sm:$0xff]  }
 0x13f   : > { %4298 = vmatprep.subr.msk.bf16.mxu0 %vm2400_vm1, %v4271_v59  ;;  %4300 = vmatprep.subr.msk.bf16.mxu1 %vm2400_vm1, %v4273_v60  ;;  %v4896_v59 = vld [vmem:[%s6228_s14 + $0x1f8] ss:$112 sps:$4 sm:$0xff]   ;;  %v4901_v60 = vld [vmem:[%s6228_s14 + $0x2d4] ss:$112 sps:$4 sm:$0xff]  }
 0x142   : > { %2590 = vmatpush1.bf16.msra.mxu0 %v2414_v0  ;;  %2633 = vmatpush1.bf16.msra.mxu1 %v2420_v1  ;;  %v4910_v0 = vld [vmem:[%s6228_s14 + $0x3bc] ss:$112 sps:$4 sm:$0xff]   ;;  %v4905_v1 = vld [vmem:[%s6228_s14 + $0x3b0] ss:$112 sps:$4 sm:$0xff]  }
 0x143   : > { %2657 = vmatprep.subr.bf16.mxu0 %v4825_v63  ;;  %2700 = vmatprep.subr.bf16.mxu1 %v4828_v2  ;;  %v4902_v63 = vld [vmem:[%s6228_s14 + $0x2d8] ss:$112 sps:$4 sm:$0xff]  }
 0x144   : > { %v4908_v2 = vld [vmem:[%s6228_s14 + $0x3b8] ss:$112 sps:$4 sm:$0xff]  }
 0x145   : > { %2604 = vmatmul.mubr.bf16.vlgmr.msra.gmra.mrb[4].mxu0 %v6277_v21  ;;  %2647 = vmatmul.mubr.bf16.vlgmr.msra.gmra.mrb[4].mxu1 %v6277_v21 }
 0x146   : > { %2658 = vmatpush1.bf16.msra.mxu0 %v4823_v3  ;;  %2701 = vmatpush1.bf16.msra.mxu1 %v4826_v4  ;;  %v4913_v3 = vld [vmem:[%s6228_s14 + $0x494] ss:$112 sps:$4 sm:$0xff]   ;;  %v4916_v4 = vld [vmem:[%s6228_s14 + $0x49c] ss:$112 sps:$4 sm:$0xff]  }
 0x147   : > { %2659 = vmatprep.subr.bf16.mxu0 %v4831_v6  ;;  %2702 = vmatprep.subr.bf16.mxu1 %v4834_v7  ;;  %v4914_v6 = vld [vmem:[%s6228_s14 + $0x498] ss:$112 sps:$4 sm:$0xff]   ;;  %v4919_v7 = vld [vmem:[%s6228_s14 + $0x574] ss:$112 sps:$4 sm:$0xff]  }
 0x148   : > { %4303 = vmatprep.mubr.msk.bf16.mxu0 %vm2396_vm0, %v6217_v36  ;;  %4305 = vmatprep.mubr.msk.bf16.mxu1 %vm2396_vm0, %v6217_v36 }
 0x14a   : > { %2660 = vmatpush1.bf16.msra.mxu0 %v4829_v8  ;;  %2703 = vmatpush1.bf16.msra.mxu1 %v4832_v9  ;;  %v4922_v8 = vld [vmem:[%s6228_s14 + $0x57c] ss:$112 sps:$4 sm:$0xff]   ;;  %v4917_v9 = vld [vmem:[%s6228_s14 + $0x570] ss:$112 sps:$4 sm:$0xff]  }
 0x14b   : > { %2661 = vmatprep.subr.bf16.mxu0 %v4837_v10  ;;  %2704 = vmatprep.subr.bf16.mxu1 %v4840_v11  ;;  %v4920_v10 = vld [vmem:[%s6228_s14 + $0x578] ss:$112 sps:$4 sm:$0xff]   ;;  %v4925_v11 = vld [vmem:[%s6228_s14 + $0x654] ss:$112 sps:$4 sm:$0xff]  }
 0x14e   : > { %2662 = vmatpush1.bf16.msra.mxu0 %v4835_v12  ;;  %2705 = vmatpush1.bf16.msra.mxu1 %v4838_v13  ;;  %v4928_v12 = vld [vmem:[%s6228_s14 + $0x65c] ss:$112 sps:$4 sm:$0xff]   ;;  %v4923_v13 = vld [vmem:[%s6228_s14 + $0x650] ss:$112 sps:$4 sm:$0xff]  }
 0x14f   : > { %2663 = vmatprep.subr.bf16.mxu0 %v4843_v14  ;;  %2706 = vmatprep.subr.bf16.mxu1 %v4846_v15  ;;  %v4926_v14 = vld [vmem:[%s6228_s14 + $0x658] ss:$112 sps:$4 sm:$0xff]   ;;  %v4931_v15 = vld [vmem:[%s6228_s14 + $0x734] ss:$112 sps:$4 sm:$0xff]  }
 0x152   : > { %2664 = vmatpush1.bf16.msra.mxu0 %v4841_v16  ;;  %2707 = vmatpush1.bf16.msra.mxu1 %v4844_v17  ;;  %v4934_v16 = vld [vmem:[%s6228_s14 + $0x73c] ss:$112 sps:$4 sm:$0xff]   ;;  %v1037_v17 = vld [vmem:[%s6228_s14 + $0x810] sm:$0x77] }
 0x153   : > { %2665 = vmatprep.subr.bf16.mxu0 %v4849_v18  ;;  %2708 = vmatprep.subr.bf16.mxu1 %v4852_v19  ;;  %v1038_v18 = vld [vmem:[%s6228_s14 + $0x818] sm:$0x77]  ;;  %v4929_v19 = vld [vmem:[%s6228_s14 + $0x730] ss:$112 sps:$4 sm:$0xff]  }
 0x156   : > { %2666 = vmatpush1.bf16.msra.mxu0 %v4847_v20  ;;  %2709 = vmatpush1.bf16.msra.mxu1 %v4850_v22  ;;  %v4932_v20 = vld [vmem:[%s6228_s14 + $0x738] ss:$112 sps:$4 sm:$0xff]   ;;  %v4279_v22 = vcombine.high %v1037_v17, %v1037_v17 }
 0x157   : > { %2667 = vmatprep.subr.bf16.mxu0 %v4855_v23  ;;  %2710 = vmatprep.subr.bf16.mxu1 %v4858_v24  ;;  %v4281_v23 = vcombine.high %v1038_v18, %v1038_v18  ;;  %v4278_v24 = vcombine.low %v1037_v17, %v1037_v17  ;;  %v5011_v17 = vld [vmem:[%s6228_s14 + $0x214] ss:$112 sps:$4 sm:$0xff]  }
 0x15a   : > { %2668 = vmatpush1.bf16.msra.mxu0 %v4853_v25  ;;  %2711 = vmatpush1.bf16.msra.mxu1 %v4856_v26  ;;  %v4280_v25 = vcombine.low %v1038_v18, %v1038_v18  ;;  %v4941_v26 = vld [vmem:[%s6228_s14 + $0x44] ss:$112 sps:$4 sm:$0xff]   ;;  %v5014_v18 = vld [vmem:[%s6228_s14 + $0x21c] ss:$112 sps:$4 sm:$0xff]  }
 0x15b   : > { %2669 = vmatprep.subr.bf16.mxu0 %v4861_v27  ;;  %2712 = vmatprep.subr.bf16.mxu1 %v4864_v28  ;;  %v2438_v27 = vsel %vm2400_vm1, %v4278_v24, 0  ;;  %v5015_v24 = vld [vmem:[%s6228_s14 + $0x2f0] ss:$112 sps:$4 sm:$0xff]  }
 0x15c   : > { %v2444_v28 = vsel %vm2400_vm1, %v4280_v25, 0  ;;  %v5018_v25 = vld [vmem:[%s6228_s14 + $0x2f8] ss:$112 sps:$4 sm:$0xff]  }
 0x15e   : > { %2670 = vmatpush1.bf16.msra.mxu0 %v4859_v29  ;;  %2713 = vmatpush1.bf16.msra.mxu1 %v4862_v30  ;;  %v4944_v29 = vld [vmem:[%s6228_s14 + $0x4c] ss:$112 sps:$4 sm:$0xff]   ;;  %v4939_v30 = vld [vmem:[%s6228_s14 + $0x40] ss:$112 sps:$4 sm:$0xff]  }
 0x15f   : > { %2671 = vmatprep.subr.bf16.mxu0 %v4867_v31  ;;  %2714 = vmatprep.subr.bf16.mxu1 %v4870_v32  ;;  %v4942_v31 = vld [vmem:[%s6228_s14 + $0x48] ss:$112 sps:$4 sm:$0xff]   ;;  %v4947_v32 = vld [vmem:[%s6228_s14 + $0x124] ss:$112 sps:$4 sm:$0xff]  }
 0x162   : > { %2672 = vmatpush1.bf16.msra.mxu0 %v4865_v33  ;;  %2715 = vmatpush1.bf16.msra.mxu1 %v4868_v34  ;;  %v4950_v33 = vld [vmem:[%s6228_s14 + $0x12c] ss:$112 sps:$4 sm:$0xff]   ;;  %v4945_v34 = vld [vmem:[%s6228_s14 + $0x120] ss:$112 sps:$4 sm:$0xff]  }
 0x163   : > { %2673 = vmatprep.subr.bf16.mxu0 %v4873_v35  ;;  %2716 = vmatprep.subr.bf16.mxu1 %v4876_v37  ;;  %v4948_v35 = vld [vmem:[%s6228_s14 + $0x128] ss:$112 sps:$4 sm:$0xff]   ;;  %v4953_v37 = vld [vmem:[%s6228_s14 + $0x204] ss:$112 sps:$4 sm:$0xff]  }
 0x166   : > { %2674 = vmatpush1.bf16.msra.mxu0 %v4871_v40  ;;  %2717 = vmatpush1.bf16.msra.mxu1 %v4874_v41  ;;  %v4954_v40 = vld [vmem:[%s6228_s14 + $0x208] ss:$112 sps:$4 sm:$0xff]   ;;  %v4959_v41 = vld [vmem:[%s6228_s14 + $0x2e4] ss:$112 sps:$4 sm:$0xff]  }
 0x167   : > { %4302 = vmatprep.subr.msk.bf16.mxu0 %vm2400_vm1, %v4275_v42  ;;  %4304 = vmatprep.subr.msk.bf16.mxu1 %vm2400_vm1, %v4277_v43  ;;  %v4962_v42 = vld [vmem:[%s6228_s14 + $0x2ec] ss:$112 sps:$4 sm:$0xff]   ;;  %v4957_v43 = vld [vmem:[%s6228_s14 + $0x2e0] ss:$112 sps:$4 sm:$0xff]  }
 0x16a   : > { %2676 = vmatpush1.bf16.msra.mxu0 %v2426_v47  ;;  %2719 = vmatpush1.bf16.msra.mxu1 %v2432_v48  ;;  %v4963_v47 = vld [vmem:[%s6228_s14 + $0x3c0] ss:$112 sps:$4 sm:$0xff]   ;;  %v4966_v48 = vld [vmem:[%s6228_s14 + $0x3c8] ss:$112 sps:$4 sm:$0xff]  }
 0x16b   : > { %2743 = vmatprep.subr.bf16.mxu0 %v4883_v46  ;;  %2786 = vmatprep.subr.bf16.mxu1 %v4886_v49  ;;  %v4968_v46 = vld [vmem:[%s6228_s14 + $0x3cc] ss:$112 sps:$4 sm:$0xff]   ;;  %v4971_v49 = vld [vmem:[%s6228_s14 + $0x4a4] ss:$112 sps:$4 sm:$0xff]  }
 0x16d   : > { %2690 = vmatmul.mubr.bf16.vlgmr.msra.gmra.mrb[8].mxu0 %v6277_v21  ;;  %2733 = vmatmul.mubr.bf16.vlgmr.msra.gmra.mrb[8].mxu1 %v6277_v21 }
 0x16e   : > { %2744 = vmatpush1.bf16.msra.mxu0 %v4881_v50  ;;  %2787 = vmatpush1.bf16.msra.mxu1 %v4884_v51  ;;  %v4974_v50 = vld [vmem:[%s6228_s14 + $0x4ac] ss:$112 sps:$4 sm:$0xff]   ;;  %v4969_v51 = vld [vmem:[%s6228_s14 + $0x4a0] ss:$112 sps:$4 sm:$0xff]  }
 0x16f   : > { %2745 = vmatprep.subr.bf16.mxu0 %v4889_v52  ;;  %2788 = vmatprep.subr.bf16.mxu1 %v4892_v53  ;;  %v4972_v52 = vld [vmem:[%s6228_s14 + $0x4a8] ss:$112 sps:$4 sm:$0xff]   ;;  %v4977_v53 = vld [vmem:[%s6228_s14 + $0x584] ss:$112 sps:$4 sm:$0xff]  }
 0x170   : > { %4307 = vmatprep.mubr.msk.bf16.mxu0 %vm2396_vm0, %v6217_v36  ;;  %4309 = vmatprep.mubr.msk.bf16.mxu1 %vm2396_vm0, %v6217_v36  ;;  %v4907_v36 = vld [vmem:[%s6228_s14 + $0x3b4] ss:$112 sps:$4 sm:$0xff]  }
 0x172   : > { %2746 = vmatpush1.bf16.msra.mxu0 %v4887_v54  ;;  %2789 = vmatpush1.bf16.msra.mxu1 %v4890_v55  ;;  %v4980_v54 = vld [vmem:[%s6228_s14 + $0x58c] ss:$112 sps:$4 sm:$0xff]   ;;  %v4975_v55 = vld [vmem:[%s6228_s14 + $0x580] ss:$112 sps:$4 sm:$0xff]  }
 0x173   : > { %2747 = vmatprep.subr.bf16.mxu0 %v4895_v56  ;;  %2790 = vmatprep.subr.bf16.mxu1 %v4898_v57  ;;  %v4978_v56 = vld [vmem:[%s6228_s14 + $0x588] ss:$112 sps:$4 sm:$0xff]   ;;  %v4983_v57 = vld [vmem:[%s6228_s14 + $0x664] ss:$112 sps:$4 sm:$0xff]  }
 0x176   : > { %2748 = vmatpush1.bf16.msra.mxu0 %v4893_v58  ;;  %2791 = vmatpush1.bf16.msra.mxu1 %v4896_v59  ;;  %v4986_v58 = vld [vmem:[%s6228_s14 + $0x66c] ss:$112 sps:$4 sm:$0xff]   ;;  %v4981_v59 = vld [vmem:[%s6228_s14 + $0x660] ss:$112 sps:$4 sm:$0xff]  }
 0x177   : > { %2749 = vmatprep.subr.bf16.mxu0 %v4901_v60  ;;  %2792 = vmatprep.subr.bf16.mxu1 %v4904_v61  ;;  %v4984_v60 = vld [vmem:[%s6228_s14 + $0x668] ss:$112 sps:$4 sm:$0xff]   ;;  %v4989_v61 = vld [vmem:[%s6228_s14 + $0x744] ss:$112 sps:$4 sm:$0xff]  }
 0x17a   : > { %2750 = vmatpush1.bf16.msra.mxu0 %v4899_v62  ;;  %2793 = vmatpush1.bf16.msra.mxu1 %v4902_v63  ;;  %v4992_v62 = vld [vmem:[%s6228_s14 + $0x74c] ss:$112 sps:$4 sm:$0xff]   ;;  %v1039_v63 = vld [vmem:[%s6228_s14 + $0x820] sm:$0x77] }
 0x17b   : > { %2751 = vmatprep.subr.bf16.mxu0 %v4907_v36  ;;  %2794 = vmatprep.subr.bf16.mxu1 %v4910_v0  ;;  %v1040_v36 = vld [vmem:[%s6228_s14 + $0x828] sm:$0x77]  ;;  %v4987_v0 = vld [vmem:[%s6228_s14 + $0x740] ss:$112 sps:$4 sm:$0xff]  }
 0x17e   : > { %2752 = vmatpush1.bf16.msra.mxu0 %v4905_v1  ;;  %2795 = vmatpush1.bf16.msra.mxu1 %v4908_v2  ;;  %v4990_v1 = vld [vmem:[%s6228_s14 + $0x748] ss:$112 sps:$4 sm:$0xff]   ;;  %v4283_v2 = vcombine.high %v1039_v63, %v1039_v63 }
 0x17f   : > { %2753 = vmatprep.subr.bf16.mxu0 %v4913_v3  ;;  %2796 = vmatprep.subr.bf16.mxu1 %v4916_v4  ;;  %v4285_v3 = vcombine.high %v1040_v36, %v1040_v36  ;;  %v4282_v4 = vcombine.low %v1039_v63, %v1039_v63  ;;  %v5069_v63 = vld [vmem:[%s6228_s14 + $0x224] ss:$112 sps:$4 sm:$0xff]  }
 0x182   : > { %2754 = vmatpush1.bf16.msra.mxu0 %v4911_v5  ;;  %2797 = vmatpush1.bf16.msra.mxu1 %v4914_v6  ;;  %v4284_v5 = vcombine.low %v1040_v36, %v1040_v36  ;;  %v2450_v6 = vsel %vm2400_vm1, %v4282_v4, 0  ;;  %v5072_v36 = vld [vmem:[%s6228_s14 + $0x22c] ss:$112 sps:$4 sm:$0xff]  }
 0x183   : > { %2755 = vmatprep.subr.bf16.mxu0 %v4919_v7  ;;  %2798 = vmatprep.subr.bf16.mxu1 %v4922_v8  ;;  %v4999_v8 = vld [vmem:[%s6228_s14 + $0x54] ss:$112 sps:$4 sm:$0xff]   ;;  %v5078_v4 = vld [vmem:[%s6228_s14 + $0x30c] ss:$112 sps:$4 sm:$0xff]  }
 0x184   : > { %v2456_v7 = vsel %vm2400_vm1, %v4284_v5, 0  ;;  %v5073_v5 = vld [vmem:[%s6228_s14 + $0x300] ss:$112 sps:$4 sm:$0xff]  }
 0x186   : > { %2756 = vmatpush1.bf16.msra.mxu0 %v4917_v9  ;;  %2799 = vmatpush1.bf16.msra.mxu1 %v4920_v10  ;;  %v5002_v9 = vld [vmem:[%s6228_s14 + $0x5c] ss:$112 sps:$4 sm:$0xff]   ;;  %v4997_v10 = vld [vmem:[%s6228_s14 + $0x50] ss:$112 sps:$4 sm:$0xff]  }
 0x187   : > { %2757 = vmatprep.subr.bf16.mxu0 %v4925_v11  ;;  %2800 = vmatprep.subr.bf16.mxu1 %v4928_v12  ;;  %v5000_v11 = vld [vmem:[%s6228_s14 + $0x58] ss:$112 sps:$4 sm:$0xff]   ;;  %v5005_v12 = vld [vmem:[%s6228_s14 + $0x134] ss:$112 sps:$4 sm:$0xff]  }
 0x18a   : > { %2758 = vmatpush1.bf16.msra.mxu0 %v4923_v13  ;;  %2801 = vmatpush1.bf16.msra.mxu1 %v4926_v14  ;;  %v5008_v13 = vld [vmem:[%s6228_s14 + $0x13c] ss:$112 sps:$4 sm:$0xff]   ;;  %v6486_v14 = vld [vmem:[%s7069_s0] ss:$8 sps:$4 sm:$0xff]  }
 0x18b   : > { %2759 = vmatprep.subr.bf16.mxu0 %v4931_v15  ;;  %2802 = vmatprep.subr.bf16.mxu1 %v4934_v16  ;;  %v5003_v15 = vld [vmem:[%s6228_s14 + $0x130] ss:$112 sps:$4 sm:$0xff]   ;;  %v5006_v16 = vld [vmem:[%s6228_s14 + $0x138] ss:$112 sps:$4 sm:$0xff]  }
 0x18e   : > { %2760 = vmatpush1.bf16.msra.mxu0 %v4929_v19  ;;  %2803 = vmatpush1.bf16.msra.mxu1 %v4932_v20  ;;  %v5009_v19 = vld [vmem:[%s6228_s14 + $0x210] ss:$112 sps:$4 sm:$0xff]   ;;  %v5012_v20 = vld [vmem:[%s6228_s14 + $0x218] ss:$112 sps:$4 sm:$0xff]  }
 0x18f   : > { %4306 = vmatprep.subr.msk.bf16.mxu0 %vm2400_vm1, %v4279_v22  ;;  %4308 = vmatprep.subr.msk.bf16.mxu1 %vm2400_vm1, %v4281_v23  ;;  %v5017_v22 = vld [vmem:[%s6228_s14 + $0x2f4] ss:$112 sps:$4 sm:$0xff]   ;;  %v5020_v23 = vld [vmem:[%s6228_s14 + $0x2fc] ss:$112 sps:$4 sm:$0xff]  }
 0x192   : > { %2762 = vmatpush1.bf16.msra.mxu0 %v2438_v27  ;;  %2805 = vmatpush1.bf16.msra.mxu1 %v2444_v28  ;;  %v5026_v27 = vld [vmem:[%s6228_s14 + $0x3dc] ss:$112 sps:$4 sm:$0xff]   ;;  %v5021_v28 = vld [vmem:[%s6228_s14 + $0x3d0] ss:$112 sps:$4 sm:$0xff]  }
 0x193   : > { %2829 = vmatprep.subr.bf16.mxu0 %v4941_v26  ;;  %2872 = vmatprep.subr.bf16.mxu1 %v4944_v29  ;;  %v5023_v26 = vld [vmem:[%s6228_s14 + $0x3d4] ss:$112 sps:$4 sm:$0xff]   ;;  %v5024_v29 = vld [vmem:[%s6228_s14 + $0x3d8] ss:$112 sps:$4 sm:$0xff]  }
 0x195   : > { %2776 = vmatmul.mubr.bf16.vlgmr.msra.gmra.mrb[12].mxu0 %v6277_v21  ;;  %2819 = vmatmul.mubr.bf16.vlgmr.msra.gmra.mrb[12].mxu1 %v6277_v21  ;;  %v4951_v21 = vld [vmem:[%s6228_s14 + $0x200] ss:$112 sps:$4 sm:$0xff]  }
 0x196   : > { %2830 = vmatpush1.bf16.msra.mxu0 %v4939_v30  ;;  %2873 = vmatpush1.bf16.msra.mxu1 %v4942_v31  ;;  %v5029_v30 = vld [vmem:[%s6228_s14 + $0x4b4] ss:$112 sps:$4 sm:$0xff]   ;;  %v5032_v31 = vld [vmem:[%s6228_s14 + $0x4bc] ss:$112 sps:$4 sm:$0xff]  }
 0x197   : > { %2831 = vmatprep.subr.bf16.mxu0 %v4947_v32  ;;  %2874 = vmatprep.subr.bf16.mxu1 %v4950_v33  ;;  %v5027_v32 = vld [vmem:[%s6228_s14 + $0x4b0] ss:$112 sps:$4 sm:$0xff]   ;;  %v5030_v33 = vld [vmem:[%s6228_s14 + $0x4b8] ss:$112 sps:$4 sm:$0xff]  }
 0x198   : > { %4311 = vmatprep.mubr.msk.bf16.mxu0 %vm2396_vm0, %v6439_v39  ;;  %4313 = vmatprep.mubr.msk.bf16.mxu1 %vm2396_vm0, %v6439_v39 }
 0x19a   : > { %2832 = vmatpush1.bf16.msra.mxu0 %v4945_v34  ;;  %2875 = vmatpush1.bf16.msra.mxu1 %v4948_v35  ;;  %v5035_v34 = vld [vmem:[%s6228_s14 + $0x594] ss:$112 sps:$4 sm:$0xff]   ;;  %v5038_v35 = vld [vmem:[%s6228_s14 + $0x59c] ss:$112 sps:$4 sm:$0xff]  }
 0x19b   : > { %2833 = vmatprep.subr.bf16.mxu0 %v4953_v37  ;;  %2876 = vmatprep.subr.bf16.mxu1 %v4956_v38  ;;  %v5033_v37 = vld [vmem:[%s6228_s14 + $0x590] ss:$112 sps:$4 sm:$0xff]   ;;  %v5036_v38 = vld [vmem:[%s6228_s14 + $0x598] ss:$112 sps:$4 sm:$0xff]  }
 0x19e   : > { %2834 = vmatpush1.bf16.msra.mxu0 %v4951_v21  ;;  %2877 = vmatpush1.bf16.msra.mxu1 %v4954_v40  ;;  %v5041_v21 = vld [vmem:[%s6228_s14 + $0x674] ss:$112 sps:$4 sm:$0xff]   ;;  %v5044_v40 = vld [vmem:[%s6228_s14 + $0x67c] ss:$112 sps:$4 sm:$0xff]  }
 0x19f   : > { %2835 = vmatprep.subr.bf16.mxu0 %v4959_v41  ;;  %2878 = vmatprep.subr.bf16.mxu1 %v4962_v42  ;;  %v5039_v41 = vld [vmem:[%s6228_s14 + $0x670] ss:$112 sps:$4 sm:$0xff]   ;;  %v5042_v42 = vld [vmem:[%s6228_s14 + $0x678] ss:$112 sps:$4 sm:$0xff]  }
 0x1a2   : > { %2836 = vmatpush1.bf16.msra.mxu0 %v4957_v43  ;;  %2879 = vmatpush1.bf16.msra.mxu1 %v4960_v44  ;;  %v5047_v43 = vld [vmem:[%s6228_s14 + $0x754] ss:$112 sps:$4 sm:$0xff]   ;;  %v5050_v44 = vld [vmem:[%s6228_s14 + $0x75c] ss:$112 sps:$4 sm:$0xff]  }
 0x1a3   : > { %2837 = vmatprep.subr.bf16.mxu0 %v4965_v45  ;;  %2880 = vmatprep.subr.bf16.mxu1 %v4968_v46  ;;  %v1041_v45 = vld [vmem:[%s6228_s14 + $0x830] sm:$0x77]  ;;  %v1042_v46 = vld [vmem:[%s6228_s14 + $0x838] sm:$0x77] }
 0x1a6   : > { %2838 = vmatpush1.bf16.msra.mxu0 %v4963_v47  ;;  %2881 = vmatpush1.bf16.msra.mxu1 %v4966_v48  ;;  %v5045_v47 = vld [vmem:[%s6228_s14 + $0x750] ss:$112 sps:$4 sm:$0xff]   ;;  %v5048_v48 = vld [vmem:[%s6228_s14 + $0x758] ss:$112 sps:$4 sm:$0xff]  }
 0x1a7   : > { %2839 = vmatprep.subr.bf16.mxu0 %v4971_v49  ;;  %2882 = vmatprep.subr.bf16.mxu1 %v4974_v50  ;;  %v4287_v49 = vcombine.high %v1041_v45, %v1041_v45  ;;  %v4289_v50 = vcombine.high %v1042_v46, %v1042_v46 }
 0x1aa   : > { %2840 = vmatpush1.bf16.msra.mxu0 %v4969_v51  ;;  %2883 = vmatpush1.bf16.msra.mxu1 %v4972_v52  ;;  %v4286_v51 = vcombine.low %v1041_v45, %v1041_v45  ;;  %v4288_v52 = vcombine.low %v1042_v46, %v1042_v46  ;;  %v5096_v45 = vld [vmem:[%s6228_s14 + $0x5ac] ss:$112 sps:$4 sm:$0xff]  }
 0x1ab   : > { %2841 = vmatprep.subr.bf16.mxu0 %v4977_v53  ;;  %2884 = vmatprep.subr.bf16.mxu1 %v4980_v54 }
 0x1ac   : > { %v2462_v53 = vsel %vm2400_vm1, %v4286_v51, 0  ;;  %v2468_v54 = vsel %vm2400_vm1, %v4288_v52, 0  ;;  %v5102_v51 = vld [vmem:[%s6228_s14 + $0x68c] ss:$112 sps:$4 sm:$0xff]   ;;  %v5097_v52 = vld [vmem:[%s6228_s14 + $0x680] ss:$112 sps:$4 sm:$0xff]  }
 0x1ae   : > { %2842 = vmatpush1.bf16.msra.mxu0 %v4975_v55  ;;  %2885 = vmatpush1.bf16.msra.mxu1 %v4978_v56  ;;  %v5057_v55 = vld [vmem:[%s6228_s14 + $0x64] ss:$112 sps:$4 sm:$0xff]   ;;  %v5060_v56 = vld [vmem:[%s6228_s14 + $0x6c] ss:$112 sps:$4 sm:$0xff]  }
 0x1af   : > { %2843 = vmatprep.subr.bf16.mxu0 %v4983_v57  ;;  %2886 = vmatprep.subr.bf16.mxu1 %v4986_v58  ;;  %v5055_v57 = vld [vmem:[%s6228_s14 + $0x60] ss:$112 sps:$4 sm:$0xff]   ;;  %v5058_v58 = vld [vmem:[%s6228_s14 + $0x68] ss:$112 sps:$4 sm:$0xff]  }
 0x1b2   : > { %2844 = vmatpush1.bf16.msra.mxu0 %v4981_v59  ;;  %2887 = vmatpush1.bf16.msra.mxu1 %v4984_v60  ;;  %v5063_v59 = vld [vmem:[%s6228_s14 + $0x144] ss:$112 sps:$4 sm:$0xff]   ;;  %v5066_v60 = vld [vmem:[%s6228_s14 + $0x14c] ss:$112 sps:$4 sm:$0xff]  }
 0x1b3   : > { %2845 = vmatprep.subr.bf16.mxu0 %v4989_v61  ;;  %2888 = vmatprep.subr.bf16.mxu1 %v4992_v62  ;;  %v5061_v61 = vld [vmem:[%s6228_s14 + $0x140] ss:$112 sps:$4 sm:$0xff]   ;;  %v5064_v62 = vld [vmem:[%s6228_s14 + $0x148] ss:$112 sps:$4 sm:$0xff]  }
 0x1b6   : > { %2846 = vmatpush1.bf16.msra.mxu0 %v4987_v0  ;;  %2889 = vmatpush1.bf16.msra.mxu1 %v4990_v1  ;;  %v6546_v0 = vpop.permute.xlu0 %1049  ;;  %v5067_v1 = vld [vmem:[%s6228_s14 + $0x220] ss:$112 sps:$4 sm:$0xff]  }
 0x1b7   : > { %4310 = vmatprep.subr.msk.bf16.mxu0 %vm2400_vm1, %v4283_v2  ;;  %4312 = vmatprep.subr.msk.bf16.mxu1 %vm2400_vm1, %v4285_v3  ;;  %v5070_v2 = vld [vmem:[%s6228_s14 + $0x228] ss:$112 sps:$4 sm:$0xff]   ;;  %v5075_v3 = vld [vmem:[%s6228_s14 + $0x304] ss:$112 sps:$4 sm:$0xff]  }
 0x1ba   : > { %2848 = vmatpush1.bf16.msra.mxu0 %v2450_v6  ;;  %2891 = vmatpush1.bf16.msra.mxu1 %v2456_v7  ;;  %v5076_v6 = vld [vmem:[%s6228_s14 + $0x308] ss:$112 sps:$4 sm:$0xff]   ;;  %v5081_v7 = vld [vmem:[%s6228_s14 + $0x3e4] ss:$112 sps:$4 sm:$0xff]  }
 0x1bb   : > { %2915 = vmatprep.subr.bf16.mxu0 %v4999_v8  ;;  %2958 = vmatprep.subr.bf16.mxu1 %v5002_v9  ;;  %v5084_v8 = vld [vmem:[%s6228_s14 + $0x3ec] ss:$112 sps:$4 sm:$0xff]  }
 0x1bd   : > { %2862 = vmatmul.mubr.bf16.vlgmr.msra.gmra.mrb[16].mxu0 %v6486_v14  ;;  %2905 = vmatmul.mubr.bf16.vlgmr.msra.gmra.mrb[16].mxu1 %v6486_v14 }
 0x1be   : > { %2916 = vmatpush1.bf16.msra.mxu0 %v4997_v10  ;;  %2959 = vmatpush1.bf16.msra.mxu1 %v5000_v11 }
 0x1bf   : > { %2917 = vmatprep.subr.bf16.mxu0 %v5005_v12  ;;  %2960 = vmatprep.subr.bf16.mxu1 %v5008_v13 }
 0x1c0   : > { %4315 = vmatprep.mubr.msk.bf16.mxu0 %vm2396_vm0, %v6439_v39  ;;  %4317 = vmatprep.mubr.msk.bf16.mxu1 %vm2396_vm0, %v6439_v39 }
 0x1c2   : > { %2918 = vmatpush1.bf16.msra.mxu0 %v5003_v15  ;;  %2961 = vmatpush1.bf16.msra.mxu1 %v5006_v16  ;;  %v5079_v16 = vld [vmem:[%s6228_s14 + $0x3e0] ss:$112 sps:$4 sm:$0xff]  }
 0x1c3   : > { %2919 = vmatprep.subr.bf16.mxu0 %v5011_v17  ;;  %2962 = vmatprep.subr.bf16.mxu1 %v5014_v18 }
 0x1c6   : > { %2920 = vmatpush1.bf16.msra.mxu0 %v5009_v19  ;;  %2963 = vmatpush1.bf16.msra.mxu1 %v5012_v20 }
 0x1c7   : > { %2921 = vmatprep.subr.bf16.mxu0 %v5017_v22  ;;  %2964 = vmatprep.subr.bf16.mxu1 %v5020_v23  ;;  %v5082_v22 = vld [vmem:[%s6228_s14 + $0x3e8] ss:$112 sps:$4 sm:$0xff]   ;;  %v5087_v23 = vld [vmem:[%s6228_s14 + $0x4c4] ss:$112 sps:$4 sm:$0xff]  }
 0x1ca   : > { %2922 = vmatpush1.bf16.msra.mxu0 %v5015_v24  ;;  %2965 = vmatpush1.bf16.msra.mxu1 %v5018_v25 }
 0x1cb   : > { %2923 = vmatprep.subr.bf16.mxu0 %v5023_v26  ;;  %2966 = vmatprep.subr.bf16.mxu1 %v5026_v27 }
 0x1ce   : > { %2924 = vmatpush1.bf16.msra.mxu0 %v5021_v28  ;;  %2967 = vmatpush1.bf16.msra.mxu1 %v5024_v29 }
 0x1cf   : > { %2925 = vmatprep.subr.bf16.mxu0 %v5029_v30  ;;  %2968 = vmatprep.subr.bf16.mxu1 %v5032_v31  ;;  %v5090_v30 = vld [vmem:[%s6228_s14 + $0x4cc] ss:$112 sps:$4 sm:$0xff]  }
 0x1d2   : > { %2926 = vmatpush1.bf16.msra.mxu0 %v5027_v32  ;;  %2969 = vmatpush1.bf16.msra.mxu1 %v5030_v33 }
 0x1d3   : > { %2927 = vmatprep.subr.bf16.mxu0 %v5035_v34  ;;  %2970 = vmatprep.subr.bf16.mxu1 %v5038_v35 }
 0x1d6   : > { %2928 = vmatpush1.bf16.msra.mxu0 %v5033_v37  ;;  %2971 = vmatpush1.bf16.msra.mxu1 %v5036_v38 }
 0x1d7   : > { %2929 = vmatprep.subr.bf16.mxu0 %v5041_v21  ;;  %2972 = vmatprep.subr.bf16.mxu1 %v5044_v40 }
 0x1da   : > { %2930 = vmatpush1.bf16.msra.mxu0 %v5039_v41  ;;  %2973 = vmatpush1.bf16.msra.mxu1 %v5042_v42  ;;  %v5085_v42 = vld [vmem:[%s6228_s14 + $0x4c0] ss:$112 sps:$4 sm:$0xff]  }
 0x1db   : > { %2931 = vmatprep.subr.bf16.mxu0 %v5047_v43  ;;  %2974 = vmatprep.subr.bf16.mxu1 %v5050_v44  ;;  %v5088_v43 = vld [vmem:[%s6228_s14 + $0x4c8] ss:$112 sps:$4 sm:$0xff]   ;;  %v5093_v44 = vld [vmem:[%s6228_s14 + $0x5a4] ss:$112 sps:$4 sm:$0xff]  }
 0x1de   : > { %2932 = vmatpush1.bf16.msra.mxu0 %v5045_v47  ;;  %2975 = vmatpush1.bf16.msra.mxu1 %v5048_v48  ;;  %v5091_v48 = vld [vmem:[%s6228_s14 + $0x5a0] ss:$112 sps:$4 sm:$0xff]  }
 0x1df   : > { %4314 = vmatprep.subr.msk.bf16.mxu0 %vm2400_vm1, %v4287_v49  ;;  %4316 = vmatprep.subr.msk.bf16.mxu1 %vm2400_vm1, %v4289_v50  ;;  %v5094_v49 = vld [vmem:[%s6228_s14 + $0x5a8] ss:$112 sps:$4 sm:$0xff]   ;;  %v5099_v50 = vld [vmem:[%s6228_s14 + $0x684] ss:$112 sps:$4 sm:$0xff]  }
 0x1e2   : > { %2934 = vmatpush1.bf16.msra.mxu0 %v2462_v53  ;;  %2977 = vmatpush1.bf16.msra.mxu1 %v2468_v54  ;;  %v5100_v53 = vld [vmem:[%s6228_s14 + $0x688] ss:$112 sps:$4 sm:$0xff]   ;;  %v5105_v54 = vld [vmem:[%s6228_s14 + $0x764] ss:$112 sps:$4 sm:$0xff]  }
 0x1e3   : > { %3001 = vmatprep.subr.bf16.mxu0 %v5057_v55  ;;  %3044 = vmatprep.subr.bf16.mxu1 %v5060_v56  ;;  %v5108_v55 = vld [vmem:[%s6228_s14 + $0x76c] ss:$112 sps:$4 sm:$0xff]   ;;  %v1043_v56 = vld [vmem:[%s6228_s14 + $0x840] sm:$0x77] }
 0x1e5   : > { %2948 = vmatmul.mubr.bf16.vlgmr.msra.gmra.mrb[20].mxu0 %v6486_v14  ;;  %2991 = vmatmul.mubr.bf16.vlgmr.msra.gmra.mrb[20].mxu1 %v6486_v14 }
 0x1e6   : > { %3002 = vmatpush1.bf16.msra.mxu0 %v5055_v57  ;;  %3045 = vmatpush1.bf16.msra.mxu1 %v5058_v58  ;;  %v1044_v57 = vld [vmem:[%s6228_s14 + $0x848] sm:$0x77]  ;;  %v5103_v58 = vld [vmem:[%s6228_s14 + $0x760] ss:$112 sps:$4 sm:$0xff]  }
 0x1e7   : > { %3003 = vmatprep.subr.bf16.mxu0 %v5063_v59  ;;  %3046 = vmatprep.subr.bf16.mxu1 %v5066_v60  ;;  %v5106_v59 = vld [vmem:[%s6228_s14 + $0x768] ss:$112 sps:$4 sm:$0xff]   ;;  %v4291_v60 = vcombine.high %v1043_v56, %v1043_v56 }
 0x1e8   : > { %4319 = vmatprep.mubr.msk.bf16.mxu0 %vm2396_vm0, %v6439_v39  ;;  %4321 = vmatprep.mubr.msk.bf16.mxu1 %vm2396_vm0, %v6439_v39  ;;  %v6554_v39 = vpop.permute.xlu0 %1054 }
 0x1ea   : > { %3004 = vmatpush1.bf16.msra.mxu0 %v5061_v61  ;;  %3047 = vmatpush1.bf16.msra.mxu1 %v5064_v62  ;;  %v4293_v61 = vcombine.high %v1044_v57, %v1044_v57  ;;  %v4290_v62 = vcombine.low %v1043_v56, %v1043_v56 }
 0x1eb   : > { %3005 = vmatprep.subr.bf16.mxu0 %v5069_v63  ;;  %3048 = vmatprep.subr.bf16.mxu1 %v5072_v36  ;;  %v4292_v63 = vcombine.low %v1044_v57, %v1044_v57 }
 0x1ec   : > { %v2474_v36 = vsel %vm2400_vm1, %v4290_v62, 0 }
 0x1ee   : > { %3006 = vmatpush1.bf16.msra.mxu0 %v5067_v1  ;;  %3049 = vmatpush1.bf16.msra.mxu1 %v5070_v2  ;;  %v2480_v1 = vsel %vm2400_vm1, %v4292_v63, 0 }
 0x1ef   : > { %3007 = vmatprep.subr.bf16.mxu0 %v5075_v3  ;;  %3050 = vmatprep.subr.bf16.mxu1 %v5078_v4 }
 0x1f0   : > { %v2519_v9 = vpop.f32.mrb[0].mxu0  ;;  %v2562_v10 = vpop.f32.mrb[0].mxu1 }
 0x1f1   : > { %v2520_v11 = vadd.f32 %v2519_v9, %v6546_v0  ;;  %v2563_v12 = vadd.f32 %v2562_v10, %v6546_v0  ;;  %v2521_v13 = vpop.f32.mrb[1].mxu0  ;;  %v2564_v15 = vpop.f32.mrb[1].mxu1 }
 0x1f2   : > { %v2522_v17 = vadd.f32 %v2521_v13, %v6546_v0  ;;  %v2565_v18 = vadd.f32 %v2564_v15, %v6546_v0  ;;  %v2523_v19 = vpop.f32.mrb[2].mxu0  ;;  %v2566_v20 = vpop.f32.mrb[2].mxu1  ;;  %3008 = vmatpush1.bf16.msra.mxu0 %v5073_v5  ;;  %3051 = vmatpush1.bf16.msra.mxu1 %v5076_v6 }
 0x1f3   : > { %v3087_v24 = vmax.f32 %v2520_v11, 0.0  ;;  %v3089_v25 = vmax.f32 %v2563_v12, 0.0  ;;  %v2524_v26 = vadd.f32 %v2523_v19, %v6554_v39  ;;  %v2567_v27 = vadd.f32 %v2566_v20, %v6554_v39  ;;  %v2525_v28 = vpop.f32.mrb[3].mxu0  ;;  %v2568_v29 = vpop.f32.mrb[3].mxu1  ;;  %3009 = vmatprep.subr.bf16.mxu0 %v5081_v7  ;;  %3052 = vmatprep.subr.bf16.mxu1 %v5084_v8 }
 0x1f4   : > { %v3088_v31 = vmax.f32 %v2522_v17, 0.0  ;;  %v3090_v32 = vmax.f32 %v2565_v18, 0.0  ;;  %v2526_v33 = vadd.f32 %v2525_v28, %v6554_v39  ;;  %v2569_v34 = vadd.f32 %v2568_v29, %v6554_v39 }
 0x1f5   : > { %v3115_v35 = vmax.f32 %v2524_v26, 0.0  ;;  %v3117_v37 = vmax.f32 %v2567_v27, 0.0 }
 0x1f6   : > { %v4382_v38 = vpack.c.bf16 %v3088_v31, %v3087_v24  ;;  %v4383_v21 = vpack.c.bf16 %v3090_v32, %v3089_v25  ;;  %v3116_v40 = vmax.f32 %v2526_v33, 0.0  ;;  %v3118_v41 = vmax.f32 %v2569_v34, 0.0  ;;  %3010 = vmatpush1.bf16.msra.mxu0 %v5079_v16  ;;  %3053 = vmatpush1.bf16.msra.mxu1 %v5082_v22 }
 0x1f7   : > { %3011 = vmatprep.subr.bf16.mxu0 %v5087_v23  ;;  %3054 = vmatprep.subr.bf16.mxu1 %v5090_v30 }
 0x1f8   : > { %3311 = vst [vmem:[%s6579_s12] sm:$0xff] %v4382_v38  ;;  %3312 = vst [vmem:[%s6579_s12 + $0x8] sm:$0xff] %v4383_v21  ;;  %v4396_v46 = vpack.c.bf16 %v3116_v40, %v3115_v35  ;;  %v4397_v47 = vpack.c.bf16 %v3118_v41, %v3117_v37 }
 0x1fa   : > { %3325 = vst [vmem:[%s6579_s12 + $0x70] sm:$0xff] %v4396_v46  ;;  %3326 = vst [vmem:[%s6579_s12 + $0x78] sm:$0xff] %v4397_v47  ;;  %3012 = vmatpush1.bf16.msra.mxu0 %v5085_v42  ;;  %3055 = vmatpush1.bf16.msra.mxu1 %v5088_v43 }
 0x1fb   : > { %3013 = vmatprep.subr.bf16.mxu0 %v5093_v44  ;;  %3056 = vmatprep.subr.bf16.mxu1 %v5096_v45 }
 0x1fe   : > { %3014 = vmatpush1.bf16.msra.mxu0 %v5091_v48  ;;  %3057 = vmatpush1.bf16.msra.mxu1 %v5094_v49 }
 0x1ff   : > { %3015 = vmatprep.subr.bf16.mxu0 %v5099_v50  ;;  %3058 = vmatprep.subr.bf16.mxu1 %v5102_v51 }
 0x202   : > { %3016 = vmatpush1.bf16.msra.mxu0 %v5097_v52  ;;  %3059 = vmatpush1.bf16.msra.mxu1 %v5100_v53 }
 0x203   : > { %3017 = vmatprep.subr.bf16.mxu0 %v5105_v54  ;;  %3060 = vmatprep.subr.bf16.mxu1 %v5108_v55 }
 0x206   : > { %3018 = vmatpush1.bf16.msra.mxu0 %v5103_v58  ;;  %3061 = vmatpush1.bf16.msra.mxu1 %v5106_v59 }
 0x207   : > { %4318 = vmatprep.subr.msk.bf16.mxu0 %vm2400_vm1, %v4291_v60  ;;  %4320 = vmatprep.subr.msk.bf16.mxu1 %vm2400_vm1, %v4293_v61 }
 0x20a   : > { %3020 = vmatpush1.bf16.msra.mxu0 %v2474_v36  ;;  %3063 = vmatpush1.bf16.msra.mxu1 %v2480_v1 }
 0x20d   : > { %3034 = vmatmul.mubr.bf16.vlgmr.msra.gmra.mrb[24].mxu0 %v6486_v14  ;;  %3077 = vmatmul.mubr.bf16.vlgmr.msra.gmra.mrb[24].mxu1 %v6486_v14 }
 0x218   : > { %v2605_v2 = vpop.f32.mrb[4].mxu0  ;;  %v2648_v3 = vpop.f32.mrb[4].mxu1 }
 0x219   : > { %v2606_v4 = vadd.f32 %v2605_v2, %v6546_v0  ;;  %v2649_v5 = vadd.f32 %v2648_v3, %v6546_v0  ;;  %v2607_v6 = vpop.f32.mrb[5].mxu0  ;;  %v2650_v7 = vpop.f32.mrb[5].mxu1 }
 0x21a   : > { %v2608_v8 = vadd.f32 %v2607_v6, %v6546_v0  ;;  %v2651_v9 = vadd.f32 %v2650_v7, %v6546_v0  ;;  %v2609_v10 = vpop.f32.mrb[6].mxu0  ;;  %v2652_v11 = vpop.f32.mrb[6].mxu1 }
 0x21b   : > { %v3091_v12 = vmax.f32 %v2606_v4, 0.0  ;;  %v3093_v13 = vmax.f32 %v2649_v5, 0.0  ;;  %v2610_v14 = vadd.f32 %v2609_v10, %v6554_v39  ;;  %v2653_v15 = vadd.f32 %v2652_v11, %v6554_v39  ;;  %v2611_v16 = vpop.f32.mrb[7].mxu0  ;;  %v2654_v17 = vpop.f32.mrb[7].mxu1 }
 0x21c   : > { %v3092_v18 = vmax.f32 %v2608_v8, 0.0  ;;  %v3094_v19 = vmax.f32 %v2651_v9, 0.0  ;;  %v2612_v20 = vadd.f32 %v2611_v16, %v6554_v39  ;;  %v2655_v22 = vadd.f32 %v2654_v17, %v6554_v39 }
 0x21d   : > { %v3119_v23 = vmax.f32 %v2610_v14, 0.0  ;;  %v3121_v24 = vmax.f32 %v2653_v15, 0.0 }
 0x21e   : > { %v4384_v25 = vpack.c.bf16 %v3092_v18, %v3091_v12  ;;  %v4385_v26 = vpack.c.bf16 %v3094_v19, %v3093_v13  ;;  %v3120_v27 = vmax.f32 %v2612_v20, 0.0  ;;  %v3122_v28 = vmax.f32 %v2655_v22, 0.0 }
 0x220   : > { %3313 = vst [vmem:[%s6579_s12 + $0x10] sm:$0xff] %v4384_v25  ;;  %3314 = vst [vmem:[%s6579_s12 + $0x18] sm:$0xff] %v4385_v26  ;;  %v4398_v29 = vpack.c.bf16 %v3120_v27, %v3119_v23  ;;  %v4399_v30 = vpack.c.bf16 %v3122_v28, %v3121_v24 }
 0x222   : > { %3327 = vst [vmem:[%s6579_s12 + $0x80] sm:$0xff] %v4398_v29  ;;  %3328 = vst [vmem:[%s6579_s12 + $0x88] sm:$0xff] %v4399_v30 }
 0x240   : > { %v2691_v31 = vpop.f32.mrb[8].mxu0  ;;  %v2734_v32 = vpop.f32.mrb[8].mxu1 }
 0x241   : > { %v2692_v33 = vadd.f32 %v2691_v31, %v6546_v0  ;;  %v2735_v34 = vadd.f32 %v2734_v32, %v6546_v0  ;;  %v2693_v35 = vpop.f32.mrb[9].mxu0  ;;  %v2736_v37 = vpop.f32.mrb[9].mxu1 }
 0x242   : > { %v2694_v38 = vadd.f32 %v2693_v35, %v6546_v0  ;;  %v2737_v21 = vadd.f32 %v2736_v37, %v6546_v0  ;;  %v2695_v40 = vpop.f32.mrb[10].mxu0  ;;  %v2738_v41 = vpop.f32.mrb[10].mxu1 }
 0x243   : > { %v3095_v42 = vmax.f32 %v2692_v33, 0.0  ;;  %v3097_v43 = vmax.f32 %v2735_v34, 0.0  ;;  %v2696_v44 = vadd.f32 %v2695_v40, %v6554_v39  ;;  %v2739_v45 = vadd.f32 %v2738_v41, %v6554_v39  ;;  %v2697_v46 = vpop.f32.mrb[11].mxu0  ;;  %v2740_v47 = vpop.f32.mrb[11].mxu1 }
 0x244   : > { %v3096_v48 = vmax.f32 %v2694_v38, 0.0  ;;  %v3098_v49 = vmax.f32 %v2737_v21, 0.0  ;;  %v2698_v50 = vadd.f32 %v2697_v46, %v6554_v39  ;;  %v2741_v51 = vadd.f32 %v2740_v47, %v6554_v39 }
 0x245   : > { %v3123_v52 = vmax.f32 %v2696_v44, 0.0  ;;  %v3125_v53 = vmax.f32 %v2739_v45, 0.0 }
 0x246   : > { %v4386_v54 = vpack.c.bf16 %v3096_v48, %v3095_v42  ;;  %v4387_v55 = vpack.c.bf16 %v3098_v49, %v3097_v43  ;;  %v3124_v56 = vmax.f32 %v2698_v50, 0.0  ;;  %v3126_v57 = vmax.f32 %v2741_v51, 0.0 }
 0x248   : > { %3315 = vst [vmem:[%s6579_s12 + $0x20] sm:$0xff] %v4386_v54  ;;  %3316 = vst [vmem:[%s6579_s12 + $0x28] sm:$0xff] %v4387_v55  ;;  %v4400_v58 = vpack.c.bf16 %v3124_v56, %v3123_v52  ;;  %v4401_v59 = vpack.c.bf16 %v3126_v57, %v3125_v53 }
 0x24a   : > { %3329 = vst [vmem:[%s6579_s12 + $0x90] sm:$0xff] %v4400_v58  ;;  %3330 = vst [vmem:[%s6579_s12 + $0x98] sm:$0xff] %v4401_v59 }
 0x268   : > { %v2777_v60 = vpop.f32.mrb[12].mxu0  ;;  %v2820_v61 = vpop.f32.mrb[12].mxu1 }
 0x269   : > { %v2778_v62 = vadd.f32 %v2777_v60, %v6546_v0  ;;  %v2821_v63 = vadd.f32 %v2820_v61, %v6546_v0  ;;  %v2779_v36 = vpop.f32.mrb[13].mxu0  ;;  %v2822_v1 = vpop.f32.mrb[13].mxu1 }
 0x26a   : > { %v2780_v2 = vadd.f32 %v2779_v36, %v6546_v0  ;;  %v2823_v3 = vadd.f32 %v2822_v1, %v6546_v0  ;;  %v2781_v4 = vpop.f32.mrb[14].mxu0  ;;  %v2824_v5 = vpop.f32.mrb[14].mxu1 }
 0x26b   : > { %v3099_v6 = vmax.f32 %v2778_v62, 0.0  ;;  %v3101_v7 = vmax.f32 %v2821_v63, 0.0  ;;  %v2782_v8 = vadd.f32 %v2781_v4, %v6554_v39  ;;  %v2825_v9 = vadd.f32 %v2824_v5, %v6554_v39  ;;  %v2783_v10 = vpop.f32.mrb[15].mxu0  ;;  %v2826_v11 = vpop.f32.mrb[15].mxu1 }
 0x26c   : > { %v3100_v12 = vmax.f32 %v2780_v2, 0.0  ;;  %v3102_v13 = vmax.f32 %v2823_v3, 0.0  ;;  %v2784_v14 = vadd.f32 %v2783_v10, %v6554_v39  ;;  %v2827_v15 = vadd.f32 %v2826_v11, %v6554_v39 }
 0x26d   : > { %v3127_v16 = vmax.f32 %v2782_v8, 0.0  ;;  %v3129_v17 = vmax.f32 %v2825_v9, 0.0 }
 0x26e   : > { %v4388_v18 = vpack.c.bf16 %v3100_v12, %v3099_v6  ;;  %v4389_v19 = vpack.c.bf16 %v3102_v13, %v3101_v7  ;;  %v3128_v20 = vmax.f32 %v2784_v14, 0.0  ;;  %v3130_v22 = vmax.f32 %v2827_v15, 0.0 }
 0x270   : > { %3317 = vst [vmem:[%s6579_s12 + $0x30] sm:$0xff] %v4388_v18  ;;  %3318 = vst [vmem:[%s6579_s12 + $0x38] sm:$0xff] %v4389_v19  ;;  %v4402_v23 = vpack.c.bf16 %v3128_v20, %v3127_v16  ;;  %v4403_v24 = vpack.c.bf16 %v3130_v22, %v3129_v17 }
 0x272   : > { %3331 = vst [vmem:[%s6579_s12 + $0xa0] sm:$0xff] %v4402_v23  ;;  %3332 = vst [vmem:[%s6579_s12 + $0xa8] sm:$0xff] %v4403_v24 }
 0x290   : > { %v2863_v25 = vpop.f32.mrb[16].mxu0  ;;  %v2906_v26 = vpop.f32.mrb[16].mxu1 }
 0x291   : > { %v2864_v27 = vadd.f32 %v2863_v25, %v6546_v0  ;;  %v2907_v28 = vadd.f32 %v2906_v26, %v6546_v0  ;;  %v2865_v29 = vpop.f32.mrb[17].mxu0  ;;  %v2908_v30 = vpop.f32.mrb[17].mxu1 }
 0x292   : > { %v2866_v31 = vadd.f32 %v2865_v29, %v6546_v0  ;;  %v2909_v32 = vadd.f32 %v2908_v30, %v6546_v0  ;;  %v2867_v33 = vpop.f32.mrb[18].mxu0  ;;  %v2910_v34 = vpop.f32.mrb[18].mxu1 }
 0x293   : > { %v3103_v35 = vmax.f32 %v2864_v27, 0.0  ;;  %v3105_v37 = vmax.f32 %v2907_v28, 0.0  ;;  %v2868_v38 = vadd.f32 %v2867_v33, %v6554_v39  ;;  %v2911_v21 = vadd.f32 %v2910_v34, %v6554_v39  ;;  %v2869_v40 = vpop.f32.mrb[19].mxu0  ;;  %v2912_v41 = vpop.f32.mrb[19].mxu1 }
 0x294   : > { %v3104_v42 = vmax.f32 %v2866_v31, 0.0  ;;  %v3106_v43 = vmax.f32 %v2909_v32, 0.0  ;;  %v2870_v44 = vadd.f32 %v2869_v40, %v6554_v39  ;;  %v2913_v45 = vadd.f32 %v2912_v41, %v6554_v39 }
 0x295   : > { %v3131_v46 = vmax.f32 %v2868_v38, 0.0  ;;  %v3133_v47 = vmax.f32 %v2911_v21, 0.0 }
 0x296   : > { %v4390_v48 = vpack.c.bf16 %v3104_v42, %v3103_v35  ;;  %v4391_v49 = vpack.c.bf16 %v3106_v43, %v3105_v37  ;;  %v3132_v50 = vmax.f32 %v2870_v44, 0.0  ;;  %v3134_v51 = vmax.f32 %v2913_v45, 0.0 }
 0x298   : > { %3319 = vst [vmem:[%s6579_s12 + $0x40] sm:$0xff] %v4390_v48  ;;  %3320 = vst [vmem:[%s6579_s12 + $0x48] sm:$0xff] %v4391_v49  ;;  %v4404_v52 = vpack.c.bf16 %v3132_v50, %v3131_v46  ;;  %v4405_v53 = vpack.c.bf16 %v3134_v51, %v3133_v47 }
 0x29a   : > { %3333 = vst [vmem:[%s6579_s12 + $0xb0] sm:$0xff] %v4404_v52  ;;  %3334 = vst [vmem:[%s6579_s12 + $0xb8] sm:$0xff] %v4405_v53 }
 0x2b8   : > { %v2949_v54 = vpop.f32.mrb[20].mxu0  ;;  %v2992_v55 = vpop.f32.mrb[20].mxu1 }
 0x2b9   : > { %v2950_v56 = vadd.f32 %v2949_v54, %v6546_v0  ;;  %v2993_v57 = vadd.f32 %v2992_v55, %v6546_v0  ;;  %v2951_v58 = vpop.f32.mrb[21].mxu0  ;;  %v2994_v59 = vpop.f32.mrb[21].mxu1 }
 0x2ba   : > { %v2952_v60 = vadd.f32 %v2951_v58, %v6546_v0  ;;  %v2995_v61 = vadd.f32 %v2994_v59, %v6546_v0  ;;  %v2953_v62 = vpop.f32.mrb[22].mxu0  ;;  %v2996_v63 = vpop.f32.mrb[22].mxu1 }
 0x2bb   : > { %v3107_v36 = vmax.f32 %v2950_v56, 0.0  ;;  %v3109_v1 = vmax.f32 %v2993_v57, 0.0  ;;  %v2954_v2 = vadd.f32 %v2953_v62, %v6554_v39  ;;  %v2997_v3 = vadd.f32 %v2996_v63, %v6554_v39  ;;  %v2955_v4 = vpop.f32.mrb[23].mxu0  ;;  %v2998_v5 = vpop.f32.mrb[23].mxu1 }
 0x2bc   : > { %v3108_v6 = vmax.f32 %v2952_v60, 0.0  ;;  %v3110_v7 = vmax.f32 %v2995_v61, 0.0  ;;  %v2956_v8 = vadd.f32 %v2955_v4, %v6554_v39  ;;  %v2999_v9 = vadd.f32 %v2998_v5, %v6554_v39 }
 0x2bd   : > { %v3135_v10 = vmax.f32 %v2954_v2, 0.0  ;;  %v3137_v11 = vmax.f32 %v2997_v3, 0.0 }
 0x2be   : > { %v4392_v12 = vpack.c.bf16 %v3108_v6, %v3107_v36  ;;  %v4393_v13 = vpack.c.bf16 %v3110_v7, %v3109_v1  ;;  %v3136_v14 = vmax.f32 %v2956_v8, 0.0  ;;  %v3138_v15 = vmax.f32 %v2999_v9, 0.0 }
 0x2c0   : > { %3321 = vst [vmem:[%s6579_s12 + $0x50] sm:$0xff] %v4392_v12  ;;  %3322 = vst [vmem:[%s6579_s12 + $0x58] sm:$0xff] %v4393_v13  ;;  %v4406_v16 = vpack.c.bf16 %v3136_v14, %v3135_v10  ;;  %v4407_v17 = vpack.c.bf16 %v3138_v15, %v3137_v11 }
 0x2c2   : > { %3335 = vst [vmem:[%s6579_s12 + $0xc0] sm:$0xff] %v4406_v16  ;;  %3336 = vst [vmem:[%s6579_s12 + $0xc8] sm:$0xff] %v4407_v17 }
 0x2e0   : > { %v3035_v18 = vpop.f32.mrb[24].mxu0  ;;  %v3078_v19 = vpop.f32.mrb[24].mxu1 }
 0x2e1   : > { %v3036_v20 = vadd.f32 %v3035_v18, %v6546_v0  ;;  %v3079_v22 = vadd.f32 %v3078_v19, %v6546_v0  ;;  %v3037_v23 = vpop.f32.mrb[25].mxu0  ;;  %v3080_v24 = vpop.f32.mrb[25].mxu1 }
 0x2e2   : > { %v3038_v25 = vadd.f32 %v3037_v23, %v6546_v0  ;;  %v3081_v26 = vadd.f32 %v3080_v24, %v6546_v0  ;;  %v3039_v27 = vpop.f32.mrb[26].mxu0  ;;  %v3082_v28 = vpop.f32.mrb[26].mxu1 }
 0x2e3   : > { %v3111_v29 = vmax.f32 %v3036_v20, 0.0  ;;  %v3113_v30 = vmax.f32 %v3079_v22, 0.0  ;;  %v3040_v31 = vadd.f32 %v3039_v27, %v6554_v39  ;;  %v3083_v32 = vadd.f32 %v3082_v28, %v6554_v39  ;;  %v3041_v33 = vpop.f32.mrb[27].mxu0  ;;  %v3084_v34 = vpop.f32.mrb[27].mxu1 }
 0x2e4   : > { %v3112_v35 = vmax.f32 %v3038_v25, 0.0  ;;  %v3114_v37 = vmax.f32 %v3081_v26, 0.0  ;;  %v3042_v38 = vadd.f32 %v3041_v33, %v6554_v39  ;;  %v3085_v0 = vadd.f32 %v3084_v34, %v6554_v39  ;;  %3345 = sbr.rel (!%p5451_p5) target bundleno = 912 (0x390), region = 102 }
 0x2e5   : > { %v3139_v21 = vmax.f32 %v3040_v31, 0.0  ;;  %v3141_v40 = vmax.f32 %v3083_v32, 0.0 }
 0x2e6   : > { %v4394_v41 = vpack.c.bf16 %v3112_v35, %v3111_v29  ;;  %v4395_v42 = vpack.c.bf16 %v3114_v37, %v3113_v30  ;;  %v3140_v43 = vmax.f32 %v3042_v38, 0.0  ;;  %v3142_v44 = vmax.f32 %v3085_v0, 0.0 }
 0x2e8   : > { %3323 = vst [vmem:[%s6579_s12 + $0x60] sm:$0xff] %v4394_v41  ;;  %3324 = vst [vmem:[%s6579_s12 + $0x68] sm:$0xff] %v4395_v42  ;;  %v4408_v45 = vpack.c.bf16 %v3140_v43, %v3139_v21  ;;  %v4409_v46 = vpack.c.bf16 %v3142_v44, %v3141_v40 }
 0x2ea   : > { %3337 = vst [vmem:[%s6579_s12 + $0xd0] sm:$0xff] %v4408_v45  ;;  %3338 = vst [vmem:[%s6579_s12 + $0xd8] sm:$0xff] %v4409_v46 }
 0x2eb   : > { %s7116_s10 = smov (!%p3348_p1, %s3347_s10), 28 }
 0x2ec   : > { %s4350_s22 = sshll.u32 %s7116_s10, 7  ;;  %s6684_s6 = sshll.u32 %s7116_s10, 2 }
 0x2ed   : > { %p4354_p2 = scmp.eq.s32.totalorder %s4350_s22, 0 }
 0x2ee   : > { %p3358_p3 = scmp.lt.u32.totalorder (!%p4354_p2), %s6684_s6, 8 }
 0x2ef   : > { %3357 = sbr.rel (%p4354_p2) target bundleno = 912 (0x390), region = 106 }
 0x2f6   : > { %3361 = sbr.rel (%p3358_p3) target bundleno = 903 (0x387), region = 110  ;;  %s6688_s20 = sand.u32 (!%p3358_p3), 7, %s6684_s6  }
 0x2f7   : > { %p3379_p5 = scmp.eq.s32.totalorder (!%p3358_p3), %s6688_s20, 0  ;;  %p4355_p4 = scmp.ne.s32.totalorder (!%p3358_p3), %s6688_s20, 0 }
 0x2fd   : > { %3382 = sbr.rel (%p4355_p4) target bundleno = 832 (0x340), region = 125  ;;  %s3383_s15 = sshrl.u32 (!%p4355_p4), %s6684_s6, 3 }
 0x2fe   : > { %s6695_s28 = sshrl.u32 (!%p4355_p4), %s3383_s15, 5 }
 0x2ff   : > { %p4356_p6 = scmp.le.s32.totalorder (!%p4355_p4), %s6695_s28, 0 }
 0x304   : > { %3912 = sbr.rel (%p4356_p6) target bundleno = 812 (0x32c), region = 273  ;;  %s7092_s4 = smov (!%p4356_p6), %s6682_s30 }
 0x305   : > { %s7093_s7 = smov (!%p4356_p6), %s6579_s12  ;;  %s6704_s14 = smov (!%p4356_p6), 0  }
 0x306   : > { %s6706_s11 = smov (!%p4356_p6), 0  }
 0x30b LB: >> { %v3396_v39 = vld [vmem:[%s5337_s7] sm:$0xff]  ;;  %v3398_v47 = vld [vmem:[%s5337_s7 + $0x8] sm:$0xff]  ;;  %v3400_v48 = vld [vmem:[%s5337_s7 + $0x10] sm:$0xff]  ;;  %s3524_s17 = sadd.s32 1, %s5341_s14  ;;  %s3390_s11 = sadd.s32 1, %s5345_s11   ;;  %s5345_s11 = sphi %s6706_s11, %s3390_s11   ;;  %s5341_s14 = sphi %s6704_s14, %s7096_s14   ;;  %s5337_s7 = sphi %s7093_s7, %s7095_s7   ;;  %s5333_s4 = sphi %s7092_s4, %s7094_s4  }
 0x30c   : >> { %3397 = vst [vmem:[%s5333_s4] sm:$0xff] %v3396_v39  ;;  %3399 = vst [vmem:[%s5333_s4 + $0x8] sm:$0xff] %v3398_v47  ;;  %v3402_v49 = vld [vmem:[%s5337_s7 + $0x18] sm:$0xff]  ;;  %v3404_v50 = vld [vmem:[%s5337_s7 + $0x20] sm:$0xff]  ;;  %p3525_p7 = scmp.ge.s32.totalorder %s3524_s17, %s6695_s28  ;;  %p3389_p8 = scmp.ge.s32.totalorder %s3390_s11, %s6695_s28 }
 0x30d   : >> { %3401 = vst [vmem:[%s5333_s4 + $0x10] sm:$0xff] %v3400_v48  ;;  %v3406_v51 = vld [vmem:[%s5337_s7 + $0x28] sm:$0xff]  ;;  %3403 = vst [vmem:[%s5333_s4 + $0x18] sm:$0xff] %v3402_v49  ;;  %v3408_v52 = vld [vmem:[%s5337_s7 + $0x30] sm:$0xff] }
 0x30e   : >> { %3405 = vst [vmem:[%s5333_s4 + $0x20] sm:$0xff] %v3404_v50  ;;  %3407 = vst [vmem:[%s5333_s4 + $0x28] sm:$0xff] %v3406_v51  ;;  %v3410_v53 = vld [vmem:[%s5337_s7 + $0x38] sm:$0xff]  ;;  %v3412_v54 = vld [vmem:[%s5337_s7 + $0x40] sm:$0xff]  ;;  %s7118_s17 = smov (%p3525_p7, %s3524_s17), 0 }
 0x30f   : >> { %3409 = vst [vmem:[%s5333_s4 + $0x30] sm:$0xff] %v3408_v52  ;;  %3411 = vst [vmem:[%s5333_s4 + $0x38] sm:$0xff] %v3410_v53  ;;  %v3414_v55 = vld [vmem:[%s5337_s7 + $0x48] sm:$0xff]  ;;  %v3416_v56 = vld [vmem:[%s5337_s7 + $0x50] sm:$0xff]  ;;  %s4357_s8 = sshll.u32 %s7118_s17, 8  ;;  %s7096_s14 = smov %s7118_s17 }
 0x310   : >> { %3413 = vst [vmem:[%s5333_s4 + $0x40] sm:$0xff] %v3412_v54  ;;  %v3418_v57 = vld [vmem:[%s5337_s7 + $0x58] sm:$0xff]  ;;  %3415 = vst [vmem:[%s5333_s4 + $0x48] sm:$0xff] %v3414_v55  ;;  %v3420_v58 = vld [vmem:[%s5337_s7 + $0x60] sm:$0xff]  ;;  %s6766_s23 = scalar_lea.vmem %s6579_s12, %s4357_s8 [#allocation3]   ;;  %s6769_s25 = scalar_lea.vmem %s6682_s30, %s4357_s8  }
 0x311   : >> { %3417 = vst [vmem:[%s5333_s4 + $0x50] sm:$0xff] %v3416_v56  ;;  %3419 = vst [vmem:[%s5333_s4 + $0x58] sm:$0xff] %v3418_v57  ;;  %v3422_v59 = vld [vmem:[%s5337_s7 + $0x68] sm:$0xff]  ;;  %v3424_v60 = vld [vmem:[%s5337_s7 + $0x70] sm:$0xff] }
 0x312   : >> { %3421 = vst [vmem:[%s5333_s4 + $0x60] sm:$0xff] %v3420_v58  ;;  %3423 = vst [vmem:[%s5333_s4 + $0x68] sm:$0xff] %v3422_v59  ;;  %v3426_v61 = vld [vmem:[%s5337_s7 + $0x78] sm:$0xff]  ;;  %v3428_v62 = vld [vmem:[%s5337_s7 + $0x80] sm:$0xff] }
 0x313   : >> { %3425 = vst [vmem:[%s5333_s4 + $0x70] sm:$0xff] %v3424_v60  ;;  %v3430_v63 = vld [vmem:[%s5337_s7 + $0x88] sm:$0xff]  ;;  %3461 = vst [vmem:[%s5333_s4 + $0x3a4] sm:$0xff] %v3424_v60  ;;  %v3432_v36 = vld [vmem:[%s5337_s7 + $0x90] sm:$0xff] }
 0x314   : >> { %3427 = vst [vmem:[%s5333_s4 + $0x78] sm:$0xff] %v3426_v61  ;;  %3429 = vst [vmem:[%s5333_s4 + $0x80] sm:$0xff] %v3428_v62  ;;  %v3434_v1 = vld [vmem:[%s5337_s7 + $0x98] sm:$0xff]  ;;  %v3436_v2 = vld [vmem:[%s5337_s7 + $0xa0] sm:$0xff] }
 0x315   : >> { %3431 = vst [vmem:[%s5333_s4 + $0x88] sm:$0xff] %v3430_v63  ;;  %3463 = vst [vmem:[%s5333_s4 + $0x3ac] sm:$0xff] %v3426_v61  ;;  %v3438_v3 = vld [vmem:[%s5337_s7 + $0xa8] sm:$0xff]  ;;  %v3440_v4 = vld [vmem:[%s5337_s7 + $0xb0] sm:$0xff] }
 0x316   : >> { %3465 = vst [vmem:[%s5333_s4 + $0x3b4] sm:$0xff] %v3428_v62  ;;  %3467 = vst [vmem:[%s5333_s4 + $0x3bc] sm:$0xff] %v3430_v63  ;;  %v3442_v5 = vld [vmem:[%s5337_s7 + $0xb8] sm:$0xff]  ;;  %v3444_v6 = vld [vmem:[%s5337_s7 + $0xc0] sm:$0xff] }
 0x317   : >> { %3433 = vst [vmem:[%s5333_s4 + $0x90] sm:$0xff] %v3432_v36  ;;  %3435 = vst [vmem:[%s5333_s4 + $0x98] sm:$0xff] %v3434_v1  ;;  %v3446_v7 = vld [vmem:[%s5337_s7 + $0xc8] sm:$0xff]  ;;  %v3448_v8 = vld [vmem:[%s5337_s7 + $0xd0] sm:$0xff] }
 0x318   : >> { %3437 = vst [vmem:[%s5333_s4 + $0xa0] sm:$0xff] %v3436_v2  ;;  %3469 = vst [vmem:[%s5333_s4 + $0x3c4] sm:$0xff] %v3432_v36  ;;  %v3450_v9 = vld [vmem:[%s5337_s7 + $0xd8] sm:$0xff]  ;;  %v3452_v10 = vld [vmem:[%s5337_s7 + $0xe0] sm:$0xff] }
 0x319   : >> { %3471 = vst [vmem:[%s5333_s4 + $0x3cc] sm:$0xff] %v3434_v1  ;;  %3473 = vst [vmem:[%s5333_s4 + $0x3d4] sm:$0xff] %v3436_v2  ;;  %v3454_v11 = vld [vmem:[%s5337_s7 + $0xe8] sm:$0xff]  ;;  %v3456_v12 = vld [vmem:[%s5337_s7 + $0xf0] sm:$0xff] }
 0x31a   : >> { %3439 = vst [vmem:[%s5333_s4 + $0xa8] sm:$0xff] %v3438_v3  ;;  %3441 = vst [vmem:[%s5333_s4 + $0xb0] sm:$0xff] %v3440_v4  ;;  %v3458_v13 = vld [vmem:[%s5337_s7 + $0xf8] sm:$0xff]  ;;  %v3496_v14 = vld [vmem:[%s5337_s7 + $0x100] sm:$0xff] }
 0x31b   : >> { %3443 = vst [vmem:[%s5333_s4 + $0xb8] sm:$0xff] %v3442_v5  ;;  %3475 = vst [vmem:[%s5333_s4 + $0x3dc] sm:$0xff] %v3438_v3  ;;  %v3498_v15 = vld [vmem:[%s5337_s7 + $0x108] sm:$0xff]  ;;  %v3500_v16 = vld [vmem:[%s5337_s7 + $0x110] sm:$0xff] }
 0x31c   : >> { %3477 = vst [vmem:[%s5333_s4 + $0x3e4] sm:$0xff] %v3440_v4  ;;  %3479 = vst [vmem:[%s5333_s4 + $0x3ec] sm:$0xff] %v3442_v5  ;;  %v3502_v17 = vld [vmem:[%s5337_s7 + $0x118] sm:$0xff]  ;;  %v3504_v18 = vld [vmem:[%s5337_s7 + $0x120] sm:$0xff] }
 0x31d   : >> { %3445 = vst [vmem:[%s5333_s4 + $0xc0] sm:$0xff] %v3444_v6  ;;  %3447 = vst [vmem:[%s5333_s4 + $0xc8] sm:$0xff] %v3446_v7  ;;  %v3506_v19 = vld [vmem:[%s5337_s7 + $0x128] sm:$0xff]  ;;  %v3508_v20 = vld [vmem:[%s5337_s7 + $0x130] sm:$0xff] }
 0x31e   : >> { %3449 = vst [vmem:[%s5333_s4 + $0xd0] sm:$0xff] %v3448_v8  ;;  %3481 = vst [vmem:[%s5333_s4 + $0x3f4] sm:$0xff] %v3444_v6  ;;  %v3510_v22 = vld [vmem:[%s5337_s7 + $0x138] sm:$0xff]  ;;  %v3512_v23 = vld [vmem:[%s5337_s7 + $0x140] sm:$0xff] }
 0x31f   : >> { %3483 = vst [vmem:[%s5333_s4 + $0x3fc] sm:$0xff] %v3446_v7  ;;  %3485 = vst [vmem:[%s5333_s4 + $0x404] sm:$0xff] %v3448_v8  ;;  %v3514_v24 = vld [vmem:[%s5337_s7 + $0x148] sm:$0xff]  ;;  %v3516_v25 = vld [vmem:[%s5337_s7 + $0x150] sm:$0xff] }
 0x320   : >> { %3451 = vst [vmem:[%s5333_s4 + $0xd8] sm:$0xff] %v3450_v9  ;;  %3453 = vst [vmem:[%s5333_s4 + $0xe0] sm:$0xff] %v3452_v10  ;;  %v3518_v26 = vld [vmem:[%s5337_s7 + $0x158] sm:$0xff]  ;;  %v3520_v27 = vld [vmem:[%s5337_s7 + $0x160] sm:$0xff] }
 0x321   : >> { %3455 = vst [vmem:[%s5333_s4 + $0xe8] sm:$0xff] %v3454_v11  ;;  %3487 = vst [vmem:[%s5333_s4 + $0x40c] sm:$0xff] %v3450_v9  ;;  %v3522_v28 = vld [vmem:[%s5337_s7 + $0x168] sm:$0xff]  ;;  %s7095_s7 = smov %s6766_s23 }
 0x322   : >> { %3489 = vst [vmem:[%s5333_s4 + $0x414] sm:$0xff] %v3452_v10  ;;  %3491 = vst [vmem:[%s5333_s4 + $0x41c] sm:$0xff] %v3454_v11 }
 0x323   : >> { %3457 = vst [vmem:[%s5333_s4 + $0xf0] sm:$0xff] %v3456_v12  ;;  %3459 = vst [vmem:[%s5333_s4 + $0xf8] sm:$0xff] %v3458_v13 }
 0x324   : >> { %3493 = vst [vmem:[%s5333_s4 + $0x424] sm:$0xff] %v3456_v12  ;;  %3495 = vst [vmem:[%s5333_s4 + $0x42c] sm:$0xff] %v3458_v13 }
 0x325   : >> { %3497 = vst [vmem:[%s5333_s4 + $0x434] sm:$0xff] %v3496_v14  ;;  %3499 = vst [vmem:[%s5333_s4 + $0x43c] sm:$0xff] %v3498_v15  ;;  %3392 = sbr.rel (!%p3389_p8) target bundleno = 779 (0x30b), region = 279 }
 0x326   : >> { %3501 = vst [vmem:[%s5333_s4 + $0x444] sm:$0xff] %v3500_v16  ;;  %3503 = vst [vmem:[%s5333_s4 + $0x44c] sm:$0xff] %v3502_v17 }
 0x327   : >> { %3505 = vst [vmem:[%s5333_s4 + $0x454] sm:$0xff] %v3504_v18  ;;  %3507 = vst [vmem:[%s5333_s4 + $0x45c] sm:$0xff] %v3506_v19 }
 0x328   : >> { %3509 = vst [vmem:[%s5333_s4 + $0x464] sm:$0xff] %v3508_v20  ;;  %3511 = vst [vmem:[%s5333_s4 + $0x46c] sm:$0xff] %v3510_v22 }
 0x329   : >> { %3513 = vst [vmem:[%s5333_s4 + $0x474] sm:$0xff] %v3512_v23  ;;  %3515 = vst [vmem:[%s5333_s4 + $0x47c] sm:$0xff] %v3514_v24 }
 0x32a   : >> { %3517 = vst [vmem:[%s5333_s4 + $0x484] sm:$0xff] %v3516_v25  ;;  %3519 = vst [vmem:[%s5333_s4 + $0x48c] sm:$0xff] %v3518_v26 }
 0x32b   : >> { %3521 = vst [vmem:[%s5333_s4 + $0x494] sm:$0xff] %v3520_v27  ;;  %3523 = vst [vmem:[%s5333_s4 + $0x49c] sm:$0xff] %v3522_v28  ;;  %s7094_s4 = smov %s6769_s25 }
 0x32c PF: > { %s6853_s26 = sand.u32 31, %s3383_s15   ;;  %s4411_s27 = sshll.u32 %s6695_s28, 12 }
 0x32d   : > { %s3535_s18 = sshra.s32 %s4411_s27, 4  ;;  %p4362_p9 = scmp.le.s32.totalorder %s6853_s26, 0 }
 0x32e   : > { %s6857_s24 = scalar_lea.vmem %s6579_s12, %s3535_s18 [#allocation3]   ;;  %s3539_s29 = scalar_lea.vmem %s6682_s30, %s3535_s18  }
 0x32f   : > { %3926 = sbr.rel (%p4362_p9) target bundleno = 832 (0x340), region = 284  ;;  %s5347_s9 = smov (!%p4362_p9), %s3539_s29  }
 0x330   : > { %s5351_s10 = smov (!%p4362_p9), %s6857_s24   ;;  %s5355_s5 = smov (!%p4362_p9), 0  }
 0x331   : > { %s5359_s21 = smov (!%p4362_p9), 0  }
 0x336 LB: >> { %v3551_v29 = vld [vmem:[%s5353_s10] sm:$0xff]  ;;  %v3553_v30 = vld [vmem:[%s5353_s10 + $0x70] sm:$0xff]  ;;  %s3555_s22 = sadd.s32 1, %s5357_s5  ;;  %s3545_s21 = sadd.s32 1, %s5361_s21   ;;  %s5361_s21 = sphi %s5359_s21, %s3545_s21   ;;  %s5357_s5 = sphi %s5355_s5, %s5356_s5   ;;  %s5353_s10 = sphi %s5351_s10, %s3560_s10   ;;  %s5349_s9 = sphi %s5347_s9, %s3561_s9  }
 0x337   : >> { %3552 = vst [vmem:[%s5349_s9] sm:$0xff] %v3551_v29  ;;  %3554 = vst [vmem:[%s5349_s9 + $0x3a4] sm:$0xff] %v3553_v30  ;;  %p3556_p10 = scmp.ge.s32.totalorder %s3555_s22, %s6853_s26  ;;  %p3544_p11 = scmp.ge.s32.totalorder %s3545_s21, %s6853_s26 }
 0x339   : >> { %s7120_s22 = smov (%p3556_p10, %s3555_s22), 0  ;;  %3547 = sbr.rel (!%p3544_p11) target bundleno = 822 (0x336), region = 290 }
 0x33a   : >> { %s4363_s15 = sshll.u32 %s7120_s22, 3  ;;  %s5356_s5 = smov %s7120_s22  }
 0x33b   : >> { %s3560_s10 = scalar_lea.vmem %s6857_s24, %s4363_s15 [#allocation3]   ;;  %s3561_s9 = scalar_lea.vmem %s3539_s29, %s4363_s15  }
 0x340 PF: > { %3564 = sbr.rel (%p3379_p5) target bundleno = 903 (0x387), region = 143  ;;  %s3566_s28 = ssub.s32 (!%p3379_p5), %s6684_s6, %s6688_s20 }
 0x341   : > { %s3570_s4 = sshrl.u32 (!%p3379_p5), %s6684_s6, 3  ;;  %s6871_s7 = scalar_lea.vmem (!%p3379_p5), %s6579_s12, %s3566_s28 [#allocation3] }
 0x342   : > { %s6874_s14 = scalar_lea.vmem (!%p3379_p5), %s6682_s30, %s3566_s28  ;;  %s6878_s11 = sshrl.u32 (!%p3379_p5), %s3570_s4, 5 }
 0x343   : > { %p4365_p12 = scmp.le.s32.totalorder (!%p3379_p5), %s6878_s11, 0 }
 0x347   : > { %3940 = sbr.rel (%p4365_p12) target bundleno = 879 (0x36f), region = 295  ;;  %s7097_s17 = smov (!%p4365_p12), %s6682_s30 }
 0x348   : > { %s7098_s8 = smov (!%p4365_p12), %s6579_s12  ;;  %s6887_s23 = smov (!%p4365_p12), 0  }
 0x349   : > { %s6889_s25 = smov (!%p4365_p12), 0  }
 0x34e LB: >> { %v3583_v31 = vld [vmem:[%s5369_s8] sm:$0xff]  ;;  %v3585_v32 = vld [vmem:[%s5369_s8 + $0x8] sm:$0xff]  ;;  %v3587_v33 = vld [vmem:[%s5369_s8 + $0x10] sm:$0xff]  ;;  %s3711_s26 = sadd.s32 1, %s5373_s23  ;;  %s3577_s25 = sadd.s32 1, %s5377_s25   ;;  %s5377_s25 = sphi %s6889_s25, %s3577_s25   ;;  %s5373_s23 = sphi %s6887_s23, %s7101_s23   ;;  %s5369_s8 = sphi %s7098_s8, %s7100_s8   ;;  %s5365_s17 = sphi %s7097_s17, %s7099_s17  }
 0x34f   : >> { %3584 = vst [vmem:[%s5365_s17] sm:$0xff] %v3583_v31  ;;  %3586 = vst [vmem:[%s5365_s17 + $0x8] sm:$0xff] %v3585_v32  ;;  %v3589_v34 = vld [vmem:[%s5369_s8 + $0x18] sm:$0xff]  ;;  %v3591_v35 = vld [vmem:[%s5369_s8 + $0x20] sm:$0xff]  ;;  %p3712_p13 = scmp.ge.s32.totalorder %s3711_s26, %s6878_s11  ;;  %p3576_p0 = scmp.ge.s32.totalorder %s3577_s25, %s6878_s11 }
 0x350   : >> { %3588 = vst [vmem:[%s5365_s17 + $0x10] sm:$0xff] %v3587_v33  ;;  %v3593_v37 = vld [vmem:[%s5369_s8 + $0x28] sm:$0xff]  ;;  %3590 = vst [vmem:[%s5365_s17 + $0x18] sm:$0xff] %v3589_v34  ;;  %v3595_v38 = vld [vmem:[%s5369_s8 + $0x30] sm:$0xff] }
 0x351   : >> { %3592 = vst [vmem:[%s5365_s17 + $0x20] sm:$0xff] %v3591_v35  ;;  %3594 = vst [vmem:[%s5365_s17 + $0x28] sm:$0xff] %v3593_v37  ;;  %v3597_v0 = vld [vmem:[%s5369_s8 + $0x38] sm:$0xff]  ;;  %v3599_v21 = vld [vmem:[%s5369_s8 + $0x40] sm:$0xff]  ;;  %s7122_s26 = smov (%p3712_p13, %s3711_s26), 0 }
 0x352   : >> { %3596 = vst [vmem:[%s5365_s17 + $0x30] sm:$0xff] %v3595_v38  ;;  %3598 = vst [vmem:[%s5365_s17 + $0x38] sm:$0xff] %v3597_v0  ;;  %v3601_v40 = vld [vmem:[%s5369_s8 + $0x48] sm:$0xff]  ;;  %v3603_v41 = vld [vmem:[%s5369_s8 + $0x50] sm:$0xff]  ;;  %s4366_s27 = sshll.u32 %s7122_s26, 8  ;;  %s7101_s23 = smov %s7122_s26 }
 0x353   : >> { %3600 = vst [vmem:[%s5365_s17 + $0x40] sm:$0xff] %v3599_v21  ;;  %v3605_v42 = vld [vmem:[%s5369_s8 + $0x58] sm:$0xff]  ;;  %3602 = vst [vmem:[%s5365_s17 + $0x48] sm:$0xff] %v3601_v40  ;;  %v3607_v43 = vld [vmem:[%s5369_s8 + $0x60] sm:$0xff]  ;;  %s6949_s18 = scalar_lea.vmem %s6579_s12, %s4366_s27 [#allocation3]   ;;  %s6952_s24 = scalar_lea.vmem %s6682_s30, %s4366_s27  }
 0x354   : >> { %3604 = vst [vmem:[%s5365_s17 + $0x50] sm:$0xff] %v3603_v41  ;;  %3606 = vst [vmem:[%s5365_s17 + $0x58] sm:$0xff] %v3605_v42  ;;  %v3609_v44 = vld [vmem:[%s5369_s8 + $0x68] sm:$0xff]  ;;  %v3611_v45 = vld [vmem:[%s5369_s8 + $0x70] sm:$0xff] }
 0x355   : >> { %3608 = vst [vmem:[%s5365_s17 + $0x60] sm:$0xff] %v3607_v43  ;;  %3610 = vst [vmem:[%s5365_s17 + $0x68] sm:$0xff] %v3609_v44  ;;  %v3613_v46 = vld [vmem:[%s5369_s8 + $0x78] sm:$0xff]  ;;  %v3615_v39 = vld [vmem:[%s5369_s8 + $0x80] sm:$0xff] }
 0x356   : >> { %3612 = vst [vmem:[%s5365_s17 + $0x70] sm:$0xff] %v3611_v45  ;;  %v3617_v47 = vld [vmem:[%s5369_s8 + $0x88] sm:$0xff]  ;;  %3648 = vst [vmem:[%s5365_s17 + $0x3a4] sm:$0xff] %v3611_v45  ;;  %v3619_v48 = vld [vmem:[%s5369_s8 + $0x90] sm:$0xff] }
 0x357   : >> { %3614 = vst [vmem:[%s5365_s17 + $0x78] sm:$0xff] %v3613_v46  ;;  %3616 = vst [vmem:[%s5365_s17 + $0x80] sm:$0xff] %v3615_v39  ;;  %v3621_v49 = vld [vmem:[%s5369_s8 + $0x98] sm:$0xff]  ;;  %v3623_v50 = vld [vmem:[%s5369_s8 + $0xa0] sm:$0xff] }
 0x358   : >> { %3618 = vst [vmem:[%s5365_s17 + $0x88] sm:$0xff] %v3617_v47  ;;  %3650 = vst [vmem:[%s5365_s17 + $0x3ac] sm:$0xff] %v3613_v46  ;;  %v3625_v51 = vld [vmem:[%s5369_s8 + $0xa8] sm:$0xff]  ;;  %v3627_v52 = vld [vmem:[%s5369_s8 + $0xb0] sm:$0xff] }
 0x359   : >> { %3652 = vst [vmem:[%s5365_s17 + $0x3b4] sm:$0xff] %v3615_v39  ;;  %3654 = vst [vmem:[%s5365_s17 + $0x3bc] sm:$0xff] %v3617_v47  ;;  %v3629_v53 = vld [vmem:[%s5369_s8 + $0xb8] sm:$0xff]  ;;  %v3631_v54 = vld [vmem:[%s5369_s8 + $0xc0] sm:$0xff] }
 0x35a   : >> { %3620 = vst [vmem:[%s5365_s17 + $0x90] sm:$0xff] %v3619_v48  ;;  %3622 = vst [vmem:[%s5365_s17 + $0x98] sm:$0xff] %v3621_v49  ;;  %v3633_v55 = vld [vmem:[%s5369_s8 + $0xc8] sm:$0xff]  ;;  %v3635_v56 = vld [vmem:[%s5369_s8 + $0xd0] sm:$0xff] }
 0x35b   : >> { %3624 = vst [vmem:[%s5365_s17 + $0xa0] sm:$0xff] %v3623_v50  ;;  %3656 = vst [vmem:[%s5365_s17 + $0x3c4] sm:$0xff] %v3619_v48  ;;  %v3637_v57 = vld [vmem:[%s5369_s8 + $0xd8] sm:$0xff]  ;;  %v3639_v58 = vld [vmem:[%s5369_s8 + $0xe0] sm:$0xff] }
 0x35c   : >> { %3658 = vst [vmem:[%s5365_s17 + $0x3cc] sm:$0xff] %v3621_v49  ;;  %3660 = vst [vmem:[%s5365_s17 + $0x3d4] sm:$0xff] %v3623_v50  ;;  %v3641_v59 = vld [vmem:[%s5369_s8 + $0xe8] sm:$0xff]  ;;  %v3643_v60 = vld [vmem:[%s5369_s8 + $0xf0] sm:$0xff] }
 0x35d   : >> { %3626 = vst [vmem:[%s5365_s17 + $0xa8] sm:$0xff] %v3625_v51  ;;  %3628 = vst [vmem:[%s5365_s17 + $0xb0] sm:$0xff] %v3627_v52  ;;  %v3645_v61 = vld [vmem:[%s5369_s8 + $0xf8] sm:$0xff]  ;;  %v3683_v62 = vld [vmem:[%s5369_s8 + $0x100] sm:$0xff] }
 0x35e   : >> { %3630 = vst [vmem:[%s5365_s17 + $0xb8] sm:$0xff] %v3629_v53  ;;  %3662 = vst [vmem:[%s5365_s17 + $0x3dc] sm:$0xff] %v3625_v51  ;;  %v3685_v63 = vld [vmem:[%s5369_s8 + $0x108] sm:$0xff]  ;;  %v3687_v36 = vld [vmem:[%s5369_s8 + $0x110] sm:$0xff] }
 0x35f   : >> { %3664 = vst [vmem:[%s5365_s17 + $0x3e4] sm:$0xff] %v3627_v52  ;;  %3666 = vst [vmem:[%s5365_s17 + $0x3ec] sm:$0xff] %v3629_v53  ;;  %v3689_v1 = vld [vmem:[%s5369_s8 + $0x118] sm:$0xff]  ;;  %v3691_v2 = vld [vmem:[%s5369_s8 + $0x120] sm:$0xff] }
 0x360   : >> { %3632 = vst [vmem:[%s5365_s17 + $0xc0] sm:$0xff] %v3631_v54  ;;  %3634 = vst [vmem:[%s5365_s17 + $0xc8] sm:$0xff] %v3633_v55  ;;  %v3693_v3 = vld [vmem:[%s5369_s8 + $0x128] sm:$0xff]  ;;  %v3695_v4 = vld [vmem:[%s5369_s8 + $0x130] sm:$0xff] }
 0x361   : >> { %3636 = vst [vmem:[%s5365_s17 + $0xd0] sm:$0xff] %v3635_v56  ;;  %3668 = vst [vmem:[%s5365_s17 + $0x3f4] sm:$0xff] %v3631_v54  ;;  %v3697_v5 = vld [vmem:[%s5369_s8 + $0x138] sm:$0xff]  ;;  %v3699_v6 = vld [vmem:[%s5369_s8 + $0x140] sm:$0xff] }
 0x362   : >> { %3670 = vst [vmem:[%s5365_s17 + $0x3fc] sm:$0xff] %v3633_v55  ;;  %3672 = vst [vmem:[%s5365_s17 + $0x404] sm:$0xff] %v3635_v56  ;;  %v3701_v7 = vld [vmem:[%s5369_s8 + $0x148] sm:$0xff]  ;;  %v3703_v8 = vld [vmem:[%s5369_s8 + $0x150] sm:$0xff] }
 0x363   : >> { %3638 = vst [vmem:[%s5365_s17 + $0xd8] sm:$0xff] %v3637_v57  ;;  %3640 = vst [vmem:[%s5365_s17 + $0xe0] sm:$0xff] %v3639_v58  ;;  %v3705_v9 = vld [vmem:[%s5369_s8 + $0x158] sm:$0xff]  ;;  %v3707_v10 = vld [vmem:[%s5369_s8 + $0x160] sm:$0xff] }
 0x364   : >> { %3642 = vst [vmem:[%s5365_s17 + $0xe8] sm:$0xff] %v3641_v59  ;;  %3674 = vst [vmem:[%s5365_s17 + $0x40c] sm:$0xff] %v3637_v57  ;;  %v3709_v11 = vld [vmem:[%s5369_s8 + $0x168] sm:$0xff]  ;;  %s7100_s8 = smov %s6949_s18 }
 0x365   : >> { %3676 = vst [vmem:[%s5365_s17 + $0x414] sm:$0xff] %v3639_v58  ;;  %3678 = vst [vmem:[%s5365_s17 + $0x41c] sm:$0xff] %v3641_v59 }
 0x366   : >> { %3644 = vst [vmem:[%s5365_s17 + $0xf0] sm:$0xff] %v3643_v60  ;;  %3646 = vst [vmem:[%s5365_s17 + $0xf8] sm:$0xff] %v3645_v61 }
 0x367   : >> { %3680 = vst [vmem:[%s5365_s17 + $0x424] sm:$0xff] %v3643_v60  ;;  %3682 = vst [vmem:[%s5365_s17 + $0x42c] sm:$0xff] %v3645_v61 }
 0x368   : >> { %3684 = vst [vmem:[%s5365_s17 + $0x434] sm:$0xff] %v3683_v62  ;;  %3686 = vst [vmem:[%s5365_s17 + $0x43c] sm:$0xff] %v3685_v63  ;;  %3579 = sbr.rel (!%p3576_p0) target bundleno = 846 (0x34e), region = 301 }
 0x369   : >> { %3688 = vst [vmem:[%s5365_s17 + $0x444] sm:$0xff] %v3687_v36  ;;  %3690 = vst [vmem:[%s5365_s17 + $0x44c] sm:$0xff] %v3689_v1 }
 0x36a   : >> { %3692 = vst [vmem:[%s5365_s17 + $0x454] sm:$0xff] %v3691_v2  ;;  %3694 = vst [vmem:[%s5365_s17 + $0x45c] sm:$0xff] %v3693_v3 }
 0x36b   : >> { %3696 = vst [vmem:[%s5365_s17 + $0x464] sm:$0xff] %v3695_v4  ;;  %3698 = vst [vmem:[%s5365_s17 + $0x46c] sm:$0xff] %v3697_v5 }
 0x36c   : >> { %3700 = vst [vmem:[%s5365_s17 + $0x474] sm:$0xff] %v3699_v6  ;;  %3702 = vst [vmem:[%s5365_s17 + $0x47c] sm:$0xff] %v3701_v7 }
 0x36d   : >> { %3704 = vst [vmem:[%s5365_s17 + $0x484] sm:$0xff] %v3703_v8  ;;  %3706 = vst [vmem:[%s5365_s17 + $0x48c] sm:$0xff] %v3705_v9 }
 0x36e   : >> { %3708 = vst [vmem:[%s5365_s17 + $0x494] sm:$0xff] %v3707_v10  ;;  %3710 = vst [vmem:[%s5365_s17 + $0x49c] sm:$0xff] %v3709_v11  ;;  %s7099_s17 = smov %s6952_s24 }
 0x36f PF: > { %s7036_s29 = sand.u32 31, %s3570_s4   ;;  %s4413_s9 = sshll.u32 %s6878_s11, 12 }
 0x370   : > { %s3722_s10 = sshra.s32 %s4413_s9, 4  ;;  %p4371_p1 = scmp.le.s32.totalorder %s7036_s29, 0 }
 0x371   : > { %s7040_s5 = scalar_lea.vmem %s6579_s12, %s3722_s10 [#allocation3]   ;;  %s3726_s21 = scalar_lea.vmem %s6682_s30, %s3722_s10  }
 0x372   : > { %3954 = sbr.rel (%p4371_p1) target bundleno = 899 (0x383), region = 306  ;;  %s5379_s22 = smov (!%p4371_p1), %s3726_s21  }
 0x373   : > { %s5383_s15 = smov (!%p4371_p1), %s7040_s5   ;;  %s5387_s28 = smov (!%p4371_p1), 0  }
 0x374   : > { %s5391_s17 = smov (!%p4371_p1), 0  }
 0x379 LB: >> { %v3738_v12 = vld [vmem:[%s5385_s15] sm:$0xff]  ;;  %v3740_v13 = vld [vmem:[%s5385_s15 + $0x70] sm:$0xff]  ;;  %s3742_s4 = sadd.s32 1, %s5389_s28  ;;  %s3732_s17 = sadd.s32 1, %s5393_s17   ;;  %s5393_s17 = sphi %s5391_s17, %s3732_s17   ;;  %s5389_s28 = sphi %s5387_s28, %s5388_s28   ;;  %s5385_s15 = sphi %s5383_s15, %s3747_s15   ;;  %s5381_s22 = sphi %s5379_s22, %s3748_s22  }
 0x37a   : >> { %3739 = vst [vmem:[%s5381_s22] sm:$0xff] %v3738_v12  ;;  %3741 = vst [vmem:[%s5381_s22 + $0x3a4] sm:$0xff] %v3740_v13  ;;  %p3743_p2 = scmp.ge.s32.totalorder %s3742_s4, %s7036_s29  ;;  %p3731_p3 = scmp.ge.s32.totalorder %s3732_s17, %s7036_s29 }
 0x37c   : >> { %s7124_s4 = smov (%p3743_p2, %s3742_s4), 0  ;;  %3734 = sbr.rel (!%p3731_p3) target bundleno = 889 (0x379), region = 312 }
 0x37d   : >> { %s4372_s11 = sshll.u32 %s7124_s4, 3  ;;  %s5388_s28 = smov %s7124_s4  }
 0x37e   : >> { %s3747_s15 = scalar_lea.vmem %s7040_s5, %s4372_s11 [#allocation3]   ;;  %s3748_s22 = scalar_lea.vmem %s3726_s21, %s4372_s11  }
 0x383 PF: > { %s5398_s8 = smov 0  }
 0x384   : > { %s3749_s23 = sshllo.u32 %s5398_s8, %s6688_s20 }
 0x385   : > { %v3758_v14 = vld [vmem:[%s6871_s7] sm:%s3749_s23]  ;;  %v3760_v15 = vld [vmem:[%s6871_s7 + $0x70] sm:%s3749_s23] }
 0x386   : > { %3759 = vst [vmem:[%s6874_s14] sm:%s3749_s23] %v3758_v14  ;;  %3761 = vst [vmem:[%s6874_s14 + $0x3a4] sm:%s3749_s23] %v3760_v15 }
 0x387 PF: > { %p4374_p5 = scmp.ge.u32.totalorder %s6684_s6, 8 }
 0x388   : > { %s5399_s25 = smov (!%p4374_p5), 0  }
 0x389   : > { %3364 = sbr.rel (%p4374_p5) target bundleno = 912 (0x390), region = 114  ;;  %s3365_s26 = sshllo.u32 (!%p4374_p5), %s5399_s25, %s6684_s6 }
 0x38a   : > { %v3374_v16 = vld [vmem:[%s6579_s12] sm:%s3365_s26] (!%p4374_p5)  ;;  %v3376_v17 = vld [vmem:[%s6579_s12 + $0x70] sm:%s3365_s26] (!%p4374_p5) }
 0x38b   : > { %3375 = vst [vmem:[%s6682_s30] sm:%s3365_s26] (!%p4374_p5), %v3374_v16  ;;  %3377 = vst [vmem:[%s6682_s30 + $0x3a4] sm:%s3365_s26] (!%p4374_p5), %v3376_v17 }
 0x390 PF: > { %p10_p4 = scmp.ge.s32.totalorder %s5439_s16, 11   ;;  %s7102_s12 = smov %s5261_s13 }
 0x391   : > { %s7103_s13 = smov %s5449_s19  ;;  %s7104_s14 = smov %s5439_s16 }
 0x392   :  { %12 = sbr.rel (!%p10_p4) target bundleno = 2 (0x2), region = 323 }

// kernel: multimodal_forward.15
= control target key start
LH: loop header
LB: loop body
LE: loop exit
PB: predicated region body
PF: predicated region fallthrough
CT: control target
= control target key end

     0   :  { %vm18_vm0 = vcmask 680960   ;;  %v207_v0 = vmov 0.0|0.0   ;;  %v208_v4 = vmov 0.0   ;;  %vm209_vm1 = vmmov 0   ;;  %s287_s1 = inlined_call_operand.vmem [shape: f32[120,84], index: 1, kind: input, shape index: {}]   ;;  %s288_s0 = inlined_call_operand.vmem [shape: f32[2,120], index: 0, kind: input, shape index: {}]   ;;  %s289_s2 = inlined_call_operand.vmem [shape: f32[1,84], index: 2, kind: input, shape index: {}]   ;;  %s290_s3 = inlined_call_operand.vmem [shape: f32[2,84], index: 3, kind: output, shape index: {}]  }
   0x1   :  { %183 = vmatprep.subr.bf16.mxu0 %v207_v0  ;;  %v22_v1 = vld [vmem:[%s287_s1] sm:$0xff]  ;;  %v23_v2 = vld [vmem:[%s287_s1 + $0x8] sm:$0xff]  ;;  %v24_v3 = vld [vmem:[%s287_s1 + $0x10] sm:$0xff]  ;;  %19 = vst.msk [vmem:[#allocation2] sm:$0x3] %vm18_vm0, %v208_v4  ;;  %180 = vmatprep.mubr.msk.f32.mxu0 %vm209_vm1, %v208_v4  ;;  %vm37_vm2 = vcmask 982016  }
   0x2   :  { %v184_v5 = vpack.c.bf16 %v23_v2, %v22_v1  ;;  %v25_v6 = vld [vmem:[%s287_s1 + $0x18] sm:$0xff]  ;;  %v26_v8 = vld [vmem:[%s287_s1 + $0x20] sm:$0xff]  ;;  %v27_v9 = vld [vmem:[%s287_s1 + $0x28] sm:$0xff] }
   0x3   :  { %v187_v7 = vpack.c.bf16 %v25_v6, %v24_v3  ;;  %v190_v10 = vpack.c.bf16 %v27_v9, %v26_v8  ;;  %v28_v11 = vld [vmem:[%s287_s1 + $0x30] sm:$0xff]  ;;  %v29_v12 = vld [vmem:[%s287_s1 + $0x38] sm:$0xff]  ;;  %v30_v14 = vld [vmem:[%s287_s1 + $0x40] sm:$0xff] }
   0x4   :  { %185 = vmatpush3.bf16.msra.mxu0 %v184_v5  ;;  %v193_v13 = vpack.c.bf16 %v29_v12, %v28_v11  ;;  %v31_v15 = vld [vmem:[%s287_s1 + $0x48] sm:$0xff]  ;;  %v32_v17 = vld [vmem:[%s287_s1 + $0x50] sm:$0xff]  ;;  %v33_v18 = vld [vmem:[%s287_s1 + $0x58] sm:$0xff] }
   0x5   :  { %186 = vmatprep.subr.bf16.mxu0 %v207_v0  ;;  %v196_v16 = vpack.c.bf16 %v31_v15, %v30_v14  ;;  %v199_v19 = vpack.c.bf16 %v33_v18, %v32_v17  ;;  %v34_v20 = vld [vmem:[%s287_s1 + $0x60] sm:$0xff]  ;;  %v35_v21 = vld [vmem:[%s287_s1 + $0x68] sm:$0xff]  ;;  %v36_v23 = vld [vmem:[%s287_s1 + $0x70] sm:$0xff] }
   0x6   :  { %v202_v22 = vpack.c.bf16 %v35_v21, %v34_v20  ;;  %v21_v24 = vld [vmem:[%s288_s0] sm:$0x3] }
   0x7   :  { %v133_v29 = vld [vmem:[%s289_s2] ss:$0 sm:$0xff] }
   0x8   :  { %188 = vmatpush3.bf16.msra.mxu0 %v187_v7  ;;  %v20_v25 = vld [vmem:[#allocation2] sm:$0x3] }
   0x9   :  { %189 = vmatprep.subr.bf16.mxu0 %v207_v0 }
   0xc   :  { %191 = vmatpush3.bf16.msra.mxu0 %v190_v10 }
   0xd   :  { %192 = vmatprep.subr.bf16.mxu0 %v207_v0 }
  0x10   :  { %194 = vmatpush3.bf16.msra.mxu0 %v193_v13 }
  0x11   :  { %195 = vmatprep.subr.bf16.mxu0 %v207_v0 }
  0x14   :  { %197 = vmatpush3.bf16.msra.mxu0 %v196_v16 }
  0x15   :  { %198 = vmatprep.subr.bf16.mxu0 %v207_v0 }
  0x18   :  { %200 = vmatpush3.bf16.msra.mxu0 %v199_v19 }
  0x19   :  { %201 = vmatprep.subr.bf16.mxu0 %v207_v0 }
  0x1c   :  { %203 = vmatpush3.bf16.msra.mxu0 %v202_v22 }
  0x1d   :  { %178 = vmatprep.subr.mxu0 %v208_v4 }
  0x20   :  { %179 = vmatpush3.msra.mxu0 %v36_v23 }
  0x21   :  { %181 = vmatmul.mubr.msk.f32.vlgmr.msra.gmra.mrb[0].mxu0 %vm37_vm2, %v21_v24 }
  0xf4   :  { %v107_v26 = vpop.f32.mrb[0].mxu0 }
  0xf5   :  { %v111_v27 = vadd.f32 %v107_v26, %v20_v25  ;;  %v182_v28 = vpop.f32.mrb[1].mxu0 }
  0xf7   :  { %113 = vst.msk [vmem:[#allocation2] sm:$0x3] %vm18_vm0, %v111_v27 }
  0xfe   :  { %v117_v30 = vld [vmem:[#allocation2] sm:$0x3] }
  0xff   :  { %v125_v31 = vadd.f32 %v133_v29, %v117_v30 }
 0x101   :  { %v126_v32 = vmax.f32 %v125_v31, 0.0 }
 0x103   :  { %127 = vst.msk [vmem:[%s290_s3] sm:$0x3] %vm18_vm0, %v126_v32 }

// kernel: multimodal_forward.14
= control target key start
LH: loop header
LB: loop body
LE: loop exit
PB: predicated region body
PF: predicated region fallthrough
CT: control target
= control target key end

     0   :  { %s5072_s9 = smov 0   ;;  %s5074_s10 = smov 0   ;;  %s5527_s0 = inlined_call_operand.vmem [shape: bf16[2,59904], index: 0, kind: input, shape index: {}]   ;;  %s5528_s1 = inlined_call_operand.vmem [shape: bf16[59904,120], index: 1, kind: input, shape index: {}]   ;;  %s5529_s2 = inlined_call_operand.vmem [shape: f32[2,2,120], index: 2, kind: output, shape index: {}]  }
   0x1   :  { %s5076_s11 = smov 0   ;;  %s5078_s12 = smov 0  }
   0x2   :  { %s5080_s13 = smov 0  }
   0x3 LB: > { %s21_s14 = sadd.s32 1, %s5043_s11  ;;  %s24_s15 = sadd.s32 1, %s5047_s12  ;;  %s5051_s13 = sphi %s5080_s13, %s12_s13   ;;  %s5047_s12 = sphi %s5078_s12, %s5533_s12   ;;  %s5043_s11 = sphi %s5076_s11, %s5532_s11   ;;  %s5039_s10 = sphi %s5074_s10, %s5531_s10   ;;  %s5035_s9 = sphi %s5072_s9, %s5530_s9  }
   0x4   : > { %p22_p0 = scmp.ge.s32.totalorder %s21_s14, 6  ;;  %p3886_p1 = scmp.ge.s32.totalorder %s5051_s13, 1 }
   0x5   : > { %p151_p2 = scmp.lt.s32.totalorder %s5051_s13, 13 }
   0x6   : > { %s5535_s14 = smov (%p22_p0, %s21_s14), 0  ;;  %s5537_s15 = smov (!%p22_p0, %s24_s15), %s5047_s12 }
   0x7   : > { %p152_p3 = pnand %p3886_p1, %p151_p2  ;;  %p26_p4 = scmp.ge.s32.totalorder %s5537_s15, 2 }
   0x8   : > { %s180_s16 = smul.u32 (!%p152_p3), 6, %s5039_s10  ;;  %p199_p7 = scmp.lt.s32.totalorder (!%p152_p3), %s5039_s10, 1 }
   0x9   : > { %s5539_s15 = smov (%p26_p4, %s5537_s15), 0  ;;  %155 = sbr.rel (%p152_p3) target bundleno = 578 (0x242), region = 28 }
   0xa   : > { %s181_s17 = sadd.s32 (!%p152_p3), %s5035_s9, %s180_s16  ;;  %p3889_p8 = scmp.ne.s32.totalorder (!%p152_p3), %s5035_s9, 0 }
   0xb   : > { %s182_s18 = smul.u32 (!%p152_p3), 39, %s181_s17 }
   0xc   : > { %s191_s19 = smul.u32 (!%p152_p3), 624, %s181_s17 }
   0xd   : > { %p183_p5 = scmp.lt.s32.totalorder (!%p152_p3), %s182_s18, 467 }
   0xe   : > { %p192_p6 = scmp.lt.s32.totalorder (!%p152_p3), %s191_s19, 7487 }
  0x10   : > { %s5541_s18 = smov (!%p183_p5, %s182_s18), 467  ;;  %s5543_s19 = smov (!%p192_p6, %s191_s19), 7487 }
  0x11   : > { %s5108_s22 = scalar_lea.vmem %s5527_s0, %s5541_s18  ;;  %s3887_s23 = sshll.u32 %s5543_s19, 2  ;;  %vm208_vm0 = vcmask (!%p3889_p8), 975872   ;;  %v5053_v0 = vmov (!%p3889_p8), 0.0  }
  0x12   : > { %s5113_s26 = scalar_lea.vmem %s5528_s1, %s3887_s23  ;;  %s5545_s10 = smov (!%p199_p7, %s5039_s10), 1  ;;  %209 = vst.msk [vmem:[#allocation2] sm:$0x3] (!%p3889_p8), %vm208_vm0, %v5053_v0 }
  0x13   : > { %s3888_s27 = sshll.u32 %s5545_s10, 1  ;;  %207 = sbr.rel (%p3889_p8) target bundleno = 26 (0x1a), region = 32 }
  0x14   : > { %s5118_s30 = scalar_lea.vmem %s5529_s2, %s3888_s27 }
  0x1a PF: > { %v4696_v1 = vld [vmem:[%s5113_s26 + $0x40] sm:$0xff]   ;;  %v4700_v5 = vld [vmem:[%s5113_s26 + $0x48] sm:$0xff]   ;;  %v4704_v9 = vld [vmem:[%s5113_s26 + $0x50] sm:$0xff]   ;;  %v849_v30 = vlaneseq  ;;  %v5054_v36 = vmov 1966171168   ;;  %vm5056_vm1 = vmmov 0  }
  0x1b   : > { %v4697_v2 = vld [vmem:[%s5113_s26 + $0xc0] sm:$0xff]   ;;  %4205 = vmatprep.subr.bf16.mxu0 %v4696_v1  ;;  %v4701_v6 = vld [vmem:[%s5113_s26 + $0xc8] sm:$0xff]   ;;  %v4705_v10 = vld [vmem:[%s5113_s26 + $0xd0] sm:$0xff]   ;;  %v847_v37 = vunpack.c.l.s4 %v5054_v36  ;;  %vm3801_vm2 = vcmask 975872   ;;  %p4202_p9 = scmp.ne.s32.totalorder %s5035_s9, 5 }
  0x1c   : > { %v4698_v3 = vld [vmem:[%s5113_s26] sm:$0xff]   ;;  %4227 = vmatprep.subr.bf16.mxu1 %v4697_v2  ;;  %v4702_v7 = vld [vmem:[%s5113_s26 + $0x8] sm:$0xff]   ;;  %v4706_v11 = vld [vmem:[%s5113_s26 + $0x10] sm:$0xff]   ;;  %v850_v34 = vshrl.u32 %v849_v30, 7 }
  0x1d   : > { %v4699_v4 = vld [vmem:[%s5113_s26 + $0x80] sm:$0xff]   ;;  %4206 = vmatpush3.bf16.msra.mxu0 %v4698_v3  ;;  %v4703_v8 = vld [vmem:[%s5113_s26 + $0x88] sm:$0xff]   ;;  %v4707_v12 = vld [vmem:[%s5113_s26 + $0x90] sm:$0xff]   ;;  %v848_v40 = vunpack.c.0.s8 %v847_v37 }
  0x1e   : > { %4228 = vmatpush3.bf16.msra.mxu1 %v4699_v4  ;;  %4207 = vmatprep.subr.bf16.mxu0 %v4700_v5  ;;  %v4708_v13 = vld [vmem:[%s5113_s26 + $0x58] sm:$0xff]   ;;  %v4712_v17 = vld [vmem:[%s5113_s26 + $0x60] sm:$0xff]   ;;  %v4716_v21 = vld [vmem:[%s5113_s26 + $0x68] sm:$0xff]  }
  0x1f   : > { %4229 = vmatprep.subr.bf16.mxu1 %v4701_v6  ;;  %v4709_v14 = vld [vmem:[%s5113_s26 + $0xd8] sm:$0xff]   ;;  %v4713_v18 = vld [vmem:[%s5113_s26 + $0xe0] sm:$0xff]   ;;  %v4717_v22 = vld [vmem:[%s5113_s26 + $0xe8] sm:$0xff]   ;;  %v5156_v42 = vsub.s32 %v848_v40, %v850_v34 }
  0x20   : > { %v4710_v15 = vld [vmem:[%s5113_s26 + $0x18] sm:$0xff]   ;;  %v4714_v19 = vld [vmem:[%s5113_s26 + $0x20] sm:$0xff]   ;;  %v4718_v23 = vld [vmem:[%s5113_s26 + $0x28] sm:$0xff]  }
  0x21   : > { %4208 = vmatpush3.bf16.msra.mxu0 %v4702_v7  ;;  %v4711_v16 = vld [vmem:[%s5113_s26 + $0x98] sm:$0xff]   ;;  %v4715_v20 = vld [vmem:[%s5113_s26 + $0xa0] sm:$0xff]   ;;  %v4719_v24 = vld [vmem:[%s5113_s26 + $0xa8] sm:$0xff]  }
  0x22   : > { %4230 = vmatpush3.bf16.msra.mxu1 %v4703_v8  ;;  %4209 = vmatprep.subr.bf16.mxu0 %v4704_v9  ;;  %v4720_v25 = vld [vmem:[%s5113_s26 + $0x70] sm:$0xff]   ;;  %v4724_v29 = vld [vmem:[%s5113_s26 + $0x78] sm:$0xff]   ;;  %v4729_v35 = vld [vmem:[%s5113_s26 + $0x140] sm:$0xff]  }
  0x23   : > { %4231 = vmatprep.subr.bf16.mxu1 %v4705_v10  ;;  %v4721_v26 = vld [vmem:[%s5113_s26 + $0xf0] sm:$0xff]   ;;  %v4725_v31 = vld [vmem:[%s5113_s26 + $0xf8] sm:$0xff]   ;;  %v211_v38 = vld [vmem:[%s5108_s22] sm:$0xff] }
  0x24   : > { %v4722_v27 = vld [vmem:[%s5113_s26 + $0x30] sm:$0xff]   ;;  %v4726_v32 = vld [vmem:[%s5113_s26 + $0x38] sm:$0xff]   ;;  %v845_v39 = vcombine.high %v211_v38, %v211_v38  ;;  %v4731_v41 = vld [vmem:[%s5113_s26 + $0x1c0] sm:$0xff]   ;;  %v852_v43 = vrot.slane %v211_v38, %v5156_v42 }
  0x25   : > { %4210 = vmatpush3.bf16.msra.mxu0 %v4706_v11  ;;  %v4723_v28 = vld [vmem:[%s5113_s26 + $0xb0] sm:$0xff]   ;;  %v4727_v33 = vld [vmem:[%s5113_s26 + $0xb8] sm:$0xff]   ;;  %v4730_v48 = vld [vmem:[%s5113_s26 + $0x100] sm:$0xff]  }
  0x26   : > { %4232 = vmatpush3.bf16.msra.mxu1 %v4707_v12  ;;  %4211 = vmatprep.subr.bf16.mxu0 %v4708_v13  ;;  %v5160_v44 = vrot.slane %v845_v39, %v5156_v42  ;;  %v860_v45 = vcombine.high %v852_v43, %v852_v43  ;;  %v868_v46 = vrot.slane %v852_v43, %v5156_v42  ;;  %v4732_v50 = vld [vmem:[%s5113_s26 + $0x180] sm:$0xff]   ;;  %v4733_v53 = vld [vmem:[%s5113_s26 + $0x148] sm:$0xff]   ;;  %v4737_v59 = vld [vmem:[%s5113_s26 + $0x150] sm:$0xff]  }
  0x27   : > { %4233 = vmatprep.subr.bf16.mxu1 %v4709_v14  ;;  %v4734_v55 = vld [vmem:[%s5113_s26 + $0x108] sm:$0xff]   ;;  %v4738_v60 = vld [vmem:[%s5113_s26 + $0x110] sm:$0xff]   ;;  %v4741_v63 = vld [vmem:[%s5113_s26 + $0x158] sm:$0xff]  }
  0x28   : > { %v861_v47 = vcombine.high %v5160_v44, %v5160_v44  ;;  %v882_v49 = vrot.slane %v860_v45, %v5156_v42  ;;  %v890_v52 = vcombine.high %v868_v46, %v868_v46  ;;  %v4735_v56 = vld [vmem:[%s5113_s26 + $0x1c8] sm:$0xff]   ;;  %v4739_v61 = vld [vmem:[%s5113_s26 + $0x1d0] sm:$0xff]   ;;  %v4742_v0 = vld [vmem:[%s5113_s26 + $0x118] sm:$0xff]  }
  0x29   : > { %4212 = vmatpush3.bf16.msra.mxu0 %v4710_v15  ;;  %v4736_v58 = vld [vmem:[%s5113_s26 + $0x188] sm:$0xff]   ;;  %v4740_v62 = vld [vmem:[%s5113_s26 + $0x190] sm:$0xff]   ;;  %v4743_v1 = vld [vmem:[%s5113_s26 + $0x1d8] sm:$0xff]  }
  0x2a   : > { %4234 = vmatpush3.bf16.msra.mxu1 %v4711_v16  ;;  %4213 = vmatprep.subr.bf16.mxu0 %v4712_v17  ;;  %v889_v51 = vrot.slane %v861_v47, %v5156_v42  ;;  %v892_v54 = vcombine.high %v882_v49, %v882_v49  ;;  %v4744_v2 = vld [vmem:[%s5113_s26 + $0x198] sm:$0xff]   ;;  %v4745_v3 = vld [vmem:[%s5113_s26 + $0x160] sm:$0xff]   ;;  %v4749_v7 = vld [vmem:[%s5113_s26 + $0x168] sm:$0xff]  }
  0x2b   : > { %4235 = vmatprep.subr.bf16.mxu1 %v4713_v18  ;;  %3032 = vmatprep.mubr.bf16.mxu0 %v882_v49  ;;  %v4746_v4 = vld [vmem:[%s5113_s26 + $0x120] sm:$0xff]   ;;  %v4750_v8 = vld [vmem:[%s5113_s26 + $0x128] sm:$0xff]   ;;  %v4753_v11 = vld [vmem:[%s5113_s26 + $0x170] sm:$0xff]  }
  0x2c   : > { %v893_v57 = vcombine.high %v889_v51, %v889_v51  ;;  %3072 = vmatprep.mubr.bf16.mxu1 %v892_v54  ;;  %v4747_v5 = vld [vmem:[%s5113_s26 + $0x1e0] sm:$0xff]   ;;  %v4751_v9 = vld [vmem:[%s5113_s26 + $0x1e8] sm:$0xff]   ;;  %v4754_v12 = vld [vmem:[%s5113_s26 + $0x130] sm:$0xff]  }
  0x2d   : > { %4214 = vmatpush3.bf16.msra.mxu0 %v4714_v19  ;;  %v4748_v6 = vld [vmem:[%s5113_s26 + $0x1a0] sm:$0xff]   ;;  %v4752_v10 = vld [vmem:[%s5113_s26 + $0x1a8] sm:$0xff]   ;;  %v4755_v13 = vld [vmem:[%s5113_s26 + $0x1f0] sm:$0xff]   ;;  %v875_v19 = vrot.slane %v5160_v44, %v5156_v42 }
  0x2e   : > { %4236 = vmatpush3.bf16.msra.mxu1 %v4715_v20  ;;  %4215 = vmatprep.subr.bf16.mxu0 %v4716_v21  ;;  %v4756_v14 = vld [vmem:[%s5113_s26 + $0x1b0] sm:$0xff]   ;;  %v4757_v15 = vld [vmem:[%s5113_s26 + $0x178] sm:$0xff]   ;;  %v4761_v20 = vld [vmem:[%s5113_s26 + $0x240] sm:$0xff]  }
  0x2f   : > { %4237 = vmatprep.subr.bf16.mxu1 %v4717_v22  ;;  %v4758_v16 = vld [vmem:[%s5113_s26 + $0x138] sm:$0xff]   ;;  %v4762_v21 = vld [vmem:[%s5113_s26 + $0x200] sm:$0xff]   ;;  %v4770_v30 = vld [vmem:[%s5113_s26 + $0x210] sm:$0xff]  }
  0x30   : > { %v4759_v17 = vld [vmem:[%s5113_s26 + $0x1f8] sm:$0xff]   ;;  %v4763_v22 = vld [vmem:[%s5113_s26 + $0x2c0] sm:$0xff]   ;;  %v4782_v43 = vld [vmem:[%s5113_s26 + $0x228] sm:$0xff]  }
  0x31   : > { %4216 = vmatpush3.bf16.msra.mxu0 %v4718_v23  ;;  %v4760_v18 = vld [vmem:[%s5113_s26 + $0x1b8] sm:$0xff]   ;;  %v4764_v23 = vld [vmem:[%s5113_s26 + $0x280] sm:$0xff]   ;;  %v4783_v44 = vld [vmem:[%s5113_s26 + $0x2e8] sm:$0xff]  }
  0x32   : > { %4238 = vmatpush3.bf16.msra.mxu1 %v4719_v24  ;;  %4217 = vmatprep.subr.bf16.mxu0 %v4720_v25  ;;  %v891_v24 = vcombine.high %v875_v19, %v875_v19  ;;  %v4765_v25 = vld [vmem:[%s5113_s26 + $0x248] sm:$0xff]   ;;  %v4774_v34 = vld [vmem:[%s5113_s26 + $0x218] sm:$0xff]   ;;  %v4777_v37 = vld [vmem:[%s5113_s26 + $0x260] sm:$0xff]  }
  0x33   : > { %4239 = vmatprep.subr.bf16.mxu1 %v4721_v26  ;;  %v4766_v26 = vld [vmem:[%s5113_s26 + $0x208] sm:$0xff]   ;;  %v4776_v36 = vld [vmem:[%s5113_s26 + $0x298] sm:$0xff]   ;;  %v4778_v38 = vld [vmem:[%s5113_s26 + $0x220] sm:$0xff]  }
  0x34   : > { %v4779_v39 = vld [vmem:[%s5113_s26 + $0x2e0] sm:$0xff]   ;;  %v4784_v45 = vld [vmem:[%s5113_s26 + $0x2a8] sm:$0xff]   ;;  %v4785_v47 = vld [vmem:[%s5113_s26 + $0x270] sm:$0xff]  }
  0x35   : > { %4218 = vmatpush3.bf16.msra.mxu0 %v4722_v27  ;;  %v4767_v27 = vld [vmem:[%s5113_s26 + $0x2c8] sm:$0xff]   ;;  %v4780_v40 = vld [vmem:[%s5113_s26 + $0x2a0] sm:$0xff]   ;;  %v4788_v54 = vld [vmem:[%s5113_s26 + $0x2b0] sm:$0xff]  }
  0x36   : > { %4240 = vmatpush3.bf16.msra.mxu1 %v4723_v28  ;;  %4219 = vmatprep.subr.bf16.mxu0 %v4724_v29  ;;  %v4768_v28 = vld [vmem:[%s5113_s26 + $0x288] sm:$0xff]   ;;  %v4769_v29 = vld [vmem:[%s5113_s26 + $0x250] sm:$0xff]  }
  0x37   : > { %4241 = vmatprep.subr.bf16.mxu1 %v4725_v31  ;;  %v4771_v31 = vld [vmem:[%s5113_s26 + $0x2d0] sm:$0xff]  }
  0x39   : > { %4220 = vmatpush3.bf16.msra.mxu0 %v4726_v32  ;;  %v4772_v32 = vld [vmem:[%s5113_s26 + $0x290] sm:$0xff]  }
  0x3a   : > { %4242 = vmatpush3.bf16.msra.mxu1 %v4727_v33  ;;  %4249 = vmatprep.subr.bf16.mxu0 %v4729_v35  ;;  %v4773_v33 = vld [vmem:[%s5113_s26 + $0x258] sm:$0xff]  }
  0x3b   : > { %4271 = vmatprep.subr.bf16.mxu1 %v4731_v41  ;;  %v4775_v35 = vld [vmem:[%s5113_s26 + $0x2d8] sm:$0xff]   ;;  %v4781_v41 = vld [vmem:[%s5113_s26 + $0x268] sm:$0xff]  }
  0x3c   : > { %3033 = vmatmul.mubr.bf16.vlgmr.msra.gmra.mrb[0].mxu0 %v868_v46  ;;  %v212_v46 = vld [vmem:[%s5108_s22 + $0x8] sm:$0xff] }
  0x3d   : > { %4250 = vmatpush3.bf16.msra.mxu0 %v4730_v48  ;;  %3073 = vmatmul.mubr.bf16.vlgmr.msra.gmra.mrb[0].mxu1 %v890_v52  ;;  %v901_v48 = vrot.slane %v212_v46, %v5156_v42  ;;  %v894_v49 = vcombine.high %v212_v46, %v212_v46  ;;  %v4835_v46 = vld [vmem:[%s5113_s26 + $0x410] sm:$0xff]  }
  0x3e   : > { %4251 = vmatprep.subr.bf16.mxu0 %v4733_v53  ;;  %4272 = vmatpush3.bf16.msra.mxu1 %v4732_v50  ;;  %v4786_v50 = vld [vmem:[%s5113_s26 + $0x230] sm:$0xff]  }
  0x3f   : > { %3112 = vmatprep.mubr.bf16.mxu0 %v889_v51  ;;  %4273 = vmatprep.subr.bf16.mxu1 %v4735_v56  ;;  %v4787_v51 = vld [vmem:[%s5113_s26 + $0x2f0] sm:$0xff]   ;;  %v909_v52 = vcombine.high %v901_v48, %v901_v48  ;;  %v5229_v53 = vrot.slane %v894_v49, %v5156_v42  ;;  %v4838_v49 = vld [vmem:[%s5113_s26 + $0x458] sm:$0xff]  }
  0x40   : > { %3152 = vmatprep.mubr.bf16.mxu1 %v893_v57  ;;  %v4790_v57 = vld [vmem:[%s5113_s26 + $0x238] sm:$0xff]  }
  0x41   : > { %4252 = vmatpush3.bf16.msra.mxu0 %v4734_v55  ;;  %v4789_v55 = vld [vmem:[%s5113_s26 + $0x278] sm:$0xff]   ;;  %v931_v56 = vrot.slane %v909_v52, %v5156_v42 }
  0x42   : > { %4253 = vmatprep.subr.bf16.mxu0 %v4737_v59  ;;  %4274 = vmatpush3.bf16.msra.mxu1 %v4736_v58  ;;  %v910_v58 = vcombine.high %v5229_v53, %v5229_v53  ;;  %v4791_v59 = vld [vmem:[%s5113_s26 + $0x2f8] sm:$0xff]  }
  0x43   : > { %4275 = vmatprep.subr.bf16.mxu1 %v4739_v61  ;;  %v4792_v61 = vld [vmem:[%s5113_s26 + $0x2b8] sm:$0xff]  }
  0x44   : > { %v4841_v52 = vld [vmem:[%s5113_s26 + $0x498] sm:$0xff]  }
  0x45   : > { %4254 = vmatpush3.bf16.msra.mxu0 %v4738_v60  ;;  %v941_v60 = vcombine.high %v931_v56, %v931_v56 }
  0x46   : > { %4255 = vmatprep.subr.bf16.mxu0 %v4741_v63  ;;  %4276 = vmatpush3.bf16.msra.mxu1 %v4740_v62  ;;  %v917_v62 = vrot.slane %v901_v48, %v5156_v42  ;;  %v4793_v63 = vld [vmem:[%s5113_s26 + $0x340] sm:$0xff]   ;;  %v4837_v48 = vld [vmem:[%s5113_s26 + $0x490] sm:$0xff]  }
  0x47   : > { %4277 = vmatprep.subr.bf16.mxu1 %v4743_v1  ;;  %v938_v1 = vrot.slane %v910_v58, %v5156_v42  ;;  %v4847_v58 = vld [vmem:[%s5113_s26 + $0x428] sm:$0xff]  }
  0x49   : > { %4256 = vmatpush3.bf16.msra.mxu0 %v4742_v0  ;;  %v4794_v0 = vld [vmem:[%s5113_s26 + $0x300] sm:$0xff]  }
  0x4a   : > { %4257 = vmatprep.subr.bf16.mxu0 %v4745_v3  ;;  %4278 = vmatpush3.bf16.msra.mxu1 %v4744_v2  ;;  %v4795_v2 = vld [vmem:[%s5113_s26 + $0x3c0] sm:$0xff]  }
  0x4b   : > { %4279 = vmatprep.subr.bf16.mxu1 %v4747_v5  ;;  %v4796_v3 = vld [vmem:[%s5113_s26 + $0x380] sm:$0xff]   ;;  %v4797_v5 = vld [vmem:[%s5113_s26 + $0x348] sm:$0xff]  }
  0x4d   : > { %4258 = vmatpush3.bf16.msra.mxu0 %v4746_v4  ;;  %v939_v4 = vcombine.high %v917_v62, %v917_v62 }
  0x4e   : > { %4259 = vmatprep.subr.bf16.mxu0 %v4749_v7  ;;  %4280 = vmatpush3.bf16.msra.mxu1 %v4748_v6  ;;  %v4798_v6 = vld [vmem:[%s5113_s26 + $0x308] sm:$0xff]   ;;  %v942_v7 = vcombine.high %v938_v1, %v938_v1 }
  0x4f   : > { %4281 = vmatprep.subr.bf16.mxu1 %v4751_v9  ;;  %v4800_v9 = vld [vmem:[%s5113_s26 + $0x388] sm:$0xff]  }
  0x51   : > { %4260 = vmatpush3.bf16.msra.mxu0 %v4750_v8  ;;  %v4799_v8 = vld [vmem:[%s5113_s26 + $0x3c8] sm:$0xff]  }
  0x52   : > { %4261 = vmatprep.subr.bf16.mxu0 %v4753_v11  ;;  %4282 = vmatpush3.bf16.msra.mxu1 %v4752_v10  ;;  %v4801_v10 = vld [vmem:[%s5113_s26 + $0x350] sm:$0xff]  }
  0x53   : > { %4283 = vmatprep.subr.bf16.mxu1 %v4755_v13  ;;  %v4802_v11 = vld [vmem:[%s5113_s26 + $0x310] sm:$0xff]  }
  0x54   : > { %v4804_v13 = vld [vmem:[%s5113_s26 + $0x390] sm:$0xff]  }
  0x55   : > { %4262 = vmatpush3.bf16.msra.mxu0 %v4754_v12  ;;  %v4803_v12 = vld [vmem:[%s5113_s26 + $0x3d0] sm:$0xff]  }
  0x56   : > { %4263 = vmatprep.subr.bf16.mxu0 %v4757_v15  ;;  %4284 = vmatpush3.bf16.msra.mxu1 %v4756_v14  ;;  %v4805_v14 = vld [vmem:[%s5113_s26 + $0x358] sm:$0xff]  }
  0x57   : > { %4285 = vmatprep.subr.bf16.mxu1 %v4759_v17  ;;  %v4806_v15 = vld [vmem:[%s5113_s26 + $0x318] sm:$0xff]  }
  0x58   : > { %v4808_v17 = vld [vmem:[%s5113_s26 + $0x398] sm:$0xff]  }
  0x59   : > { %4264 = vmatpush3.bf16.msra.mxu0 %v4758_v16  ;;  %v4807_v16 = vld [vmem:[%s5113_s26 + $0x3d8] sm:$0xff]  }
  0x5a   : > { %4293 = vmatprep.subr.bf16.mxu0 %v4761_v20  ;;  %4286 = vmatpush3.bf16.msra.mxu1 %v4760_v18  ;;  %v4809_v18 = vld [vmem:[%s5113_s26 + $0x360] sm:$0xff]  }
  0x5b   : > { %4315 = vmatprep.subr.bf16.mxu1 %v4763_v22  ;;  %v4811_v20 = vld [vmem:[%s5113_s26 + $0x3e0] sm:$0xff]   ;;  %v4813_v22 = vld [vmem:[%s5113_s26 + $0x368] sm:$0xff]  }
  0x5c   : > { %3113 = vmatmul.mubr.bf16.vlgmr.msra.gmra.mrb[4].mxu0 %v875_v19  ;;  %v4810_v19 = vld [vmem:[%s5113_s26 + $0x320] sm:$0xff]  }
  0x5d   : > { %4294 = vmatpush3.bf16.msra.mxu0 %v4762_v21  ;;  %3153 = vmatmul.mubr.bf16.vlgmr.msra.gmra.mrb[4].mxu1 %v891_v24  ;;  %v4812_v21 = vld [vmem:[%s5113_s26 + $0x3a0] sm:$0xff]   ;;  %v4815_v24 = vld [vmem:[%s5113_s26 + $0x3e8] sm:$0xff]  }
  0x5e   : > { %4295 = vmatprep.subr.bf16.mxu0 %v4765_v25  ;;  %4316 = vmatpush3.bf16.msra.mxu1 %v4764_v23  ;;  %v4814_v23 = vld [vmem:[%s5113_s26 + $0x328] sm:$0xff]  }
  0x5f   : > { %4317 = vmatprep.subr.bf16.mxu1 %v4767_v27  ;;  %3192 = vmatprep.mubr.bf16.mxu0 %v931_v56  ;;  %v4816_v25 = vld [vmem:[%s5113_s26 + $0x3a8] sm:$0xff]   ;;  %v4818_v27 = vld [vmem:[%s5113_s26 + $0x330] sm:$0xff]   ;;  %v4845_v56 = vld [vmem:[%s5113_s26 + $0x4a0] sm:$0xff]  }
  0x60   : > { %3232 = vmatprep.mubr.bf16.mxu1 %v941_v60  ;;  %v4849_v60 = vld [vmem:[%s5113_s26 + $0x4a8] sm:$0xff]  }
  0x61   : > { %4296 = vmatpush3.bf16.msra.mxu0 %v4766_v26  ;;  %v4817_v26 = vld [vmem:[%s5113_s26 + $0x370] sm:$0xff]  }
  0x62   : > { %4297 = vmatprep.subr.bf16.mxu0 %v4769_v29  ;;  %4318 = vmatpush3.bf16.msra.mxu1 %v4768_v28  ;;  %v4819_v28 = vld [vmem:[%s5113_s26 + $0x3f0] sm:$0xff]  }
  0x63   : > { %4319 = vmatprep.subr.bf16.mxu1 %v4771_v31  ;;  %v4820_v29 = vld [vmem:[%s5113_s26 + $0x3b0] sm:$0xff]   ;;  %v4822_v31 = vld [vmem:[%s5113_s26 + $0x338] sm:$0xff]  }
  0x65   : > { %4298 = vmatpush3.bf16.msra.mxu0 %v4770_v30  ;;  %v4821_v30 = vld [vmem:[%s5113_s26 + $0x378] sm:$0xff]  }
  0x66   : > { %4299 = vmatprep.subr.bf16.mxu0 %v4773_v33  ;;  %4320 = vmatpush3.bf16.msra.mxu1 %v4772_v32  ;;  %v4823_v32 = vld [vmem:[%s5113_s26 + $0x3f8] sm:$0xff]  }
  0x67   : > { %4321 = vmatprep.subr.bf16.mxu1 %v4775_v35  ;;  %v4825_v33 = vld [vmem:[%s5113_s26 + $0x3b8] sm:$0xff]   ;;  %v4826_v35 = vld [vmem:[%s5113_s26 + $0x440] sm:$0xff]  }
  0x69   : > { %4300 = vmatpush3.bf16.msra.mxu0 %v4774_v34  ;;  %v924_v34 = vrot.slane %v5229_v53, %v5156_v42  ;;  %v4842_v53 = vld [vmem:[%s5113_s26 + $0x460] sm:$0xff]  }
  0x6a   : > { %4301 = vmatprep.subr.bf16.mxu0 %v4777_v37  ;;  %4322 = vmatpush3.bf16.msra.mxu1 %v4776_v36  ;;  %v4827_v36 = vld [vmem:[%s5113_s26 + $0x400] sm:$0xff]  }
  0x6b   : > { %4323 = vmatprep.subr.bf16.mxu1 %v4779_v39  ;;  %v4828_v37 = vld [vmem:[%s5113_s26 + $0x4c0] sm:$0xff]   ;;  %v940_v39 = vcombine.high %v924_v34, %v924_v34 }
  0x6d   : > { %4302 = vmatpush3.bf16.msra.mxu0 %v4778_v38  ;;  %v4829_v38 = vld [vmem:[%s5113_s26 + $0x480] sm:$0xff]  }
  0x6e   : > { %4303 = vmatprep.subr.bf16.mxu0 %v4781_v41  ;;  %4324 = vmatpush3.bf16.msra.mxu1 %v4780_v40  ;;  %v4830_v40 = vld [vmem:[%s5113_s26 + $0x448] sm:$0xff]  }
  0x6f   : > { %4325 = vmatprep.subr.bf16.mxu1 %v4783_v44  ;;  %v4831_v41 = vld [vmem:[%s5113_s26 + $0x408] sm:$0xff]  }
  0x70   : > { %v4833_v44 = vld [vmem:[%s5113_s26 + $0x488] sm:$0xff]  }
  0x71   : > { %4304 = vmatpush3.bf16.msra.mxu0 %v4782_v43  ;;  %v4832_v43 = vld [vmem:[%s5113_s26 + $0x4c8] sm:$0xff]  }
  0x72   : > { %4305 = vmatprep.subr.bf16.mxu0 %v4785_v47  ;;  %4326 = vmatpush3.bf16.msra.mxu1 %v4784_v45  ;;  %v4834_v45 = vld [vmem:[%s5113_s26 + $0x450] sm:$0xff]  }
  0x73   : > { %4327 = vmatprep.subr.bf16.mxu1 %v4787_v51  ;;  %v4836_v47 = vld [vmem:[%s5113_s26 + $0x4d0] sm:$0xff]   ;;  %v4840_v51 = vld [vmem:[%s5113_s26 + $0x4d8] sm:$0xff]  }
  0x75   : > { %4306 = vmatpush3.bf16.msra.mxu0 %v4786_v50  ;;  %v4839_v50 = vld [vmem:[%s5113_s26 + $0x418] sm:$0xff]  }
  0x76   : > { %4307 = vmatprep.subr.bf16.mxu0 %v4789_v55  ;;  %4328 = vmatpush3.bf16.msra.mxu1 %v4788_v54  ;;  %v4843_v54 = vld [vmem:[%s5113_s26 + $0x420] sm:$0xff]  }
  0x77   : > { %4329 = vmatprep.subr.bf16.mxu1 %v4791_v59  ;;  %v4844_v55 = vld [vmem:[%s5113_s26 + $0x4e0] sm:$0xff]   ;;  %v4848_v59 = vld [vmem:[%s5113_s26 + $0x4e8] sm:$0xff]  }
  0x79   : > { %4308 = vmatpush3.bf16.msra.mxu0 %v4790_v57  ;;  %v4846_v57 = vld [vmem:[%s5113_s26 + $0x468] sm:$0xff]  }
  0x7a   : > { %4337 = vmatprep.subr.bf16.mxu0 %v4793_v63  ;;  %4330 = vmatpush3.bf16.msra.mxu1 %v4792_v61  ;;  %v213_v61 = vld [vmem:[%s5108_s22 + $0x10] sm:$0xff] }
  0x7b   : > { %4359 = vmatprep.subr.bf16.mxu1 %v4795_v2  ;;  %v950_v63 = vrot.slane %v213_v61, %v5156_v42  ;;  %v4852_v2 = vld [vmem:[%s5113_s26 + $0x4f0] sm:$0xff]  }
  0x7c   : > { %3193 = vmatmul.mubr.bf16.vlgmr.msra.gmra.mrb[8].mxu0 %v917_v62  ;;  %v4850_v62 = vld [vmem:[%s5113_s26 + $0x470] sm:$0xff]  }
  0x7d   : > { %4338 = vmatpush3.bf16.msra.mxu0 %v4794_v0  ;;  %3272 = vmatprep.mubr.bf16.mxu0 %v938_v1  ;;  %v943_v0 = vcombine.high %v213_v61, %v213_v61  ;;  %v4851_v1 = vld [vmem:[%s5113_s26 + $0x430] sm:$0xff]  }
  0x7e   : > { %3233 = vmatmul.mubr.bf16.vlgmr.msra.gmra.mrb[8].mxu1 %v939_v4  ;;  %4339 = vmatprep.subr.bf16.mxu0 %v4797_v5  ;;  %v4853_v5 = vld [vmem:[%s5113_s26 + $0x4b0] sm:$0xff]  }
  0x7f   : > { %4360 = vmatpush3.bf16.msra.mxu1 %v4796_v3  ;;  %3312 = vmatprep.mubr.bf16.mxu1 %v942_v7  ;;  %v958_v3 = vcombine.high %v950_v63, %v950_v63  ;;  %v5305_v4 = vrot.slane %v943_v0, %v5156_v42  ;;  %v4900_v61 = vld [vmem:[%s5113_s26 + $0x610] sm:$0xff]   ;;  %v4903_v0 = vld [vmem:[%s5113_s26 + $0x658] sm:$0xff]  }
  0x80   : > { %4361 = vmatprep.subr.bf16.mxu1 %v4799_v8  ;;  %v4855_v8 = vld [vmem:[%s5113_s26 + $0x438] sm:$0xff]  }
  0x81   : > { %4340 = vmatpush3.bf16.msra.mxu0 %v4798_v6  ;;  %v4854_v6 = vld [vmem:[%s5113_s26 + $0x478] sm:$0xff]   ;;  %v980_v7 = vrot.slane %v958_v3, %v5156_v42 }
  0x82   : > { %4341 = vmatprep.subr.bf16.mxu0 %v4801_v10  ;;  %v4856_v10 = vld [vmem:[%s5113_s26 + $0x4f8] sm:$0xff]  }
  0x83   : > { %4362 = vmatpush3.bf16.msra.mxu1 %v4800_v9  ;;  %v959_v9 = vcombine.high %v5305_v4, %v5305_v4  ;;  %v4906_v3 = vld [vmem:[%s5113_s26 + $0x698] sm:$0xff]  }
  0x84   : > { %4363 = vmatprep.subr.bf16.mxu1 %v4803_v12  ;;  %v4857_v12 = vld [vmem:[%s5113_s26 + $0x4b8] sm:$0xff]  }
  0x85   : > { %4342 = vmatpush3.bf16.msra.mxu0 %v4802_v11  ;;  %v990_v11 = vcombine.high %v980_v7, %v980_v7 }
  0x86   : > { %4343 = vmatprep.subr.bf16.mxu0 %v4805_v14  ;;  %v4858_v14 = vld [vmem:[%s5113_s26 + $0x540] sm:$0xff]  }
  0x87   : > { %4364 = vmatpush3.bf16.msra.mxu1 %v4804_v13  ;;  %v966_v13 = vrot.slane %v950_v63, %v5156_v42  ;;  %v4902_v63 = vld [vmem:[%s5113_s26 + $0x690] sm:$0xff]  }
  0x88   : > { %4365 = vmatprep.subr.bf16.mxu1 %v4807_v16  ;;  %v987_v16 = vrot.slane %v959_v9, %v5156_v42  ;;  %v4912_v9 = vld [vmem:[%s5113_s26 + $0x628] sm:$0xff]  }
  0x89   : > { %4344 = vmatpush3.bf16.msra.mxu0 %v4806_v15  ;;  %v4859_v15 = vld [vmem:[%s5113_s26 + $0x500] sm:$0xff]  }
  0x8a   : > { %4345 = vmatprep.subr.bf16.mxu0 %v4809_v18  ;;  %v4861_v18 = vld [vmem:[%s5113_s26 + $0x580] sm:$0xff]  }
  0x8b   : > { %4366 = vmatpush3.bf16.msra.mxu1 %v4808_v17  ;;  %v4860_v17 = vld [vmem:[%s5113_s26 + $0x5c0] sm:$0xff]  }
  0x8c   : > { %4367 = vmatprep.subr.bf16.mxu1 %v4811_v20  ;;  %v4862_v20 = vld [vmem:[%s5113_s26 + $0x548] sm:$0xff]  }
  0x8d   : > { %4346 = vmatpush3.bf16.msra.mxu0 %v4810_v19  ;;  %v988_v19 = vcombine.high %v966_v13, %v966_v13 }
  0x8e   : > { %4347 = vmatprep.subr.bf16.mxu0 %v4813_v22  ;;  %v991_v22 = vcombine.high %v987_v16, %v987_v16 }
  0x8f   : > { %4368 = vmatpush3.bf16.msra.mxu1 %v4812_v21  ;;  %v4863_v21 = vld [vmem:[%s5113_s26 + $0x508] sm:$0xff]  }
  0x90   : > { %4369 = vmatprep.subr.bf16.mxu1 %v4815_v24  ;;  %v4865_v24 = vld [vmem:[%s5113_s26 + $0x588] sm:$0xff]  }
  0x91   : > { %4348 = vmatpush3.bf16.msra.mxu0 %v4814_v23  ;;  %v4864_v23 = vld [vmem:[%s5113_s26 + $0x5c8] sm:$0xff]  }
  0x92   : > { %4349 = vmatprep.subr.bf16.mxu0 %v4817_v26  ;;  %v4867_v26 = vld [vmem:[%s5113_s26 + $0x510] sm:$0xff]  }
  0x93   : > { %4370 = vmatpush3.bf16.msra.mxu1 %v4816_v25  ;;  %v4866_v25 = vld [vmem:[%s5113_s26 + $0x550] sm:$0xff]  }
  0x94   : > { %4371 = vmatprep.subr.bf16.mxu1 %v4819_v28  ;;  %v4869_v28 = vld [vmem:[%s5113_s26 + $0x590] sm:$0xff]  }
  0x95   : > { %4350 = vmatpush3.bf16.msra.mxu0 %v4818_v27  ;;  %v4868_v27 = vld [vmem:[%s5113_s26 + $0x5d0] sm:$0xff]  }
  0x96   : > { %4351 = vmatprep.subr.bf16.mxu0 %v4821_v30  ;;  %v4871_v30 = vld [vmem:[%s5113_s26 + $0x518] sm:$0xff]  }
  0x97   : > { %4372 = vmatpush3.bf16.msra.mxu1 %v4820_v29  ;;  %v4870_v29 = vld [vmem:[%s5113_s26 + $0x558] sm:$0xff]  }
  0x98   : > { %4373 = vmatprep.subr.bf16.mxu1 %v4823_v32  ;;  %v4873_v32 = vld [vmem:[%s5113_s26 + $0x598] sm:$0xff]  }
  0x99   : > { %4352 = vmatpush3.bf16.msra.mxu0 %v4822_v31  ;;  %v4872_v31 = vld [vmem:[%s5113_s26 + $0x5d8] sm:$0xff]  }
  0x9a   : > { %4381 = vmatprep.subr.bf16.mxu0 %v4826_v35  ;;  %v4876_v35 = vld [vmem:[%s5113_s26 + $0x5e0] sm:$0xff]  }
  0x9b   : > { %4374 = vmatpush3.bf16.msra.mxu1 %v4825_v33  ;;  %v4874_v33 = vld [vmem:[%s5113_s26 + $0x560] sm:$0xff]  }
  0x9c   : > { %3273 = vmatmul.mubr.bf16.vlgmr.msra.gmra.mrb[12].mxu0 %v924_v34  ;;  %4403 = vmatprep.subr.bf16.mxu1 %v4828_v37  ;;  %v4875_v34 = vld [vmem:[%s5113_s26 + $0x520] sm:$0xff]   ;;  %v4878_v37 = vld [vmem:[%s5113_s26 + $0x568] sm:$0xff]  }
  0x9d   : > { %4382 = vmatpush3.bf16.msra.mxu0 %v4827_v36  ;;  %3352 = vmatprep.mubr.bf16.mxu0 %v980_v7  ;;  %v4877_v36 = vld [vmem:[%s5113_s26 + $0x5a0] sm:$0xff]  }
  0x9e   : > { %3313 = vmatmul.mubr.bf16.vlgmr.msra.gmra.mrb[12].mxu1 %v940_v39  ;;  %4383 = vmatprep.subr.bf16.mxu0 %v4830_v40  ;;  %v4880_v39 = vld [vmem:[%s5113_s26 + $0x5e8] sm:$0xff]   ;;  %v4910_v7 = vld [vmem:[%s5113_s26 + $0x6a0] sm:$0xff]  }
  0x9f   : > { %4404 = vmatpush3.bf16.msra.mxu1 %v4829_v38  ;;  %3392 = vmatprep.mubr.bf16.mxu1 %v990_v11  ;;  %v4879_v38 = vld [vmem:[%s5113_s26 + $0x528] sm:$0xff]  }
  0xa0   : > { %4405 = vmatprep.subr.bf16.mxu1 %v4832_v43  ;;  %v4881_v40 = vld [vmem:[%s5113_s26 + $0x5a8] sm:$0xff]   ;;  %v4883_v43 = vld [vmem:[%s5113_s26 + $0x530] sm:$0xff]  }
  0xa1   : > { %4384 = vmatpush3.bf16.msra.mxu0 %v4831_v41  ;;  %v4882_v41 = vld [vmem:[%s5113_s26 + $0x570] sm:$0xff]   ;;  %v4914_v11 = vld [vmem:[%s5113_s26 + $0x6a8] sm:$0xff]  }
  0xa2   : > { %4385 = vmatprep.subr.bf16.mxu0 %v4834_v45  ;;  %v4885_v45 = vld [vmem:[%s5113_s26 + $0x5b0] sm:$0xff]  }
  0xa3   : > { %4406 = vmatpush3.bf16.msra.mxu1 %v4833_v44  ;;  %v4884_v44 = vld [vmem:[%s5113_s26 + $0x5f0] sm:$0xff]  }
  0xa4   : > { %4407 = vmatprep.subr.bf16.mxu1 %v4836_v47  ;;  %v4887_v47 = vld [vmem:[%s5113_s26 + $0x538] sm:$0xff]  }
  0xa5   : > { %4386 = vmatpush3.bf16.msra.mxu0 %v4835_v46  ;;  %v4886_v46 = vld [vmem:[%s5113_s26 + $0x578] sm:$0xff]  }
  0xa6   : > { %4387 = vmatprep.subr.bf16.mxu0 %v4838_v49  ;;  %v4890_v49 = vld [vmem:[%s5113_s26 + $0x5b8] sm:$0xff]  }
  0xa7   : > { %4408 = vmatpush3.bf16.msra.mxu1 %v4837_v48  ;;  %v4888_v48 = vld [vmem:[%s5113_s26 + $0x5f8] sm:$0xff]  }
  0xa8   : > { %4409 = vmatprep.subr.bf16.mxu1 %v4840_v51  ;;  %v4891_v51 = vld [vmem:[%s5113_s26 + $0x640] sm:$0xff]  }
  0xa9   : > { %4388 = vmatpush3.bf16.msra.mxu0 %v4839_v50  ;;  %v973_v50 = vrot.slane %v5305_v4, %v5156_v42  ;;  %v4907_v4 = vld [vmem:[%s5113_s26 + $0x660] sm:$0xff]  }
  0xaa   : > { %4389 = vmatprep.subr.bf16.mxu0 %v4842_v53  ;;  %v4893_v53 = vld [vmem:[%s5113_s26 + $0x6c0] sm:$0xff]  }
  0xab   : > { %4410 = vmatpush3.bf16.msra.mxu1 %v4841_v52  ;;  %v4892_v52 = vld [vmem:[%s5113_s26 + $0x600] sm:$0xff]  }
  0xac   : > { %4411 = vmatprep.subr.bf16.mxu1 %v4844_v55  ;;  %v989_v55 = vcombine.high %v973_v50, %v973_v50 }
  0xad   : > { %4390 = vmatpush3.bf16.msra.mxu0 %v4843_v54  ;;  %v4894_v54 = vld [vmem:[%s5113_s26 + $0x680] sm:$0xff]  }
  0xae   : > { %4391 = vmatprep.subr.bf16.mxu0 %v4846_v57  ;;  %v4896_v57 = vld [vmem:[%s5113_s26 + $0x608] sm:$0xff]  }
  0xaf   : > { %4412 = vmatpush3.bf16.msra.mxu1 %v4845_v56  ;;  %v4895_v56 = vld [vmem:[%s5113_s26 + $0x648] sm:$0xff]  }
  0xb0   : > { %4413 = vmatprep.subr.bf16.mxu1 %v4848_v59  ;;  %v4898_v59 = vld [vmem:[%s5113_s26 + $0x688] sm:$0xff]  }
  0xb1   : > { %4392 = vmatpush3.bf16.msra.mxu0 %v4847_v58  ;;  %v4897_v58 = vld [vmem:[%s5113_s26 + $0x6c8] sm:$0xff]  }
  0xb2   : > { %4393 = vmatprep.subr.bf16.mxu0 %v4850_v62  ;;  %v4901_v62 = vld [vmem:[%s5113_s26 + $0x6d0] sm:$0xff]  }
  0xb3   : > { %4414 = vmatpush3.bf16.msra.mxu1 %v4849_v60  ;;  %v4899_v60 = vld [vmem:[%s5113_s26 + $0x650] sm:$0xff]  }
  0xb4   : > { %4415 = vmatprep.subr.bf16.mxu1 %v4852_v2  ;;  %v4905_v2 = vld [vmem:[%s5113_s26 + $0x6d8] sm:$0xff]  }
  0xb5   : > { %4394 = vmatpush3.bf16.msra.mxu0 %v4851_v1  ;;  %v4904_v1 = vld [vmem:[%s5113_s26 + $0x618] sm:$0xff]  }
  0xb6   : > { %4395 = vmatprep.subr.bf16.mxu0 %v4854_v6  ;;  %v4909_v6 = vld [vmem:[%s5113_s26 + $0x6e0] sm:$0xff]  }
  0xb7   : > { %4416 = vmatpush3.bf16.msra.mxu1 %v4853_v5  ;;  %v4908_v5 = vld [vmem:[%s5113_s26 + $0x620] sm:$0xff]  }
  0xb8   : > { %4417 = vmatprep.subr.bf16.mxu1 %v4856_v10  ;;  %v4913_v10 = vld [vmem:[%s5113_s26 + $0x6e8] sm:$0xff]  }
  0xb9   : > { %4396 = vmatpush3.bf16.msra.mxu0 %v4855_v8  ;;  %v4911_v8 = vld [vmem:[%s5113_s26 + $0x668] sm:$0xff]  }
  0xba   : > { %4425 = vmatprep.subr.bf16.mxu0 %v4858_v14  ;;  %v4916_v14 = vld [vmem:[%s5113_s26 + $0x630] sm:$0xff]  }
  0xbb   : > { %4418 = vmatpush3.bf16.msra.mxu1 %v4857_v12  ;;  %v4915_v12 = vld [vmem:[%s5113_s26 + $0x670] sm:$0xff]  }
  0xbc   : > { %3353 = vmatmul.mubr.bf16.vlgmr.msra.gmra.mrb[16].mxu0 %v966_v13  ;;  %4447 = vmatprep.subr.bf16.mxu1 %v4860_v17  ;;  %v214_v13 = vld [vmem:[%s5108_s22 + $0x18] sm:$0xff]  ;;  %v4917_v17 = vld [vmem:[%s5113_s26 + $0x6f0] sm:$0xff]  }
  0xbd   : > { %4426 = vmatpush3.bf16.msra.mxu0 %v4859_v15  ;;  %3432 = vmatprep.mubr.bf16.mxu0 %v987_v16  ;;  %v999_v15 = vrot.slane %v214_v13, %v5156_v42  ;;  %v992_v16 = vcombine.high %v214_v13, %v214_v13  ;;  %v4956_v13 = vld [vmem:[%s5113_s26 + $0x840] sm:$0xff]  }
  0xbe   : > { %3393 = vmatmul.mubr.bf16.vlgmr.msra.gmra.mrb[16].mxu1 %v988_v19  ;;  %4427 = vmatprep.subr.bf16.mxu0 %v4862_v20 }
  0xbf   : > { %4448 = vmatpush3.bf16.msra.mxu1 %v4861_v18  ;;  %3472 = vmatprep.mubr.bf16.mxu1 %v991_v22  ;;  %v4918_v18 = vld [vmem:[%s5113_s26 + $0x6b0] sm:$0xff]   ;;  %v1007_v19 = vcombine.high %v999_v15, %v999_v15  ;;  %v5382_v20 = vrot.slane %v992_v16, %v5156_v42  ;;  %v4920_v22 = vld [vmem:[%s5113_s26 + $0x638] sm:$0xff]   ;;  %v4959_v16 = vld [vmem:[%s5113_s26 + $0x880] sm:$0xff]  }
  0xc0   : > { %4449 = vmatprep.subr.bf16.mxu1 %v4864_v23 }
  0xc1   : > { %4428 = vmatpush3.bf16.msra.mxu0 %v4863_v21  ;;  %v4919_v21 = vld [vmem:[%s5113_s26 + $0x678] sm:$0xff]   ;;  %v1029_v23 = vrot.slane %v1007_v19, %v5156_v42  ;;  %v4961_v19 = vld [vmem:[%s5113_s26 + $0x808] sm:$0xff]  }
  0xc2   : > { %4429 = vmatprep.subr.bf16.mxu0 %v4866_v25  ;;  %v4921_v25 = vld [vmem:[%s5113_s26 + $0x6f8] sm:$0xff]  }
  0xc3   : > { %4450 = vmatpush3.bf16.msra.mxu1 %v4865_v24  ;;  %v1008_v24 = vcombine.high %v5382_v20, %v5382_v20 }
  0xc4   : > { %4451 = vmatprep.subr.bf16.mxu1 %v4868_v27  ;;  %v1039_v27 = vcombine.high %v1029_v23, %v1029_v23 }
  0xc5   : > { %4430 = vmatpush3.bf16.msra.mxu0 %v4867_v26  ;;  %v4922_v26 = vld [vmem:[%s5113_s26 + $0x6b8] sm:$0xff]  }
  0xc6   : > { %4431 = vmatprep.subr.bf16.mxu0 %v4870_v29  ;;  %v4923_v29 = vld [vmem:[%s5113_s26 + $0x740] sm:$0xff]  }
  0xc7   : > { %4452 = vmatpush3.bf16.msra.mxu1 %v4869_v28  ;;  %v1015_v28 = vrot.slane %v999_v15, %v5156_v42  ;;  %v4958_v15 = vld [vmem:[%s5113_s26 + $0x8c0] sm:$0xff]  }
  0xc8   : > { %4453 = vmatprep.subr.bf16.mxu1 %v4872_v31  ;;  %v1036_v31 = vrot.slane %v1008_v24, %v5156_v42  ;;  %v4966_v24 = vld [vmem:[%s5113_s26 + $0x8d0] sm:$0xff]  }
  0xc9   : > { %4432 = vmatpush3.bf16.msra.mxu0 %v4871_v30  ;;  %v4924_v30 = vld [vmem:[%s5113_s26 + $0x700] sm:$0xff]  }
  0xca   : > { %4433 = vmatprep.subr.bf16.mxu0 %v4874_v33  ;;  %v4926_v33 = vld [vmem:[%s5113_s26 + $0x780] sm:$0xff]  }
  0xcb   : > { %4454 = vmatpush3.bf16.msra.mxu1 %v4873_v32  ;;  %v4925_v32 = vld [vmem:[%s5113_s26 + $0x7c0] sm:$0xff]  }
  0xcc   : > { %4455 = vmatprep.subr.bf16.mxu1 %v4876_v35  ;;  %v4927_v35 = vld [vmem:[%s5113_s26 + $0x748] sm:$0xff]  }
  0xcd   : > { %4434 = vmatpush3.bf16.msra.mxu0 %v4875_v34  ;;  %v1037_v34 = vcombine.high %v1015_v28, %v1015_v28 }
  0xce   : > { %4435 = vmatprep.subr.bf16.mxu0 %v4878_v37  ;;  %v1040_v37 = vcombine.high %v1036_v31, %v1036_v31 }
  0xcf   : > { %4456 = vmatpush3.bf16.msra.mxu1 %v4877_v36  ;;  %v4928_v36 = vld [vmem:[%s5113_s26 + $0x708] sm:$0xff]  }
  0xd0   : > { %4457 = vmatprep.subr.bf16.mxu1 %v4880_v39  ;;  %v4930_v39 = vld [vmem:[%s5113_s26 + $0x788] sm:$0xff]  }
  0xd1   : > { %4436 = vmatpush3.bf16.msra.mxu0 %v4879_v38  ;;  %v4929_v38 = vld [vmem:[%s5113_s26 + $0x7c8] sm:$0xff]  }
  0xd2   : > { %4437 = vmatprep.subr.bf16.mxu0 %v4882_v41  ;;  %v4932_v41 = vld [vmem:[%s5113_s26 + $0x710] sm:$0xff]  }
  0xd3   : > { %4458 = vmatpush3.bf16.msra.mxu1 %v4881_v40  ;;  %v4931_v40 = vld [vmem:[%s5113_s26 + $0x750] sm:$0xff]  }
  0xd4   : > { %4459 = vmatprep.subr.bf16.mxu1 %v4884_v44  ;;  %v4934_v44 = vld [vmem:[%s5113_s26 + $0x790] sm:$0xff]  }
  0xd5   : > { %4438 = vmatpush3.bf16.msra.mxu0 %v4883_v43  ;;  %v4933_v43 = vld [vmem:[%s5113_s26 + $0x7d0] sm:$0xff]  }
  0xd6   : > { %4439 = vmatprep.subr.bf16.mxu0 %v4886_v46  ;;  %v4936_v46 = vld [vmem:[%s5113_s26 + $0x718] sm:$0xff]  }
  0xd7   : > { %4460 = vmatpush3.bf16.msra.mxu1 %v4885_v45  ;;  %v4935_v45 = vld [vmem:[%s5113_s26 + $0x758] sm:$0xff]  }
  0xd8   : > { %4461 = vmatprep.subr.bf16.mxu1 %v4888_v48  ;;  %v4938_v48 = vld [vmem:[%s5113_s26 + $0x798] sm:$0xff]  }
  0xd9   : > { %4440 = vmatpush3.bf16.msra.mxu0 %v4887_v47  ;;  %v4937_v47 = vld [vmem:[%s5113_s26 + $0x7d8] sm:$0xff]  }
  0xda   : > { %4469 = vmatprep.subr.bf16.mxu0 %v4891_v51  ;;  %v4941_v51 = vld [vmem:[%s5113_s26 + $0x7e0] sm:$0xff]  }
  0xdb   : > { %4462 = vmatpush3.bf16.msra.mxu1 %v4890_v49  ;;  %v4939_v49 = vld [vmem:[%s5113_s26 + $0x760] sm:$0xff]  }
  0xdc   : > { %3433 = vmatmul.mubr.bf16.vlgmr.msra.gmra.mrb[20].mxu0 %v973_v50  ;;  %4491 = vmatprep.subr.bf16.mxu1 %v4893_v53  ;;  %v4940_v50 = vld [vmem:[%s5113_s26 + $0x720] sm:$0xff]   ;;  %v4943_v53 = vld [vmem:[%s5113_s26 + $0x768] sm:$0xff]  }
  0xdd   : > { %4470 = vmatpush3.bf16.msra.mxu0 %v4892_v52  ;;  %3512 = vmatprep.mubr.bf16.mxu0 %v1029_v23  ;;  %v4942_v52 = vld [vmem:[%s5113_s26 + $0x7a0] sm:$0xff]   ;;  %v4965_v23 = vld [vmem:[%s5113_s26 + $0x810] sm:$0xff]  }
  0xde   : > { %3473 = vmatmul.mubr.bf16.vlgmr.msra.gmra.mrb[20].mxu1 %v989_v55  ;;  %4471 = vmatprep.subr.bf16.mxu0 %v4895_v56  ;;  %v4945_v55 = vld [vmem:[%s5113_s26 + $0x7e8] sm:$0xff]  }
  0xdf   : > { %4492 = vmatpush3.bf16.msra.mxu1 %v4894_v54  ;;  %3552 = vmatprep.mubr.bf16.mxu1 %v1039_v27  ;;  %v4944_v54 = vld [vmem:[%s5113_s26 + $0x728] sm:$0xff]   ;;  %v4969_v27 = vld [vmem:[%s5113_s26 + $0x818] sm:$0xff]  }
  0xe0   : > { %4493 = vmatprep.subr.bf16.mxu1 %v4897_v58  ;;  %v4946_v56 = vld [vmem:[%s5113_s26 + $0x7a8] sm:$0xff]  }
  0xe1   : > { %4472 = vmatpush3.bf16.msra.mxu0 %v4896_v57  ;;  %v4947_v57 = vld [vmem:[%s5113_s26 + $0x770] sm:$0xff]  }
  0xe2   : > { %4473 = vmatprep.subr.bf16.mxu0 %v4899_v60 }
  0xe3   : > { %4494 = vmatpush3.bf16.msra.mxu1 %v4898_v59  ;;  %v4948_v59 = vld [vmem:[%s5113_s26 + $0x730] sm:$0xff]  }
  0xe4   : > { %4495 = vmatprep.subr.bf16.mxu1 %v4901_v62 }
  0xe5   : > { %4474 = vmatpush3.bf16.msra.mxu0 %v4900_v61  ;;  %v4949_v61 = vld [vmem:[%s5113_s26 + $0x7f0] sm:$0xff]  }
  0xe6   : > { %4475 = vmatprep.subr.bf16.mxu0 %v4903_v0 }
  0xe7   : > { %4496 = vmatpush3.bf16.msra.mxu1 %v4902_v63 }
  0xe8   : > { %4497 = vmatprep.subr.bf16.mxu1 %v4905_v2  ;;  %v4951_v2 = vld [vmem:[%s5113_s26 + $0x778] sm:$0xff]  }
  0xe9   : > { %4476 = vmatpush3.bf16.msra.mxu0 %v4904_v1  ;;  %v4950_v1 = vld [vmem:[%s5113_s26 + $0x7b0] sm:$0xff]  }
  0xea   : > { %4477 = vmatprep.subr.bf16.mxu0 %v4907_v4 }
  0xeb   : > { %4498 = vmatpush3.bf16.msra.mxu1 %v4906_v3 }
  0xec   : > { %4499 = vmatprep.subr.bf16.mxu1 %v4909_v6 }
  0xed   : > { %4478 = vmatpush3.bf16.msra.mxu0 %v4908_v5 }
  0xee   : > { %4479 = vmatprep.subr.bf16.mxu0 %v4911_v8 }
  0xef   : > { %4500 = vmatpush3.bf16.msra.mxu1 %v4910_v7  ;;  %v4952_v7 = vld [vmem:[%s5113_s26 + $0x738] sm:$0xff]  }
  0xf0   : > { %4501 = vmatprep.subr.bf16.mxu1 %v4913_v10 }
  0xf1   : > { %4480 = vmatpush3.bf16.msra.mxu0 %v4912_v9  ;;  %v4953_v9 = vld [vmem:[%s5113_s26 + $0x7f8] sm:$0xff]  }
  0xf2   : > { %4481 = vmatprep.subr.bf16.mxu0 %v4915_v12  ;;  %v1022_v12 = vrot.slane %v5382_v20, %v5156_v42  ;;  %v4962_v20 = vld [vmem:[%s5113_s26 + $0x8c8] sm:$0xff]  }
  0xf3   : > { %4502 = vmatpush3.bf16.msra.mxu1 %v4914_v11  ;;  %v4955_v11 = vld [vmem:[%s5113_s26 + $0x7b8] sm:$0xff]  }
  0xf4   : > { %4503 = vmatprep.subr.bf16.mxu1 %v4917_v17  ;;  %v1038_v17 = vcombine.high %v1022_v12, %v1022_v12 }
  0xf5   : > { %4482 = vmatpush3.bf16.msra.mxu0 %v4916_v14  ;;  %v4957_v14 = vld [vmem:[%s5113_s26 + $0x800] sm:$0xff]  }
  0xf6   : > { %4483 = vmatprep.subr.bf16.mxu0 %v4919_v21  ;;  %v4963_v21 = vld [vmem:[%s5113_s26 + $0x888] sm:$0xff]  }
  0xf7   : > { %4504 = vmatpush3.bf16.msra.mxu1 %v4918_v18  ;;  %v4960_v18 = vld [vmem:[%s5113_s26 + $0x848] sm:$0xff]  }
  0xf8   : > { %4505 = vmatprep.subr.bf16.mxu1 %v4921_v25  ;;  %v4967_v25 = vld [vmem:[%s5113_s26 + $0x890] sm:$0xff]  }
  0xf9   : > { %4484 = vmatpush3.bf16.msra.mxu0 %v4920_v22  ;;  %v4964_v22 = vld [vmem:[%s5113_s26 + $0x850] sm:$0xff]  }
  0xfa   : > { %4513 = vmatprep.subr.bf16.mxu0 %v4923_v29  ;;  %v4971_v29 = vld [vmem:[%s5113_s26 + $0x898] sm:$0xff]  }
  0xfb   : > { %4506 = vmatpush3.bf16.msra.mxu1 %v4922_v26  ;;  %v4968_v26 = vld [vmem:[%s5113_s26 + $0x858] sm:$0xff]  }
  0xfc   : > { %3513 = vmatmul.mubr.bf16.vlgmr.msra.gmra.mrb[24].mxu0 %v1015_v28  ;;  %4535 = vmatprep.subr.bf16.mxu1 %v4925_v32  ;;  %v4970_v28 = vld [vmem:[%s5113_s26 + $0x8d8] sm:$0xff]   ;;  %v4974_v32 = vld [vmem:[%s5113_s26 + $0x8e0] sm:$0xff]  }
  0xfd   : > { %4514 = vmatpush3.bf16.msra.mxu0 %v4924_v30  ;;  %3592 = vmatprep.mubr.bf16.mxu0 %v1036_v31  ;;  %v4972_v30 = vld [vmem:[%s5113_s26 + $0x860] sm:$0xff]  }
  0xfe   : > { %3553 = vmatmul.mubr.bf16.vlgmr.msra.gmra.mrb[24].mxu1 %v1037_v34  ;;  %4515 = vmatprep.subr.bf16.mxu0 %v4927_v35  ;;  %v4973_v31 = vld [vmem:[%s5113_s26 + $0x820] sm:$0xff]   ;;  %v4976_v34 = vld [vmem:[%s5113_s26 + $0x868] sm:$0xff]  }
  0xff   : > { %4536 = vmatpush3.bf16.msra.mxu1 %v4926_v33  ;;  %3632 = vmatprep.mubr.bf16.mxu1 %v1040_v37  ;;  %v4975_v33 = vld [vmem:[%s5113_s26 + $0x8a0] sm:$0xff]   ;;  %v4977_v35 = vld [vmem:[%s5113_s26 + $0x828] sm:$0xff]  }
 0x100   : > { %4537 = vmatprep.subr.bf16.mxu1 %v4929_v38  ;;  %v4979_v37 = vld [vmem:[%s5113_s26 + $0x8a8] sm:$0xff]   ;;  %v4980_v38 = vld [vmem:[%s5113_s26 + $0x870] sm:$0xff]  }
 0x101   : > { %4516 = vmatpush3.bf16.msra.mxu0 %v4928_v36  ;;  %v4978_v36 = vld [vmem:[%s5113_s26 + $0x8e8] sm:$0xff]  }
 0x102   : > { %4517 = vmatprep.subr.bf16.mxu0 %v4931_v40 }
 0x103   : > { %4538 = vmatpush3.bf16.msra.mxu1 %v4930_v39  ;;  %v215_v39 = vld [vmem:[%s5108_s22 + $0x20] sm:$0x7f] }
 0x104   : > { %4539 = vmatprep.subr.bf16.mxu1 %v4933_v43  ;;  %v1048_v43 = vrot.slane %v215_v39, %v5156_v42 }
 0x105   : > { %4518 = vmatpush3.bf16.msra.mxu0 %v4932_v41  ;;  %v4981_v41 = vld [vmem:[%s5113_s26 + $0x830] sm:$0xff]  }
 0x106   : > { %4519 = vmatprep.subr.bf16.mxu0 %v4935_v45 }
 0x107   : > { %4540 = vmatpush3.bf16.msra.mxu1 %v4934_v44  ;;  %v1041_v44 = vcombine.high %v215_v39, %v215_v39 }
 0x108   : > { %4541 = vmatprep.subr.bf16.mxu1 %v4937_v47 }
 0x109   : > { %4520 = vmatpush3.bf16.msra.mxu0 %v4936_v46  ;;  %v4982_v46 = vld [vmem:[%s5113_s26 + $0x8f0] sm:$0xff]  }
 0x10a   : > { %4521 = vmatprep.subr.bf16.mxu0 %v4939_v49 }
 0x10b   : > { %4542 = vmatpush3.bf16.msra.mxu1 %v4938_v48 }
 0x10c   : > { %4543 = vmatprep.subr.bf16.mxu1 %v4941_v51  ;;  %v5459_v51 = vrot.slane %v1041_v44, %v5156_v42  ;;  %v5012_v44 = vld [vmem:[%s5113_s26 + $0x9b8] sm:$0xff]  }
 0x10d   : > { %4522 = vmatpush3.bf16.msra.mxu0 %v4940_v50  ;;  %v1056_v50 = vcombine.high %v1048_v43, %v1048_v43 }
 0x10e   : > { %4523 = vmatprep.subr.bf16.mxu0 %v4943_v53 }
 0x10f   : > { %v4221_v58 = vpop.f32.mrb[0].mxu0  ;;  %4544 = vmatpush3.bf16.msra.mxu1 %v4942_v52 }
 0x110   : > { %v4222_v60 = vpop.f32.mrb[1].mxu0  ;;  %4545 = vmatprep.subr.bf16.mxu1 %v4945_v55  ;;  %v4243_v62 = vpop.f32.mrb[0].mxu1  ;;  %v4984_v55 = vld [vmem:[%s5113_s26 + $0x878] sm:$0xff]  }
 0x111   : > { %v4223_v63 = vadd.f32 %v4222_v60, %v4221_v58  ;;  %v4224_v0 = vpop.f32.mrb[2].mxu0  ;;  %4524 = vmatpush3.bf16.msra.mxu0 %v4944_v54  ;;  %v4244_v3 = vpop.f32.mrb[1].mxu1  ;;  %v4983_v54 = vld [vmem:[%s5113_s26 + $0x8b0] sm:$0xff]   ;;  %v1078_v60 = vrot.slane %v1056_v50, %v5156_v42 }
 0x112   : > { %v4225_v4 = vpop.f32.mrb[3].mxu0  ;;  %4525 = vmatprep.subr.bf16.mxu0 %v4947_v57  ;;  %v4245_v5 = vadd.f32 %v4244_v3, %v4243_v62  ;;  %v4246_v6 = vpop.f32.mrb[2].mxu1  ;;  %v4986_v62 = vld [vmem:[%s5113_s26 + $0x8f8] sm:$0xff]   ;;  %v4988_v3 = vld [vmem:[%s5113_s26 + $0x940] sm:$0xff]  }
 0x113   : > { %4546 = vmatpush3.bf16.msra.mxu1 %v4946_v56  ;;  %v4247_v8 = vpop.f32.mrb[3].mxu1  ;;  %v1088_v0 = vcombine.high %v1078_v60, %v1078_v60  ;;  %v4987_v4 = vld [vmem:[%s5113_s26 + $0x8b8] sm:$0xff]  }
 0x114   : > { %4547 = vmatprep.subr.bf16.mxu1 %v4949_v61  ;;  %v5424_v10 = vadd.f32 %v4245_v5, %v4223_v63  ;;  %v4989_v5 = vld [vmem:[%s5113_s26 + $0x900] sm:$0xff]   ;;  %v4991_v8 = vld [vmem:[%s5113_s26 + $0x948] sm:$0xff]  }
 0x115   : > { %4526 = vmatpush3.bf16.msra.mxu0 %v4948_v59  ;;  %v4985_v59 = vld [vmem:[%s5113_s26 + $0x838] sm:$0xff]  }
 0x116   : > { %4527 = vmatprep.subr.bf16.mxu0 %v4951_v2  ;;  %v1064_v2 = vrot.slane %v1048_v43, %v5156_v42  ;;  %v1071_v43 = vrot.slane %v5459_v51, %v5156_v42 }
 0x117   : > { %4548 = vmatpush3.bf16.msra.mxu1 %v4950_v1  ;;  %v1057_v1 = vcombine.high %v5459_v51, %v5459_v51 }
 0x118   : > { %4549 = vmatprep.subr.bf16.mxu1 %v4953_v9  ;;  %v4990_v9 = vld [vmem:[%s5113_s26 + $0x980] sm:$0xff]  }
 0x119   : > { %4528 = vmatpush3.bf16.msra.mxu0 %v4952_v7  ;;  %v1085_v6 = vrot.slane %v1057_v1, %v5156_v42  ;;  %v1086_v7 = vcombine.high %v1064_v2, %v1064_v2 }
 0x11a   : > { %4557 = vmatprep.subr.bf16.mxu0 %v4956_v13  ;;  %v4993_v13 = vld [vmem:[%s5113_s26 + $0x988] sm:$0xff]  }
 0x11b   : > { %4550 = vmatpush3.bf16.msra.mxu1 %v4955_v11  ;;  %v4992_v11 = vld [vmem:[%s5113_s26 + $0x908] sm:$0xff]  }
 0x11c   : > { %3593 = vmatmul.mubr.bf16.vlgmr.msra.gmra.mrb[28].mxu0 %v1022_v12  ;;  %4579 = vmatprep.subr.bf16.mxu1 %v4958_v15  ;;  %v4994_v12 = vld [vmem:[%s5113_s26 + $0x950] sm:$0xff]   ;;  %v4997_v15 = vld [vmem:[%s5113_s26 + $0x958] sm:$0xff]  }
 0x11d   : > { %4558 = vmatpush3.bf16.msra.mxu0 %v4957_v14  ;;  %3672 = vmatprep.mubr.bf16.mxu0 %v1078_v60  ;;  %v4995_v14 = vld [vmem:[%s5113_s26 + $0x910] sm:$0xff]  }
 0x11e   : > { %3633 = vmatmul.mubr.bf16.vlgmr.msra.gmra.mrb[28].mxu1 %v1038_v17  ;;  %4559 = vmatprep.subr.bf16.mxu0 %v4960_v18  ;;  %v4998_v17 = vld [vmem:[%s5113_s26 + $0x918] sm:$0xff]   ;;  %v5000_v18 = vld [vmem:[%s5113_s26 + $0x960] sm:$0xff]  }
 0x11f   : > { %4580 = vmatpush3.bf16.msra.mxu1 %v4959_v16  ;;  %3712 = vmatprep.mubr.bf16.mxu1 %v1088_v0  ;;  %v4996_v16 = vld [vmem:[%s5113_s26 + $0x990] sm:$0xff]  }
 0x120   : > { %4581 = vmatprep.subr.bf16.mxu1 %v4962_v20  ;;  %v5001_v20 = vld [vmem:[%s5113_s26 + $0x920] sm:$0xff]  }
 0x121   : > { %4560 = vmatpush3.bf16.msra.mxu0 %v4961_v19  ;;  %v4999_v19 = vld [vmem:[%s5113_s26 + $0x998] sm:$0xff]  }
 0x122   : > { %4561 = vmatprep.subr.bf16.mxu0 %v4964_v22  ;;  %v5002_v22 = vld [vmem:[%s5113_s26 + $0x9a0] sm:$0xff]  }
 0x123   : > { %4582 = vmatpush3.bf16.msra.mxu1 %v4963_v21  ;;  %v5003_v21 = vld [vmem:[%s5113_s26 + $0x968] sm:$0xff]  }
 0x124   : > { %4583 = vmatprep.subr.bf16.mxu1 %v4966_v24  ;;  %v5006_v24 = vld [vmem:[%s5113_s26 + $0x970] sm:$0xff]  }
 0x125   : > { %4562 = vmatpush3.bf16.msra.mxu0 %v4965_v23  ;;  %v5004_v23 = vld [vmem:[%s5113_s26 + $0x928] sm:$0xff]  }
 0x126   : > { %4563 = vmatprep.subr.bf16.mxu0 %v4968_v26  ;;  %v5005_v26 = vld [vmem:[%s5113_s26 + $0x9a8] sm:$0xff]  }
 0x127   : > { %4584 = vmatpush3.bf16.msra.mxu1 %v4967_v25 }
 0x128   : > { %4585 = vmatprep.subr.bf16.mxu1 %v4970_v28 }
 0x129   : > { %4564 = vmatpush3.bf16.msra.mxu0 %v4969_v27 }
 0x12a   : > { %4565 = vmatprep.subr.bf16.mxu0 %v4972_v30 }
 0x12b   : > { %4586 = vmatpush3.bf16.msra.mxu1 %v4971_v29 }
 0x12c   : > { %4587 = vmatprep.subr.bf16.mxu1 %v4974_v32 }
 0x12d   : > { %4566 = vmatpush3.bf16.msra.mxu0 %v4973_v31  ;;  %v5007_v31 = vld [vmem:[%s5113_s26 + $0x930] sm:$0xff]  }
 0x12e   : > { %4567 = vmatprep.subr.bf16.mxu0 %v4976_v34  ;;  %v5009_v34 = vld [vmem:[%s5113_s26 + $0x978] sm:$0xff]  }
 0x12f   : > { %v4265_v40 = vpop.f32.mrb[4].mxu0  ;;  %4588 = vmatpush3.bf16.msra.mxu1 %v4975_v33 }
 0x130   : > { %v4266_v45 = vpop.f32.mrb[5].mxu0  ;;  %4589 = vmatprep.subr.bf16.mxu1 %v4978_v36  ;;  %v4287_v49 = vpop.f32.mrb[4].mxu1 }
 0x131   : > { %v4267_v47 = vadd.f32 %v4266_v45, %v4265_v40  ;;  %v4268_v48 = vpop.f32.mrb[6].mxu0  ;;  %4568 = vmatpush3.bf16.msra.mxu0 %v4977_v35  ;;  %v4288_v53 = vpop.f32.mrb[5].mxu1  ;;  %v1087_v45 = vcombine.high %v1071_v43, %v1071_v43 }
 0x132   : > { %v4269_v52 = vpop.f32.mrb[7].mxu0  ;;  %4569 = vmatprep.subr.bf16.mxu0 %v4980_v38  ;;  %v4289_v57 = vadd.f32 %v4288_v53, %v4287_v49  ;;  %v4290_v58 = vpop.f32.mrb[6].mxu1  ;;  %v5008_v38 = vld [vmem:[%s5113_s26 + $0x9b0] sm:$0xff]  }
 0x133   : > { %v3115_v56 = vadd.f32 %v4267_v47, %v5424_v10  ;;  %4590 = vmatpush3.bf16.msra.mxu1 %v4979_v37  ;;  %v4291_v61 = vpop.f32.mrb[7].mxu1  ;;  %v5055_v10 = vmov 0.0  }
 0x134   : > { %4591 = vmatprep.subr.bf16.mxu1 %v4982_v46 }
 0x135   : > { %v5467_v63 = vadd.f32 %v4289_v57, %v3115_v56  ;;  %4570 = vmatpush3.bf16.msra.mxu0 %v4981_v41  ;;  %v5010_v41 = vld [vmem:[%s5113_s26 + $0x938] sm:$0xff]  }
 0x136   : > { %4571 = vmatprep.subr.bf16.mxu0 %v4984_v55 }
 0x137   : > { %4592 = vmatpush3.bf16.msra.mxu1 %v4983_v54 }
 0x138   : > { %4593 = vmatprep.subr.bf16.mxu1 %v4986_v62 }
 0x139   : > { %4572 = vmatpush3.bf16.msra.mxu0 %v4985_v59 }
 0x13a   : > { %4601 = vmatprep.subr.bf16.mxu0 %v4988_v3 }
 0x13b   : > { %4594 = vmatpush3.bf16.msra.mxu1 %v4987_v4 }
 0x13c   : > { %3673 = vmatmul.mubr.bf16.vlgmr.msra.gmra.mrb[32].mxu0 %v1064_v2  ;;  %4632 = vmatprep.subr.bf16.mxu1 %v5055_v10 }
 0x13d   : > { %4602 = vmatpush3.bf16.msra.mxu0 %v4989_v5  ;;  %3752 = vmatprep.mubr.bf16.mxu0 %v1085_v6 }
 0x13e   : > { %3713 = vmatmul.mubr.bf16.vlgmr.msra.gmra.mrb[32].mxu1 %v1086_v7  ;;  %4603 = vmatprep.subr.bf16.mxu0 %v4991_v8 }
 0x13f   : > { %4633 = vmatpush3.bf16.msra.mxu1 %v4990_v9  ;;  %4648 = vmatprep.mubr.msk.bf16.mxu1 %vm5056_vm1, %v5055_v10 }
 0x140   : > { %4634 = vmatprep.subr.bf16.mxu1 %v5055_v10 }
 0x141   : > { %4604 = vmatpush3.bf16.msra.mxu0 %v4992_v11 }
 0x142   : > { %4605 = vmatprep.subr.bf16.mxu0 %v4994_v12 }
 0x143   : > { %4635 = vmatpush3.bf16.msra.mxu1 %v4993_v13 }
 0x144   : > { %4636 = vmatprep.subr.bf16.mxu1 %v5055_v10 }
 0x145   : > { %4606 = vmatpush3.bf16.msra.mxu0 %v4995_v14 }
 0x146   : > { %4607 = vmatprep.subr.bf16.mxu0 %v4997_v15 }
 0x147   : > { %4637 = vmatpush3.bf16.msra.mxu1 %v4996_v16 }
 0x148   : > { %4638 = vmatprep.subr.bf16.mxu1 %v5055_v10 }
 0x149   : > { %4608 = vmatpush3.bf16.msra.mxu0 %v4998_v17 }
 0x14a   : > { %4609 = vmatprep.subr.bf16.mxu0 %v5000_v18 }
 0x14b   : > { %4639 = vmatpush3.bf16.msra.mxu1 %v4999_v19 }
 0x14c   : > { %4640 = vmatprep.subr.bf16.mxu1 %v5055_v10 }
 0x14d   : > { %4610 = vmatpush3.bf16.msra.mxu0 %v5001_v20 }
 0x14e   : > { %4611 = vmatprep.subr.bf16.mxu0 %v5003_v21 }
 0x14f   : > { %v4309_v25 = vpop.f32.mrb[8].mxu0  ;;  %4641 = vmatpush3.bf16.msra.mxu1 %v5002_v22 }
 0x150   : > { %v4310_v27 = vpop.f32.mrb[9].mxu0  ;;  %4642 = vmatprep.subr.bf16.mxu1 %v5055_v10 }
 0x151   : > { %v4311_v28 = vadd.f32 %v4310_v27, %v4309_v25  ;;  %v4312_v29 = vpop.f32.mrb[10].mxu0  ;;  %v4331_v30 = vpop.f32.mrb[8].mxu1  ;;  %4612 = vmatpush3.bf16.msra.mxu0 %v5004_v23 }
 0x152   : > { %v4313_v32 = vpop.f32.mrb[11].mxu0  ;;  %v4332_v33 = vpop.f32.mrb[9].mxu1  ;;  %4613 = vmatprep.subr.bf16.mxu0 %v5006_v24 }
 0x153   : > { %v3195_v35 = vadd.f32 %v4311_v28, %v5467_v63  ;;  %v4333_v36 = vadd.f32 %v4332_v33, %v4331_v30  ;;  %4643 = vmatpush3.bf16.msra.mxu1 %v5005_v26  ;;  %v4334_v37 = vpop.f32.mrb[10].mxu1 }
 0x154   : > { %v4335_v39 = vpop.f32.mrb[11].mxu1  ;;  %4644 = vmatprep.subr.bf16.mxu1 %v5055_v10 }
 0x155   : > { %v3235_v40 = vadd.f32 %v4333_v36, %v3195_v35  ;;  %4614 = vmatpush3.bf16.msra.mxu0 %v5007_v31 }
 0x156   : > { %4615 = vmatprep.subr.bf16.mxu0 %v5009_v34 }
 0x157   : > { %4645 = vmatpush3.bf16.msra.mxu1 %v5008_v38 }
 0x158   : > { %4646 = vmatprep.subr.bf16.mxu1 %v5055_v10 }
 0x159   : > { %4616 = vmatpush3.bf16.msra.mxu0 %v5010_v41 }
 0x15b   : > { %4647 = vmatpush3.bf16.msra.mxu1 %v5012_v44 }
 0x15c   : > { %3753 = vmatmul.mubr.bf16.vlgmr.msra.gmra.mrb[36].mxu0 %v1071_v43 }
 0x15e   : > { %4649 = vmatmul.mubr.bf16.vlgmr.msra.gmra.mrb[36].mxu1 %v1087_v45 }
 0x16f   : > { %v4353_v46 = vpop.f32.mrb[12].mxu0 }
 0x170   : > { %v4354_v47 = vpop.f32.mrb[13].mxu0 }
 0x171   : > { %v4355_v48 = vadd.f32 %v4354_v47, %v4353_v46  ;;  %v4356_v49 = vpop.f32.mrb[14].mxu0  ;;  %v4375_v50 = vpop.f32.mrb[12].mxu1 }
 0x172   : > { %v4357_v52 = vpop.f32.mrb[15].mxu0  ;;  %v4376_v53 = vpop.f32.mrb[13].mxu1 }
 0x173   : > { %v3275_v54 = vadd.f32 %v4355_v48, %v3235_v40  ;;  %v4377_v55 = vadd.f32 %v4376_v53, %v4375_v50  ;;  %v4378_v56 = vpop.f32.mrb[14].mxu1 }
 0x174   : > { %v4379_v42 = vpop.f32.mrb[15].mxu1 }
 0x175   : > { %v3315_v51 = vadd.f32 %v4377_v55, %v3275_v54 }
 0x18f   : > { %v4397_v57 = vpop.f32.mrb[16].mxu0 }
 0x190   : > { %v4398_v58 = vpop.f32.mrb[17].mxu0 }
 0x191   : > { %v4399_v59 = vadd.f32 %v4398_v58, %v4397_v57  ;;  %v4400_v60 = vpop.f32.mrb[18].mxu0  ;;  %v4419_v61 = vpop.f32.mrb[16].mxu1 }
 0x192   : > { %v4401_v62 = vpop.f32.mrb[19].mxu0  ;;  %v4420_v63 = vpop.f32.mrb[17].mxu1 }
 0x193   : > { %v3355_v0 = vadd.f32 %v4399_v59, %v3315_v51  ;;  %v4421_v1 = vadd.f32 %v4420_v63, %v4419_v61  ;;  %v4422_v2 = vpop.f32.mrb[18].mxu1  ;;  %v210_v62 = vld [vmem:[#allocation2] sm:$0x3] }
 0x194   : > { %v4423_v3 = vpop.f32.mrb[19].mxu1 }
 0x195   : > { %v3395_v4 = vadd.f32 %v4421_v1, %v3355_v0 }
 0x1af   : > { %v4441_v5 = vpop.f32.mrb[20].mxu0 }
 0x1b0   : > { %v4442_v6 = vpop.f32.mrb[21].mxu0 }
 0x1b1   : > { %v4443_v7 = vadd.f32 %v4442_v6, %v4441_v5  ;;  %v4444_v8 = vpop.f32.mrb[22].mxu0  ;;  %v4463_v9 = vpop.f32.mrb[20].mxu1 }
 0x1b2   : > { %v4445_v10 = vpop.f32.mrb[23].mxu0  ;;  %v4464_v11 = vpop.f32.mrb[21].mxu1 }
 0x1b3   : > { %v3435_v12 = vadd.f32 %v4443_v7, %v3395_v4  ;;  %v4465_v13 = vadd.f32 %v4464_v11, %v4463_v9  ;;  %v4466_v14 = vpop.f32.mrb[22].mxu1 }
 0x1b4   : > { %v4467_v15 = vpop.f32.mrb[23].mxu1 }
 0x1b5   : > { %v3475_v16 = vadd.f32 %v4465_v13, %v3435_v12 }
 0x1cf   : > { %v4485_v17 = vpop.f32.mrb[24].mxu0 }
 0x1d0   : > { %v4486_v18 = vpop.f32.mrb[25].mxu0 }
 0x1d1   : > { %v4487_v19 = vadd.f32 %v4486_v18, %v4485_v17  ;;  %v4488_v20 = vpop.f32.mrb[26].mxu0  ;;  %v4507_v21 = vpop.f32.mrb[24].mxu1 }
 0x1d2   : > { %v4489_v22 = vpop.f32.mrb[27].mxu0  ;;  %v4508_v23 = vpop.f32.mrb[25].mxu1 }
 0x1d3   : > { %v3515_v24 = vadd.f32 %v4487_v19, %v3475_v16  ;;  %v4509_v25 = vadd.f32 %v4508_v23, %v4507_v21  ;;  %v4510_v26 = vpop.f32.mrb[26].mxu1 }
 0x1d4   : > { %v4511_v27 = vpop.f32.mrb[27].mxu1 }
 0x1d5   : > { %v3555_v28 = vadd.f32 %v4509_v25, %v3515_v24 }
 0x1ef   : > { %v4529_v29 = vpop.f32.mrb[28].mxu0 }
 0x1f0   : > { %v4530_v30 = vpop.f32.mrb[29].mxu0 }
 0x1f1   : > { %v4531_v31 = vadd.f32 %v4530_v30, %v4529_v29  ;;  %v4532_v32 = vpop.f32.mrb[30].mxu0  ;;  %v4551_v33 = vpop.f32.mrb[28].mxu1 }
 0x1f2   : > { %v4533_v34 = vpop.f32.mrb[31].mxu0  ;;  %v4552_v35 = vpop.f32.mrb[29].mxu1 }
 0x1f3   : > { %v3595_v36 = vadd.f32 %v4531_v31, %v3555_v28  ;;  %v4553_v37 = vadd.f32 %v4552_v35, %v4551_v33  ;;  %v4554_v38 = vpop.f32.mrb[30].mxu1 }
 0x1f4   : > { %v4555_v39 = vpop.f32.mrb[31].mxu1 }
 0x1f5   : > { %v3635_v40 = vadd.f32 %v4553_v37, %v3595_v36 }
 0x20f   : > { %v4573_v41 = vpop.f32.mrb[32].mxu0 }
 0x210   : > { %v4574_v43 = vpop.f32.mrb[33].mxu0 }
 0x211   : > { %v4575_v44 = vadd.f32 %v4574_v43, %v4573_v41  ;;  %v4576_v45 = vpop.f32.mrb[34].mxu0  ;;  %v4595_v46 = vpop.f32.mrb[32].mxu1 }
 0x212   : > { %v4577_v47 = vpop.f32.mrb[35].mxu0  ;;  %v4596_v48 = vpop.f32.mrb[33].mxu1 }
 0x213   : > { %v3675_v49 = vadd.f32 %v4575_v44, %v3635_v40  ;;  %v4597_v50 = vadd.f32 %v4596_v48, %v4595_v46  ;;  %v4598_v52 = vpop.f32.mrb[34].mxu1 }
 0x214   : > { %v4599_v53 = vpop.f32.mrb[35].mxu1 }
 0x215   : > { %v3715_v54 = vadd.f32 %v4597_v50, %v3675_v49 }
 0x22f   : > { %v4617_v55 = vpop.f32.mrb[36].mxu0 }
 0x230   : > { %v4618_v56 = vpop.f32.mrb[37].mxu0 }
 0x231   : > { %v4619_v42 = vadd.f32 %v4618_v56, %v4617_v55  ;;  %v4620_v51 = vpop.f32.mrb[38].mxu0  ;;  %v3794_v57 = vpop.f32.mrb[36].mxu1 }
 0x232   : > { %v4621_v58 = vpop.f32.mrb[39].mxu0  ;;  %v4650_v59 = vpop.f32.mrb[37].mxu1 }
 0x233   : > { %v3755_v60 = vadd.f32 %v4619_v42, %v3715_v54  ;;  %v3797_v61 = vpop.f32.mrb[38].mxu1  ;;  %3806 = sbr.rel (%p4202_p9) target bundleno = 578 (0x242), region = 36 }
 0x234   : > { %v4651_v63 = vpop.f32.mrb[39].mxu1 }
 0x235   : > { %v3795_v0 = vadd.f32 %v3794_v57, %v3755_v60 }
 0x237   : > { %v3800_v1 = vadd.f32 %v3795_v0, %v210_v62 }
 0x239   : > { %3802 = vst.msk [vmem:[#allocation2] sm:$0x3] %vm3801_vm2, %v3800_v1 }
 0x240   : > { %v3807_v2 = vld [vmem:[#allocation2] sm:$0x3] }
 0x241   : > { %3808 = vst.msk [vmem:[%s5118_s30] sm:$0x3] %vm3801_vm2, %v3807_v2 }
 0x242 PF: > { %s12_s13 = sadd.s32 1, %s5051_s13   ;;  %s5530_s9 = smov %s5043_s11 }
 0x243   : > { %p9_p10 = scmp.ge.s32.totalorder %s12_s13, 14   ;;  %s5531_s10 = smov %s5047_s12 }
 0x244   : > { %s5532_s11 = smov %s5535_s14  ;;  %s5533_s12 = smov %s5539_s15 }
 0x245   :  { %11 = sbr.rel (!%p9_p10) target bundleno = 3 (0x3), region = 69 }

// kernel: multimodal_forward.16
= control target key start
LH: loop header
LB: loop body
LE: loop exit
PB: predicated region body
PF: predicated region fallthrough
CT: control target
= control target key end

     0   :  { %vm18_vm0 = vcmask 25600   ;;  %v189_v0 = vmov 0.0|0.0   ;;  %v190_v4 = vmov 0.0   ;;  %vm191_vm1 = vmmov 0   ;;  %s257_s1 = inlined_call_operand.vmem [shape: f32[84,4], index: 1, kind: input, shape index: {}]   ;;  %s258_s0 = inlined_call_operand.vmem [shape: f32[2,84], index: 0, kind: input, shape index: {}]   ;;  %s259_s2 = inlined_call_operand.vmem [shape: f32[1,4], index: 2, kind: input, shape index: {}]   ;;  %s260_s3 = inlined_call_operand.vmem [shape: f32[2,4], index: 3, kind: output, shape index: {}]  }
   0x1   :  { %171 = vmatprep.subr.bf16.mxu0 %v189_v0  ;;  %v22_v1 = vld [vmem:[%s257_s1] sm:$0xff]  ;;  %v23_v2 = vld [vmem:[%s257_s1 + $0x8] sm:$0xff]  ;;  %v24_v3 = vld [vmem:[%s257_s1 + $0x10] sm:$0xff]  ;;  %19 = vst.msk [vmem:[#allocation2] sm:$0x3] %vm18_vm0, %v190_v4  ;;  %168 = vmatprep.mubr.msk.f32.mxu0 %vm191_vm1, %v190_v4  ;;  %vm37_vm2 = vcmask 1043456  }
   0x2   :  { %v172_v5 = vpack.c.bf16 %v23_v2, %v22_v1  ;;  %v25_v6 = vld [vmem:[%s257_s1 + $0x18] sm:$0xff]  ;;  %v26_v8 = vld [vmem:[%s257_s1 + $0x20] sm:$0xff]  ;;  %v27_v9 = vld [vmem:[%s257_s1 + $0x28] sm:$0xff]  ;;  %vm33_vm3 = vcmask 687104  }
   0x3   :  { %v175_v7 = vpack.c.bf16 %v25_v6, %v24_v3  ;;  %v178_v10 = vpack.c.bf16 %v27_v9, %v26_v8  ;;  %v28_v11 = vld [vmem:[%s257_s1 + $0x30] sm:$0xff]  ;;  %v29_v12 = vld [vmem:[%s257_s1 + $0x38] sm:$0xff]  ;;  %v30_v14 = vld [vmem:[%s257_s1 + $0x40] sm:$0xff] }
   0x4   :  { %173 = vmatpush3.bf16.msra.mxu0 %v172_v5  ;;  %v181_v13 = vpack.c.bf16 %v29_v12, %v28_v11  ;;  %v31_v15 = vld [vmem:[%s257_s1 + $0x48] sm:$0xff]  ;;  %v32_v17 = vld [vmem:[%s257_s1 + $0x50] sm:$0xf]  ;;  %v21_v18 = vld [vmem:[%s258_s0] sm:$0x3] }
   0x5   :  { %174 = vmatprep.subr.bf16.mxu0 %v189_v0  ;;  %v184_v16 = vpack.c.bf16 %v31_v15, %v30_v14  ;;  %v133_v23 = vld [vmem:[%s259_s2] ss:$0 sm:$0xff] }
   0x8   :  { %176 = vmatpush3.bf16.msra.mxu0 %v175_v7  ;;  %v20_v19 = vld [vmem:[#allocation2] sm:$0x3] }
   0x9   :  { %177 = vmatprep.subr.bf16.mxu0 %v189_v0 }
   0xc   :  { %179 = vmatpush3.bf16.msra.mxu0 %v178_v10 }
   0xd   :  { %180 = vmatprep.subr.bf16.mxu0 %v189_v0 }
  0x10   :  { %182 = vmatpush3.bf16.msra.mxu0 %v181_v13 }
  0x11   :  { %183 = vmatprep.subr.bf16.mxu0 %v189_v0 }
  0x14   :  { %185 = vmatpush3.bf16.msra.mxu0 %v184_v16 }
  0x15   :  { %166 = vmatprep.subr.mxu0 %v190_v4 }
  0x18   :  { %167 = vmatpush3.msk.msra.mxu0 %vm37_vm2, %v32_v17 }
  0x19   :  { %169 = vmatmul.mubr.msk.f32.vlgmr.msra.gmra.mrb[0].mxu0 %vm33_vm3, %v21_v18 }
  0xec   :  { %v107_v20 = vpop.f32.mrb[0].mxu0 }
  0xed   :  { %v111_v21 = vadd.f32 %v107_v20, %v20_v19  ;;  %v170_v22 = vpop.f32.mrb[1].mxu0 }
  0xef   :  { %113 = vst.msk [vmem:[#allocation2] sm:$0x3] %vm18_vm0, %v111_v21 }
  0xf6   :  { %v117_v24 = vld [vmem:[#allocation2] sm:$0x3] }
  0xf7   :  { %v125_v25 = vadd.f32 %v133_v23, %v117_v24 }
  0xf9   :  { %126 = vst.msk [vmem:[%s260_s3] sm:$0x3] %vm18_vm0, %v125_v25 }

// kernel: multimodal_forward.9
= control target key start
LH: loop header
LB: loop body
LE: loop exit
PB: predicated region body
PF: predicated region fallthrough
CT: control target
= control target key end

     0   :  { %vm28_vm0 = vcmask 261120   ;;  %s209_s1 = inlined_call_operand.vmem [shape: f32[32,128], index: 1, kind: input, shape index: {}]   ;;  %s210_s0 = inlined_call_operand.vmem [shape: f32[16,32], index: 0, kind: input, shape index: {}]   ;;  %s211_s2 = inlined_call_operand.vmem [shape: f32[1,128], index: 2, kind: input, shape index: {}]   ;;  %s212_s3 = inlined_call_operand.vmem [shape: f32[16,128], index: 3, kind: output, shape index: {}]  }
   0x1   :  { %v24_v0 = vld [vmem:[%s209_s1] sm:$0xff]  ;;  %v25_v1 = vld [vmem:[%s209_s1 + $0x8] sm:$0xff]  ;;  %v26_v2 = vld [vmem:[%s209_s1 + $0x10] sm:$0xff] }
   0x2   :  { %v154_v3 = vpack.c.bf16 %v25_v1, %v24_v0  ;;  %v27_v4 = vld [vmem:[%s209_s1 + $0x18] sm:$0xff]  ;;  %v22_v5 = vld [vmem:[%s210_s0] sm:$0xff]  ;;  %v23_v7 = vld [vmem:[%s210_s0 + $0x8] sm:$0xff] }
   0x3   :  { %v158_v6 = vpack.c.bf16 %v27_v4, %v26_v2  ;;  %151 = vmatprep.mubr.msk.f32.mxu0 %vm28_vm0, %v22_v5  ;;  %v136_v8 = vld [vmem:[%s211_s2] ss:$0 sm:$0xff] }
   0x4   :  { %155 = vmatprep.subr.bf16.mxu0 %v154_v3 }
   0x5   :  { %157 = vmatpush3.bf16.msra.mxu0 %v154_v3 }
   0x6   :  { %159 = vmatprep.subr.bf16.mxu0 %v158_v6 }
   0x9   :  { %161 = vmatpush3.bf16.msra.mxu0 %v158_v6 }
   0xc   :  { %152 = vmatmul.mubr.msk.f32.vlgmr.msra.gmra.mrb[0].mxu0 %vm28_vm0, %v23_v7 }
  0xdf   :  { %v153_v9 = vpop.f32.mrb[0].mxu0 }
  0xe0   :  { %v127_v10 = vadd.f32 %v153_v9, %v136_v8  ;;  %v101_v11 = vpop.f32.mrb[1].mxu0 }
  0xe1   :  { %v126_v12 = vadd.f32 %v136_v8, %v101_v11 }
  0xe2   :  { %129 = vst [vmem:[%s212_s3 + $0x8] sm:$0xff] %v127_v10 }
  0xe3   :  { %128 = vst [vmem:[%s212_s3] sm:$0xff] %v126_v12 }

// kernel: multimodal_forward.10
= control target key start
LH: loop header
LB: loop body
LE: loop exit
PB: predicated region body
PF: predicated region fallthrough
CT: control target
= control target key end

     0   :  { %v1090_v0 = vmov 0.0|0.0   ;;  %vm1091_vm0 = vmmov 0   ;;  %v1092_v4 = vmov 0.0   ;;  %s1093_s18 = smov 64   ;;  %s1094_s19 = smov 32   ;;  %vm16_vm1 = vcmask 261120   ;;  %s1241_s1 = inlined_call_operand.vmem [shape: f32[32,128], index: 1, kind: input, shape index: {}]   ;;  %s1242_s0 = inlined_call_operand.vmem [shape: f32[8,2,128], index: 0, kind: input, shape index: {}]   ;;  %s1243_s2 = inlined_call_operand.vmem [shape: f32[2,32], index: 2, kind: output, shape index: {}]  }
   0x1   :  { %973 = vmatprep.subr.bf16.mxu0 %v1090_v0  ;;  %v12_v1 = vld [vmem:[%s1241_s1] sm:$0xff]  ;;  %v13_v2 = vld [vmem:[%s1241_s1 + $0x8] sm:$0xff]  ;;  %v14_v3 = vld [vmem:[%s1241_s1 + $0x10] sm:$0xff]  ;;  %893 = vmatprep.mubr.msk.f32.mxu0 %vm1091_vm0, %v1092_v4  ;;  %vm825_vm2 = vcmask 254976  }
   0x2   :  { %v1122_v5 = vpack.c.bf16 %v13_v2, %v12_v1  ;;  %v15_v6 = vld [vmem:[%s1241_s1 + $0x18] sm:$0xff]  ;;  %979 = vmatprep.subr.bf16.mxu1 %v1090_v0  ;;  %904 = vmatprep.mubr.msk.f32.mxu1 %vm1091_vm0, %v1092_v4  ;;  %v11_v8 = vld [vmem:[%s1242_s0] sm:$0x3]  ;;  %v831_v27 = vld [vmem:[%s1242_s0 + $0x2] sm:$0x3] }
   0x3   :  { %v1131_v7 = vpack.c.bf16 %v15_v6, %v14_v3  ;;  %v833_v46 = vld [vmem:[%s1242_s0 + $0x4] sm:$0x3]  ;;  %v835_v2 = vld [vmem:[%s1242_s0 + $0x6] sm:$0x3] }
   0x4   :  { %975 = vmatpush3.bf16.msra.mxu0 %v1122_v5  ;;  %981 = vmatpush3.bf16.msra.mxu1 %v1122_v5 }
   0x5   :  { %976 = vmatprep.subr.bf16.mxu0 %v1090_v0  ;;  %982 = vmatprep.subr.bf16.mxu1 %v1090_v0 }
   0x8   :  { %978 = vmatpush3.bf16.msra.mxu0 %v1131_v7  ;;  %984 = vmatpush3.bf16.msra.mxu1 %v1131_v7 }
   0x9   :  { %985 = vmatprep.subr.bf16.mxu0 %v1090_v0  ;;  %991 = vmatprep.subr.bf16.mxu1 %v1090_v0 }
   0xb   :  { %894 = vmatmul.mubr.f32.vlgmr.msra.gmra.mrb[0].mxu0 %v1092_v4 }
   0xc   :  { %987 = vmatpush3.bf16.msra.mxu0 %v1122_v5  ;;  %915 = vmatprep.mubr.msk.f32.mxu0 %vm1091_vm0, %v1092_v4 }
   0xd   :  { %988 = vmatprep.subr.bf16.mxu0 %v1090_v0 }
  0x10   :  { %990 = vmatpush3.bf16.msra.mxu0 %v1131_v7 }
  0x11   :  { %997 = vmatprep.subr.bf16.mxu0 %v1090_v0 }
  0xde   :  { %v86_v9 = vpop.f32.mrb[0].mxu0 }
  0xdf   :  { %v90_v10 = vadd.f32 %v86_v9, %v11_v8  ;;  %v895_v11 = vpop.f32.mrb[1].mxu0 }
  0xe1   :  { %1026 = vtanh.f32 %v90_v10  ;;  %v91_v13 = vsub.f32 0.0, %v90_v10 }
  0xe3   :  { %v92_v14 = vmul.f32 1.442695, %v91_v13 }
  0xe5   :  { %1028 = vpow2.f32 %v92_v14 }
  0xeb   :  { %v1027_v12 = vpop.eup %1026 }
  0xec   :  { %99 = vrot.lane.b32.xlu0 %v1027_v12, %s1093_s18 }
  0xef   :  { %v1029_v15 = vpop.eup %1028 }
  0xf0   :  { %v94_v16 = vadd.f32 1.0, %v1029_v15 }
  0xf2   :  { %1030 = vrcp.f32 %v94_v16 }
  0xfc   :  { %v1031_v17 = vpop.eup %1030 }
  0xfd   :  { %v97_v20 = vmul.f32 0.0, %v1031_v17 }
 0x15e   :  { %v100_v18 = vpop.permute.xlu0 %99 }
 0x15f   :  { %v102_v19 = vmul.f32 %v1031_v17, %v100_v18 }
 0x161   :  { %104 = vrot.lane.b32.xlu0 %v102_v19, %s1094_s19 }
 0x1d3   :  { %v105_v21 = vpop.permute.xlu0 %104 }
 0x1d4   :  { %v107_v22 = vadd.f32 %v105_v21, %v97_v20 }
 0x1d6   :  { %1032 = vtanh.f32 %v107_v22 }
 0x1e0   :  { %v1033_v23 = vpop.eup %1032 }
 0x1e1   :  { %110 = vrot.lane.b32.xlu1 %v1033_v23, %s1093_s18 }
 0x253   :  { %v111_v24 = vpop.permute.xlu1 %110 }
 0x254   :  { %v113_v25 = vmul.f32 %v1031_v17, %v111_v24  ;;  %v837_v24 = vld [vmem:[%s1242_s0 + $0x8] sm:$0x3] }
 0x256   :  { %117 = vrot.lane.b32.xlu1 %v113_v25, %s1094_s19 }
 0x2c8   :  { %v118_v26 = vpop.permute.xlu1 %117 }
 0x2c9   :  { %905 = vmatmul.mubr.msk.f32.vlgmr.msra.gmra.mrb[0].mxu1 %vm16_vm1, %v118_v26 }
 0x2ca   :  { %993 = vmatpush3.bf16.msra.mxu1 %v1122_v5  ;;  %926 = vmatprep.mubr.msk.f32.mxu1 %vm1091_vm0, %v1092_v4 }
 0x2cb   :  { %994 = vmatprep.subr.bf16.mxu1 %v1090_v0 }
 0x2ce   :  { %996 = vmatpush3.bf16.msra.mxu1 %v1131_v7 }
 0x2cf   :  { %1003 = vmatprep.subr.bf16.mxu1 %v1090_v0 }
 0x39c   :  { %v187_v28 = vpop.f32.mrb[0].mxu1 }
 0x39d   :  { %v191_v29 = vadd.f32 %v831_v27, %v187_v28  ;;  %v906_v30 = vpop.f32.mrb[1].mxu1 }
 0x39f   :  { %1034 = vtanh.f32 %v191_v29  ;;  %v192_v32 = vsub.f32 0.0, %v191_v29 }
 0x3a1   :  { %v193_v33 = vmul.f32 1.442695, %v192_v32 }
 0x3a3   :  { %1036 = vpow2.f32 %v193_v33 }
 0x3a9   :  { %v1035_v31 = vpop.eup %1034 }
 0x3aa   :  { %200 = vrot.lane.b32.xlu0 %v1035_v31, %s1093_s18 }
 0x3ad   :  { %v1037_v34 = vpop.eup %1036 }
 0x3ae   :  { %v195_v35 = vadd.f32 1.0, %v1037_v34 }
 0x3b0   :  { %1038 = vrcp.f32 %v195_v35 }
 0x3ba   :  { %v1039_v36 = vpop.eup %1038 }
 0x3bb   :  { %v198_v39 = vmul.f32 %v1039_v36, %v107_v22 }
 0x41c   :  { %v201_v37 = vpop.permute.xlu0 %200 }
 0x41d   :  { %v203_v38 = vmul.f32 %v1039_v36, %v201_v37 }
 0x41f   :  { %205 = vrot.lane.b32.xlu1 %v203_v38, %s1094_s19 }
 0x491   :  { %v206_v40 = vpop.permute.xlu1 %205 }
 0x492   :  { %v208_v41 = vadd.f32 %v206_v40, %v198_v39 }
 0x494   :  { %1040 = vtanh.f32 %v208_v41 }
 0x49e   :  { %v1041_v42 = vpop.eup %1040 }
 0x49f   :  { %211 = vrot.lane.b32.xlu0 %v1041_v42, %s1093_s18 }
 0x511   :  { %v212_v43 = vpop.permute.xlu0 %211 }
 0x512   :  { %v214_v44 = vmul.f32 %v1039_v36, %v212_v43  ;;  %v839_v43 = vld [vmem:[%s1242_s0 + $0xa] sm:$0x3] }
 0x514   :  { %218 = vrot.lane.b32.xlu1 %v214_v44, %s1094_s19 }
 0x586   :  { %v219_v45 = vpop.permute.xlu1 %218 }
 0x587   :  { %916 = vmatmul.mubr.msk.f32.vlgmr.msra.gmra.mrb[2].mxu0 %vm16_vm1, %v219_v45 }
 0x588   :  { %999 = vmatpush3.bf16.msra.mxu0 %v1122_v5  ;;  %937 = vmatprep.mubr.msk.f32.mxu0 %vm1091_vm0, %v1092_v4 }
 0x589   :  { %1000 = vmatprep.subr.bf16.mxu0 %v1090_v0 }
 0x58c   :  { %1002 = vmatpush3.bf16.msra.mxu0 %v1131_v7 }
 0x58d   :  { %1009 = vmatprep.subr.bf16.mxu0 %v1090_v0 }
 0x65a   :  { %v288_v47 = vpop.f32.mrb[2].mxu0 }
 0x65b   :  { %v292_v48 = vadd.f32 %v833_v46, %v288_v47  ;;  %v917_v49 = vpop.f32.mrb[3].mxu0 }
 0x65d   :  { %1042 = vtanh.f32 %v292_v48  ;;  %v293_v51 = vsub.f32 0.0, %v292_v48 }
 0x65f   :  { %v294_v52 = vmul.f32 1.442695, %v293_v51 }
 0x661   :  { %1044 = vpow2.f32 %v294_v52 }
 0x667   :  { %v1043_v50 = vpop.eup %1042 }
 0x668   :  { %301 = vrot.lane.b32.xlu0 %v1043_v50, %s1093_s18 }
 0x66b   :  { %v1045_v53 = vpop.eup %1044 }
 0x66c   :  { %v296_v54 = vadd.f32 1.0, %v1045_v53 }
 0x66e   :  { %1046 = vrcp.f32 %v296_v54 }
 0x678   :  { %v1047_v55 = vpop.eup %1046 }
 0x679   :  { %v299_v58 = vmul.f32 %v1047_v55, %v208_v41 }
 0x6da   :  { %v302_v56 = vpop.permute.xlu0 %301 }
 0x6db   :  { %v304_v57 = vmul.f32 %v1047_v55, %v302_v56 }
 0x6dd   :  { %306 = vrot.lane.b32.xlu1 %v304_v57, %s1094_s19 }
 0x74f   :  { %v307_v59 = vpop.permute.xlu1 %306 }
 0x750   :  { %v309_v60 = vadd.f32 %v307_v59, %v299_v58  ;;  %v841_v58 = vld [vmem:[%s1242_s0 + $0xc] sm:$0x3] }
 0x752   :  { %1048 = vtanh.f32 %v309_v60 }
 0x75c   :  { %v1049_v61 = vpop.eup %1048 }
 0x75d   :  { %312 = vrot.lane.b32.xlu0 %v1049_v61, %s1093_s18 }
 0x7cf   :  { %v313_v62 = vpop.permute.xlu0 %312 }
 0x7d0   :  { %v315_v63 = vmul.f32 %v1047_v55, %v313_v62 }
 0x7d2   :  { %319 = vrot.lane.b32.xlu1 %v315_v63, %s1094_s19 }
 0x844   :  { %v320_v1 = vpop.permute.xlu1 %319 }
 0x845   :  { %927 = vmatmul.mubr.msk.f32.vlgmr.msra.gmra.mrb[2].mxu1 %vm16_vm1, %v320_v1 }
 0x846   :  { %1005 = vmatpush3.bf16.msra.mxu1 %v1122_v5  ;;  %948 = vmatprep.mubr.msk.f32.mxu1 %vm1091_vm0, %v1092_v4 }
 0x847   :  { %1006 = vmatprep.subr.bf16.mxu1 %v1090_v0 }
 0x84a   :  { %1008 = vmatpush3.bf16.msra.mxu1 %v1131_v7 }
 0x84b   :  { %1015 = vmatprep.subr.bf16.mxu1 %v1090_v0 }
 0x918   :  { %v389_v3 = vpop.f32.mrb[2].mxu1 }
 0x919   :  { %v393_v6 = vadd.f32 %v835_v2, %v389_v3  ;;  %v928_v8 = vpop.f32.mrb[3].mxu1 }
 0x91b   :  { %1050 = vtanh.f32 %v393_v6  ;;  %v394_v10 = vsub.f32 0.0, %v393_v6 }
 0x91d   :  { %v395_v11 = vmul.f32 1.442695, %v394_v10 }
 0x91f   :  { %1052 = vpow2.f32 %v395_v11 }
 0x925   :  { %v1051_v9 = vpop.eup %1050 }
 0x926   :  { %402 = vrot.lane.b32.xlu0 %v1051_v9, %s1093_s18 }
 0x929   :  { %v1053_v12 = vpop.eup %1052 }
 0x92a   :  { %v397_v13 = vadd.f32 1.0, %v1053_v12 }
 0x92c   :  { %1054 = vrcp.f32 %v397_v13 }
 0x936   :  { %v1055_v14 = vpop.eup %1054 }
 0x937   :  { %v400_v17 = vmul.f32 %v1055_v14, %v309_v60 }
 0x998   :  { %v403_v15 = vpop.permute.xlu0 %402 }
 0x999   :  { %v405_v16 = vmul.f32 %v1055_v14, %v403_v15 }
 0x99b   :  { %407 = vrot.lane.b32.xlu1 %v405_v16, %s1094_s19 }
 0xa0d   :  { %v408_v18 = vpop.permute.xlu1 %407 }
 0xa0e   :  { %v410_v19 = vadd.f32 %v408_v18, %v400_v17  ;;  %v843_v17 = vld [vmem:[%s1242_s0 + $0xe] sm:$0x3] }
 0xa10   :  { %1056 = vtanh.f32 %v410_v19 }
 0xa1a   :  { %v1057_v20 = vpop.eup %1056 }
 0xa1b   :  { %413 = vrot.lane.b32.xlu0 %v1057_v20, %s1093_s18 }
 0xa8d   :  { %v414_v21 = vpop.permute.xlu0 %413 }
 0xa8e   :  { %v416_v22 = vmul.f32 %v1055_v14, %v414_v21 }
 0xa90   :  { %420 = vrot.lane.b32.xlu1 %v416_v22, %s1094_s19 }
 0xb02   :  { %v421_v23 = vpop.permute.xlu1 %420 }
 0xb03   :  { %938 = vmatmul.mubr.msk.f32.vlgmr.msra.gmra.mrb[4].mxu0 %vm16_vm1, %v421_v23 }
 0xb04   :  { %1011 = vmatpush3.bf16.msra.mxu0 %v1122_v5  ;;  %959 = vmatprep.mubr.msk.f32.mxu0 %vm1091_vm0, %v1092_v4 }
 0xb05   :  { %1012 = vmatprep.subr.bf16.mxu0 %v1090_v0 }
 0xb08   :  { %1014 = vmatpush3.bf16.msra.mxu0 %v1131_v7 }
 0xbd6   :  { %v490_v25 = vpop.f32.mrb[4].mxu0 }
 0xbd7   :  { %v494_v26 = vadd.f32 %v837_v24, %v490_v25  ;;  %v939_v27 = vpop.f32.mrb[5].mxu0 }
 0xbd9   :  { %1058 = vtanh.f32 %v494_v26  ;;  %v495_v29 = vsub.f32 0.0, %v494_v26 }
 0xbdb   :  { %v496_v30 = vmul.f32 1.442695, %v495_v29 }
 0xbdd   :  { %1060 = vpow2.f32 %v496_v30 }
 0xbe3   :  { %v1059_v28 = vpop.eup %1058 }
 0xbe4   :  { %503 = vrot.lane.b32.xlu0 %v1059_v28, %s1093_s18 }
 0xbe7   :  { %v1061_v31 = vpop.eup %1060 }
 0xbe8   :  { %v498_v32 = vadd.f32 1.0, %v1061_v31 }
 0xbea   :  { %1062 = vrcp.f32 %v498_v32 }
 0xbf4   :  { %v1063_v33 = vpop.eup %1062 }
 0xbf5   :  { %v501_v36 = vmul.f32 %v1063_v33, %v410_v19 }
 0xc56   :  { %v504_v34 = vpop.permute.xlu0 %503 }
 0xc57   :  { %v506_v35 = vmul.f32 %v1063_v33, %v504_v34 }
 0xc59   :  { %508 = vrot.lane.b32.xlu1 %v506_v35, %s1094_s19 }
 0xccb   :  { %v509_v37 = vpop.permute.xlu1 %508 }
 0xccc   :  { %v511_v38 = vadd.f32 %v509_v37, %v501_v36 }
 0xcce   :  { %1064 = vtanh.f32 %v511_v38 }
 0xcd8   :  { %v1065_v39 = vpop.eup %1064 }
 0xcd9   :  { %514 = vrot.lane.b32.xlu0 %v1065_v39, %s1093_s18 }
 0xd4b   :  { %v515_v40 = vpop.permute.xlu0 %514 }
 0xd4c   :  { %v517_v41 = vmul.f32 %v1063_v33, %v515_v40 }
 0xd4e   :  { %521 = vrot.lane.b32.xlu1 %v517_v41, %s1094_s19 }
 0xdc0   :  { %v522_v42 = vpop.permute.xlu1 %521 }
 0xdc1   :  { %949 = vmatmul.mubr.msk.f32.vlgmr.msra.gmra.mrb[4].mxu1 %vm16_vm1, %v522_v42 }
 0xdc2   :  { %1017 = vmatpush3.bf16.msra.mxu1 %v1122_v5  ;;  %970 = vmatprep.mubr.msk.f32.mxu1 %vm1091_vm0, %v1092_v4 }
 0xdc3   :  { %1018 = vmatprep.subr.bf16.mxu1 %v1090_v0 }
 0xdc6   :  { %1020 = vmatpush3.bf16.msra.mxu1 %v1131_v7 }
 0xe94   :  { %v591_v44 = vpop.f32.mrb[4].mxu1 }
 0xe95   :  { %v595_v45 = vadd.f32 %v839_v43, %v591_v44  ;;  %v950_v46 = vpop.f32.mrb[5].mxu1 }
 0xe97   :  { %1066 = vtanh.f32 %v595_v45  ;;  %v596_v48 = vsub.f32 0.0, %v595_v45 }
 0xe99   :  { %v597_v5 = vmul.f32 1.442695, %v596_v48 }
 0xe9b   :  { %1068 = vpow2.f32 %v597_v5 }
 0xea1   :  { %v1067_v47 = vpop.eup %1066 }
 0xea2   :  { %604 = vrot.lane.b32.xlu0 %v1067_v47, %s1093_s18 }
 0xea5   :  { %v1069_v49 = vpop.eup %1068 }
 0xea6   :  { %v599_v4 = vadd.f32 1.0, %v1069_v49 }
 0xea8   :  { %1070 = vrcp.f32 %v599_v4 }
 0xeb2   :  { %v1071_v0 = vpop.eup %1070 }
 0xeb3   :  { %v602_v51 = vmul.f32 %v1071_v0, %v511_v38 }
 0xf14   :  { %v605_v50 = vpop.permute.xlu0 %604 }
 0xf15   :  { %v607_v7 = vmul.f32 %v1071_v0, %v605_v50 }
 0xf17   :  { %609 = vrot.lane.b32.xlu1 %v607_v7, %s1094_s19 }
 0xf89   :  { %v610_v52 = vpop.permute.xlu1 %609 }
 0xf8a   :  { %v612_v53 = vadd.f32 %v610_v52, %v602_v51 }
 0xf8c   :  { %1072 = vtanh.f32 %v612_v53 }
 0xf96   :  { %v1073_v54 = vpop.eup %1072 }
 0xf97   :  { %615 = vrot.lane.b32.xlu0 %v1073_v54, %s1093_s18 }
0x1009   :  { %v616_v55 = vpop.permute.xlu0 %615 }
0x100a   :  { %v618_v56 = vmul.f32 %v1071_v0, %v616_v55 }
0x100c   :  { %622 = vrot.lane.b32.xlu1 %v618_v56, %s1094_s19 }
0x107e   :  { %v623_v57 = vpop.permute.xlu1 %622 }
0x107f   :  { %960 = vmatmul.mubr.msk.f32.vlgmr.msra.gmra.mrb[6].mxu0 %vm16_vm1, %v623_v57 }
0x1152   :  { %v692_v59 = vpop.f32.mrb[6].mxu0 }
0x1153   :  { %v696_v60 = vadd.f32 %v841_v58, %v692_v59  ;;  %v961_v61 = vpop.f32.mrb[7].mxu0 }
0x1155   :  { %1074 = vtanh.f32 %v696_v60  ;;  %v697_v63 = vsub.f32 0.0, %v696_v60 }
0x1157   :  { %v698_v1 = vmul.f32 1.442695, %v697_v63 }
0x1159   :  { %1076 = vpow2.f32 %v698_v1 }
0x115f   :  { %v1075_v62 = vpop.eup %1074 }
0x1160   :  { %705 = vrot.lane.b32.xlu0 %v1075_v62, %s1093_s18 }
0x1163   :  { %v1077_v2 = vpop.eup %1076 }
0x1164   :  { %v700_v3 = vadd.f32 1.0, %v1077_v2 }
0x1166   :  { %1078 = vrcp.f32 %v700_v3 }
0x1170   :  { %v1079_v6 = vpop.eup %1078 }
0x1171   :  { %v703_v10 = vmul.f32 %v1079_v6, %v612_v53 }
0x11d2   :  { %v706_v8 = vpop.permute.xlu0 %705 }
0x11d3   :  { %v708_v9 = vmul.f32 %v1079_v6, %v706_v8 }
0x11d5   :  { %710 = vrot.lane.b32.xlu1 %v708_v9, %s1094_s19 }
0x1247   :  { %v711_v11 = vpop.permute.xlu1 %710 }
0x1248   :  { %v713_v12 = vadd.f32 %v711_v11, %v703_v10 }
0x124a   :  { %1080 = vtanh.f32 %v713_v12 }
0x1254   :  { %v1081_v13 = vpop.eup %1080 }
0x1255   :  { %716 = vrot.lane.b32.xlu0 %v1081_v13, %s1093_s18 }
0x12c7   :  { %v717_v14 = vpop.permute.xlu0 %716 }
0x12c8   :  { %v719_v15 = vmul.f32 %v1079_v6, %v717_v14 }
0x12ca   :  { %723 = vrot.lane.b32.xlu1 %v719_v15, %s1094_s19 }
0x133c   :  { %v724_v16 = vpop.permute.xlu1 %723 }
0x133d   :  { %971 = vmatmul.mubr.msk.f32.vlgmr.msra.gmra.mrb[6].mxu1 %vm16_vm1, %v724_v16 }
0x1410   :  { %v793_v18 = vpop.f32.mrb[6].mxu1 }
0x1411   :  { %v797_v19 = vadd.f32 %v843_v17, %v793_v18  ;;  %v972_v20 = vpop.f32.mrb[7].mxu1 }
0x1413   :  { %1082 = vtanh.f32 %v797_v19  ;;  %v798_v22 = vsub.f32 0.0, %v797_v19 }
0x1415   :  { %v799_v23 = vmul.f32 1.442695, %v798_v22 }
0x1417   :  { %1084 = vpow2.f32 %v799_v23 }
0x141d   :  { %v1083_v21 = vpop.eup %1082 }
0x141e   :  { %806 = vrot.lane.b32.xlu0 %v1083_v21, %s1093_s18 }
0x1421   :  { %v1085_v24 = vpop.eup %1084 }
0x1422   :  { %v801_v25 = vadd.f32 1.0, %v1085_v24 }
0x1424   :  { %1086 = vrcp.f32 %v801_v25 }
0x142e   :  { %v1087_v26 = vpop.eup %1086 }
0x142f   :  { %v804_v29 = vmul.f32 %v1087_v26, %v713_v12 }
0x1490   :  { %v807_v27 = vpop.permute.xlu0 %806 }
0x1491   :  { %v809_v28 = vmul.f32 %v1087_v26, %v807_v27 }
0x1493   :  { %811 = vrot.lane.b32.xlu1 %v809_v28, %s1094_s19 }
0x1505   :  { %v812_v30 = vpop.permute.xlu1 %811 }
0x1506   :  { %v814_v31 = vadd.f32 %v812_v30, %v804_v29 }
0x1508   :  { %1088 = vtanh.f32 %v814_v31 }
0x1512   :  { %v1089_v32 = vpop.eup %1088 }
0x1513   :  { %817 = vrot.lane.b32.xlu0 %v1089_v32, %s1093_s18 }
0x1585   :  { %v818_v33 = vpop.permute.xlu0 %817 }
0x1586   :  { %v820_v34 = vmul.f32 %v1087_v26, %v818_v33 }
0x1588   :  { %822 = vrot.lane.b32.xlu1 %v820_v34, %s1094_s19 }
0x15fa   :  { %v823_v35 = vpop.permute.xlu1 %822 }
0x15fb   :  { %826 = vst.msk [vmem:[%s1243_s2] sm:$0x3] %vm825_vm2, %v823_v35 }

// kernel: multimodal_forward.11
= control target key start
LH: loop header
LB: loop body
LE: loop exit
PB: predicated region body
PF: predicated region fallthrough
CT: control target
= control target key end

     0   :  { %vm18_vm0 = vcmask 25600   ;;  %v147_v0 = vmov 0.0|0.0   ;;  %v148_v4 = vmov 0.0   ;;  %vm149_vm1 = vmmov 0   ;;  %s194_s1 = inlined_call_operand.vmem [shape: f32[32,4], index: 1, kind: input, shape index: {}]   ;;  %s195_s0 = inlined_call_operand.vmem [shape: f32[2,32], index: 0, kind: input, shape index: {}]   ;;  %s196_s2 = inlined_call_operand.vmem [shape: f32[1,4], index: 2, kind: input, shape index: {}]   ;;  %s197_s3 = inlined_call_operand.vmem [shape: f32[2,4], index: 3, kind: output, shape index: {}]  }
   0x1   :  { %138 = vmatprep.subr.bf16.mxu0 %v147_v0  ;;  %v22_v1 = vld [vmem:[%s194_s1] sm:$0xff]  ;;  %v23_v2 = vld [vmem:[%s194_s1 + $0x8] sm:$0xff]  ;;  %v24_v3 = vld [vmem:[%s194_s1 + $0x10] sm:$0xff]  ;;  %19 = vst.msk [vmem:[#allocation2] sm:$0x3] %vm18_vm0, %v148_v4  ;;  %135 = vmatprep.mubr.msk.f32.mxu0 %vm149_vm1, %v148_v4  ;;  %vm26_vm2 = vcmask 261120  }
   0x2   :  { %v139_v5 = vpack.c.bf16 %v23_v2, %v22_v1  ;;  %v25_v6 = vld [vmem:[%s194_s1 + $0x18] sm:$0xff]  ;;  %v21_v8 = vld [vmem:[%s195_s0] sm:$0x3] }
   0x3   :  { %v142_v7 = vpack.c.bf16 %v25_v6, %v24_v3  ;;  %v121_v13 = vld [vmem:[%s196_s2] ss:$0 sm:$0xff] }
   0x4   :  { %140 = vmatpush3.bf16.msra.mxu0 %v139_v5 }
   0x5   :  { %141 = vmatprep.subr.bf16.mxu0 %v147_v0 }
   0x8   :  { %143 = vmatpush3.bf16.msra.mxu0 %v142_v7  ;;  %v20_v9 = vld [vmem:[#allocation2] sm:$0x3] }
   0xb   :  { %136 = vmatmul.mubr.msk.f32.vlgmr.msra.gmra.mrb[0].mxu0 %vm26_vm2, %v21_v8 }
  0xde   :  { %v96_v10 = vpop.f32.mrb[0].mxu0 }
  0xdf   :  { %v100_v11 = vadd.f32 %v96_v10, %v20_v9  ;;  %v137_v12 = vpop.f32.mrb[1].mxu0 }
  0xe1   :  { %102 = vst.msk [vmem:[#allocation2] sm:$0x3] %vm18_vm0, %v100_v11 }
  0xe8   :  { %v106_v14 = vld [vmem:[#allocation2] sm:$0x3] }
  0xe9   :  { %v114_v15 = vadd.f32 %v121_v13, %v106_v14 }
  0xeb   :  { %115 = vst.msk [vmem:[%s197_s3] sm:$0x3] %vm18_vm0, %v114_v15 }

// kernel: multimodal_forward.17
= control target key start
LH: loop header
LB: loop body
LE: loop exit
PB: predicated region body
PF: predicated region fallthrough
CT: control target
= control target key end

     0   :  { %vm19_vm0 = vcmask 25600   ;;  %v164_v2 = vmov 0.0   ;;  %vm165_vm1 = vmmov 0   ;;  %vm24_vm2 = vcmask 64512   ;;  %s211_s0 = inlined_call_operand.vmem [shape: f32[2,8], index: 0, kind: input, shape index: {}]   ;;  %s212_s1 = inlined_call_operand.vmem [shape: f32[8,4], index: 1, kind: input, shape index: {}]   ;;  %s213_s2 = inlined_call_operand.vmem [shape: f32[1,4], index: 2, kind: input, shape index: {}]   ;;  %s214_s3 = inlined_call_operand.hbm [shape: f32[2,4], index: 3, kind: output, shape index: {}]  }
   0x1   :  { %v23_v0 = vld [vmem:[%s212_s1] sm:$0xff]  ;;  %20 = vst.msk [vmem:[#allocation2] sm:$0x3] %vm19_vm0, %v164_v2  ;;  %132 = vmatprep.subr.mxu0 %v164_v2  ;;  %134 = vmatprep.mubr.msk.f32.mxu0 %vm165_vm1, %v164_v2 }
   0x2   :  { %v22_v1 = vld [vmem:[%s211_s0] sm:$0x3] }
   0x3   :  { %8 = vsyncpa [#allocation4], 0  ;;  %133 = vmatpush3.msra.mxu0 %v23_v0  ;;  %v129_v7 = vld [vmem:[%s213_s2] ss:$0 sm:$0xff]  ;;  %s166_s0 = smov [#allocation3]  }
   0x4   :  { %135 = vmatmul.mubr.msk.f32.vlgmr.msra.gmra.mrb[0].mxu0 %vm24_vm2, %v22_v1  ;;  %s120_s17 = sshll.u32 %s166_s0, 4  ;;  %s121_s17 = int_to_ptr.vmem [resolvable:$true] %s120_s17 }
   0x5   :  { %s140_s18 = scalar_lea.vmem %s121_s17, 32  ;;  %p145_p1 = scmp.lt.s32.totalorder %s121_s17, %s121_s17 }
   0x6   :  { %p141_p0 = scmp.ne.s32.totalorder %s121_s17, %s140_s18  ;;  %p146_p2 = scmp.lt.s32.totalorder %s140_s18, %s140_s18 }
   0x8   :  { %v21_v3 = vld [vmem:[#allocation2] sm:$0x3]  ;;  %p147_p3 = por %p146_p2, %p145_p1 }
   0xa   :  { %p148_p4 = pnand %p147_p3, %p141_p0 }
  0xd7   :  { %v94_v4 = vpop.f32.mrb[0].mxu0 }
  0xd8   :  { %v98_v5 = vadd.f32 %v94_v4, %v21_v3  ;;  %v136_v6 = vpop.f32.mrb[1].mxu0 }
  0xda   :  { %100 = vst.msk [vmem:[#allocation2] sm:$0x3] %vm19_vm0, %v98_v5 }
  0xe1   :  { %v104_v8 = vld [vmem:[#allocation2] sm:$0x3] }
  0xe2   :  { %v112_v9 = vadd.f32 %v129_v7, %v104_v8 }
  0xe4   :  { %113 = vst.msk [vmem:[#allocation3] sm:$0x3] %vm19_vm0, %v112_v9 }
  0xe5   :  { %151 = shalt.err (!%p148_p4)
}
  0xe6   :  { %s152_s21 = scalar_lea.hbm %s214_s3, 32 }
  0xe7   :  { %p153_p5 = scmp.ne.s32.totalorder %s214_s3, %s152_s21  ;;  %p156_p6 = scmp.lt.u32.totalorder %s152_s21, %s214_s3 }
  0xe9   :  { %p158_p7 = pnand %p156_p6, %p153_p5 }
  0xeb   :  { %161 = shalt.err (!%p158_p7)
}
  0xec   :  { %123 = dma.vmem_to_hbm [thread:$0]  %s121_s17, 32, %s214_s3, [#allocation4]  }
  0xed   :  { %162 = dma.done.wait [#allocation4], 32  }
  0xee   :  { %163 = vsyncadd [#allocation4], 4294967264 }
  0xef   :  { %127 = vsyncpa [#allocation4], 1 }

</bundles_post_ra>
